<compile_context>
chip_gen: v6e
topology: v6e:2x2x1
jax: 0.10.0
libtpu: 0.0.40
codegen_flags: <defaults>
</compile_context>

<pallas_src>
import math

import jax
import jax.numpy as jnp
from jax import lax
from jax.experimental import pallas as pl
from jax.experimental.pallas import tpu as pltpu


def _sigmoid(x):
    # Single-EUP-op sigmoid (tanh form); used in both the kernel and the reference
    # so the matched-precision correctness check is apples-to-apples.
    return 0.5 * jnp.tanh(0.5 * x) + 0.5


# ---------------------------------------------------------------------------
# Fused 3-layer LSTM stack kernel.
# PyTorch gate order (i, f, g, o); h0 = c0 = 0; bias = b_ih + b_hh.
# Each grid step owns one batch tile of `bt` sequences; activations are stored
# time-major within the tile: row = t * bt + b.
# ---------------------------------------------------------------------------
def _make_stack_kernel(T, bt, dims, unroll):
    n_layers = len(dims)

    def kernel(x_ref, *refs):
        w_refs = refs[:3 * n_layers]
        y_ref = refs[3 * n_layers]
        gx, act_a, act_b = refs[3 * n_layers + 1:]
        acts = (act_a, act_b)

        for l in range(n_layers):
            fin, hid = dims[l]
            wih_t = w_refs[3 * l]        # (fin, 4*hid)  bf16
            whh_t = w_refs[3 * l + 1]    # (hid, 4*hid)  bf16
            b = w_refs[3 * l + 2]        # (1, 4*hid)    f32 (= b_ih + b_hh)
            in_ref = x_ref if l == 0 else acts[(l - 1) % 2]
            out_ref = y_ref if l == n_layers - 1 else acts[l % 2]

            # (1) Hoisted input projection: one (T*bt, fin) @ (fin, 4*hid) bf16 MXU
            #     matmul with f32 accumulation + fused bias for the whole sequence.
            xin = in_ref[:, 0:fin]                                   # bf16
            gx[:, 0:4 * hid] = (
                jnp.dot(xin, wih_t[...],
                        preferred_element_type=jnp.float32) + b[...])

            # (2) Recurrence: per step only h @ W_hh^T (bf16 MXU, f32 accum) plus
            #     f32 gate math; h/c stay in vregs as loop carries, one store/step.
            def step(t, carry):
                h, c = carry
                row = pl.multiple_of(t * bt, bt)     # bt is a multiple of 8
                g = gx[pl.ds(row, bt), 0:4 * hid] + jnp.dot(
                    h.astype(jnp.bfloat16), whh_t[...],
                    preferred_element_type=jnp.float32)
                i_g = _sigmoid(g[:, 0:hid])
                f_g = _sigmoid(g[:, hid:2 * hid])
                g_g = jnp.tanh(g[:, 2 * hid:3 * hid])
                o_g = _sigmoid(g[:, 3 * hid:4 * hid])
                c = f_g * c + i_g * g_g
                h = o_g * jnp.tanh(c)
                out_ref[pl.ds(row, bt), 0:hid] = h.astype(out_ref.dtype)
                return (h, c)

            zeros = jnp.zeros((bt, hid), jnp.float32)
            lax.fori_loop(0, T, step, (zeros, zeros), unroll=unroll)
            # TODO(synk): interleave layer l+1's gx projection with this
            # recurrence (chunked) to fill the idle MXU slots.

    return kernel


def lstm_stack(x_tiles, layer_params, T, bt):
    """x_tiles: (nbt, T*bt, E) bf16, time-major within each batch tile.

    Returns (nbt, T*bt, E_out) bf16 final-layer hidden states."""
    nbt, n_rows, e_in = x_tiles.shape
    assert n_rows == T * bt
    dims = [(lp["w_ih"].shape[1], lp["w_hh"].shape[1]) for lp in layer_params]
    out_dim = dims[-1][1]
    max_hid = max(h for _, h in dims)
    act_w = max(h for _, h in dims[:-1])

    flat_w = []
    for lp in layer_params:
        hid = lp["w_hh"].shape[1]
        flat_w += [
            jnp.transpose(lp["w_ih"]).astype(jnp.bfloat16),            # (fin, 4H)
            jnp.transpose(lp["w_hh"]).astype(jnp.bfloat16),            # (H, 4H)
            (lp["b_ih"] + lp["b_hh"]).reshape(1, 4 * hid).astype(jnp.float32),
        ]

    def nbytes(shape, dtype):
        return math.prod(shape) * jnp.dtype(dtype).itemsize

    scratch = [pltpu.VMEM((n_rows, 4 * max_hid), jnp.float32),   # shared x-gates
               pltpu.VMEM((n_rows, act_w), jnp.bfloat16),        # ping activation
               pltpu.VMEM((n_rows, act_w), jnp.bfloat16)]        # pong activation
    scratch_bytes = (nbytes((n_rows, 4 * max_hid), jnp.float32)
                     + 2 * nbytes((n_rows, act_w), jnp.bfloat16))
    io_bytes = 2 * (nbytes((n_rows, e_in), jnp.bfloat16)
                    + nbytes((n_rows, out_dim), jnp.bfloat16))
    w_bytes = 2 * sum(nbytes(w.shape, w.dtype) for w in flat_w)
    vmem_limit = int(min(64 * 1024 * 1024,
                         max(32 * 1024 * 1024,
                             2 * (scratch_bytes + io_bytes + w_bytes))))

    unroll = T if T <= 16 else 8   # partial unroll for long sequences

    in_specs = [pl.BlockSpec((None, n_rows, e_in), lambda g: (g, 0, 0))]
    in_specs += [pl.BlockSpec(w.shape, lambda g: (0, 0)) for w in flat_w]

    return pl.pallas_call(
        _make_stack_kernel(T, bt, dims, unroll),
        out_shape=jax.ShapeDtypeStruct((nbt, n_rows, out_dim), jnp.bfloat16),
        grid=(nbt,),
        in_specs=in_specs,
        out_specs=pl.BlockSpec((None, n_rows, out_dim), lambda g: (g, 0, 0)),
        scratch_shapes=scratch,
        compiler_params=pltpu.CompilerParams(
            dimension_semantics=("parallel",),      # v7x: batch tiles across 2 TCs
            vmem_limit_bytes=vmem_limit),
    )(x_tiles, *flat_w)


# ---------------------------------------------------------------------------
# Tiled decoder: logits = h @ W_emb^T + b (weight tied to the embedding table).
# Contracts on E against the native (V, E) layout — no wrapper transpose.
# ---------------------------------------------------------------------------
def _decoder_kernel(h_ref, w_ref, b_ref, o_ref):
    o_ref[...] = lax.dot_general(
        h_ref[...], w_ref[...],
        dimension_numbers=(((1,), (1,)), ((), ())),
        preferred_element_type=jnp.float32) + b_ref[...]


def decoder(h2d, w_dec, b_dec, *, tile_n=256, tile_v=512):
    """h2d: (N, E); w_dec: (V, E) tied embedding; b_dec: (V,). Returns (N, V) f32."""
    N, E = h2d.shape
    V = w_dec.shape[0]
    tn = min(tile_n, N)
    tv = min(tile_v, V)
    # NOTE: partial row/vocab tiles rely on Pallas OOB padding; padded bias lanes
    # only land in padded output columns. Keep V a multiple of 128 for dense stores.
    return pl.pallas_call(
        _decoder_kernel,
        out_shape=jax.ShapeDtypeStruct((N, V), jnp.float32),
        grid=(pl.cdiv(N, tn), pl.cdiv(V, tv)),
        in_specs=[
            pl.BlockSpec((tn, E), lambda i, j: (i, 0)),
            pl.BlockSpec((tv, E), lambda i, j: (j, 0)),
            pl.BlockSpec((1, tv), lambda i, j: (0, j)),
        ],
        out_specs=pl.BlockSpec((tn, tv), lambda i, j: (i, j)),
        compiler_params=pltpu.CompilerParams(
            dimension_semantics=("parallel", "parallel")),
    )(h2d.astype(jnp.bfloat16), w_dec.astype(jnp.bfloat16),
      b_dec.reshape(1, V).astype(jnp.float32))


# ---------------------------------------------------------------------------
# Full RLSTM forward (forward=0, stochastic=False path).
# ---------------------------------------------------------------------------
def _pick_batch_tile(B):
    # Split the batch in two (for v7x's 2 TensorCores) when it is big enough and
    # the tile stays sublane-aligned (multiple of 8); otherwise a single tile.
    if B >= 16 and B % 16 == 0:
        return B // 2
    return B


def rlstm_forward(params, inputs):
    """inputs: (B, T) int32 token ids -> logits (B, T, V) float32."""
    emb = params["embedding"]                              # (V, E) f32
    B, T = inputs.shape
    V, E = emb.shape
    bt = _pick_batch_tile(B)
    assert B % bt == 0
    nbt = B // bt

    # TODO(synk): fuse the embedding gather into the stack kernel via
    # PrefetchScalarGridSpec + pl.Element row gather; kept as XLA glue for now.
    x = emb[inputs]                                        # (B, T, E) f32
    # -> (nbt, T*bt, E): time-major within each batch tile, bf16 MXU operand.
    x_tiles = (x.reshape(nbt, bt, T, E).transpose(0, 2, 1, 3)
                .reshape(nbt, T * bt, E).astype(jnp.bfloat16))

    h = lstm_stack(x_tiles, params["lstm"], T, bt)         # (nbt, T*bt, E) bf16
    h2 = (h.reshape(nbt, T, bt, E).transpose(0, 2, 1, 3)
           .reshape(B * T, E))                             # row = b*T + t
    logits = decoder(h2, emb, params["b_dec"])             # (B*T, V) f32
    return logits.reshape(B, T, V)


# ---------------------------------------------------------------------------
# Pure-JAX references (f32, and matched bf16-matmul precision) for correctness.
# ---------------------------------------------------------------------------
def _ref_lstm(x_btf, w_ih, w_hh, b_ih, b_hh, mm_dtype):
    B = x_btf.shape[0]
    H = w_hh.shape[1]
    wih_t = w_ih.T.astype(mm_dtype)
    whh_t = w_hh.T.astype(mm_dtype)
    bias = (b_ih + b_hh).astype(jnp.float32)

    def step(carry, xt):
        h, c = carry
        gates = (jnp.dot(xt.astype(mm_dtype), wih_t,
                         preferred_element_type=jnp.float32)
                 + jnp.dot(h.astype(mm_dtype), whh_t,
                           preferred_element_type=jnp.float32) + bias)
        i, f, g, o = jnp.split(gates, 4, axis=-1)
        c = _sigmoid(f) * c + _sigmoid(i) * jnp.tanh(g)
        h = _sigmoid(o) * jnp.tanh(c)
        return (h, c), h

    init = (jnp.zeros((B, H), jnp.float32), jnp.zeros((B, H), jnp.float32))
    _, ys = jax.lax.scan(step, init, jnp.transpose(x_btf, (1, 0, 2)))
    return jnp.transpose(ys, (1, 0, 2))


def rlstm_forward_ref(params, inputs, mm_dtype=jnp.float32):
    h = params["embedding"][inputs]
    for lp in params["lstm"]:
        h = _ref_lstm(h, lp["w_ih"], lp["w_hh"], lp["b_ih"], lp["b_hh"], mm_dtype)
    return (jnp.dot(h.astype(mm_dtype), params["embedding"].T.astype(mm_dtype),
                    preferred_element_type=jnp.float32) + params["b_dec"])


# ---------------------------------------------------------------------------
# Deterministic parameter construction (shapes from RLSTM.__init__).
# ---------------------------------------------------------------------------
def make_params(key, vocab_size, embed_size, hidden_size):
    keys = jax.random.split(key, 16)
    k = iter(keys)

    def u(key_, shape, scale):
        return jax.random.uniform(key_, shape, jnp.float32, -scale, scale)

    emb = jax.random.normal(next(k), (vocab_size, embed_size), jnp.float32)

    layer_dims = [(embed_size, hidden_size),
                  (hidden_size, hidden_size),
                  (hidden_size, embed_size)]
    lstm = []
    for (fin, hid) in layer_dims:
        s = 1.0 / jnp.sqrt(hid)
        lstm.append(dict(
            w_ih=u(next(k), (4 * hid, fin), s),
            w_hh=u(next(k), (4 * hid, hid), s),
            b_ih=u(next(k), (4 * hid,), s),
            b_hh=u(next(k), (4 * hid,), s),
        ))

    b_dec = u(next(k), (vocab_size,), 1.0 / jnp.sqrt(embed_size))
    return dict(embedding=emb, lstm=lstm, b_dec=b_dec)


if __name__ == "__main__":
    # Hardware-friendly small shapes: batch tile multiple of 8 (sublane), 4*HIDDEN
    # = 128 lanes, VOCAB multiple of 128 for lane-dense decoder tiles.
    VOCAB, EMBED, HIDDEN = 128, 32, 32
    B, T = 8, 16

    key = jax.random.PRNGKey(0)
    kp, ki = jax.random.split(key)
    params = make_params(kp, VOCAB, EMBED, HIDDEN)
    inputs = jax.random.randint(ki, (B, T), 0, VOCAB, dtype=jnp.int32)

    logits = jax.jit(rlstm_forward)(params, inputs)
    logits = jax.block_until_ready(logits)
    assert logits.shape == (B, T, VOCAB), logits.shape

    # Tight check vs a matched-precision reference (bf16 MXU operands, f32 accum).
    ref_bf16 = rlstm_forward_ref(params, inputs, mm_dtype=jnp.bfloat16)
    err_bf16 = float(jnp.max(jnp.abs(logits - ref_bf16)))
    assert jnp.allclose(logits, ref_bf16, atol=2e-2, rtol=2e-2), err_bf16

    # Loose check vs the pure-f32 reference (bf16 MXU operands add ~1e-2 error).
    ref_f32 = rlstm_forward_ref(params, inputs, mm_dtype=jnp.float32)
    err_f32 = float(jnp.max(jnp.abs(logits - ref_f32)))
    assert jnp.allclose(logits, ref_f32, atol=2e-1, rtol=2e-1), err_f32

    print("KERNEL_OK")
</pallas_src>

<mosaic_0001>
module attributes {stable_mosaic.version = 11 : i64} {
  func.func @_decoder_kernel(%arg0: i32, %arg1: i32, %arg2: memref<128x32xbf16, #tpu.memory_space<vmem>>, %arg3: memref<128x32xbf16, #tpu.memory_space<vmem>>, %arg4: memref<1x128xf32, #tpu.memory_space<vmem>>, %arg5: memref<128x128xf32, #tpu.memory_space<vmem>>) attributes {dimension_semantics = [#tpu.dimension_semantics<parallel>, #tpu.dimension_semantics<parallel>], iteration_bounds = array<i64: 1, 1>, scalar_prefetch = 0 : i64, scratch_operands = 0 : i64, tpu.core_type = #tpu.core_type<tc>, window_params = [{transform_indices = @transform_0, window_bounds = array<i64: 128, 32>}, {transform_indices = @transform_1, window_bounds = array<i64: 128, 32>}, {transform_indices = @transform_2, window_bounds = array<i64: 1, 128>}, {transform_indices = @transform_3, window_bounds = array<i64: 128, 128>}]} {
    %c0 = arith.constant 0 : index
    %c0_0 = arith.constant 0 : index
    %0 = vector.load %arg2[%c0, %c0_0] : memref<128x32xbf16, #tpu.memory_space<vmem>>, vector<128x32xbf16>
    %c0_1 = arith.constant 0 : index
    %c0_2 = arith.constant 0 : index
    %1 = vector.load %arg3[%c0_1, %c0_2] : memref<128x32xbf16, #tpu.memory_space<vmem>>, vector<128x32xbf16>
    %cst = arith.constant dense<0.000000e+00> : vector<128x128xf32>
    %2 = tpu.matmul %0, %1, %cst {dimension_numbers = #tpu.dot_dimension_numbers<[1], [1], [0], [0], [0, 0, 1, 0], [], []>} : vector<128x32xbf16>, vector<128x32xbf16>, vector<128x128xf32> -> vector<128x128xf32>
    %c0_3 = arith.constant 0 : index
    %c0_4 = arith.constant 0 : index
    %3 = vector.load %arg4[%c0_3, %c0_4] : memref<1x128xf32, #tpu.memory_space<vmem>>, vector<1x128xf32>
    %4 = vector.broadcast %3 : vector<1x128xf32> to vector<128x128xf32>
    %5 = arith.addf %2, %4 : vector<128x128xf32>
    %c0_5 = arith.constant 0 : index
    %c0_6 = arith.constant 0 : index
    %6 = vector.load %arg5[%c0_5, %c0_6] : memref<128x128xf32, #tpu.memory_space<vmem>>, vector<128x128xf32>
    tpu.vector_store %arg5[%c0_5, %c0_6], %5 {strides = array<i32>} : memref<128x128xf32, #tpu.memory_space<vmem>>, vector<128x128xf32>,
    return
  }
  func.func @transform_0(%arg0: i32, %arg1: i32) -> (i32, i32) {
    %c0_i32 = arith.constant 0 : i32
    %c0_i32_0 = arith.constant 0 : i32
    return %arg0, %c0_i32 : i32, i32
  }
  func.func @transform_1(%arg0: i32, %arg1: i32) -> (i32, i32) {
    %c0_i32 = arith.constant 0 : i32
    %c0_i32_0 = arith.constant 0 : i32
    return %arg1, %c0_i32 : i32, i32
  }
  func.func @transform_2(%arg0: i32, %arg1: i32) -> (i32, i32) {
    %c0_i32 = arith.constant 0 : i32
    %c0_i32_0 = arith.constant 0 : i32
    return %c0_i32, %arg1 : i32, i32
  }
  func.func @transform_3(%arg0: i32, %arg1: i32) -> (i32, i32) {
    %c0_i32 = arith.constant 0 : i32
    return %arg0, %arg1 : i32, i32
  }
}

module attributes {stable_mosaic.version = 11 : i64} {
  func.func @kernel(%arg0: i32, %arg1: memref<1x128x32xbf16, #tpu.memory_space<vmem>>, %arg2: memref<32x128xbf16, #tpu.memory_space<vmem>>, %arg3: memref<32x128xbf16, #tpu.memory_space<vmem>>, %arg4: memref<1x128xf32, #tpu.memory_space<vmem>>, %arg5: memref<32x128xbf16, #tpu.memory_space<vmem>>, %arg6: memref<32x128xbf16, #tpu.memory_space<vmem>>, %arg7: memref<1x128xf32, #tpu.memory_space<vmem>>, %arg8: memref<32x128xbf16, #tpu.memory_space<vmem>>, %arg9: memref<32x128xbf16, #tpu.memory_space<vmem>>, %arg10: memref<1x128xf32, #tpu.memory_space<vmem>>, %arg11: memref<1x128x32xbf16, #tpu.memory_space<vmem>>, %arg12: memref<128x128xf32, #tpu.memory_space<vmem>>, %arg13: memref<128x32xbf16, #tpu.memory_space<vmem>>, %arg14: memref<128x32xbf16, #tpu.memory_space<vmem>>) attributes {dimension_semantics = [#tpu.dimension_semantics<parallel>], iteration_bounds = array<i64: 1>, scalar_prefetch = 0 : i64, scratch_operands = 3 : i64, tpu.core_type = #tpu.core_type<tc>, window_params = [{transform_indices = @transform_0, window_bounds = array<i64: 1, 128, 32>}, {pipeline_mode = #tpu.pipeline_mode<synchronous>, transform_indices = @transform_1, window_bounds = array<i64: 32, 128>}, {pipeline_mode = #tpu.pipeline_mode<synchronous>, transform_indices = @transform_2, window_bounds = array<i64: 32, 128>}, {pipeline_mode = #tpu.pipeline_mode<synchronous>, transform_indices = @transform_3, window_bounds = array<i64: 1, 128>}, {pipeline_mode = #tpu.pipeline_mode<synchronous>, transform_indices = @transform_4, window_bounds = array<i64: 32, 128>}, {pipeline_mode = #tpu.pipeline_mode<synchronous>, transform_indices = @transform_5, window_bounds = array<i64: 32, 128>}, {pipeline_mode = #tpu.pipeline_mode<synchronous>, transform_indices = @transform_6, window_bounds = array<i64: 1, 128>}, {pipeline_mode = #tpu.pipeline_mode<synchronous>, transform_indices = @transform_7, window_bounds = array<i64: 32, 128>}, {pipeline_mode = #tpu.pipeline_mode<synchronous>, transform_indices = @transform_8, window_bounds = array<i64: 32, 128>}, {pipeline_mode = #tpu.pipeline_mode<synchronous>, transform_indices = @transform_9, window_bounds = array<i64: 1, 128>}, {transform_indices = @transform_10, window_bounds = array<i64: 1, 128, 32>}]} {
    %c0 = arith.constant 0 : index
    %c0_0 = arith.constant 0 : index
    %c0_1 = arith.constant 0 : index
    %0 = vector.load %arg1[%c0, %c0_0, %c0_1] : memref<1x128x32xbf16, #tpu.memory_space<vmem>>, vector<1x128x32xbf16>
    %1 = vector.shape_cast %0 : vector<1x128x32xbf16> to vector<128x32xbf16>
    %c0_2 = arith.constant 0 : index
    %c0_3 = arith.constant 0 : index
    %2 = vector.load %arg2[%c0_2, %c0_3] : memref<32x128xbf16, #tpu.memory_space<vmem>>, vector<32x128xbf16>
    %cst = arith.constant dense<0.000000e+00> : vector<128x128xf32>
    %3 = tpu.matmul %1, %2, %cst {dimension_numbers = #tpu.dot_dimension_numbers<[1], [0], [0], [1], [0, 0, 1, 1], [], []>} : vector<128x32xbf16>, vector<32x128xbf16>, vector<128x128xf32> -> vector<128x128xf32>
    %c0_4 = arith.constant 0 : index
    %c0_5 = arith.constant 0 : index
    %4 = vector.load %arg4[%c0_4, %c0_5] : memref<1x128xf32, #tpu.memory_space<vmem>>, vector<1x128xf32>
    %5 = vector.broadcast %4 : vector<1x128xf32> to vector<128x128xf32>
    %6 = arith.addf %3, %5 : vector<128x128xf32>
    %c0_6 = arith.constant 0 : index
    %c0_7 = arith.constant 0 : index
    %7 = vector.load %arg12[%c0_6, %c0_7] : memref<128x128xf32, #tpu.memory_space<vmem>>, vector<128x128xf32>
    tpu.vector_store %arg12[%c0_6, %c0_7], %6 {strides = array<i32>} : memref<128x128xf32, #tpu.memory_space<vmem>>, vector<128x128xf32>,
    %cst_8 = arith.constant 0.000000e+00 : f32
    %8 = vector.broadcast %cst_8 : f32 to vector<8x32xf32>
    %c0_i32 = arith.constant 0 : i32
    %c8_i32 = arith.constant 8 : i32
    %9 = arith.muli %c0_i32, %c8_i32 : i32
    %10 = tpu.assume_multiple %9, 8 : i32
    %11 = arith.index_cast %10 : i32 to index
    %c0_9 = arith.constant 0 : index
    %12 = vector.load %arg12[%11, %c0_9] : memref<128x128xf32, #tpu.memory_space<vmem>>, vector<8x128xf32>
    %13 = arith.truncf %8 : vector<8x32xf32> to vector<8x32xbf16>
    %c0_10 = arith.constant 0 : index
    %c0_11 = arith.constant 0 : index
    %14 = vector.load %arg3[%c0_10, %c0_11] : memref<32x128xbf16, #tpu.memory_space<vmem>>, vector<32x128xbf16>
    %cst_12 = arith.constant dense<0.000000e+00> : vector<8x128xf32>
    %15 = tpu.matmul %13, %14, %cst_12 {dimension_numbers = #tpu.dot_dimension_numbers<[1], [0], [0], [1], [0, 0, 1, 1], [], []>} : vector<8x32xbf16>, vector<32x128xbf16>, vector<8x128xf32> -> vector<8x128xf32>
    %16 = arith.addf %12, %15 : vector<8x128xf32>
    %17 = vector.extract_strided_slice %16 {offsets = [0, 0], sizes = [8, 32], strides = [1, 1]} : vector<8x128xf32> to vector<8x32xf32>
    %cst_13 = arith.constant 5.000000e-01 : f32
    %18 = vector.broadcast %cst_13 : f32 to vector<8x32xf32>
    %19 = arith.mulf %18, %17 : vector<8x32xf32>
    %20 = math.tanh %19 : vector<8x32xf32>
    %cst_14 = arith.constant 5.000000e-01 : f32
    %21 = vector.broadcast %cst_14 : f32 to vector<8x32xf32>
    %22 = arith.mulf %21, %20 : vector<8x32xf32>
    %cst_15 = arith.constant 5.000000e-01 : f32
    %23 = vector.broadcast %cst_15 : f32 to vector<8x32xf32>
    %24 = arith.addf %22, %23 : vector<8x32xf32>
    %25 = vector.extract_strided_slice %16 {offsets = [0, 32], sizes = [8, 32], strides = [1, 1]} : vector<8x128xf32> to vector<8x32xf32>
    %cst_16 = arith.constant 5.000000e-01 : f32
    %26 = vector.broadcast %cst_16 : f32 to vector<8x32xf32>
    %27 = arith.mulf %26, %25 : vector<8x32xf32>
    %28 = math.tanh %27 : vector<8x32xf32>
    %cst_17 = arith.constant 5.000000e-01 : f32
    %29 = vector.broadcast %cst_17 : f32 to vector<8x32xf32>
    %30 = arith.mulf %29, %28 : vector<8x32xf32>
    %cst_18 = arith.constant 5.000000e-01 : f32
    %31 = vector.broadcast %cst_18 : f32 to vector<8x32xf32>
    %32 = arith.addf %30, %31 : vector<8x32xf32>
    %33 = vector.extract_strided_slice %16 {offsets = [0, 64], sizes = [8, 32], strides = [1, 1]} : vector<8x128xf32> to vector<8x32xf32>
    %34 = math.tanh %33 : vector<8x32xf32>
    %35 = vector.extract_strided_slice %16 {offsets = [0, 96], sizes = [8, 32], strides = [1, 1]} : vector<8x128xf32> to vector<8x32xf32>
    %cst_19 = arith.constant 5.000000e-01 : f32
    %36 = vector.broadcast %cst_19 : f32 to vector<8x32xf32>
    %37 = arith.mulf %36, %35 : vector<8x32xf32>
    %38 = math.tanh %37 : vector<8x32xf32>
    %cst_20 = arith.constant 5.000000e-01 : f32
    %39 = vector.broadcast %cst_20 : f32 to vector<8x32xf32>
    %40 = arith.mulf %39, %38 : vector<8x32xf32>
    %cst_21 = arith.constant 5.000000e-01 : f32
    %41 = vector.broadcast %cst_21 : f32 to vector<8x32xf32>
    %42 = arith.addf %40, %41 : vector<8x32xf32>
    %43 = arith.mulf %32, %8 : vector<8x32xf32>
    %44 = arith.mulf %24, %34 : vector<8x32xf32>
    %45 = arith.addf %43, %44 : vector<8x32xf32>
    %46 = math.tanh %45 : vector<8x32xf32>
    %47 = arith.mulf %42, %46 : vector<8x32xf32>
    %48 = arith.truncf %47 : vector<8x32xf32> to vector<8x32xbf16>
    %49 = arith.index_cast %10 : i32 to index
    %c0_22 = arith.constant 0 : index
    %50 = vector.load %arg13[%49, %c0_22] : memref<128x32xbf16, #tpu.memory_space<vmem>>, vector<8x32xbf16>
    tpu.vector_store %arg13[%49, %c0_22], %48 {strides = array<i32>} : memref<128x32xbf16, #tpu.memory_space<vmem>>, vector<8x32xbf16>,
    %c1_i32 = arith.constant 1 : i32
    %c8_i32_23 = arith.constant 8 : i32
    %51 = arith.muli %c1_i32, %c8_i32_23 : i32
    %52 = tpu.assume_multiple %51, 8 : i32
    %53 = arith.index_cast %52 : i32 to index
    %c0_24 = arith.constant 0 : index
    %54 = vector.load %arg12[%53, %c0_24] : memref<128x128xf32, #tpu.memory_space<vmem>>, vector<8x128xf32>
    %55 = arith.truncf %47 : vector<8x32xf32> to vector<8x32xbf16>
    %c0_25 = arith.constant 0 : index
    %c0_26 = arith.constant 0 : index
    %56 = vector.load %arg3[%c0_25, %c0_26] : memref<32x128xbf16, #tpu.memory_space<vmem>>, vector<32x128xbf16>
    %cst_27 = arith.constant dense<0.000000e+00> : vector<8x128xf32>
    %57 = tpu.matmul %55, %56, %cst_27 {dimension_numbers = #tpu.dot_dimension_numbers<[1], [0], [0], [1], [0, 0, 1, 1], [], []>} : vector<8x32xbf16>, vector<32x128xbf16>, vector<8x128xf32> -> vector<8x128xf32>
    %58 = arith.addf %54, %57 : vector<8x128xf32>
    %59 = vector.extract_strided_slice %58 {offsets = [0, 0], sizes = [8, 32], strides = [1, 1]} : vector<8x128xf32> to vector<8x32xf32>
    %cst_28 = arith.constant 5.000000e-01 : f32
    %60 = vector.broadcast %cst_28 : f32 to vector<8x32xf32>
    %61 = arith.mulf %60, %59 : vector<8x32xf32>
    %62 = math.tanh %61 : vector<8x32xf32>
    %cst_29 = arith.constant 5.000000e-01 : f32
    %63 = vector.broadcast %cst_29 : f32 to vector<8x32xf32>
    %64 = arith.mulf %63, %62 : vector<8x32xf32>
    %cst_30 = arith.constant 5.000000e-01 : f32
    %65 = vector.broadcast %cst_30 : f32 to vector<8x32xf32>
    %66 = arith.addf %64, %65 : vector<8x32xf32>
    %67 = vector.extract_strided_slice %58 {offsets = [0, 32], sizes = [8, 32], strides = [1, 1]} : vector<8x128xf32> to vector<8x32xf32>
    %cst_31 = arith.constant 5.000000e-01 : f32
    %68 = vector.broadcast %cst_31 : f32 to vector<8x32xf32>
    %69 = arith.mulf %68, %67 : vector<8x32xf32>
    %70 = math.tanh %69 : vector<8x32xf32>
    %cst_32 = arith.constant 5.000000e-01 : f32
    %71 = vector.broadcast %cst_32 : f32 to vector<8x32xf32>
    %72 = arith.mulf %71, %70 : vector<8x32xf32>
    %cst_33 = arith.constant 5.000000e-01 : f32
    %73 = vector.broadcast %cst_33 : f32 to vector<8x32xf32>
    %74 = arith.addf %72, %73 : vector<8x32xf32>
    %75 = vector.extract_strided_slice %58 {offsets = [0, 64], sizes = [8, 32], strides = [1, 1]} : vector<8x128xf32> to vector<8x32xf32>
    %76 = math.tanh %75 : vector<8x32xf32>
    %77 = vector.extract_strided_slice %58 {offsets = [0, 96], sizes = [8, 32], strides = [1, 1]} : vector<8x128xf32> to vector<8x32xf32>
    %cst_34 = arith.constant 5.000000e-01 : f32
    %78 = vector.broadcast %cst_34 : f32 to vector<8x32xf32>
    %79 = arith.mulf %78, %77 : vector<8x32xf32>
    %80 = math.tanh %79 : vector<8x32xf32>
    %cst_35 = arith.constant 5.000000e-01 : f32
    %81 = vector.broadcast %cst_35 : f32 to vector<8x32xf32>
    %82 = arith.mulf %81, %80 : vector<8x32xf32>
    %cst_36 = arith.constant 5.000000e-01 : f32
    %83 = vector.broadcast %cst_36 : f32 to vector<8x32xf32>
    %84 = arith.addf %82, %83 : vector<8x32xf32>
    %85 = arith.mulf %74, %45 : vector<8x32xf32>
    %86 = arith.mulf %66, %76 : vector<8x32xf32>
    %87 = arith.addf %85, %86 : vector<8x32xf32>
    %88 = math.tanh %87 : vector<8x32xf32>
    %89 = arith.mulf %84, %88 : vector<8x32xf32>
    %90 = arith.truncf %89 : vector<8x32xf32> to vector<8x32xbf16>
    %91 = arith.index_cast %52 : i32 to index
    %c0_37 = arith.constant 0 : index
    %92 = vector.load %arg13[%91, %c0_37] : memref<128x32xbf16, #tpu.memory_space<vmem>>, vector<8x32xbf16>
    tpu.vector_store %arg13[%91, %c0_37], %90 {strides = array<i32>} : memref<128x32xbf16, #tpu.memory_space<vmem>>, vector<8x32xbf16>,
    %c2_i32 = arith.constant 2 : i32
    %c8_i32_38 = arith.constant 8 : i32
    %93 = arith.muli %c2_i32, %c8_i32_38 : i32
    %94 = tpu.assume_multiple %93, 8 : i32
    %95 = arith.index_cast %94 : i32 to index
    %c0_39 = arith.constant 0 : index
    %96 = vector.load %arg12[%95, %c0_39] : memref<128x128xf32, #tpu.memory_space<vmem>>, vector<8x128xf32>
    %97 = arith.truncf %89 : vector<8x32xf32> to vector<8x32xbf16>
    %c0_40 = arith.constant 0 : index
    %c0_41 = arith.constant 0 : index
    %98 = vector.load %arg3[%c0_40, %c0_41] : memref<32x128xbf16, #tpu.memory_space<vmem>>, vector<32x128xbf16>
    %cst_42 = arith.constant dense<0.000000e+00> : vector<8x128xf32>
    %99 = tpu.matmul %97, %98, %cst_42 {dimension_numbers = #tpu.dot_dimension_numbers<[1], [0], [0], [1], [0, 0, 1, 1], [], []>} : vector<8x32xbf16>, vector<32x128xbf16>, vector<8x128xf32> -> vector<8x128xf32>
    %100 = arith.addf %96, %99 : vector<8x128xf32>
    %101 = vector.extract_strided_slice %100 {offsets = [0, 0], sizes = [8, 32], strides = [1, 1]} : vector<8x128xf32> to vector<8x32xf32>
    %cst_43 = arith.constant 5.000000e-01 : f32
    %102 = vector.broadcast %cst_43 : f32 to vector<8x32xf32>
    %103 = arith.mulf %102, %101 : vector<8x32xf32>
    %104 = math.tanh %103 : vector<8x32xf32>
    %cst_44 = arith.constant 5.000000e-01 : f32
    %105 = vector.broadcast %cst_44 : f32 to vector<8x32xf32>
    %106 = arith.mulf %105, %104 : vector<8x32xf32>
    %cst_45 = arith.constant 5.000000e-01 : f32
    %107 = vector.broadcast %cst_45 : f32 to vector<8x32xf32>
    %108 = arith.addf %106, %107 : vector<8x32xf32>
    %109 = vector.extract_strided_slice %100 {offsets = [0, 32], sizes = [8, 32], strides = [1, 1]} : vector<8x128xf32> to vector<8x32xf32>
    %cst_46 = arith.constant 5.000000e-01 : f32
    %110 = vector.broadcast %cst_46 : f32 to vector<8x32xf32>
    %111 = arith.mulf %110, %109 : vector<8x32xf32>
    %112 = math.tanh %111 : vector<8x32xf32>
    %cst_47 = arith.constant 5.000000e-01 : f32
    %113 = vector.broadcast %cst_47 : f32 to vector<8x32xf32>
    %114 = arith.mulf %113, %112 : vector<8x32xf32>
    %cst_48 = arith.constant 5.000000e-01 : f32
    %115 = vector.broadcast %cst_48 : f32 to vector<8x32xf32>
    %116 = arith.addf %114, %115 : vector<8x32xf32>
    %117 = vector.extract_strided_slice %100 {offsets = [0, 64], sizes = [8, 32], strides = [1, 1]} : vector<8x128xf32> to vector<8x32xf32>
    %118 = math.tanh %117 : vector<8x32xf32>
    %119 = vector.extract_strided_slice %100 {offsets = [0, 96], sizes = [8, 32], strides = [1, 1]} : vector<8x128xf32> to vector<8x32xf32>
    %cst_49 = arith.constant 5.000000e-01 : f32
    %120 = vector.broadcast %cst_49 : f32 to vector<8x32xf32>
    %121 = arith.mulf %120, %119 : vector<8x32xf32>
    %122 = math.tanh %121 : vector<8x32xf32>
    %cst_50 = arith.constant 5.000000e-01 : f32
    %123 = vector.broadcast %cst_50 : f32 to vector<8x32xf32>
    %124 = arith.mulf %123, %122 : vector<8x32xf32>
    %cst_51 = arith.constant 5.000000e-01 : f32
    %125 = vector.broadcast %cst_51 : f32 to vector<8x32xf32>
    %126 = arith.addf %124, %125 : vector<8x32xf32>
    %127 = arith.mulf %116, %87 : vector<8x32xf32>
    %128 = arith.mulf %108, %118 : vector<8x32xf32>
    %129 = arith.addf %127, %128 : vector<8x32xf32>
    %130 = math.tanh %129 : vector<8x32xf32>
    %131 = arith.mulf %126, %130 : vector<8x32xf32>
    %132 = arith.truncf %131 : vector<8x32xf32> to vector<8x32xbf16>
    %133 = arith.index_cast %94 : i32 to index
    %c0_52 = arith.constant 0 : index
    %134 = vector.load %arg13[%133, %c0_52] : memref<128x32xbf16, #tpu.memory_space<vmem>>, vector<8x32xbf16>
    tpu.vector_store %arg13[%133, %c0_52], %132 {strides = array<i32>} : memref<128x32xbf16, #tpu.memory_space<vmem>>, vector<8x32xbf16>,
    %c3_i32 = arith.constant 3 : i32
    %c8_i32_53 = arith.constant 8 : i32
    %135 = arith.muli %c3_i32, %c8_i32_53 : i32
    %136 = tpu.assume_multiple %135, 8 : i32
    %137 = arith.index_cast %136 : i32 to index
    %c0_54 = arith.constant 0 : index
    %138 = vector.load %arg12[%137, %c0_54] : memref<128x128xf32, #tpu.memory_space<vmem>>, vector<8x128xf32>
    %139 = arith.truncf %131 : vector<8x32xf32> to vector<8x32xbf16>
    %c0_55 = arith.constant 0 : index
    %c0_56 = arith.constant 0 : index
    %140 = vector.load %arg3[%c0_55, %c0_56] : memref<32x128xbf16, #tpu.memory_space<vmem>>, vector<32x128xbf16>
    %cst_57 = arith.constant dense<0.000000e+00> : vector<8x128xf32>
    %141 = tpu.matmul %139, %140, %cst_57 {dimension_numbers = #tpu.dot_dimension_numbers<[1], [0], [0], [1], [0, 0, 1, 1], [], []>} : vector<8x32xbf16>, vector<32x128xbf16>, vector<8x128xf32> -> vector<8x128xf32>
    %142 = arith.addf %138, %141 : vector<8x128xf32>
    %143 = vector.extract_strided_slice %142 {offsets = [0, 0], sizes = [8, 32], strides = [1, 1]} : vector<8x128xf32> to vector<8x32xf32>
    %cst_58 = arith.constant 5.000000e-01 : f32
    %144 = vector.broadcast %cst_58 : f32 to vector<8x32xf32>
    %145 = arith.mulf %144, %143 : vector<8x32xf32>
    %146 = math.tanh %145 : vector<8x32xf32>
    %cst_59 = arith.constant 5.000000e-01 : f32
    %147 = vector.broadcast %cst_59 : f32 to vector<8x32xf32>
    %148 = arith.mulf %147, %146 : vector<8x32xf32>
    %cst_60 = arith.constant 5.000000e-01 : f32
    %149 = vector.broadcast %cst_60 : f32 to vector<8x32xf32>
    %150 = arith.addf %148, %149 : vector<8x32xf32>
    %151 = vector.extract_strided_slice %142 {offsets = [0, 32], sizes = [8, 32], strides = [1, 1]} : vector<8x128xf32> to vector<8x32xf32>
    %cst_61 = arith.constant 5.000000e-01 : f32
    %152 = vector.broadcast %cst_61 : f32 to vector<8x32xf32>
    %153 = arith.mulf %152, %151 : vector<8x32xf32>
    %154 = math.tanh %153 : vector<8x32xf32>
    %cst_62 = arith.constant 5.000000e-01 : f32
    %155 = vector.broadcast %cst_62 : f32 to vector<8x32xf32>
    %156 = arith.mulf %155, %154 : vector<8x32xf32>
    %cst_63 = arith.constant 5.000000e-01 : f32
    %157 = vector.broadcast %cst_63 : f32 to vector<8x32xf32>
    %158 = arith.addf %156, %157 : vector<8x32xf32>
    %159 = vector.extract_strided_slice %142 {offsets = [0, 64], sizes = [8, 32], strides = [1, 1]} : vector<8x128xf32> to vector<8x32xf32>
    %160 = math.tanh %159 : vector<8x32xf32>
    %161 = vector.extract_strided_slice %142 {offsets = [0, 96], sizes = [8, 32], strides = [1, 1]} : vector<8x128xf32> to vector<8x32xf32>
    %cst_64 = arith.constant 5.000000e-01 : f32
    %162 = vector.broadcast %cst_64 : f32 to vector<8x32xf32>
    %163 = arith.mulf %162, %161 : vector<8x32xf32>
    %164 = math.tanh %163 : vector<8x32xf32>
    %cst_65 = arith.constant 5.000000e-01 : f32
    %165 = vector.broadcast %cst_65 : f32 to vector<8x32xf32>
    %166 = arith.mulf %165, %164 : vector<8x32xf32>
    %cst_66 = arith.constant 5.000000e-01 : f32
    %167 = vector.broadcast %cst_66 : f32 to vector<8x32xf32>
    %168 = arith.addf %166, %167 : vector<8x32xf32>
    %169 = arith.mulf %158, %129 : vector<8x32xf32>
    %170 = arith.mulf %150, %160 : vector<8x32xf32>
    %171 = arith.addf %169, %170 : vector<8x32xf32>
    %172 = math.tanh %171 : vector<8x32xf32>
    %173 = arith.mulf %168, %172 : vector<8x32xf32>
    %174 = arith.truncf %173 : vector<8x32xf32> to vector<8x32xbf16>
    %175 = arith.index_cast %136 : i32 to index
    %c0_67 = arith.constant 0 : index
    %176 = vector.load %arg13[%175, %c0_67] : memref<128x32xbf16, #tpu.memory_space<vmem>>, vector<8x32xbf16>
    tpu.vector_store %arg13[%175, %c0_67], %174 {strides = array<i32>} : memref<128x32xbf16, #tpu.memory_space<vmem>>, vector<8x32xbf16>,
    %c4_i32 = arith.constant 4 : i32
    %c8_i32_68 = arith.constant 8 : i32
    %177 = arith.muli %c4_i32, %c8_i32_68 : i32
    %178 = tpu.assume_multiple %177, 8 : i32
    %179 = arith.index_cast %178 : i32 to index
    %c0_69 = arith.constant 0 : index
    %180 = vector.load %arg12[%179, %c0_69] : memref<128x128xf32, #tpu.memory_space<vmem>>, vector<8x128xf32>
    %181 = arith.truncf %173 : vector<8x32xf32> to vector<8x32xbf16>
    %c0_70 = arith.constant 0 : index
    %c0_71 = arith.constant 0 : index
    %182 = vector.load %arg3[%c0_70, %c0_71] : memref<32x128xbf16, #tpu.memory_space<vmem>>, vector<32x128xbf16>
    %cst_72 = arith.constant dense<0.000000e+00> : vector<8x128xf32>
    %183 = tpu.matmul %181, %182, %cst_72 {dimension_numbers = #tpu.dot_dimension_numbers<[1], [0], [0], [1], [0, 0, 1, 1], [], []>} : vector<8x32xbf16>, vector<32x128xbf16>, vector<8x128xf32> -> vector<8x128xf32>
    %184 = arith.addf %180, %183 : vector<8x128xf32>
    %185 = vector.extract_strided_slice %184 {offsets = [0, 0], sizes = [8, 32], strides = [1, 1]} : vector<8x128xf32> to vector<8x32xf32>
    %cst_73 = arith.constant 5.000000e-01 : f32
    %186 = vector.broadcast %cst_73 : f32 to vector<8x32xf32>
    %187 = arith.mulf %186, %185 : vector<8x32xf32>
    %188 = math.tanh %187 : vector<8x32xf32>
    %cst_74 = arith.constant 5.000000e-01 : f32
    %189 = vector.broadcast %cst_74 : f32 to vector<8x32xf32>
    %190 = arith.mulf %189, %188 : vector<8x32xf32>
    %cst_75 = arith.constant 5.000000e-01 : f32
    %191 = vector.broadcast %cst_75 : f32 to vector<8x32xf32>
    %192 = arith.addf %190, %191 : vector<8x32xf32>
    %193 = vector.extract_strided_slice %184 {offsets = [0, 32], sizes = [8, 32], strides = [1, 1]} : vector<8x128xf32> to vector<8x32xf32>
    %cst_76 = arith.constant 5.000000e-01 : f32
    %194 = vector.broadcast %cst_76 : f32 to vector<8x32xf32>
    %195 = arith.mulf %194, %193 : vector<8x32xf32>
    %196 = math.tanh %195 : vector<8x32xf32>
    %cst_77 = arith.constant 5.000000e-01 : f32
    %197 = vector.broadcast %cst_77 : f32 to vector<8x32xf32>
    %198 = arith.mulf %197, %196 : vector<8x32xf32>
    %cst_78 = arith.constant 5.000000e-01 : f32
    %199 = vector.broadcast %cst_78 : f32 to vector<8x32xf32>
    %200 = arith.addf %198, %199 : vector<8x32xf32>
    %201 = vector.extract_strided_slice %184 {offsets = [0, 64], sizes = [8, 32], strides = [1, 1]} : vector<8x128xf32> to vector<8x32xf32>
    %202 = math.tanh %201 : vector<8x32xf32>
    %203 = vector.extract_strided_slice %184 {offsets = [0, 96], sizes = [8, 32], strides = [1, 1]} : vector<8x128xf32> to vector<8x32xf32>
    %cst_79 = arith.constant 5.000000e-01 : f32
    %204 = vector.broadcast %cst_79 : f32 to vector<8x32xf32>
    %205 = arith.mulf %204, %203 : vector<8x32xf32>
    %206 = math.tanh %205 : vector<8x32xf32>
    %cst_80 = arith.constant 5.000000e-01 : f32
    %207 = vector.broadcast %cst_80 : f32 to vector<8x32xf32>
    %208 = arith.mulf %207, %206 : vector<8x32xf32>
    %cst_81 = arith.constant 5.000000e-01 : f32
    %209 = vector.broadcast %cst_81 : f32 to vector<8x32xf32>
    %210 = arith.addf %208, %209 : vector<8x32xf32>
    %211 = arith.mulf %200, %171 : vector<8x32xf32>
    %212 = arith.mulf %192, %202 : vector<8x32xf32>
    %213 = arith.addf %211, %212 : vector<8x32xf32>
    %214 = math.tanh %213 : vector<8x32xf32>
    %215 = arith.mulf %210, %214 : vector<8x32xf32>
    %216 = arith.truncf %215 : vector<8x32xf32> to vector<8x32xbf16>
    %217 = arith.index_cast %178 : i32 to index
    %c0_82 = arith.constant 0 : index
    %218 = vector.load %arg13[%217, %c0_82] : memref<128x32xbf16, #tpu.memory_space<vmem>>, vector<8x32xbf16>
    tpu.vector_store %arg13[%217, %c0_82], %216 {strides = array<i32>} : memref<128x32xbf16, #tpu.memory_space<vmem>>, vector<8x32xbf16>,
    %c5_i32 = arith.constant 5 : i32
    %c8_i32_83 = arith.constant 8 : i32
    %219 = arith.muli %c5_i32, %c8_i32_83 : i32
    %220 = tpu.assume_multiple %219, 8 : i32
    %221 = arith.index_cast %220 : i32 to index
    %c0_84 = arith.constant 0 : index
    %222 = vector.load %arg12[%221, %c0_84] : memref<128x128xf32, #tpu.memory_space<vmem>>, vector<8x128xf32>
    %223 = arith.truncf %215 : vector<8x32xf32> to vector<8x32xbf16>
    %c0_85 = arith.constant 0 : index
    %c0_86 = arith.constant 0 : index
    %224 = vector.load %arg3[%c0_85, %c0_86] : memref<32x128xbf16, #tpu.memory_space<vmem>>, vector<32x128xbf16>
    %cst_87 = arith.constant dense<0.000000e+00> : vector<8x128xf32>
    %225 = tpu.matmul %223, %224, %cst_87 {dimension_numbers = #tpu.dot_dimension_numbers<[1], [0], [0], [1], [0, 0, 1, 1], [], []>} : vector<8x32xbf16>, vector<32x128xbf16>, vector<8x128xf32> -> vector<8x128xf32>
    %226 = arith.addf %222, %225 : vector<8x128xf32>
    %227 = vector.extract_strided_slice %226 {offsets = [0, 0], sizes = [8, 32], strides = [1, 1]} : vector<8x128xf32> to vector<8x32xf32>
    %cst_88 = arith.constant 5.000000e-01 : f32
    %228 = vector.broadcast %cst_88 : f32 to vector<8x32xf32>
    %229 = arith.mulf %228, %227 : vector<8x32xf32>
    %230 = math.tanh %229 : vector<8x32xf32>
    %cst_89 = arith.constant 5.000000e-01 : f32
    %231 = vector.broadcast %cst_89 : f32 to vector<8x32xf32>
    %232 = arith.mulf %231, %230 : vector<8x32xf32>
    %cst_90 = arith.constant 5.000000e-01 : f32
    %233 = vector.broadcast %cst_90 : f32 to vector<8x32xf32>
    %234 = arith.addf %232, %233 : vector<8x32xf32>
    %235 = vector.extract_strided_slice %226 {offsets = [0, 32], sizes = [8, 32], strides = [1, 1]} : vector<8x128xf32> to vector<8x32xf32>
    %cst_91 = arith.constant 5.000000e-01 : f32
    %236 = vector.broadcast %cst_91 : f32 to vector<8x32xf32>
    %237 = arith.mulf %236, %235 : vector<8x32xf32>
    %238 = math.tanh %237 : vector<8x32xf32>
    %cst_92 = arith.constant 5.000000e-01 : f32
    %239 = vector.broadcast %cst_92 : f32 to vector<8x32xf32>
    %240 = arith.mulf %239, %238 : vector<8x32xf32>
    %cst_93 = arith.constant 5.000000e-01 : f32
    %241 = vector.broadcast %cst_93 : f32 to vector<8x32xf32>
    %242 = arith.addf %240, %241 : vector<8x32xf32>
    %243 = vector.extract_strided_slice %226 {offsets = [0, 64], sizes = [8, 32], strides = [1, 1]} : vector<8x128xf32> to vector<8x32xf32>
    %244 = math.tanh %243 : vector<8x32xf32>
    %245 = vector.extract_strided_slice %226 {offsets = [0, 96], sizes = [8, 32], strides = [1, 1]} : vector<8x128xf32> to vector<8x32xf32>
    %cst_94 = arith.constant 5.000000e-01 : f32
    %246 = vector.broadcast %cst_94 : f32 to vector<8x32xf32>
    %247 = arith.mulf %246, %245 : vector<8x32xf32>
    %248 = math.tanh %247 : vector<8x32xf32>
    %cst_95 = arith.constant 5.000000e-01 : f32
    %249 = vector.broadcast %cst_95 : f32 to vector<8x32xf32>
    %250 = arith.mulf %249, %248 : vector<8x32xf32>
    %cst_96 = arith.constant 5.000000e-01 : f32
    %251 = vector.broadcast %cst_96 : f32 to vector<8x32xf32>
    %252 = arith.addf %250, %251 : vector<8x32xf32>
    %253 = arith.mulf %242, %213 : vector<8x32xf32>
    %254 = arith.mulf %234, %244 : vector<8x32xf32>
    %255 = arith.addf %253, %254 : vector<8x32xf32>
    %256 = math.tanh %255 : vector<8x32xf32>
    %257 = arith.mulf %252, %256 : vector<8x32xf32>
    %258 = arith.truncf %257 : vector<8x32xf32> to vector<8x32xbf16>
    %259 = arith.index_cast %220 : i32 to index
    %c0_97 = arith.constant 0 : index
    %260 = vector.load %arg13[%259, %c0_97] : memref<128x32xbf16, #tpu.memory_space<vmem>>, vector<8x32xbf16>
    tpu.vector_store %arg13[%259, %c0_97], %258 {strides = array<i32>} : memref<128x32xbf16, #tpu.memory_space<vmem>>, vector<8x32xbf16>,
    %c6_i32 = arith.constant 6 : i32
    %c8_i32_98 = arith.constant 8 : i32
    %261 = arith.muli %c6_i32, %c8_i32_98 : i32
    %262 = tpu.assume_multiple %261, 8 : i32
    %263 = arith.index_cast %262 : i32 to index
    %c0_99 = arith.constant 0 : index
    %264 = vector.load %arg12[%263, %c0_99] : memref<128x128xf32, #tpu.memory_space<vmem>>, vector<8x128xf32>
    %265 = arith.truncf %257 : vector<8x32xf32> to vector<8x32xbf16>
    %c0_100 = arith.constant 0 : index
    %c0_101 = arith.constant 0 : index
    %266 = vector.load %arg3[%c0_100, %c0_101] : memref<32x128xbf16, #tpu.memory_space<vmem>>, vector<32x128xbf16>
    %cst_102 = arith.constant dense<0.000000e+00> : vector<8x128xf32>
    %267 = tpu.matmul %265, %266, %cst_102 {dimension_numbers = #tpu.dot_dimension_numbers<[1], [0], [0], [1], [0, 0, 1, 1], [], []>} : vector<8x32xbf16>, vector<32x128xbf16>, vector<8x128xf32> -> vector<8x128xf32>
    %268 = arith.addf %264, %267 : vector<8x128xf32>
    %269 = vector.extract_strided_slice %268 {offsets = [0, 0], sizes = [8, 32], strides = [1, 1]} : vector<8x128xf32> to vector<8x32xf32>
    %cst_103 = arith.constant 5.000000e-01 : f32
    %270 = vector.broadcast %cst_103 : f32 to vector<8x32xf32>
    %271 = arith.mulf %270, %269 : vector<8x32xf32>
    %272 = math.tanh %271 : vector<8x32xf32>
    %cst_104 = arith.constant 5.000000e-01 : f32
    %273 = vector.broadcast %cst_104 : f32 to vector<8x32xf32>
    %274 = arith.mulf %273, %272 : vector<8x32xf32>
    %cst_105 = arith.constant 5.000000e-01 : f32
    %275 = vector.broadcast %cst_105 : f32 to vector<8x32xf32>
    %276 = arith.addf %274, %275 : vector<8x32xf32>
    %277 = vector.extract_strided_slice %268 {offsets = [0, 32], sizes = [8, 32], strides = [1, 1]} : vector<8x128xf32> to vector<8x32xf32>
    %cst_106 = arith.constant 5.000000e-01 : f32
    %278 = vector.broadcast %cst_106 : f32 to vector<8x32xf32>
    %279 = arith.mulf %278, %277 : vector<8x32xf32>
    %280 = math.tanh %279 : vector<8x32xf32>
    %cst_107 = arith.constant 5.000000e-01 : f32
    %281 = vector.broadcast %cst_107 : f32 to vector<8x32xf32>
    %282 = arith.mulf %281, %280 : vector<8x32xf32>
    %cst_108 = arith.constant 5.000000e-01 : f32
    %283 = vector.broadcast %cst_108 : f32 to vector<8x32xf32>
    %284 = arith.addf %282, %283 : vector<8x32xf32>
    %285 = vector.extract_strided_slice %268 {offsets = [0, 64], sizes = [8, 32], strides = [1, 1]} : vector<8x128xf32> to vector<8x32xf32>
    %286 = math.tanh %285 : vector<8x32xf32>
    %287 = vector.extract_strided_slice %268 {offsets = [0, 96], sizes = [8, 32], strides = [1, 1]} : vector<8x128xf32> to vector<8x32xf32>
    %cst_109 = arith.constant 5.000000e-01 : f32
    %288 = vector.broadcast %cst_109 : f32 to vector<8x32xf32>
    %289 = arith.mulf %288, %287 : vector<8x32xf32>
    %290 = math.tanh %289 : vector<8x32xf32>
    %cst_110 = arith.constant 5.000000e-01 : f32
    %291 = vector.broadcast %cst_110 : f32 to vector<8x32xf32>
    %292 = arith.mulf %291, %290 : vector<8x32xf32>
    %cst_111 = arith.constant 5.000000e-01 : f32
    %293 = vector.broadcast %cst_111 : f32 to vector<8x32xf32>
    %294 = arith.addf %292, %293 : vector<8x32xf32>
    %295 = arith.mulf %284, %255 : vector<8x32xf32>
    %296 = arith.mulf %276, %286 : vector<8x32xf32>
    %297 = arith.addf %295, %296 : vector<8x32xf32>
    %298 = math.tanh %297 : vector<8x32xf32>
    %299 = arith.mulf %294, %298 : vector<8x32xf32>
    %300 = arith.truncf %299 : vector<8x32xf32> to vector<8x32xbf16>
    %301 = arith.index_cast %262 : i32 to index
    %c0_112 = arith.constant 0 : index
    %302 = vector.load %arg13[%301, %c0_112] : memref<128x32xbf16, #tpu.memory_space<vmem>>, vector<8x32xbf16>
    tpu.vector_store %arg13[%301, %c0_112], %300 {strides = array<i32>} : memref<128x32xbf16, #tpu.memory_space<vmem>>, vector<8x32xbf16>,
    %c7_i32 = arith.constant 7 : i32
    %c8_i32_113 = arith.constant 8 : i32
    %303 = arith.muli %c7_i32, %c8_i32_113 : i32
    %304 = tpu.assume_multiple %303, 8 : i32
    %305 = arith.index_cast %304 : i32 to index
    %c0_114 = arith.constant 0 : index
    %306 = vector.load %arg12[%305, %c0_114] : memref<128x128xf32, #tpu.memory_space<vmem>>, vector<8x128xf32>
    %307 = arith.truncf %299 : vector<8x32xf32> to vector<8x32xbf16>
    %c0_115 = arith.constant 0 : index
    %c0_116 = arith.constant 0 : index
    %308 = vector.load %arg3[%c0_115, %c0_116] : memref<32x128xbf16, #tpu.memory_space<vmem>>, vector<32x128xbf16>
    %cst_117 = arith.constant dense<0.000000e+00> : vector<8x128xf32>
    %309 = tpu.matmul %307, %308, %cst_117 {dimension_numbers = #tpu.dot_dimension_numbers<[1], [0], [0], [1], [0, 0, 1, 1], [], []>} : vector<8x32xbf16>, vector<32x128xbf16>, vector<8x128xf32> -> vector<8x128xf32>
    %310 = arith.addf %306, %309 : vector<8x128xf32>
    %311 = vector.extract_strided_slice %310 {offsets = [0, 0], sizes = [8, 32], strides = [1, 1]} : vector<8x128xf32> to vector<8x32xf32>
    %cst_118 = arith.constant 5.000000e-01 : f32
    %312 = vector.broadcast %cst_118 : f32 to vector<8x32xf32>
    %313 = arith.mulf %312, %311 : vector<8x32xf32>
    %314 = math.tanh %313 : vector<8x32xf32>
    %cst_119 = arith.constant 5.000000e-01 : f32
    %315 = vector.broadcast %cst_119 : f32 to vector<8x32xf32>
    %316 = arith.mulf %315, %314 : vector<8x32xf32>
    %cst_120 = arith.constant 5.000000e-01 : f32
    %317 = vector.broadcast %cst_120 : f32 to vector<8x32xf32>
    %318 = arith.addf %316, %317 : vector<8x32xf32>
    %319 = vector.extract_strided_slice %310 {offsets = [0, 32], sizes = [8, 32], strides = [1, 1]} : vector<8x128xf32> to vector<8x32xf32>
    %cst_121 = arith.constant 5.000000e-01 : f32
    %320 = vector.broadcast %cst_121 : f32 to vector<8x32xf32>
    %321 = arith.mulf %320, %319 : vector<8x32xf32>
    %322 = math.tanh %321 : vector<8x32xf32>
    %cst_122 = arith.constant 5.000000e-01 : f32
    %323 = vector.broadcast %cst_122 : f32 to vector<8x32xf32>
    %324 = arith.mulf %323, %322 : vector<8x32xf32>
    %cst_123 = arith.constant 5.000000e-01 : f32
    %325 = vector.broadcast %cst_123 : f32 to vector<8x32xf32>
    %326 = arith.addf %324, %325 : vector<8x32xf32>
    %327 = vector.extract_strided_slice %310 {offsets = [0, 64], sizes = [8, 32], strides = [1, 1]} : vector<8x128xf32> to vector<8x32xf32>
    %328 = math.tanh %327 : vector<8x32xf32>
    %329 = vector.extract_strided_slice %310 {offsets = [0, 96], sizes = [8, 32], strides = [1, 1]} : vector<8x128xf32> to vector<8x32xf32>
    %cst_124 = arith.constant 5.000000e-01 : f32
    %330 = vector.broadcast %cst_124 : f32 to vector<8x32xf32>
    %331 = arith.mulf %330, %329 : vector<8x32xf32>
    %332 = math.tanh %331 : vector<8x32xf32>
    %cst_125 = arith.constant 5.000000e-01 : f32
    %333 = vector.broadcast %cst_125 : f32 to vector<8x32xf32>
    %334 = arith.mulf %333, %332 : vector<8x32xf32>
    %cst_126 = arith.constant 5.000000e-01 : f32
    %335 = vector.broadcast %cst_126 : f32 to vector<8x32xf32>
    %336 = arith.addf %334, %335 : vector<8x32xf32>
    %337 = arith.mulf %326, %297 : vector<8x32xf32>
    %338 = arith.mulf %318, %328 : vector<8x32xf32>
    %339 = arith.addf %337, %338 : vector<8x32xf32>
    %340 = math.tanh %339 : vector<8x32xf32>
    %341 = arith.mulf %336, %340 : vector<8x32xf32>
    %342 = arith.truncf %341 : vector<8x32xf32> to vector<8x32xbf16>
    %343 = arith.index_cast %304 : i32 to index
    %c0_127 = arith.constant 0 : index
    %344 = vector.load %arg13[%343, %c0_127] : memref<128x32xbf16, #tpu.memory_space<vmem>>, vector<8x32xbf16>
    tpu.vector_store %arg13[%343, %c0_127], %342 {strides = array<i32>} : memref<128x32xbf16, #tpu.memory_space<vmem>>, vector<8x32xbf16>,
    %c8_i32_128 = arith.constant 8 : i32
    %c8_i32_129 = arith.constant 8 : i32
    %345 = arith.muli %c8_i32_128, %c8_i32_129 : i32
    %346 = tpu.assume_multiple %345, 8 : i32
    %347 = arith.index_cast %346 : i32 to index
    %c0_130 = arith.constant 0 : index
    %348 = vector.load %arg12[%347, %c0_130] : memref<128x128xf32, #tpu.memory_space<vmem>>, vector<8x128xf32>
    %349 = arith.truncf %341 : vector<8x32xf32> to vector<8x32xbf16>
    %c0_131 = arith.constant 0 : index
    %c0_132 = arith.constant 0 : index
    %350 = vector.load %arg3[%c0_131, %c0_132] : memref<32x128xbf16, #tpu.memory_space<vmem>>, vector<32x128xbf16>
    %cst_133 = arith.constant dense<0.000000e+00> : vector<8x128xf32>
    %351 = tpu.matmul %349, %350, %cst_133 {dimension_numbers = #tpu.dot_dimension_numbers<[1], [0], [0], [1], [0, 0, 1, 1], [], []>} : vector<8x32xbf16>, vector<32x128xbf16>, vector<8x128xf32> -> vector<8x128xf32>
    %352 = arith.addf %348, %351 : vector<8x128xf32>
    %353 = vector.extract_strided_slice %352 {offsets = [0, 0], sizes = [8, 32], strides = [1, 1]} : vector<8x128xf32> to vector<8x32xf32>
    %cst_134 = arith.constant 5.000000e-01 : f32
    %354 = vector.broadcast %cst_134 : f32 to vector<8x32xf32>
    %355 = arith.mulf %354, %353 : vector<8x32xf32>
    %356 = math.tanh %355 : vector<8x32xf32>
    %cst_135 = arith.constant 5.000000e-01 : f32
    %357 = vector.broadcast %cst_135 : f32 to vector<8x32xf32>
    %358 = arith.mulf %357, %356 : vector<8x32xf32>
    %cst_136 = arith.constant 5.000000e-01 : f32
    %359 = vector.broadcast %cst_136 : f32 to vector<8x32xf32>
    %360 = arith.addf %358, %359 : vector<8x32xf32>
    %361 = vector.extract_strided_slice %352 {offsets = [0, 32], sizes = [8, 32], strides = [1, 1]} : vector<8x128xf32> to vector<8x32xf32>
    %cst_137 = arith.constant 5.000000e-01 : f32
    %362 = vector.broadcast %cst_137 : f32 to vector<8x32xf32>
    %363 = arith.mulf %362, %361 : vector<8x32xf32>
    %364 = math.tanh %363 : vector<8x32xf32>
    %cst_138 = arith.constant 5.000000e-01 : f32
    %365 = vector.broadcast %cst_138 : f32 to vector<8x32xf32>
    %366 = arith.mulf %365, %364 : vector<8x32xf32>
    %cst_139 = arith.constant 5.000000e-01 : f32
    %367 = vector.broadcast %cst_139 : f32 to vector<8x32xf32>
    %368 = arith.addf %366, %367 : vector<8x32xf32>
    %369 = vector.extract_strided_slice %352 {offsets = [0, 64], sizes = [8, 32], strides = [1, 1]} : vector<8x128xf32> to vector<8x32xf32>
    %370 = math.tanh %369 : vector<8x32xf32>
    %371 = vector.extract_strided_slice %352 {offsets = [0, 96], sizes = [8, 32], strides = [1, 1]} : vector<8x128xf32> to vector<8x32xf32>
    %cst_140 = arith.constant 5.000000e-01 : f32
    %372 = vector.broadcast %cst_140 : f32 to vector<8x32xf32>
    %373 = arith.mulf %372, %371 : vector<8x32xf32>
    %374 = math.tanh %373 : vector<8x32xf32>
    %cst_141 = arith.constant 5.000000e-01 : f32
    %375 = vector.broadcast %cst_141 : f32 to vector<8x32xf32>
    %376 = arith.mulf %375, %374 : vector<8x32xf32>
    %cst_142 = arith.constant 5.000000e-01 : f32
    %377 = vector.broadcast %cst_142 : f32 to vector<8x32xf32>
    %378 = arith.addf %376, %377 : vector<8x32xf32>
    %379 = arith.mulf %368, %339 : vector<8x32xf32>
    %380 = arith.mulf %360, %370 : vector<8x32xf32>
    %381 = arith.addf %379, %380 : vector<8x32xf32>
    %382 = math.tanh %381 : vector<8x32xf32>
    %383 = arith.mulf %378, %382 : vector<8x32xf32>
    %384 = arith.truncf %383 : vector<8x32xf32> to vector<8x32xbf16>
    %385 = arith.index_cast %346 : i32 to index
    %c0_143 = arith.constant 0 : index
    %386 = vector.load %arg13[%385, %c0_143] : memref<128x32xbf16, #tpu.memory_space<vmem>>, vector<8x32xbf16>
    tpu.vector_store %arg13[%385, %c0_143], %384 {strides = array<i32>} : memref<128x32xbf16, #tpu.memory_space<vmem>>, vector<8x32xbf16>,
    %c9_i32 = arith.constant 9 : i32
    %c8_i32_144 = arith.constant 8 : i32
    %387 = arith.muli %c9_i32, %c8_i32_144 : i32
    %388 = tpu.assume_multiple %387, 8 : i32
    %389 = arith.index_cast %388 : i32 to index
    %c0_145 = arith.constant 0 : index
    %390 = vector.load %arg12[%389, %c0_145] : memref<128x128xf32, #tpu.memory_space<vmem>>, vector<8x128xf32>
    %391 = arith.truncf %383 : vector<8x32xf32> to vector<8x32xbf16>
    %c0_146 = arith.constant 0 : index
    %c0_147 = arith.constant 0 : index
    %392 = vector.load %arg3[%c0_146, %c0_147] : memref<32x128xbf16, #tpu.memory_space<vmem>>, vector<32x128xbf16>
    %cst_148 = arith.constant dense<0.000000e+00> : vector<8x128xf32>
    %393 = tpu.matmul %391, %392, %cst_148 {dimension_numbers = #tpu.dot_dimension_numbers<[1], [0], [0], [1], [0, 0, 1, 1], [], []>} : vector<8x32xbf16>, vector<32x128xbf16>, vector<8x128xf32> -> vector<8x128xf32>
    %394 = arith.addf %390, %393 : vector<8x128xf32>
    %395 = vector.extract_strided_slice %394 {offsets = [0, 0], sizes = [8, 32], strides = [1, 1]} : vector<8x128xf32> to vector<8x32xf32>
    %cst_149 = arith.constant 5.000000e-01 : f32
    %396 = vector.broadcast %cst_149 : f32 to vector<8x32xf32>
    %397 = arith.mulf %396, %395 : vector<8x32xf32>
    %398 = math.tanh %397 : vector<8x32xf32>
    %cst_150 = arith.constant 5.000000e-01 : f32
    %399 = vector.broadcast %cst_150 : f32 to vector<8x32xf32>
    %400 = arith.mulf %399, %398 : vector<8x32xf32>
    %cst_151 = arith.constant 5.000000e-01 : f32
    %401 = vector.broadcast %cst_151 : f32 to vector<8x32xf32>
    %402 = arith.addf %400, %401 : vector<8x32xf32>
    %403 = vector.extract_strided_slice %394 {offsets = [0, 32], sizes = [8, 32], strides = [1, 1]} : vector<8x128xf32> to vector<8x32xf32>
    %cst_152 = arith.constant 5.000000e-01 : f32
    %404 = vector.broadcast %cst_152 : f32 to vector<8x32xf32>
    %405 = arith.mulf %404, %403 : vector<8x32xf32>
    %406 = math.tanh %405 : vector<8x32xf32>
    %cst_153 = arith.constant 5.000000e-01 : f32
    %407 = vector.broadcast %cst_153 : f32 to vector<8x32xf32>
    %408 = arith.mulf %407, %406 : vector<8x32xf32>
    %cst_154 = arith.constant 5.000000e-01 : f32
    %409 = vector.broadcast %cst_154 : f32 to vector<8x32xf32>
    %410 = arith.addf %408, %409 : vector<8x32xf32>
    %411 = vector.extract_strided_slice %394 {offsets = [0, 64], sizes = [8, 32], strides = [1, 1]} : vector<8x128xf32> to vector<8x32xf32>
    %412 = math.tanh %411 : vector<8x32xf32>
    %413 = vector.extract_strided_slice %394 {offsets = [0, 96], sizes = [8, 32], strides = [1, 1]} : vector<8x128xf32> to vector<8x32xf32>
    %cst_155 = arith.constant 5.000000e-01 : f32
    %414 = vector.broadcast %cst_155 : f32 to vector<8x32xf32>
    %415 = arith.mulf %414, %413 : vector<8x32xf32>
    %416 = math.tanh %415 : vector<8x32xf32>
    %cst_156 = arith.constant 5.000000e-01 : f32
    %417 = vector.broadcast %cst_156 : f32 to vector<8x32xf32>
    %418 = arith.mulf %417, %416 : vector<8x32xf32>
    %cst_157 = arith.constant 5.000000e-01 : f32
    %419 = vector.broadcast %cst_157 : f32 to vector<8x32xf32>
    %420 = arith.addf %418, %419 : vector<8x32xf32>
    %421 = arith.mulf %410, %381 : vector<8x32xf32>
    %422 = arith.mulf %402, %412 : vector<8x32xf32>
    %423 = arith.addf %421, %422 : vector<8x32xf32>
    %424 = math.tanh %423 : vector<8x32xf32>
    %425 = arith.mulf %420, %424 : vector<8x32xf32>
    %426 = arith.truncf %425 : vector<8x32xf32> to vector<8x32xbf16>
    %427 = arith.index_cast %388 : i32 to index
    %c0_158 = arith.constant 0 : index
    %428 = vector.load %arg13[%427, %c0_158] : memref<128x32xbf16, #tpu.memory_space<vmem>>, vector<8x32xbf16>
    tpu.vector_store %arg13[%427, %c0_158], %426 {strides = array<i32>} : memref<128x32xbf16, #tpu.memory_space<vmem>>, vector<8x32xbf16>,
    %c10_i32 = arith.constant 10 : i32
    %c8_i32_159 = arith.constant 8 : i32
    %429 = arith.muli %c10_i32, %c8_i32_159 : i32
    %430 = tpu.assume_multiple %429, 8 : i32
    %431 = arith.index_cast %430 : i32 to index
    %c0_160 = arith.constant 0 : index
    %432 = vector.load %arg12[%431, %c0_160] : memref<128x128xf32, #tpu.memory_space<vmem>>, vector<8x128xf32>
    %433 = arith.truncf %425 : vector<8x32xf32> to vector<8x32xbf16>
    %c0_161 = arith.constant 0 : index
    %c0_162 = arith.constant 0 : index
    %434 = vector.load %arg3[%c0_161, %c0_162] : memref<32x128xbf16, #tpu.memory_space<vmem>>, vector<32x128xbf16>
    %cst_163 = arith.constant dense<0.000000e+00> : vector<8x128xf32>
    %435 = tpu.matmul %433, %434, %cst_163 {dimension_numbers = #tpu.dot_dimension_numbers<[1], [0], [0], [1], [0, 0, 1, 1], [], []>} : vector<8x32xbf16>, vector<32x128xbf16>, vector<8x128xf32> -> vector<8x128xf32>
    %436 = arith.addf %432, %435 : vector<8x128xf32>
    %437 = vector.extract_strided_slice %436 {offsets = [0, 0], sizes = [8, 32], strides = [1, 1]} : vector<8x128xf32> to vector<8x32xf32>
    %cst_164 = arith.constant 5.000000e-01 : f32
    %438 = vector.broadcast %cst_164 : f32 to vector<8x32xf32>
    %439 = arith.mulf %438, %437 : vector<8x32xf32>
    %440 = math.tanh %439 : vector<8x32xf32>
    %cst_165 = arith.constant 5.000000e-01 : f32
    %441 = vector.broadcast %cst_165 : f32 to vector<8x32xf32>
    %442 = arith.mulf %441, %440 : vector<8x32xf32>
    %cst_166 = arith.constant 5.000000e-01 : f32
    %443 = vector.broadcast %cst_166 : f32 to vector<8x32xf32>
    %444 = arith.addf %442, %443 : vector<8x32xf32>
    %445 = vector.extract_strided_slice %436 {offsets = [0, 32], sizes = [8, 32], strides = [1, 1]} : vector<8x128xf32> to vector<8x32xf32>
    %cst_167 = arith.constant 5.000000e-01 : f32
    %446 = vector.broadcast %cst_167 : f32 to vector<8x32xf32>
    %447 = arith.mulf %446, %445 : vector<8x32xf32>
    %448 = math.tanh %447 : vector<8x32xf32>
    %cst_168 = arith.constant 5.000000e-01 : f32
    %449 = vector.broadcast %cst_168 : f32 to vector<8x32xf32>
    %450 = arith.mulf %449, %448 : vector<8x32xf32>
    %cst_169 = arith.constant 5.000000e-01 : f32
    %451 = vector.broadcast %cst_169 : f32 to vector<8x32xf32>
    %452 = arith.addf %450, %451 : vector<8x32xf32>
    %453 = vector.extract_strided_slice %436 {offsets = [0, 64], sizes = [8, 32], strides = [1, 1]} : vector<8x128xf32> to vector<8x32xf32>
    %454 = math.tanh %453 : vector<8x32xf32>
    %455 = vector.extract_strided_slice %436 {offsets = [0, 96], sizes = [8, 32], strides = [1, 1]} : vector<8x128xf32> to vector<8x32xf32>
    %cst_170 = arith.constant 5.000000e-01 : f32
    %456 = vector.broadcast %cst_170 : f32 to vector<8x32xf32>
    %457 = arith.mulf %456, %455 : vector<8x32xf32>
    %458 = math.tanh %457 : vector<8x32xf32>
    %cst_171 = arith.constant 5.000000e-01 : f32
    %459 = vector.broadcast %cst_171 : f32 to vector<8x32xf32>
    %460 = arith.mulf %459, %458 : vector<8x32xf32>
    %cst_172 = arith.constant 5.000000e-01 : f32
    %461 = vector.broadcast %cst_172 : f32 to vector<8x32xf32>
    %462 = arith.addf %460, %461 : vector<8x32xf32>
    %463 = arith.mulf %452, %423 : vector<8x32xf32>
    %464 = arith.mulf %444, %454 : vector<8x32xf32>
    %465 = arith.addf %463, %464 : vector<8x32xf32>
    %466 = math.tanh %465 : vector<8x32xf32>
    %467 = arith.mulf %462, %466 : vector<8x32xf32>
    %468 = arith.truncf %467 : vector<8x32xf32> to vector<8x32xbf16>
    %469 = arith.index_cast %430 : i32 to index
    %c0_173 = arith.constant 0 : index
    %470 = vector.load %arg13[%469, %c0_173] : memref<128x32xbf16, #tpu.memory_space<vmem>>, vector<8x32xbf16>
    tpu.vector_store %arg13[%469, %c0_173], %468 {strides = array<i32>} : memref<128x32xbf16, #tpu.memory_space<vmem>>, vector<8x32xbf16>,
    %c11_i32 = arith.constant 11 : i32
    %c8_i32_174 = arith.constant 8 : i32
    %471 = arith.muli %c11_i32, %c8_i32_174 : i32
    %472 = tpu.assume_multiple %471, 8 : i32
    %473 = arith.index_cast %472 : i32 to index
    %c0_175 = arith.constant 0 : index
    %474 = vector.load %arg12[%473, %c0_175] : memref<128x128xf32, #tpu.memory_space<vmem>>, vector<8x128xf32>
    %475 = arith.truncf %467 : vector<8x32xf32> to vector<8x32xbf16>
    %c0_176 = arith.constant 0 : index
    %c0_177 = arith.constant 0 : index
    %476 = vector.load %arg3[%c0_176, %c0_177] : memref<32x128xbf16, #tpu.memory_space<vmem>>, vector<32x128xbf16>
    %cst_178 = arith.constant dense<0.000000e+00> : vector<8x128xf32>
    %477 = tpu.matmul %475, %476, %cst_178 {dimension_numbers = #tpu.dot_dimension_numbers<[1], [0], [0], [1], [0, 0, 1, 1], [], []>} : vector<8x32xbf16>, vector<32x128xbf16>, vector<8x128xf32> -> vector<8x128xf32>
    %478 = arith.addf %474, %477 : vector<8x128xf32>
    %479 = vector.extract_strided_slice %478 {offsets = [0, 0], sizes = [8, 32], strides = [1, 1]} : vector<8x128xf32> to vector<8x32xf32>
    %cst_179 = arith.constant 5.000000e-01 : f32
    %480 = vector.broadcast %cst_179 : f32 to vector<8x32xf32>
    %481 = arith.mulf %480, %479 : vector<8x32xf32>
    %482 = math.tanh %481 : vector<8x32xf32>
    %cst_180 = arith.constant 5.000000e-01 : f32
    %483 = vector.broadcast %cst_180 : f32 to vector<8x32xf32>
    %484 = arith.mulf %483, %482 : vector<8x32xf32>
    %cst_181 = arith.constant 5.000000e-01 : f32
    %485 = vector.broadcast %cst_181 : f32 to vector<8x32xf32>
    %486 = arith.addf %484, %485 : vector<8x32xf32>
    %487 = vector.extract_strided_slice %478 {offsets = [0, 32], sizes = [8, 32], strides = [1, 1]} : vector<8x128xf32> to vector<8x32xf32>
    %cst_182 = arith.constant 5.000000e-01 : f32
    %488 = vector.broadcast %cst_182 : f32 to vector<8x32xf32>
    %489 = arith.mulf %488, %487 : vector<8x32xf32>
    %490 = math.tanh %489 : vector<8x32xf32>
    %cst_183 = arith.constant 5.000000e-01 : f32
    %491 = vector.broadcast %cst_183 : f32 to vector<8x32xf32>
    %492 = arith.mulf %491, %490 : vector<8x32xf32>
    %cst_184 = arith.constant 5.000000e-01 : f32
    %493 = vector.broadcast %cst_184 : f32 to vector<8x32xf32>
    %494 = arith.addf %492, %493 : vector<8x32xf32>
    %495 = vector.extract_strided_slice %478 {offsets = [0, 64], sizes = [8, 32], strides = [1, 1]} : vector<8x128xf32> to vector<8x32xf32>
    %496 = math.tanh %495 : vector<8x32xf32>
    %497 = vector.extract_strided_slice %478 {offsets = [0, 96], sizes = [8, 32], strides = [1, 1]} : vector<8x128xf32> to vector<8x32xf32>
    %cst_185 = arith.constant 5.000000e-01 : f32
    %498 = vector.broadcast %cst_185 : f32 to vector<8x32xf32>
    %499 = arith.mulf %498, %497 : vector<8x32xf32>
    %500 = math.tanh %499 : vector<8x32xf32>
    %cst_186 = arith.constant 5.000000e-01 : f32
    %501 = vector.broadcast %cst_186 : f32 to vector<8x32xf32>
    %502 = arith.mulf %501, %500 : vector<8x32xf32>
    %cst_187 = arith.constant 5.000000e-01 : f32
    %503 = vector.broadcast %cst_187 : f32 to vector<8x32xf32>
    %504 = arith.addf %502, %503 : vector<8x32xf32>
    %505 = arith.mulf %494, %465 : vector<8x32xf32>
    %506 = arith.mulf %486, %496 : vector<8x32xf32>
    %507 = arith.addf %505, %506 : vector<8x32xf32>
    %508 = math.tanh %507 : vector<8x32xf32>
    %509 = arith.mulf %504, %508 : vector<8x32xf32>
    %510 = arith.truncf %509 : vector<8x32xf32> to vector<8x32xbf16>
    %511 = arith.index_cast %472 : i32 to index
    %c0_188 = arith.constant 0 : index
    %512 = vector.load %arg13[%511, %c0_188] : memref<128x32xbf16, #tpu.memory_space<vmem>>, vector<8x32xbf16>
    tpu.vector_store %arg13[%511, %c0_188], %510 {strides = array<i32>} : memref<128x32xbf16, #tpu.memory_space<vmem>>, vector<8x32xbf16>,
    %c12_i32 = arith.constant 12 : i32
    %c8_i32_189 = arith.constant 8 : i32
    %513 = arith.muli %c12_i32, %c8_i32_189 : i32
    %514 = tpu.assume_multiple %513, 8 : i32
    %515 = arith.index_cast %514 : i32 to index
    %c0_190 = arith.constant 0 : index
    %516 = vector.load %arg12[%515, %c0_190] : memref<128x128xf32, #tpu.memory_space<vmem>>, vector<8x128xf32>
    %517 = arith.truncf %509 : vector<8x32xf32> to vector<8x32xbf16>
    %c0_191 = arith.constant 0 : index
    %c0_192 = arith.constant 0 : index
    %518 = vector.load %arg3[%c0_191, %c0_192] : memref<32x128xbf16, #tpu.memory_space<vmem>>, vector<32x128xbf16>
    %cst_193 = arith.constant dense<0.000000e+00> : vector<8x128xf32>
    %519 = tpu.matmul %517, %518, %cst_193 {dimension_numbers = #tpu.dot_dimension_numbers<[1], [0], [0], [1], [0, 0, 1, 1], [], []>} : vector<8x32xbf16>, vector<32x128xbf16>, vector<8x128xf32> -> vector<8x128xf32>
    %520 = arith.addf %516, %519 : vector<8x128xf32>
    %521 = vector.extract_strided_slice %520 {offsets = [0, 0], sizes = [8, 32], strides = [1, 1]} : vector<8x128xf32> to vector<8x32xf32>
    %cst_194 = arith.constant 5.000000e-01 : f32
    %522 = vector.broadcast %cst_194 : f32 to vector<8x32xf32>
    %523 = arith.mulf %522, %521 : vector<8x32xf32>
    %524 = math.tanh %523 : vector<8x32xf32>
    %cst_195 = arith.constant 5.000000e-01 : f32
    %525 = vector.broadcast %cst_195 : f32 to vector<8x32xf32>
    %526 = arith.mulf %525, %524 : vector<8x32xf32>
    %cst_196 = arith.constant 5.000000e-01 : f32
    %527 = vector.broadcast %cst_196 : f32 to vector<8x32xf32>
    %528 = arith.addf %526, %527 : vector<8x32xf32>
    %529 = vector.extract_strided_slice %520 {offsets = [0, 32], sizes = [8, 32], strides = [1, 1]} : vector<8x128xf32> to vector<8x32xf32>
    %cst_197 = arith.constant 5.000000e-01 : f32
    %530 = vector.broadcast %cst_197 : f32 to vector<8x32xf32>
    %531 = arith.mulf %530, %529 : vector<8x32xf32>
    %532 = math.tanh %531 : vector<8x32xf32>
    %cst_198 = arith.constant 5.000000e-01 : f32
    %533 = vector.broadcast %cst_198 : f32 to vector<8x32xf32>
    %534 = arith.mulf %533, %532 : vector<8x32xf32>
    %cst_199 = arith.constant 5.000000e-01 : f32
    %535 = vector.broadcast %cst_199 : f32 to vector<8x32xf32>
    %536 = arith.addf %534, %535 : vector<8x32xf32>
    %537 = vector.extract_strided_slice %520 {offsets = [0, 64], sizes = [8, 32], strides = [1, 1]} : vector<8x128xf32> to vector<8x32xf32>
    %538 = math.tanh %537 : vector<8x32xf32>
    %539 = vector.extract_strided_slice %520 {offsets = [0, 96], sizes = [8, 32], strides = [1, 1]} : vector<8x128xf32> to vector<8x32xf32>
    %cst_200 = arith.constant 5.000000e-01 : f32
    %540 = vector.broadcast %cst_200 : f32 to vector<8x32xf32>
    %541 = arith.mulf %540, %539 : vector<8x32xf32>
    %542 = math.tanh %541 : vector<8x32xf32>
    %cst_201 = arith.constant 5.000000e-01 : f32
    %543 = vector.broadcast %cst_201 : f32 to vector<8x32xf32>
    %544 = arith.mulf %543, %542 : vector<8x32xf32>
    %cst_202 = arith.constant 5.000000e-01 : f32
    %545 = vector.broadcast %cst_202 : f32 to vector<8x32xf32>
    %546 = arith.addf %544, %545 : vector<8x32xf32>
    %547 = arith.mulf %536, %507 : vector<8x32xf32>
    %548 = arith.mulf %528, %538 : vector<8x32xf32>
    %549 = arith.addf %547, %548 : vector<8x32xf32>
    %550 = math.tanh %549 : vector<8x32xf32>
    %551 = arith.mulf %546, %550 : vector<8x32xf32>
    %552 = arith.truncf %551 : vector<8x32xf32> to vector<8x32xbf16>
    %553 = arith.index_cast %514 : i32 to index
    %c0_203 = arith.constant 0 : index
    %554 = vector.load %arg13[%553, %c0_203] : memref<128x32xbf16, #tpu.memory_space<vmem>>, vector<8x32xbf16>
    tpu.vector_store %arg13[%553, %c0_203], %552 {strides = array<i32>} : memref<128x32xbf16, #tpu.memory_space<vmem>>, vector<8x32xbf16>,
    %c13_i32 = arith.constant 13 : i32
    %c8_i32_204 = arith.constant 8 : i32
    %555 = arith.muli %c13_i32, %c8_i32_204 : i32
    %556 = tpu.assume_multiple %555, 8 : i32
    %557 = arith.index_cast %556 : i32 to index
    %c0_205 = arith.constant 0 : index
    %558 = vector.load %arg12[%557, %c0_205] : memref<128x128xf32, #tpu.memory_space<vmem>>, vector<8x128xf32>
    %559 = arith.truncf %551 : vector<8x32xf32> to vector<8x32xbf16>
    %c0_206 = arith.constant 0 : index
    %c0_207 = arith.constant 0 : index
    %560 = vector.load %arg3[%c0_206, %c0_207] : memref<32x128xbf16, #tpu.memory_space<vmem>>, vector<32x128xbf16>
    %cst_208 = arith.constant dense<0.000000e+00> : vector<8x128xf32>
    %561 = tpu.matmul %559, %560, %cst_208 {dimension_numbers = #tpu.dot_dimension_numbers<[1], [0], [0], [1], [0, 0, 1, 1], [], []>} : vector<8x32xbf16>, vector<32x128xbf16>, vector<8x128xf32> -> vector<8x128xf32>
    %562 = arith.addf %558, %561 : vector<8x128xf32>
    %563 = vector.extract_strided_slice %562 {offsets = [0, 0], sizes = [8, 32], strides = [1, 1]} : vector<8x128xf32> to vector<8x32xf32>
    %cst_209 = arith.constant 5.000000e-01 : f32
    %564 = vector.broadcast %cst_209 : f32 to vector<8x32xf32>
    %565 = arith.mulf %564, %563 : vector<8x32xf32>
    %566 = math.tanh %565 : vector<8x32xf32>
    %cst_210 = arith.constant 5.000000e-01 : f32
    %567 = vector.broadcast %cst_210 : f32 to vector<8x32xf32>
    %568 = arith.mulf %567, %566 : vector<8x32xf32>
    %cst_211 = arith.constant 5.000000e-01 : f32
    %569 = vector.broadcast %cst_211 : f32 to vector<8x32xf32>
    %570 = arith.addf %568, %569 : vector<8x32xf32>
    %571 = vector.extract_strided_slice %562 {offsets = [0, 32], sizes = [8, 32], strides = [1, 1]} : vector<8x128xf32> to vector<8x32xf32>
    %cst_212 = arith.constant 5.000000e-01 : f32
    %572 = vector.broadcast %cst_212 : f32 to vector<8x32xf32>
    %573 = arith.mulf %572, %571 : vector<8x32xf32>
    %574 = math.tanh %573 : vector<8x32xf32>
    %cst_213 = arith.constant 5.000000e-01 : f32
    %575 = vector.broadcast %cst_213 : f32 to vector<8x32xf32>
    %576 = arith.mulf %575, %574 : vector<8x32xf32>
    %cst_214 = arith.constant 5.000000e-01 : f32
    %577 = vector.broadcast %cst_214 : f32 to vector<8x32xf32>
    %578 = arith.addf %576, %577 : vector<8x32xf32>
    %579 = vector.extract_strided_slice %562 {offsets = [0, 64], sizes = [8, 32], strides = [1, 1]} : vector<8x128xf32> to vector<8x32xf32>
    %580 = math.tanh %579 : vector<8x32xf32>
    %581 = vector.extract_strided_slice %562 {offsets = [0, 96], sizes = [8, 32], strides = [1, 1]} : vector<8x128xf32> to vector<8x32xf32>
    %cst_215 = arith.constant 5.000000e-01 : f32
    %582 = vector.broadcast %cst_215 : f32 to vector<8x32xf32>
    %583 = arith.mulf %582, %581 : vector<8x32xf32>
    %584 = math.tanh %583 : vector<8x32xf32>
    %cst_216 = arith.constant 5.000000e-01 : f32
    %585 = vector.broadcast %cst_216 : f32 to vector<8x32xf32>
    %586 = arith.mulf %585, %584 : vector<8x32xf32>
    %cst_217 = arith.constant 5.000000e-01 : f32
    %587 = vector.broadcast %cst_217 : f32 to vector<8x32xf32>
    %588 = arith.addf %586, %587 : vector<8x32xf32>
    %589 = arith.mulf %578, %549 : vector<8x32xf32>
    %590 = arith.mulf %570, %580 : vector<8x32xf32>
    %591 = arith.addf %589, %590 : vector<8x32xf32>
    %592 = math.tanh %591 : vector<8x32xf32>
    %593 = arith.mulf %588, %592 : vector<8x32xf32>
    %594 = arith.truncf %593 : vector<8x32xf32> to vector<8x32xbf16>
    %595 = arith.index_cast %556 : i32 to index
    %c0_218 = arith.constant 0 : index
    %596 = vector.load %arg13[%595, %c0_218] : memref<128x32xbf16, #tpu.memory_space<vmem>>, vector<8x32xbf16>
    tpu.vector_store %arg13[%595, %c0_218], %594 {strides = array<i32>} : memref<128x32xbf16, #tpu.memory_space<vmem>>, vector<8x32xbf16>,
    %c14_i32 = arith.constant 14 : i32
    %c8_i32_219 = arith.constant 8 : i32
    %597 = arith.muli %c14_i32, %c8_i32_219 : i32
    %598 = tpu.assume_multiple %597, 8 : i32
    %599 = arith.index_cast %598 : i32 to index
    %c0_220 = arith.constant 0 : index
    %600 = vector.load %arg12[%599, %c0_220] : memref<128x128xf32, #tpu.memory_space<vmem>>, vector<8x128xf32>
    %601 = arith.truncf %593 : vector<8x32xf32> to vector<8x32xbf16>
    %c0_221 = arith.constant 0 : index
    %c0_222 = arith.constant 0 : index
    %602 = vector.load %arg3[%c0_221, %c0_222] : memref<32x128xbf16, #tpu.memory_space<vmem>>, vector<32x128xbf16>
    %cst_223 = arith.constant dense<0.000000e+00> : vector<8x128xf32>
    %603 = tpu.matmul %601, %602, %cst_223 {dimension_numbers = #tpu.dot_dimension_numbers<[1], [0], [0], [1], [0, 0, 1, 1], [], []>} : vector<8x32xbf16>, vector<32x128xbf16>, vector<8x128xf32> -> vector<8x128xf32>
    %604 = arith.addf %600, %603 : vector<8x128xf32>
    %605 = vector.extract_strided_slice %604 {offsets = [0, 0], sizes = [8, 32], strides = [1, 1]} : vector<8x128xf32> to vector<8x32xf32>
    %cst_224 = arith.constant 5.000000e-01 : f32
    %606 = vector.broadcast %cst_224 : f32 to vector<8x32xf32>
    %607 = arith.mulf %606, %605 : vector<8x32xf32>
    %608 = math.tanh %607 : vector<8x32xf32>
    %cst_225 = arith.constant 5.000000e-01 : f32
    %609 = vector.broadcast %cst_225 : f32 to vector<8x32xf32>
    %610 = arith.mulf %609, %608 : vector<8x32xf32>
    %cst_226 = arith.constant 5.000000e-01 : f32
    %611 = vector.broadcast %cst_226 : f32 to vector<8x32xf32>
    %612 = arith.addf %610, %611 : vector<8x32xf32>
    %613 = vector.extract_strided_slice %604 {offsets = [0, 32], sizes = [8, 32], strides = [1, 1]} : vector<8x128xf32> to vector<8x32xf32>
    %cst_227 = arith.constant 5.000000e-01 : f32
    %614 = vector.broadcast %cst_227 : f32 to vector<8x32xf32>
    %615 = arith.mulf %614, %613 : vector<8x32xf32>
    %616 = math.tanh %615 : vector<8x32xf32>
    %cst_228 = arith.constant 5.000000e-01 : f32
    %617 = vector.broadcast %cst_228 : f32 to vector<8x32xf32>
    %618 = arith.mulf %617, %616 : vector<8x32xf32>
    %cst_229 = arith.constant 5.000000e-01 : f32
    %619 = vector.broadcast %cst_229 : f32 to vector<8x32xf32>
    %620 = arith.addf %618, %619 : vector<8x32xf32>
    %621 = vector.extract_strided_slice %604 {offsets = [0, 64], sizes = [8, 32], strides = [1, 1]} : vector<8x128xf32> to vector<8x32xf32>
    %622 = math.tanh %621 : vector<8x32xf32>
    %623 = vector.extract_strided_slice %604 {offsets = [0, 96], sizes = [8, 32], strides = [1, 1]} : vector<8x128xf32> to vector<8x32xf32>
    %cst_230 = arith.constant 5.000000e-01 : f32
    %624 = vector.broadcast %cst_230 : f32 to vector<8x32xf32>
    %625 = arith.mulf %624, %623 : vector<8x32xf32>
    %626 = math.tanh %625 : vector<8x32xf32>
    %cst_231 = arith.constant 5.000000e-01 : f32
    %627 = vector.broadcast %cst_231 : f32 to vector<8x32xf32>
    %628 = arith.mulf %627, %626 : vector<8x32xf32>
    %cst_232 = arith.constant 5.000000e-01 : f32
    %629 = vector.broadcast %cst_232 : f32 to vector<8x32xf32>
    %630 = arith.addf %628, %629 : vector<8x32xf32>
    %631 = arith.mulf %620, %591 : vector<8x32xf32>
    %632 = arith.mulf %612, %622 : vector<8x32xf32>
    %633 = arith.addf %631, %632 : vector<8x32xf32>
    %634 = math.tanh %633 : vector<8x32xf32>
    %635 = arith.mulf %630, %634 : vector<8x32xf32>
    %636 = arith.truncf %635 : vector<8x32xf32> to vector<8x32xbf16>
    %637 = arith.index_cast %598 : i32 to index
    %c0_233 = arith.constant 0 : index
    %638 = vector.load %arg13[%637, %c0_233] : memref<128x32xbf16, #tpu.memory_space<vmem>>, vector<8x32xbf16>
    tpu.vector_store %arg13[%637, %c0_233], %636 {strides = array<i32>} : memref<128x32xbf16, #tpu.memory_space<vmem>>, vector<8x32xbf16>,
    %c15_i32 = arith.constant 15 : i32
    %c8_i32_234 = arith.constant 8 : i32
    %639 = arith.muli %c15_i32, %c8_i32_234 : i32
    %640 = tpu.assume_multiple %639, 8 : i32
    %641 = arith.index_cast %640 : i32 to index
    %c0_235 = arith.constant 0 : index
    %642 = vector.load %arg12[%641, %c0_235] : memref<128x128xf32, #tpu.memory_space<vmem>>, vector<8x128xf32>
    %643 = arith.truncf %635 : vector<8x32xf32> to vector<8x32xbf16>
    %c0_236 = arith.constant 0 : index
    %c0_237 = arith.constant 0 : index
    %644 = vector.load %arg3[%c0_236, %c0_237] : memref<32x128xbf16, #tpu.memory_space<vmem>>, vector<32x128xbf16>
    %cst_238 = arith.constant dense<0.000000e+00> : vector<8x128xf32>
    %645 = tpu.matmul %643, %644, %cst_238 {dimension_numbers = #tpu.dot_dimension_numbers<[1], [0], [0], [1], [0, 0, 1, 1], [], []>} : vector<8x32xbf16>, vector<32x128xbf16>, vector<8x128xf32> -> vector<8x128xf32>
    %646 = arith.addf %642, %645 : vector<8x128xf32>
    %647 = vector.extract_strided_slice %646 {offsets = [0, 0], sizes = [8, 32], strides = [1, 1]} : vector<8x128xf32> to vector<8x32xf32>
    %cst_239 = arith.constant 5.000000e-01 : f32
    %648 = vector.broadcast %cst_239 : f32 to vector<8x32xf32>
    %649 = arith.mulf %648, %647 : vector<8x32xf32>
    %650 = math.tanh %649 : vector<8x32xf32>
    %cst_240 = arith.constant 5.000000e-01 : f32
    %651 = vector.broadcast %cst_240 : f32 to vector<8x32xf32>
    %652 = arith.mulf %651, %650 : vector<8x32xf32>
    %cst_241 = arith.constant 5.000000e-01 : f32
    %653 = vector.broadcast %cst_241 : f32 to vector<8x32xf32>
    %654 = arith.addf %652, %653 : vector<8x32xf32>
    %655 = vector.extract_strided_slice %646 {offsets = [0, 32], sizes = [8, 32], strides = [1, 1]} : vector<8x128xf32> to vector<8x32xf32>
    %cst_242 = arith.constant 5.000000e-01 : f32
    %656 = vector.broadcast %cst_242 : f32 to vector<8x32xf32>
    %657 = arith.mulf %656, %655 : vector<8x32xf32>
    %658 = math.tanh %657 : vector<8x32xf32>
    %cst_243 = arith.constant 5.000000e-01 : f32
    %659 = vector.broadcast %cst_243 : f32 to vector<8x32xf32>
    %660 = arith.mulf %659, %658 : vector<8x32xf32>
    %cst_244 = arith.constant 5.000000e-01 : f32
    %661 = vector.broadcast %cst_244 : f32 to vector<8x32xf32>
    %662 = arith.addf %660, %661 : vector<8x32xf32>
    %663 = vector.extract_strided_slice %646 {offsets = [0, 64], sizes = [8, 32], strides = [1, 1]} : vector<8x128xf32> to vector<8x32xf32>
    %664 = math.tanh %663 : vector<8x32xf32>
    %665 = vector.extract_strided_slice %646 {offsets = [0, 96], sizes = [8, 32], strides = [1, 1]} : vector<8x128xf32> to vector<8x32xf32>
    %cst_245 = arith.constant 5.000000e-01 : f32
    %666 = vector.broadcast %cst_245 : f32 to vector<8x32xf32>
    %667 = arith.mulf %666, %665 : vector<8x32xf32>
    %668 = math.tanh %667 : vector<8x32xf32>
    %cst_246 = arith.constant 5.000000e-01 : f32
    %669 = vector.broadcast %cst_246 : f32 to vector<8x32xf32>
    %670 = arith.mulf %669, %668 : vector<8x32xf32>
    %cst_247 = arith.constant 5.000000e-01 : f32
    %671 = vector.broadcast %cst_247 : f32 to vector<8x32xf32>
    %672 = arith.addf %670, %671 : vector<8x32xf32>
    %673 = arith.mulf %662, %633 : vector<8x32xf32>
    %674 = arith.mulf %654, %664 : vector<8x32xf32>
    %675 = arith.addf %673, %674 : vector<8x32xf32>
    %676 = math.tanh %675 : vector<8x32xf32>
    %677 = arith.mulf %672, %676 : vector<8x32xf32>
    %678 = arith.truncf %677 : vector<8x32xf32> to vector<8x32xbf16>
    %679 = arith.index_cast %640 : i32 to index
    %c0_248 = arith.constant 0 : index
    %680 = vector.load %arg13[%679, %c0_248] : memref<128x32xbf16, #tpu.memory_space<vmem>>, vector<8x32xbf16>
    tpu.vector_store %arg13[%679, %c0_248], %678 {strides = array<i32>} : memref<128x32xbf16, #tpu.memory_space<vmem>>, vector<8x32xbf16>,
    %c16_i32 = arith.constant 16 : i32
    %c0_249 = arith.constant 0 : index
    %c0_250 = arith.constant 0 : index
    %681 = vector.load %arg13[%c0_249, %c0_250] : memref<128x32xbf16, #tpu.memory_space<vmem>>, vector<128x32xbf16>
    %c0_251 = arith.constant 0 : index
    %c0_252 = arith.constant 0 : index
    %682 = vector.load %arg5[%c0_251, %c0_252] : memref<32x128xbf16, #tpu.memory_space<vmem>>, vector<32x128xbf16>
    %cst_253 = arith.constant dense<0.000000e+00> : vector<128x128xf32>
    %683 = tpu.matmul %681, %682, %cst_253 {dimension_numbers = #tpu.dot_dimension_numbers<[1], [0], [0], [1], [0, 0, 1, 1], [], []>} : vector<128x32xbf16>, vector<32x128xbf16>, vector<128x128xf32> -> vector<128x128xf32>
    %c0_254 = arith.constant 0 : index
    %c0_255 = arith.constant 0 : index
    %684 = vector.load %arg7[%c0_254, %c0_255] : memref<1x128xf32, #tpu.memory_space<vmem>>, vector<1x128xf32>
    %685 = vector.broadcast %684 : vector<1x128xf32> to vector<128x128xf32>
    %686 = arith.addf %683, %685 : vector<128x128xf32>
    %c0_256 = arith.constant 0 : index
    %c0_257 = arith.constant 0 : index
    %687 = vector.load %arg12[%c0_256, %c0_257] : memref<128x128xf32, #tpu.memory_space<vmem>>, vector<128x128xf32>
    tpu.vector_store %arg12[%c0_256, %c0_257], %686 {strides = array<i32>} : memref<128x128xf32, #tpu.memory_space<vmem>>, vector<128x128xf32>,
    %cst_258 = arith.constant 0.000000e+00 : f32
    %688 = vector.broadcast %cst_258 : f32 to vector<8x32xf32>
    %c0_i32_259 = arith.constant 0 : i32
    %c8_i32_260 = arith.constant 8 : i32
    %689 = arith.muli %c0_i32_259, %c8_i32_260 : i32
    %690 = tpu.assume_multiple %689, 8 : i32
    %691 = arith.index_cast %690 : i32 to index
    %c0_261 = arith.constant 0 : index
    %692 = vector.load %arg12[%691, %c0_261] : memref<128x128xf32, #tpu.memory_space<vmem>>, vector<8x128xf32>
    %693 = arith.truncf %688 : vector<8x32xf32> to vector<8x32xbf16>
    %c0_262 = arith.constant 0 : index
    %c0_263 = arith.constant 0 : index
    %694 = vector.load %arg6[%c0_262, %c0_263] : memref<32x128xbf16, #tpu.memory_space<vmem>>, vector<32x128xbf16>
    %cst_264 = arith.constant dense<0.000000e+00> : vector<8x128xf32>
    %695 = tpu.matmul %693, %694, %cst_264 {dimension_numbers = #tpu.dot_dimension_numbers<[1], [0], [0], [1], [0, 0, 1, 1], [], []>} : vector<8x32xbf16>, vector<32x128xbf16>, vector<8x128xf32> -> vector<8x128xf32>
    %696 = arith.addf %692, %695 : vector<8x128xf32>
    %697 = vector.extract_strided_slice %696 {offsets = [0, 0], sizes = [8, 32], strides = [1, 1]} : vector<8x128xf32> to vector<8x32xf32>
    %cst_265 = arith.constant 5.000000e-01 : f32
    %698 = vector.broadcast %cst_265 : f32 to vector<8x32xf32>
    %699 = arith.mulf %698, %697 : vector<8x32xf32>
    %700 = math.tanh %699 : vector<8x32xf32>
    %cst_266 = arith.constant 5.000000e-01 : f32
    %701 = vector.broadcast %cst_266 : f32 to vector<8x32xf32>
    %702 = arith.mulf %701, %700 : vector<8x32xf32>
    %cst_267 = arith.constant 5.000000e-01 : f32
    %703 = vector.broadcast %cst_267 : f32 to vector<8x32xf32>
    %704 = arith.addf %702, %703 : vector<8x32xf32>
    %705 = vector.extract_strided_slice %696 {offsets = [0, 32], sizes = [8, 32], strides = [1, 1]} : vector<8x128xf32> to vector<8x32xf32>
    %cst_268 = arith.constant 5.000000e-01 : f32
    %706 = vector.broadcast %cst_268 : f32 to vector<8x32xf32>
    %707 = arith.mulf %706, %705 : vector<8x32xf32>
    %708 = math.tanh %707 : vector<8x32xf32>
    %cst_269 = arith.constant 5.000000e-01 : f32
    %709 = vector.broadcast %cst_269 : f32 to vector<8x32xf32>
    %710 = arith.mulf %709, %708 : vector<8x32xf32>
    %cst_270 = arith.constant 5.000000e-01 : f32
    %711 = vector.broadcast %cst_270 : f32 to vector<8x32xf32>
    %712 = arith.addf %710, %711 : vector<8x32xf32>
    %713 = vector.extract_strided_slice %696 {offsets = [0, 64], sizes = [8, 32], strides = [1, 1]} : vector<8x128xf32> to vector<8x32xf32>
    %714 = math.tanh %713 : vector<8x32xf32>
    %715 = vector.extract_strided_slice %696 {offsets = [0, 96], sizes = [8, 32], strides = [1, 1]} : vector<8x128xf32> to vector<8x32xf32>
    %cst_271 = arith.constant 5.000000e-01 : f32
    %716 = vector.broadcast %cst_271 : f32 to vector<8x32xf32>
    %717 = arith.mulf %716, %715 : vector<8x32xf32>
    %718 = math.tanh %717 : vector<8x32xf32>
    %cst_272 = arith.constant 5.000000e-01 : f32
    %719 = vector.broadcast %cst_272 : f32 to vector<8x32xf32>
    %720 = arith.mulf %719, %718 : vector<8x32xf32>
    %cst_273 = arith.constant 5.000000e-01 : f32
    %721 = vector.broadcast %cst_273 : f32 to vector<8x32xf32>
    %722 = arith.addf %720, %721 : vector<8x32xf32>
    %723 = arith.mulf %712, %688 : vector<8x32xf32>
    %724 = arith.mulf %704, %714 : vector<8x32xf32>
    %725 = arith.addf %723, %724 : vector<8x32xf32>
    %726 = math.tanh %725 : vector<8x32xf32>
    %727 = arith.mulf %722, %726 : vector<8x32xf32>
    %728 = arith.truncf %727 : vector<8x32xf32> to vector<8x32xbf16>
    %729 = arith.index_cast %690 : i32 to index
    %c0_274 = arith.constant 0 : index
    %730 = vector.load %arg14[%729, %c0_274] : memref<128x32xbf16, #tpu.memory_space<vmem>>, vector<8x32xbf16>
    tpu.vector_store %arg14[%729, %c0_274], %728 {strides = array<i32>} : memref<128x32xbf16, #tpu.memory_space<vmem>>, vector<8x32xbf16>,
    %c1_i32_275 = arith.constant 1 : i32
    %c8_i32_276 = arith.constant 8 : i32
    %731 = arith.muli %c1_i32_275, %c8_i32_276 : i32
    %732 = tpu.assume_multiple %731, 8 : i32
    %733 = arith.index_cast %732 : i32 to index
    %c0_277 = arith.constant 0 : index
    %734 = vector.load %arg12[%733, %c0_277] : memref<128x128xf32, #tpu.memory_space<vmem>>, vector<8x128xf32>
    %735 = arith.truncf %727 : vector<8x32xf32> to vector<8x32xbf16>
    %c0_278 = arith.constant 0 : index
    %c0_279 = arith.constant 0 : index
    %736 = vector.load %arg6[%c0_278, %c0_279] : memref<32x128xbf16, #tpu.memory_space<vmem>>, vector<32x128xbf16>
    %cst_280 = arith.constant dense<0.000000e+00> : vector<8x128xf32>
    %737 = tpu.matmul %735, %736, %cst_280 {dimension_numbers = #tpu.dot_dimension_numbers<[1], [0], [0], [1], [0, 0, 1, 1], [], []>} : vector<8x32xbf16>, vector<32x128xbf16>, vector<8x128xf32> -> vector<8x128xf32>
    %738 = arith.addf %734, %737 : vector<8x128xf32>
    %739 = vector.extract_strided_slice %738 {offsets = [0, 0], sizes = [8, 32], strides = [1, 1]} : vector<8x128xf32> to vector<8x32xf32>
    %cst_281 = arith.constant 5.000000e-01 : f32
    %740 = vector.broadcast %cst_281 : f32 to vector<8x32xf32>
    %741 = arith.mulf %740, %739 : vector<8x32xf32>
    %742 = math.tanh %741 : vector<8x32xf32>
    %cst_282 = arith.constant 5.000000e-01 : f32
    %743 = vector.broadcast %cst_282 : f32 to vector<8x32xf32>
    %744 = arith.mulf %743, %742 : vector<8x32xf32>
    %cst_283 = arith.constant 5.000000e-01 : f32
    %745 = vector.broadcast %cst_283 : f32 to vector<8x32xf32>
    %746 = arith.addf %744, %745 : vector<8x32xf32>
    %747 = vector.extract_strided_slice %738 {offsets = [0, 32], sizes = [8, 32], strides = [1, 1]} : vector<8x128xf32> to vector<8x32xf32>
    %cst_284 = arith.constant 5.000000e-01 : f32
    %748 = vector.broadcast %cst_284 : f32 to vector<8x32xf32>
    %749 = arith.mulf %748, %747 : vector<8x32xf32>
    %750 = math.tanh %749 : vector<8x32xf32>
    %cst_285 = arith.constant 5.000000e-01 : f32
    %751 = vector.broadcast %cst_285 : f32 to vector<8x32xf32>
    %752 = arith.mulf %751, %750 : vector<8x32xf32>
    %cst_286 = arith.constant 5.000000e-01 : f32
    %753 = vector.broadcast %cst_286 : f32 to vector<8x32xf32>
    %754 = arith.addf %752, %753 : vector<8x32xf32>
    %755 = vector.extract_strided_slice %738 {offsets = [0, 64], sizes = [8, 32], strides = [1, 1]} : vector<8x128xf32> to vector<8x32xf32>
    %756 = math.tanh %755 : vector<8x32xf32>
    %757 = vector.extract_strided_slice %738 {offsets = [0, 96], sizes = [8, 32], strides = [1, 1]} : vector<8x128xf32> to vector<8x32xf32>
    %cst_287 = arith.constant 5.000000e-01 : f32
    %758 = vector.broadcast %cst_287 : f32 to vector<8x32xf32>
    %759 = arith.mulf %758, %757 : vector<8x32xf32>
    %760 = math.tanh %759 : vector<8x32xf32>
    %cst_288 = arith.constant 5.000000e-01 : f32
    %761 = vector.broadcast %cst_288 : f32 to vector<8x32xf32>
    %762 = arith.mulf %761, %760 : vector<8x32xf32>
    %cst_289 = arith.constant 5.000000e-01 : f32
    %763 = vector.broadcast %cst_289 : f32 to vector<8x32xf32>
    %764 = arith.addf %762, %763 : vector<8x32xf32>
    %765 = arith.mulf %754, %725 : vector<8x32xf32>
    %766 = arith.mulf %746, %756 : vector<8x32xf32>
    %767 = arith.addf %765, %766 : vector<8x32xf32>
    %768 = math.tanh %767 : vector<8x32xf32>
    %769 = arith.mulf %764, %768 : vector<8x32xf32>
    %770 = arith.truncf %769 : vector<8x32xf32> to vector<8x32xbf16>
    %771 = arith.index_cast %732 : i32 to index
    %c0_290 = arith.constant 0 : index
    %772 = vector.load %arg14[%771, %c0_290] : memref<128x32xbf16, #tpu.memory_space<vmem>>, vector<8x32xbf16>
    tpu.vector_store %arg14[%771, %c0_290], %770 {strides = array<i32>} : memref<128x32xbf16, #tpu.memory_space<vmem>>, vector<8x32xbf16>,
    %c2_i32_291 = arith.constant 2 : i32
    %c8_i32_292 = arith.constant 8 : i32
    %773 = arith.muli %c2_i32_291, %c8_i32_292 : i32
    %774 = tpu.assume_multiple %773, 8 : i32
    %775 = arith.index_cast %774 : i32 to index
    %c0_293 = arith.constant 0 : index
    %776 = vector.load %arg12[%775, %c0_293] : memref<128x128xf32, #tpu.memory_space<vmem>>, vector<8x128xf32>
    %777 = arith.truncf %769 : vector<8x32xf32> to vector<8x32xbf16>
    %c0_294 = arith.constant 0 : index
    %c0_295 = arith.constant 0 : index
    %778 = vector.load %arg6[%c0_294, %c0_295] : memref<32x128xbf16, #tpu.memory_space<vmem>>, vector<32x128xbf16>
    %cst_296 = arith.constant dense<0.000000e+00> : vector<8x128xf32>
    %779 = tpu.matmul %777, %778, %cst_296 {dimension_numbers = #tpu.dot_dimension_numbers<[1], [0], [0], [1], [0, 0, 1, 1], [], []>} : vector<8x32xbf16>, vector<32x128xbf16>, vector<8x128xf32> -> vector<8x128xf32>
    %780 = arith.addf %776, %779 : vector<8x128xf32>
    %781 = vector.extract_strided_slice %780 {offsets = [0, 0], sizes = [8, 32], strides = [1, 1]} : vector<8x128xf32> to vector<8x32xf32>
    %cst_297 = arith.constant 5.000000e-01 : f32
    %782 = vector.broadcast %cst_297 : f32 to vector<8x32xf32>
    %783 = arith.mulf %782, %781 : vector<8x32xf32>
    %784 = math.tanh %783 : vector<8x32xf32>
    %cst_298 = arith.constant 5.000000e-01 : f32
    %785 = vector.broadcast %cst_298 : f32 to vector<8x32xf32>
    %786 = arith.mulf %785, %784 : vector<8x32xf32>
    %cst_299 = arith.constant 5.000000e-01 : f32
    %787 = vector.broadcast %cst_299 : f32 to vector<8x32xf32>
    %788 = arith.addf %786, %787 : vector<8x32xf32>
    %789 = vector.extract_strided_slice %780 {offsets = [0, 32], sizes = [8, 32], strides = [1, 1]} : vector<8x128xf32> to vector<8x32xf32>
    %cst_300 = arith.constant 5.000000e-01 : f32
    %790 = vector.broadcast %cst_300 : f32 to vector<8x32xf32>
    %791 = arith.mulf %790, %789 : vector<8x32xf32>
    %792 = math.tanh %791 : vector<8x32xf32>
    %cst_301 = arith.constant 5.000000e-01 : f32
    %793 = vector.broadcast %cst_301 : f32 to vector<8x32xf32>
    %794 = arith.mulf %793, %792 : vector<8x32xf32>
    %cst_302 = arith.constant 5.000000e-01 : f32
    %795 = vector.broadcast %cst_302 : f32 to vector<8x32xf32>
    %796 = arith.addf %794, %795 : vector<8x32xf32>
    %797 = vector.extract_strided_slice %780 {offsets = [0, 64], sizes = [8, 32], strides = [1, 1]} : vector<8x128xf32> to vector<8x32xf32>
    %798 = math.tanh %797 : vector<8x32xf32>
    %799 = vector.extract_strided_slice %780 {offsets = [0, 96], sizes = [8, 32], strides = [1, 1]} : vector<8x128xf32> to vector<8x32xf32>
    %cst_303 = arith.constant 5.000000e-01 : f32
    %800 = vector.broadcast %cst_303 : f32 to vector<8x32xf32>
    %801 = arith.mulf %800, %799 : vector<8x32xf32>
    %802 = math.tanh %801 : vector<8x32xf32>
    %cst_304 = arith.constant 5.000000e-01 : f32
    %803 = vector.broadcast %cst_304 : f32 to vector<8x32xf32>
    %804 = arith.mulf %803, %802 : vector<8x32xf32>
    %cst_305 = arith.constant 5.000000e-01 : f32
    %805 = vector.broadcast %cst_305 : f32 to vector<8x32xf32>
    %806 = arith.addf %804, %805 : vector<8x32xf32>
    %807 = arith.mulf %796, %767 : vector<8x32xf32>
    %808 = arith.mulf %788, %798 : vector<8x32xf32>
    %809 = arith.addf %807, %808 : vector<8x32xf32>
    %810 = math.tanh %809 : vector<8x32xf32>
    %811 = arith.mulf %806, %810 : vector<8x32xf32>
    %812 = arith.truncf %811 : vector<8x32xf32> to vector<8x32xbf16>
    %813 = arith.index_cast %774 : i32 to index
    %c0_306 = arith.constant 0 : index
    %814 = vector.load %arg14[%813, %c0_306] : memref<128x32xbf16, #tpu.memory_space<vmem>>, vector<8x32xbf16>
    tpu.vector_store %arg14[%813, %c0_306], %812 {strides = array<i32>} : memref<128x32xbf16, #tpu.memory_space<vmem>>, vector<8x32xbf16>,
    %c3_i32_307 = arith.constant 3 : i32
    %c8_i32_308 = arith.constant 8 : i32
    %815 = arith.muli %c3_i32_307, %c8_i32_308 : i32
    %816 = tpu.assume_multiple %815, 8 : i32
    %817 = arith.index_cast %816 : i32 to index
    %c0_309 = arith.constant 0 : index
    %818 = vector.load %arg12[%817, %c0_309] : memref<128x128xf32, #tpu.memory_space<vmem>>, vector<8x128xf32>
    %819 = arith.truncf %811 : vector<8x32xf32> to vector<8x32xbf16>
    %c0_310 = arith.constant 0 : index
    %c0_311 = arith.constant 0 : index
    %820 = vector.load %arg6[%c0_310, %c0_311] : memref<32x128xbf16, #tpu.memory_space<vmem>>, vector<32x128xbf16>
    %cst_312 = arith.constant dense<0.000000e+00> : vector<8x128xf32>
    %821 = tpu.matmul %819, %820, %cst_312 {dimension_numbers = #tpu.dot_dimension_numbers<[1], [0], [0], [1], [0, 0, 1, 1], [], []>} : vector<8x32xbf16>, vector<32x128xbf16>, vector<8x128xf32> -> vector<8x128xf32>
    %822 = arith.addf %818, %821 : vector<8x128xf32>
    %823 = vector.extract_strided_slice %822 {offsets = [0, 0], sizes = [8, 32], strides = [1, 1]} : vector<8x128xf32> to vector<8x32xf32>
    %cst_313 = arith.constant 5.000000e-01 : f32
    %824 = vector.broadcast %cst_313 : f32 to vector<8x32xf32>
    %825 = arith.mulf %824, %823 : vector<8x32xf32>
    %826 = math.tanh %825 : vector<8x32xf32>
    %cst_314 = arith.constant 5.000000e-01 : f32
    %827 = vector.broadcast %cst_314 : f32 to vector<8x32xf32>
    %828 = arith.mulf %827, %826 : vector<8x32xf32>
    %cst_315 = arith.constant 5.000000e-01 : f32
    %829 = vector.broadcast %cst_315 : f32 to vector<8x32xf32>
    %830 = arith.addf %828, %829 : vector<8x32xf32>
    %831 = vector.extract_strided_slice %822 {offsets = [0, 32], sizes = [8, 32], strides = [1, 1]} : vector<8x128xf32> to vector<8x32xf32>
    %cst_316 = arith.constant 5.000000e-01 : f32
    %832 = vector.broadcast %cst_316 : f32 to vector<8x32xf32>
    %833 = arith.mulf %832, %831 : vector<8x32xf32>
    %834 = math.tanh %833 : vector<8x32xf32>
    %cst_317 = arith.constant 5.000000e-01 : f32
    %835 = vector.broadcast %cst_317 : f32 to vector<8x32xf32>
    %836 = arith.mulf %835, %834 : vector<8x32xf32>
    %cst_318 = arith.constant 5.000000e-01 : f32
    %837 = vector.broadcast %cst_318 : f32 to vector<8x32xf32>
    %838 = arith.addf %836, %837 : vector<8x32xf32>
    %839 = vector.extract_strided_slice %822 {offsets = [0, 64], sizes = [8, 32], strides = [1, 1]} : vector<8x128xf32> to vector<8x32xf32>
    %840 = math.tanh %839 : vector<8x32xf32>
    %841 = vector.extract_strided_slice %822 {offsets = [0, 96], sizes = [8, 32], strides = [1, 1]} : vector<8x128xf32> to vector<8x32xf32>
    %cst_319 = arith.constant 5.000000e-01 : f32
    %842 = vector.broadcast %cst_319 : f32 to vector<8x32xf32>
    %843 = arith.mulf %842, %841 : vector<8x32xf32>
    %844 = math.tanh %843 : vector<8x32xf32>
    %cst_320 = arith.constant 5.000000e-01 : f32
    %845 = vector.broadcast %cst_320 : f32 to vector<8x32xf32>
    %846 = arith.mulf %845, %844 : vector<8x32xf32>
    %cst_321 = arith.constant 5.000000e-01 : f32
    %847 = vector.broadcast %cst_321 : f32 to vector<8x32xf32>
    %848 = arith.addf %846, %847 : vector<8x32xf32>
    %849 = arith.mulf %838, %809 : vector<8x32xf32>
    %850 = arith.mulf %830, %840 : vector<8x32xf32>
    %851 = arith.addf %849, %850 : vector<8x32xf32>
    %852 = math.tanh %851 : vector<8x32xf32>
    %853 = arith.mulf %848, %852 : vector<8x32xf32>
    %854 = arith.truncf %853 : vector<8x32xf32> to vector<8x32xbf16>
    %855 = arith.index_cast %816 : i32 to index
    %c0_322 = arith.constant 0 : index
    %856 = vector.load %arg14[%855, %c0_322] : memref<128x32xbf16, #tpu.memory_space<vmem>>, vector<8x32xbf16>
    tpu.vector_store %arg14[%855, %c0_322], %854 {strides = array<i32>} : memref<128x32xbf16, #tpu.memory_space<vmem>>, vector<8x32xbf16>,
    %c4_i32_323 = arith.constant 4 : i32
    %c8_i32_324 = arith.constant 8 : i32
    %857 = arith.muli %c4_i32_323, %c8_i32_324 : i32
    %858 = tpu.assume_multiple %857, 8 : i32
    %859 = arith.index_cast %858 : i32 to index
    %c0_325 = arith.constant 0 : index
    %860 = vector.load %arg12[%859, %c0_325] : memref<128x128xf32, #tpu.memory_space<vmem>>, vector<8x128xf32>
    %861 = arith.truncf %853 : vector<8x32xf32> to vector<8x32xbf16>
    %c0_326 = arith.constant 0 : index
    %c0_327 = arith.constant 0 : index
    %862 = vector.load %arg6[%c0_326, %c0_327] : memref<32x128xbf16, #tpu.memory_space<vmem>>, vector<32x128xbf16>
    %cst_328 = arith.constant dense<0.000000e+00> : vector<8x128xf32>
    %863 = tpu.matmul %861, %862, %cst_328 {dimension_numbers = #tpu.dot_dimension_numbers<[1], [0], [0], [1], [0, 0, 1, 1], [], []>} : vector<8x32xbf16>, vector<32x128xbf16>, vector<8x128xf32> -> vector<8x128xf32>
    %864 = arith.addf %860, %863 : vector<8x128xf32>
    %865 = vector.extract_strided_slice %864 {offsets = [0, 0], sizes = [8, 32], strides = [1, 1]} : vector<8x128xf32> to vector<8x32xf32>
    %cst_329 = arith.constant 5.000000e-01 : f32
    %866 = vector.broadcast %cst_329 : f32 to vector<8x32xf32>
    %867 = arith.mulf %866, %865 : vector<8x32xf32>
    %868 = math.tanh %867 : vector<8x32xf32>
    %cst_330 = arith.constant 5.000000e-01 : f32
    %869 = vector.broadcast %cst_330 : f32 to vector<8x32xf32>
    %870 = arith.mulf %869, %868 : vector<8x32xf32>
    %cst_331 = arith.constant 5.000000e-01 : f32
    %871 = vector.broadcast %cst_331 : f32 to vector<8x32xf32>
    %872 = arith.addf %870, %871 : vector<8x32xf32>
    %873 = vector.extract_strided_slice %864 {offsets = [0, 32], sizes = [8, 32], strides = [1, 1]} : vector<8x128xf32> to vector<8x32xf32>
    %cst_332 = arith.constant 5.000000e-01 : f32
    %874 = vector.broadcast %cst_332 : f32 to vector<8x32xf32>
    %875 = arith.mulf %874, %873 : vector<8x32xf32>
    %876 = math.tanh %875 : vector<8x32xf32>
    %cst_333 = arith.constant 5.000000e-01 : f32
    %877 = vector.broadcast %cst_333 : f32 to vector<8x32xf32>
    %878 = arith.mulf %877, %876 : vector<8x32xf32>
    %cst_334 = arith.constant 5.000000e-01 : f32
    %879 = vector.broadcast %cst_334 : f32 to vector<8x32xf32>
    %880 = arith.addf %878, %879 : vector<8x32xf32>
    %881 = vector.extract_strided_slice %864 {offsets = [0, 64], sizes = [8, 32], strides = [1, 1]} : vector<8x128xf32> to vector<8x32xf32>
    %882 = math.tanh %881 : vector<8x32xf32>
    %883 = vector.extract_strided_slice %864 {offsets = [0, 96], sizes = [8, 32], strides = [1, 1]} : vector<8x128xf32> to vector<8x32xf32>
    %cst_335 = arith.constant 5.000000e-01 : f32
    %884 = vector.broadcast %cst_335 : f32 to vector<8x32xf32>
    %885 = arith.mulf %884, %883 : vector<8x32xf32>
    %886 = math.tanh %885 : vector<8x32xf32>
    %cst_336 = arith.constant 5.000000e-01 : f32
    %887 = vector.broadcast %cst_336 : f32 to vector<8x32xf32>
    %888 = arith.mulf %887, %886 : vector<8x32xf32>
    %cst_337 = arith.constant 5.000000e-01 : f32
    %889 = vector.broadcast %cst_337 : f32 to vector<8x32xf32>
    %890 = arith.addf %888, %889 : vector<8x32xf32>
    %891 = arith.mulf %880, %851 : vector<8x32xf32>
    %892 = arith.mulf %872, %882 : vector<8x32xf32>
    %893 = arith.addf %891, %892 : vector<8x32xf32>
    %894 = math.tanh %893 : vector<8x32xf32>
    %895 = arith.mulf %890, %894 : vector<8x32xf32>
    %896 = arith.truncf %895 : vector<8x32xf32> to vector<8x32xbf16>
    %897 = arith.index_cast %858 : i32 to index
    %c0_338 = arith.constant 0 : index
    %898 = vector.load %arg14[%897, %c0_338] : memref<128x32xbf16, #tpu.memory_space<vmem>>, vector<8x32xbf16>
    tpu.vector_store %arg14[%897, %c0_338], %896 {strides = array<i32>} : memref<128x32xbf16, #tpu.memory_space<vmem>>, vector<8x32xbf16>,
    %c5_i32_339 = arith.constant 5 : i32
    %c8_i32_340 = arith.constant 8 : i32
    %899 = arith.muli %c5_i32_339, %c8_i32_340 : i32
    %900 = tpu.assume_multiple %899, 8 : i32
    %901 = arith.index_cast %900 : i32 to index
    %c0_341 = arith.constant 0 : index
    %902 = vector.load %arg12[%901, %c0_341] : memref<128x128xf32, #tpu.memory_space<vmem>>, vector<8x128xf32>
    %903 = arith.truncf %895 : vector<8x32xf32> to vector<8x32xbf16>
    %c0_342 = arith.constant 0 : index
    %c0_343 = arith.constant 0 : index
    %904 = vector.load %arg6[%c0_342, %c0_343] : memref<32x128xbf16, #tpu.memory_space<vmem>>, vector<32x128xbf16>
    %cst_344 = arith.constant dense<0.000000e+00> : vector<8x128xf32>
    %905 = tpu.matmul %903, %904, %cst_344 {dimension_numbers = #tpu.dot_dimension_numbers<[1], [0], [0], [1], [0, 0, 1, 1], [], []>} : vector<8x32xbf16>, vector<32x128xbf16>, vector<8x128xf32> -> vector<8x128xf32>
    %906 = arith.addf %902, %905 : vector<8x128xf32>
    %907 = vector.extract_strided_slice %906 {offsets = [0, 0], sizes = [8, 32], strides = [1, 1]} : vector<8x128xf32> to vector<8x32xf32>
    %cst_345 = arith.constant 5.000000e-01 : f32
    %908 = vector.broadcast %cst_345 : f32 to vector<8x32xf32>
    %909 = arith.mulf %908, %907 : vector<8x32xf32>
    %910 = math.tanh %909 : vector<8x32xf32>
    %cst_346 = arith.constant 5.000000e-01 : f32
    %911 = vector.broadcast %cst_346 : f32 to vector<8x32xf32>
    %912 = arith.mulf %911, %910 : vector<8x32xf32>
    %cst_347 = arith.constant 5.000000e-01 : f32
    %913 = vector.broadcast %cst_347 : f32 to vector<8x32xf32>
    %914 = arith.addf %912, %913 : vector<8x32xf32>
    %915 = vector.extract_strided_slice %906 {offsets = [0, 32], sizes = [8, 32], strides = [1, 1]} : vector<8x128xf32> to vector<8x32xf32>
    %cst_348 = arith.constant 5.000000e-01 : f32
    %916 = vector.broadcast %cst_348 : f32 to vector<8x32xf32>
    %917 = arith.mulf %916, %915 : vector<8x32xf32>
    %918 = math.tanh %917 : vector<8x32xf32>
    %cst_349 = arith.constant 5.000000e-01 : f32
    %919 = vector.broadcast %cst_349 : f32 to vector<8x32xf32>
    %920 = arith.mulf %919, %918 : vector<8x32xf32>
    %cst_350 = arith.constant 5.000000e-01 : f32
    %921 = vector.broadcast %cst_350 : f32 to vector<8x32xf32>
    %922 = arith.addf %920, %921 : vector<8x32xf32>
    %923 = vector.extract_strided_slice %906 {offsets = [0, 64], sizes = [8, 32], strides = [1, 1]} : vector<8x128xf32> to vector<8x32xf32>
    %924 = math.tanh %923 : vector<8x32xf32>
    %925 = vector.extract_strided_slice %906 {offsets = [0, 96], sizes = [8, 32], strides = [1, 1]} : vector<8x128xf32> to vector<8x32xf32>
    %cst_351 = arith.constant 5.000000e-01 : f32
    %926 = vector.broadcast %cst_351 : f32 to vector<8x32xf32>
    %927 = arith.mulf %926, %925 : vector<8x32xf32>
    %928 = math.tanh %927 : vector<8x32xf32>
    %cst_352 = arith.constant 5.000000e-01 : f32
    %929 = vector.broadcast %cst_352 : f32 to vector<8x32xf32>
    %930 = arith.mulf %929, %928 : vector<8x32xf32>
    %cst_353 = arith.constant 5.000000e-01 : f32
    %931 = vector.broadcast %cst_353 : f32 to vector<8x32xf32>
    %932 = arith.addf %930, %931 : vector<8x32xf32>
    %933 = arith.mulf %922, %893 : vector<8x32xf32>
    %934 = arith.mulf %914, %924 : vector<8x32xf32>
    %935 = arith.addf %933, %934 : vector<8x32xf32>
    %936 = math.tanh %935 : vector<8x32xf32>
    %937 = arith.mulf %932, %936 : vector<8x32xf32>
    %938 = arith.truncf %937 : vector<8x32xf32> to vector<8x32xbf16>
    %939 = arith.index_cast %900 : i32 to index
    %c0_354 = arith.constant 0 : index
    %940 = vector.load %arg14[%939, %c0_354] : memref<128x32xbf16, #tpu.memory_space<vmem>>, vector<8x32xbf16>
    tpu.vector_store %arg14[%939, %c0_354], %938 {strides = array<i32>} : memref<128x32xbf16, #tpu.memory_space<vmem>>, vector<8x32xbf16>,
    %c6_i32_355 = arith.constant 6 : i32
    %c8_i32_356 = arith.constant 8 : i32
    %941 = arith.muli %c6_i32_355, %c8_i32_356 : i32
    %942 = tpu.assume_multiple %941, 8 : i32
    %943 = arith.index_cast %942 : i32 to index
    %c0_357 = arith.constant 0 : index
    %944 = vector.load %arg12[%943, %c0_357] : memref<128x128xf32, #tpu.memory_space<vmem>>, vector<8x128xf32>
    %945 = arith.truncf %937 : vector<8x32xf32> to vector<8x32xbf16>
    %c0_358 = arith.constant 0 : index
    %c0_359 = arith.constant 0 : index
    %946 = vector.load %arg6[%c0_358, %c0_359] : memref<32x128xbf16, #tpu.memory_space<vmem>>, vector<32x128xbf16>
    %cst_360 = arith.constant dense<0.000000e+00> : vector<8x128xf32>
    %947 = tpu.matmul %945, %946, %cst_360 {dimension_numbers = #tpu.dot_dimension_numbers<[1], [0], [0], [1], [0, 0, 1, 1], [], []>} : vector<8x32xbf16>, vector<32x128xbf16>, vector<8x128xf32> -> vector<8x128xf32>
    %948 = arith.addf %944, %947 : vector<8x128xf32>
    %949 = vector.extract_strided_slice %948 {offsets = [0, 0], sizes = [8, 32], strides = [1, 1]} : vector<8x128xf32> to vector<8x32xf32>
    %cst_361 = arith.constant 5.000000e-01 : f32
    %950 = vector.broadcast %cst_361 : f32 to vector<8x32xf32>
    %951 = arith.mulf %950, %949 : vector<8x32xf32>
    %952 = math.tanh %951 : vector<8x32xf32>
    %cst_362 = arith.constant 5.000000e-01 : f32
    %953 = vector.broadcast %cst_362 : f32 to vector<8x32xf32>
    %954 = arith.mulf %953, %952 : vector<8x32xf32>
    %cst_363 = arith.constant 5.000000e-01 : f32
    %955 = vector.broadcast %cst_363 : f32 to vector<8x32xf32>
    %956 = arith.addf %954, %955 : vector<8x32xf32>
    %957 = vector.extract_strided_slice %948 {offsets = [0, 32], sizes = [8, 32], strides = [1, 1]} : vector<8x128xf32> to vector<8x32xf32>
    %cst_364 = arith.constant 5.000000e-01 : f32
    %958 = vector.broadcast %cst_364 : f32 to vector<8x32xf32>
    %959 = arith.mulf %958, %957 : vector<8x32xf32>
    %960 = math.tanh %959 : vector<8x32xf32>
    %cst_365 = arith.constant 5.000000e-01 : f32
    %961 = vector.broadcast %cst_365 : f32 to vector<8x32xf32>
    %962 = arith.mulf %961, %960 : vector<8x32xf32>
    %cst_366 = arith.constant 5.000000e-01 : f32
    %963 = vector.broadcast %cst_366 : f32 to vector<8x32xf32>
    %964 = arith.addf %962, %963 : vector<8x32xf32>
    %965 = vector.extract_strided_slice %948 {offsets = [0, 64], sizes = [8, 32], strides = [1, 1]} : vector<8x128xf32> to vector<8x32xf32>
    %966 = math.tanh %965 : vector<8x32xf32>
    %967 = vector.extract_strided_slice %948 {offsets = [0, 96], sizes = [8, 32], strides = [1, 1]} : vector<8x128xf32> to vector<8x32xf32>
    %cst_367 = arith.constant 5.000000e-01 : f32
    %968 = vector.broadcast %cst_367 : f32 to vector<8x32xf32>
    %969 = arith.mulf %968, %967 : vector<8x32xf32>
    %970 = math.tanh %969 : vector<8x32xf32>
    %cst_368 = arith.constant 5.000000e-01 : f32
    %971 = vector.broadcast %cst_368 : f32 to vector<8x32xf32>
    %972 = arith.mulf %971, %970 : vector<8x32xf32>
    %cst_369 = arith.constant 5.000000e-01 : f32
    %973 = vector.broadcast %cst_369 : f32 to vector<8x32xf32>
    %974 = arith.addf %972, %973 : vector<8x32xf32>
    %975 = arith.mulf %964, %935 : vector<8x32xf32>
    %976 = arith.mulf %956, %966 : vector<8x32xf32>
    %977 = arith.addf %975, %976 : vector<8x32xf32>
    %978 = math.tanh %977 : vector<8x32xf32>
    %979 = arith.mulf %974, %978 : vector<8x32xf32>
    %980 = arith.truncf %979 : vector<8x32xf32> to vector<8x32xbf16>
    %981 = arith.index_cast %942 : i32 to index
    %c0_370 = arith.constant 0 : index
    %982 = vector.load %arg14[%981, %c0_370] : memref<128x32xbf16, #tpu.memory_space<vmem>>, vector<8x32xbf16>
    tpu.vector_store %arg14[%981, %c0_370], %980 {strides = array<i32>} : memref<128x32xbf16, #tpu.memory_space<vmem>>, vector<8x32xbf16>,
    %c7_i32_371 = arith.constant 7 : i32
    %c8_i32_372 = arith.constant 8 : i32
    %983 = arith.muli %c7_i32_371, %c8_i32_372 : i32
    %984 = tpu.assume_multiple %983, 8 : i32
    %985 = arith.index_cast %984 : i32 to index
    %c0_373 = arith.constant 0 : index
    %986 = vector.load %arg12[%985, %c0_373] : memref<128x128xf32, #tpu.memory_space<vmem>>, vector<8x128xf32>
    %987 = arith.truncf %979 : vector<8x32xf32> to vector<8x32xbf16>
    %c0_374 = arith.constant 0 : index
    %c0_375 = arith.constant 0 : index
    %988 = vector.load %arg6[%c0_374, %c0_375] : memref<32x128xbf16, #tpu.memory_space<vmem>>, vector<32x128xbf16>
    %cst_376 = arith.constant dense<0.000000e+00> : vector<8x128xf32>
    %989 = tpu.matmul %987, %988, %cst_376 {dimension_numbers = #tpu.dot_dimension_numbers<[1], [0], [0], [1], [0, 0, 1, 1], [], []>} : vector<8x32xbf16>, vector<32x128xbf16>, vector<8x128xf32> -> vector<8x128xf32>
    %990 = arith.addf %986, %989 : vector<8x128xf32>
    %991 = vector.extract_strided_slice %990 {offsets = [0, 0], sizes = [8, 32], strides = [1, 1]} : vector<8x128xf32> to vector<8x32xf32>
    %cst_377 = arith.constant 5.000000e-01 : f32
    %992 = vector.broadcast %cst_377 : f32 to vector<8x32xf32>
    %993 = arith.mulf %992, %991 : vector<8x32xf32>
    %994 = math.tanh %993 : vector<8x32xf32>
    %cst_378 = arith.constant 5.000000e-01 : f32
    %995 = vector.broadcast %cst_378 : f32 to vector<8x32xf32>
    %996 = arith.mulf %995, %994 : vector<8x32xf32>
    %cst_379 = arith.constant 5.000000e-01 : f32
    %997 = vector.broadcast %cst_379 : f32 to vector<8x32xf32>
    %998 = arith.addf %996, %997 : vector<8x32xf32>
    %999 = vector.extract_strided_slice %990 {offsets = [0, 32], sizes = [8, 32], strides = [1, 1]} : vector<8x128xf32> to vector<8x32xf32>
    %cst_380 = arith.constant 5.000000e-01 : f32
    %1000 = vector.broadcast %cst_380 : f32 to vector<8x32xf32>
    %1001 = arith.mulf %1000, %999 : vector<8x32xf32>
    %1002 = math.tanh %1001 : vector<8x32xf32>
    %cst_381 = arith.constant 5.000000e-01 : f32
    %1003 = vector.broadcast %cst_381 : f32 to vector<8x32xf32>
    %1004 = arith.mulf %1003, %1002 : vector<8x32xf32>
    %cst_382 = arith.constant 5.000000e-01 : f32
    %1005 = vector.broadcast %cst_382 : f32 to vector<8x32xf32>
    %1006 = arith.addf %1004, %1005 : vector<8x32xf32>
    %1007 = vector.extract_strided_slice %990 {offsets = [0, 64], sizes = [8, 32], strides = [1, 1]} : vector<8x128xf32> to vector<8x32xf32>
    %1008 = math.tanh %1007 : vector<8x32xf32>
    %1009 = vector.extract_strided_slice %990 {offsets = [0, 96], sizes = [8, 32], strides = [1, 1]} : vector<8x128xf32> to vector<8x32xf32>
    %cst_383 = arith.constant 5.000000e-01 : f32
    %1010 = vector.broadcast %cst_383 : f32 to vector<8x32xf32>
    %1011 = arith.mulf %1010, %1009 : vector<8x32xf32>
    %1012 = math.tanh %1011 : vector<8x32xf32>
    %cst_384 = arith.constant 5.000000e-01 : f32
    %1013 = vector.broadcast %cst_384 : f32 to vector<8x32xf32>
    %1014 = arith.mulf %1013, %1012 : vector<8x32xf32>
    %cst_385 = arith.constant 5.000000e-01 : f32
    %1015 = vector.broadcast %cst_385 : f32 to vector<8x32xf32>
    %1016 = arith.addf %1014, %1015 : vector<8x32xf32>
    %1017 = arith.mulf %1006, %977 : vector<8x32xf32>
    %1018 = arith.mulf %998, %1008 : vector<8x32xf32>
    %1019 = arith.addf %1017, %1018 : vector<8x32xf32>
    %1020 = math.tanh %1019 : vector<8x32xf32>
    %1021 = arith.mulf %1016, %1020 : vector<8x32xf32>
    %1022 = arith.truncf %1021 : vector<8x32xf32> to vector<8x32xbf16>
    %1023 = arith.index_cast %984 : i32 to index
    %c0_386 = arith.constant 0 : index
    %1024 = vector.load %arg14[%1023, %c0_386] : memref<128x32xbf16, #tpu.memory_space<vmem>>, vector<8x32xbf16>
    tpu.vector_store %arg14[%1023, %c0_386], %1022 {strides = array<i32>} : memref<128x32xbf16, #tpu.memory_space<vmem>>, vector<8x32xbf16>,
    %c8_i32_387 = arith.constant 8 : i32
    %c8_i32_388 = arith.constant 8 : i32
    %1025 = arith.muli %c8_i32_387, %c8_i32_388 : i32
    %1026 = tpu.assume_multiple %1025, 8 : i32
    %1027 = arith.index_cast %1026 : i32 to index
    %c0_389 = arith.constant 0 : index
    %1028 = vector.load %arg12[%1027, %c0_389] : memref<128x128xf32, #tpu.memory_space<vmem>>, vector<8x128xf32>
    %1029 = arith.truncf %1021 : vector<8x32xf32> to vector<8x32xbf16>
    %c0_390 = arith.constant 0 : index
    %c0_391 = arith.constant 0 : index
    %1030 = vector.load %arg6[%c0_390, %c0_391] : memref<32x128xbf16, #tpu.memory_space<vmem>>, vector<32x128xbf16>
    %cst_392 = arith.constant dense<0.000000e+00> : vector<8x128xf32>
    %1031 = tpu.matmul %1029, %1030, %cst_392 {dimension_numbers = #tpu.dot_dimension_numbers<[1], [0], [0], [1], [0, 0, 1, 1], [], []>} : vector<8x32xbf16>, vector<32x128xbf16>, vector<8x128xf32> -> vector<8x128xf32>
    %1032 = arith.addf %1028, %1031 : vector<8x128xf32>
    %1033 = vector.extract_strided_slice %1032 {offsets = [0, 0], sizes = [8, 32], strides = [1, 1]} : vector<8x128xf32> to vector<8x32xf32>
    %cst_393 = arith.constant 5.000000e-01 : f32
    %1034 = vector.broadcast %cst_393 : f32 to vector<8x32xf32>
    %1035 = arith.mulf %1034, %1033 : vector<8x32xf32>
    %1036 = math.tanh %1035 : vector<8x32xf32>
    %cst_394 = arith.constant 5.000000e-01 : f32
    %1037 = vector.broadcast %cst_394 : f32 to vector<8x32xf32>
    %1038 = arith.mulf %1037, %1036 : vector<8x32xf32>
    %cst_395 = arith.constant 5.000000e-01 : f32
    %1039 = vector.broadcast %cst_395 : f32 to vector<8x32xf32>
    %1040 = arith.addf %1038, %1039 : vector<8x32xf32>
    %1041 = vector.extract_strided_slice %1032 {offsets = [0, 32], sizes = [8, 32], strides = [1, 1]} : vector<8x128xf32> to vector<8x32xf32>
    %cst_396 = arith.constant 5.000000e-01 : f32
    %1042 = vector.broadcast %cst_396 : f32 to vector<8x32xf32>
    %1043 = arith.mulf %1042, %1041 : vector<8x32xf32>
    %1044 = math.tanh %1043 : vector<8x32xf32>
    %cst_397 = arith.constant 5.000000e-01 : f32
    %1045 = vector.broadcast %cst_397 : f32 to vector<8x32xf32>
    %1046 = arith.mulf %1045, %1044 : vector<8x32xf32>
    %cst_398 = arith.constant 5.000000e-01 : f32
    %1047 = vector.broadcast %cst_398 : f32 to vector<8x32xf32>
    %1048 = arith.addf %1046, %1047 : vector<8x32xf32>
    %1049 = vector.extract_strided_slice %1032 {offsets = [0, 64], sizes = [8, 32], strides = [1, 1]} : vector<8x128xf32> to vector<8x32xf32>
    %1050 = math.tanh %1049 : vector<8x32xf32>
    %1051 = vector.extract_strided_slice %1032 {offsets = [0, 96], sizes = [8, 32], strides = [1, 1]} : vector<8x128xf32> to vector<8x32xf32>
    %cst_399 = arith.constant 5.000000e-01 : f32
    %1052 = vector.broadcast %cst_399 : f32 to vector<8x32xf32>
    %1053 = arith.mulf %1052, %1051 : vector<8x32xf32>
    %1054 = math.tanh %1053 : vector<8x32xf32>
    %cst_400 = arith.constant 5.000000e-01 : f32
    %1055 = vector.broadcast %cst_400 : f32 to vector<8x32xf32>
    %1056 = arith.mulf %1055, %1054 : vector<8x32xf32>
    %cst_401 = arith.constant 5.000000e-01 : f32
    %1057 = vector.broadcast %cst_401 : f32 to vector<8x32xf32>
    %1058 = arith.addf %1056, %1057 : vector<8x32xf32>
    %1059 = arith.mulf %1048, %1019 : vector<8x32xf32>
    %1060 = arith.mulf %1040, %1050 : vector<8x32xf32>
    %1061 = arith.addf %1059, %1060 : vector<8x32xf32>
    %1062 = math.tanh %1061 : vector<8x32xf32>
    %1063 = arith.mulf %1058, %1062 : vector<8x32xf32>
    %1064 = arith.truncf %1063 : vector<8x32xf32> to vector<8x32xbf16>
    %1065 = arith.index_cast %1026 : i32 to index
    %c0_402 = arith.constant 0 : index
    %1066 = vector.load %arg14[%1065, %c0_402] : memref<128x32xbf16, #tpu.memory_space<vmem>>, vector<8x32xbf16>
    tpu.vector_store %arg14[%1065, %c0_402], %1064 {strides = array<i32>} : memref<128x32xbf16, #tpu.memory_space<vmem>>, vector<8x32xbf16>,
    %c9_i32_403 = arith.constant 9 : i32
    %c8_i32_404 = arith.constant 8 : i32
    %1067 = arith.muli %c9_i32_403, %c8_i32_404 : i32
    %1068 = tpu.assume_multiple %1067, 8 : i32
    %1069 = arith.index_cast %1068 : i32 to index
    %c0_405 = arith.constant 0 : index
    %1070 = vector.load %arg12[%1069, %c0_405] : memref<128x128xf32, #tpu.memory_space<vmem>>, vector<8x128xf32>
    %1071 = arith.truncf %1063 : vector<8x32xf32> to vector<8x32xbf16>
    %c0_406 = arith.constant 0 : index
    %c0_407 = arith.constant 0 : index
    %1072 = vector.load %arg6[%c0_406, %c0_407] : memref<32x128xbf16, #tpu.memory_space<vmem>>, vector<32x128xbf16>
    %cst_408 = arith.constant dense<0.000000e+00> : vector<8x128xf32>
    %1073 = tpu.matmul %1071, %1072, %cst_408 {dimension_numbers = #tpu.dot_dimension_numbers<[1], [0], [0], [1], [0, 0, 1, 1], [], []>} : vector<8x32xbf16>, vector<32x128xbf16>, vector<8x128xf32> -> vector<8x128xf32>
    %1074 = arith.addf %1070, %1073 : vector<8x128xf32>
    %1075 = vector.extract_strided_slice %1074 {offsets = [0, 0], sizes = [8, 32], strides = [1, 1]} : vector<8x128xf32> to vector<8x32xf32>
    %cst_409 = arith.constant 5.000000e-01 : f32
    %1076 = vector.broadcast %cst_409 : f32 to vector<8x32xf32>
    %1077 = arith.mulf %1076, %1075 : vector<8x32xf32>
    %1078 = math.tanh %1077 : vector<8x32xf32>
    %cst_410 = arith.constant 5.000000e-01 : f32
    %1079 = vector.broadcast %cst_410 : f32 to vector<8x32xf32>
    %1080 = arith.mulf %1079, %1078 : vector<8x32xf32>
    %cst_411 = arith.constant 5.000000e-01 : f32
    %1081 = vector.broadcast %cst_411 : f32 to vector<8x32xf32>
    %1082 = arith.addf %1080, %1081 : vector<8x32xf32>
    %1083 = vector.extract_strided_slice %1074 {offsets = [0, 32], sizes = [8, 32], strides = [1, 1]} : vector<8x128xf32> to vector<8x32xf32>
    %cst_412 = arith.constant 5.000000e-01 : f32
    %1084 = vector.broadcast %cst_412 : f32 to vector<8x32xf32>
    %1085 = arith.mulf %1084, %1083 : vector<8x32xf32>
    %1086 = math.tanh %1085 : vector<8x32xf32>
    %cst_413 = arith.constant 5.000000e-01 : f32
    %1087 = vector.broadcast %cst_413 : f32 to vector<8x32xf32>
    %1088 = arith.mulf %1087, %1086 : vector<8x32xf32>
    %cst_414 = arith.constant 5.000000e-01 : f32
    %1089 = vector.broadcast %cst_414 : f32 to vector<8x32xf32>
    %1090 = arith.addf %1088, %1089 : vector<8x32xf32>
    %1091 = vector.extract_strided_slice %1074 {offsets = [0, 64], sizes = [8, 32], strides = [1, 1]} : vector<8x128xf32> to vector<8x32xf32>
    %1092 = math.tanh %1091 : vector<8x32xf32>
    %1093 = vector.extract_strided_slice %1074 {offsets = [0, 96], sizes = [8, 32], strides = [1, 1]} : vector<8x128xf32> to vector<8x32xf32>
    %cst_415 = arith.constant 5.000000e-01 : f32
    %1094 = vector.broadcast %cst_415 : f32 to vector<8x32xf32>
    %1095 = arith.mulf %1094, %1093 : vector<8x32xf32>
    %1096 = math.tanh %1095 : vector<8x32xf32>
    %cst_416 = arith.constant 5.000000e-01 : f32
    %1097 = vector.broadcast %cst_416 : f32 to vector<8x32xf32>
    %1098 = arith.mulf %1097, %1096 : vector<8x32xf32>
    %cst_417 = arith.constant 5.000000e-01 : f32
    %1099 = vector.broadcast %cst_417 : f32 to vector<8x32xf32>
    %1100 = arith.addf %1098, %1099 : vector<8x32xf32>
    %1101 = arith.mulf %1090, %1061 : vector<8x32xf32>
    %1102 = arith.mulf %1082, %1092 : vector<8x32xf32>
    %1103 = arith.addf %1101, %1102 : vector<8x32xf32>
    %1104 = math.tanh %1103 : vector<8x32xf32>
    %1105 = arith.mulf %1100, %1104 : vector<8x32xf32>
    %1106 = arith.truncf %1105 : vector<8x32xf32> to vector<8x32xbf16>
    %1107 = arith.index_cast %1068 : i32 to index
    %c0_418 = arith.constant 0 : index
    %1108 = vector.load %arg14[%1107, %c0_418] : memref<128x32xbf16, #tpu.memory_space<vmem>>, vector<8x32xbf16>
    tpu.vector_store %arg14[%1107, %c0_418], %1106 {strides = array<i32>} : memref<128x32xbf16, #tpu.memory_space<vmem>>, vector<8x32xbf16>,
    %c10_i32_419 = arith.constant 10 : i32
    %c8_i32_420 = arith.constant 8 : i32
    %1109 = arith.muli %c10_i32_419, %c8_i32_420 : i32
    %1110 = tpu.assume_multiple %1109, 8 : i32
    %1111 = arith.index_cast %1110 : i32 to index
    %c0_421 = arith.constant 0 : index
    %1112 = vector.load %arg12[%1111, %c0_421] : memref<128x128xf32, #tpu.memory_space<vmem>>, vector<8x128xf32>
    %1113 = arith.truncf %1105 : vector<8x32xf32> to vector<8x32xbf16>
    %c0_422 = arith.constant 0 : index
    %c0_423 = arith.constant 0 : index
    %1114 = vector.load %arg6[%c0_422, %c0_423] : memref<32x128xbf16, #tpu.memory_space<vmem>>, vector<32x128xbf16>
    %cst_424 = arith.constant dense<0.000000e+00> : vector<8x128xf32>
    %1115 = tpu.matmul %1113, %1114, %cst_424 {dimension_numbers = #tpu.dot_dimension_numbers<[1], [0], [0], [1], [0, 0, 1, 1], [], []>} : vector<8x32xbf16>, vector<32x128xbf16>, vector<8x128xf32> -> vector<8x128xf32>
    %1116 = arith.addf %1112, %1115 : vector<8x128xf32>
    %1117 = vector.extract_strided_slice %1116 {offsets = [0, 0], sizes = [8, 32], strides = [1, 1]} : vector<8x128xf32> to vector<8x32xf32>
    %cst_425 = arith.constant 5.000000e-01 : f32
    %1118 = vector.broadcast %cst_425 : f32 to vector<8x32xf32>
    %1119 = arith.mulf %1118, %1117 : vector<8x32xf32>
    %1120 = math.tanh %1119 : vector<8x32xf32>
    %cst_426 = arith.constant 5.000000e-01 : f32
    %1121 = vector.broadcast %cst_426 : f32 to vector<8x32xf32>
    %1122 = arith.mulf %1121, %1120 : vector<8x32xf32>
    %cst_427 = arith.constant 5.000000e-01 : f32
    %1123 = vector.broadcast %cst_427 : f32 to vector<8x32xf32>
    %1124 = arith.addf %1122, %1123 : vector<8x32xf32>
    %1125 = vector.extract_strided_slice %1116 {offsets = [0, 32], sizes = [8, 32], strides = [1, 1]} : vector<8x128xf32> to vector<8x32xf32>
    %cst_428 = arith.constant 5.000000e-01 : f32
    %1126 = vector.broadcast %cst_428 : f32 to vector<8x32xf32>
    %1127 = arith.mulf %1126, %1125 : vector<8x32xf32>
    %1128 = math.tanh %1127 : vector<8x32xf32>
    %cst_429 = arith.constant 5.000000e-01 : f32
    %1129 = vector.broadcast %cst_429 : f32 to vector<8x32xf32>
    %1130 = arith.mulf %1129, %1128 : vector<8x32xf32>
    %cst_430 = arith.constant 5.000000e-01 : f32
    %1131 = vector.broadcast %cst_430 : f32 to vector<8x32xf32>
    %1132 = arith.addf %1130, %1131 : vector<8x32xf32>
    %1133 = vector.extract_strided_slice %1116 {offsets = [0, 64], sizes = [8, 32], strides = [1, 1]} : vector<8x128xf32> to vector<8x32xf32>
    %1134 = math.tanh %1133 : vector<8x32xf32>
    %1135 = vector.extract_strided_slice %1116 {offsets = [0, 96], sizes = [8, 32], strides = [1, 1]} : vector<8x128xf32> to vector<8x32xf32>
    %cst_431 = arith.constant 5.000000e-01 : f32
    %1136 = vector.broadcast %cst_431 : f32 to vector<8x32xf32>
    %1137 = arith.mulf %1136, %1135 : vector<8x32xf32>
    %1138 = math.tanh %1137 : vector<8x32xf32>
    %cst_432 = arith.constant 5.000000e-01 : f32
    %1139 = vector.broadcast %cst_432 : f32 to vector<8x32xf32>
    %1140 = arith.mulf %1139, %1138 : vector<8x32xf32>
    %cst_433 = arith.constant 5.000000e-01 : f32
    %1141 = vector.broadcast %cst_433 : f32 to vector<8x32xf32>
    %1142 = arith.addf %1140, %1141 : vector<8x32xf32>
    %1143 = arith.mulf %1132, %1103 : vector<8x32xf32>
    %1144 = arith.mulf %1124, %1134 : vector<8x32xf32>
    %1145 = arith.addf %1143, %1144 : vector<8x32xf32>
    %1146 = math.tanh %1145 : vector<8x32xf32>
    %1147 = arith.mulf %1142, %1146 : vector<8x32xf32>
    %1148 = arith.truncf %1147 : vector<8x32xf32> to vector<8x32xbf16>
    %1149 = arith.index_cast %1110 : i32 to index
    %c0_434 = arith.constant 0 : index
    %1150 = vector.load %arg14[%1149, %c0_434] : memref<128x32xbf16, #tpu.memory_space<vmem>>, vector<8x32xbf16>
    tpu.vector_store %arg14[%1149, %c0_434], %1148 {strides = array<i32>} : memref<128x32xbf16, #tpu.memory_space<vmem>>, vector<8x32xbf16>,
    %c11_i32_435 = arith.constant 11 : i32
    %c8_i32_436 = arith.constant 8 : i32
    %1151 = arith.muli %c11_i32_435, %c8_i32_436 : i32
    %1152 = tpu.assume_multiple %1151, 8 : i32
    %1153 = arith.index_cast %1152 : i32 to index
    %c0_437 = arith.constant 0 : index
    %1154 = vector.load %arg12[%1153, %c0_437] : memref<128x128xf32, #tpu.memory_space<vmem>>, vector<8x128xf32>
    %1155 = arith.truncf %1147 : vector<8x32xf32> to vector<8x32xbf16>
    %c0_438 = arith.constant 0 : index
    %c0_439 = arith.constant 0 : index
    %1156 = vector.load %arg6[%c0_438, %c0_439] : memref<32x128xbf16, #tpu.memory_space<vmem>>, vector<32x128xbf16>
    %cst_440 = arith.constant dense<0.000000e+00> : vector<8x128xf32>
    %1157 = tpu.matmul %1155, %1156, %cst_440 {dimension_numbers = #tpu.dot_dimension_numbers<[1], [0], [0], [1], [0, 0, 1, 1], [], []>} : vector<8x32xbf16>, vector<32x128xbf16>, vector<8x128xf32> -> vector<8x128xf32>
    %1158 = arith.addf %1154, %1157 : vector<8x128xf32>
    %1159 = vector.extract_strided_slice %1158 {offsets = [0, 0], sizes = [8, 32], strides = [1, 1]} : vector<8x128xf32> to vector<8x32xf32>
    %cst_441 = arith.constant 5.000000e-01 : f32
    %1160 = vector.broadcast %cst_441 : f32 to vector<8x32xf32>
    %1161 = arith.mulf %1160, %1159 : vector<8x32xf32>
    %1162 = math.tanh %1161 : vector<8x32xf32>
    %cst_442 = arith.constant 5.000000e-01 : f32
    %1163 = vector.broadcast %cst_442 : f32 to vector<8x32xf32>
    %1164 = arith.mulf %1163, %1162 : vector<8x32xf32>
    %cst_443 = arith.constant 5.000000e-01 : f32
    %1165 = vector.broadcast %cst_443 : f32 to vector<8x32xf32>
    %1166 = arith.addf %1164, %1165 : vector<8x32xf32>
    %1167 = vector.extract_strided_slice %1158 {offsets = [0, 32], sizes = [8, 32], strides = [1, 1]} : vector<8x128xf32> to vector<8x32xf32>
    %cst_444 = arith.constant 5.000000e-01 : f32
    %1168 = vector.broadcast %cst_444 : f32 to vector<8x32xf32>
    %1169 = arith.mulf %1168, %1167 : vector<8x32xf32>
    %1170 = math.tanh %1169 : vector<8x32xf32>
    %cst_445 = arith.constant 5.000000e-01 : f32
    %1171 = vector.broadcast %cst_445 : f32 to vector<8x32xf32>
    %1172 = arith.mulf %1171, %1170 : vector<8x32xf32>
    %cst_446 = arith.constant 5.000000e-01 : f32
    %1173 = vector.broadcast %cst_446 : f32 to vector<8x32xf32>
    %1174 = arith.addf %1172, %1173 : vector<8x32xf32>
    %1175 = vector.extract_strided_slice %1158 {offsets = [0, 64], sizes = [8, 32], strides = [1, 1]} : vector<8x128xf32> to vector<8x32xf32>
    %1176 = math.tanh %1175 : vector<8x32xf32>
    %1177 = vector.extract_strided_slice %1158 {offsets = [0, 96], sizes = [8, 32], strides = [1, 1]} : vector<8x128xf32> to vector<8x32xf32>
    %cst_447 = arith.constant 5.000000e-01 : f32
    %1178 = vector.broadcast %cst_447 : f32 to vector<8x32xf32>
    %1179 = arith.mulf %1178, %1177 : vector<8x32xf32>
    %1180 = math.tanh %1179 : vector<8x32xf32>
    %cst_448 = arith.constant 5.000000e-01 : f32
    %1181 = vector.broadcast %cst_448 : f32 to vector<8x32xf32>
    %1182 = arith.mulf %1181, %1180 : vector<8x32xf32>
    %cst_449 = arith.constant 5.000000e-01 : f32
    %1183 = vector.broadcast %cst_449 : f32 to vector<8x32xf32>
    %1184 = arith.addf %1182, %1183 : vector<8x32xf32>
    %1185 = arith.mulf %1174, %1145 : vector<8x32xf32>
    %1186 = arith.mulf %1166, %1176 : vector<8x32xf32>
    %1187 = arith.addf %1185, %1186 : vector<8x32xf32>
    %1188 = math.tanh %1187 : vector<8x32xf32>
    %1189 = arith.mulf %1184, %1188 : vector<8x32xf32>
    %1190 = arith.truncf %1189 : vector<8x32xf32> to vector<8x32xbf16>
    %1191 = arith.index_cast %1152 : i32 to index
    %c0_450 = arith.constant 0 : index
    %1192 = vector.load %arg14[%1191, %c0_450] : memref<128x32xbf16, #tpu.memory_space<vmem>>, vector<8x32xbf16>
    tpu.vector_store %arg14[%1191, %c0_450], %1190 {strides = array<i32>} : memref<128x32xbf16, #tpu.memory_space<vmem>>, vector<8x32xbf16>,
    %c12_i32_451 = arith.constant 12 : i32
    %c8_i32_452 = arith.constant 8 : i32
    %1193 = arith.muli %c12_i32_451, %c8_i32_452 : i32
    %1194 = tpu.assume_multiple %1193, 8 : i32
    %1195 = arith.index_cast %1194 : i32 to index
    %c0_453 = arith.constant 0 : index
    %1196 = vector.load %arg12[%1195, %c0_453] : memref<128x128xf32, #tpu.memory_space<vmem>>, vector<8x128xf32>
    %1197 = arith.truncf %1189 : vector<8x32xf32> to vector<8x32xbf16>
    %c0_454 = arith.constant 0 : index
    %c0_455 = arith.constant 0 : index
    %1198 = vector.load %arg6[%c0_454, %c0_455] : memref<32x128xbf16, #tpu.memory_space<vmem>>, vector<32x128xbf16>
    %cst_456 = arith.constant dense<0.000000e+00> : vector<8x128xf32>
    %1199 = tpu.matmul %1197, %1198, %cst_456 {dimension_numbers = #tpu.dot_dimension_numbers<[1], [0], [0], [1], [0, 0, 1, 1], [], []>} : vector<8x32xbf16>, vector<32x128xbf16>, vector<8x128xf32> -> vector<8x128xf32>
    %1200 = arith.addf %1196, %1199 : vector<8x128xf32>
    %1201 = vector.extract_strided_slice %1200 {offsets = [0, 0], sizes = [8, 32], strides = [1, 1]} : vector<8x128xf32> to vector<8x32xf32>
    %cst_457 = arith.constant 5.000000e-01 : f32
    %1202 = vector.broadcast %cst_457 : f32 to vector<8x32xf32>
    %1203 = arith.mulf %1202, %1201 : vector<8x32xf32>
    %1204 = math.tanh %1203 : vector<8x32xf32>
    %cst_458 = arith.constant 5.000000e-01 : f32
    %1205 = vector.broadcast %cst_458 : f32 to vector<8x32xf32>
    %1206 = arith.mulf %1205, %1204 : vector<8x32xf32>
    %cst_459 = arith.constant 5.000000e-01 : f32
    %1207 = vector.broadcast %cst_459 : f32 to vector<8x32xf32>
    %1208 = arith.addf %1206, %1207 : vector<8x32xf32>
    %1209 = vector.extract_strided_slice %1200 {offsets = [0, 32], sizes = [8, 32], strides = [1, 1]} : vector<8x128xf32> to vector<8x32xf32>
    %cst_460 = arith.constant 5.000000e-01 : f32
    %1210 = vector.broadcast %cst_460 : f32 to vector<8x32xf32>
    %1211 = arith.mulf %1210, %1209 : vector<8x32xf32>
    %1212 = math.tanh %1211 : vector<8x32xf32>
    %cst_461 = arith.constant 5.000000e-01 : f32
    %1213 = vector.broadcast %cst_461 : f32 to vector<8x32xf32>
    %1214 = arith.mulf %1213, %1212 : vector<8x32xf32>
    %cst_462 = arith.constant 5.000000e-01 : f32
    %1215 = vector.broadcast %cst_462 : f32 to vector<8x32xf32>
    %1216 = arith.addf %1214, %1215 : vector<8x32xf32>
    %1217 = vector.extract_strided_slice %1200 {offsets = [0, 64], sizes = [8, 32], strides = [1, 1]} : vector<8x128xf32> to vector<8x32xf32>
    %1218 = math.tanh %1217 : vector<8x32xf32>
    %1219 = vector.extract_strided_slice %1200 {offsets = [0, 96], sizes = [8, 32], strides = [1, 1]} : vector<8x128xf32> to vector<8x32xf32>
    %cst_463 = arith.constant 5.000000e-01 : f32
    %1220 = vector.broadcast %cst_463 : f32 to vector<8x32xf32>
    %1221 = arith.mulf %1220, %1219 : vector<8x32xf32>
    %1222 = math.tanh %1221 : vector<8x32xf32>
    %cst_464 = arith.constant 5.000000e-01 : f32
    %1223 = vector.broadcast %cst_464 : f32 to vector<8x32xf32>
    %1224 = arith.mulf %1223, %1222 : vector<8x32xf32>
    %cst_465 = arith.constant 5.000000e-01 : f32
    %1225 = vector.broadcast %cst_465 : f32 to vector<8x32xf32>
    %1226 = arith.addf %1224, %1225 : vector<8x32xf32>
    %1227 = arith.mulf %1216, %1187 : vector<8x32xf32>
    %1228 = arith.mulf %1208, %1218 : vector<8x32xf32>
    %1229 = arith.addf %1227, %1228 : vector<8x32xf32>
    %1230 = math.tanh %1229 : vector<8x32xf32>
    %1231 = arith.mulf %1226, %1230 : vector<8x32xf32>
    %1232 = arith.truncf %1231 : vector<8x32xf32> to vector<8x32xbf16>
    %1233 = arith.index_cast %1194 : i32 to index
    %c0_466 = arith.constant 0 : index
    %1234 = vector.load %arg14[%1233, %c0_466] : memref<128x32xbf16, #tpu.memory_space<vmem>>, vector<8x32xbf16>
    tpu.vector_store %arg14[%1233, %c0_466], %1232 {strides = array<i32>} : memref<128x32xbf16, #tpu.memory_space<vmem>>, vector<8x32xbf16>,
    %c13_i32_467 = arith.constant 13 : i32
    %c8_i32_468 = arith.constant 8 : i32
    %1235 = arith.muli %c13_i32_467, %c8_i32_468 : i32
    %1236 = tpu.assume_multiple %1235, 8 : i32
    %1237 = arith.index_cast %1236 : i32 to index
    %c0_469 = arith.constant 0 : index
    %1238 = vector.load %arg12[%1237, %c0_469] : memref<128x128xf32, #tpu.memory_space<vmem>>, vector<8x128xf32>
    %1239 = arith.truncf %1231 : vector<8x32xf32> to vector<8x32xbf16>
    %c0_470 = arith.constant 0 : index
    %c0_471 = arith.constant 0 : index
    %1240 = vector.load %arg6[%c0_470, %c0_471] : memref<32x128xbf16, #tpu.memory_space<vmem>>, vector<32x128xbf16>
    %cst_472 = arith.constant dense<0.000000e+00> : vector<8x128xf32>
    %1241 = tpu.matmul %1239, %1240, %cst_472 {dimension_numbers = #tpu.dot_dimension_numbers<[1], [0], [0], [1], [0, 0, 1, 1], [], []>} : vector<8x32xbf16>, vector<32x128xbf16>, vector<8x128xf32> -> vector<8x128xf32>
    %1242 = arith.addf %1238, %1241 : vector<8x128xf32>
    %1243 = vector.extract_strided_slice %1242 {offsets = [0, 0], sizes = [8, 32], strides = [1, 1]} : vector<8x128xf32> to vector<8x32xf32>
    %cst_473 = arith.constant 5.000000e-01 : f32
    %1244 = vector.broadcast %cst_473 : f32 to vector<8x32xf32>
    %1245 = arith.mulf %1244, %1243 : vector<8x32xf32>
    %1246 = math.tanh %1245 : vector<8x32xf32>
    %cst_474 = arith.constant 5.000000e-01 : f32
    %1247 = vector.broadcast %cst_474 : f32 to vector<8x32xf32>
    %1248 = arith.mulf %1247, %1246 : vector<8x32xf32>
    %cst_475 = arith.constant 5.000000e-01 : f32
    %1249 = vector.broadcast %cst_475 : f32 to vector<8x32xf32>
    %1250 = arith.addf %1248, %1249 : vector<8x32xf32>
    %1251 = vector.extract_strided_slice %1242 {offsets = [0, 32], sizes = [8, 32], strides = [1, 1]} : vector<8x128xf32> to vector<8x32xf32>
    %cst_476 = arith.constant 5.000000e-01 : f32
    %1252 = vector.broadcast %cst_476 : f32 to vector<8x32xf32>
    %1253 = arith.mulf %1252, %1251 : vector<8x32xf32>
    %1254 = math.tanh %1253 : vector<8x32xf32>
    %cst_477 = arith.constant 5.000000e-01 : f32
    %1255 = vector.broadcast %cst_477 : f32 to vector<8x32xf32>
    %1256 = arith.mulf %1255, %1254 : vector<8x32xf32>
    %cst_478 = arith.constant 5.000000e-01 : f32
    %1257 = vector.broadcast %cst_478 : f32 to vector<8x32xf32>
    %1258 = arith.addf %1256, %1257 : vector<8x32xf32>
    %1259 = vector.extract_strided_slice %1242 {offsets = [0, 64], sizes = [8, 32], strides = [1, 1]} : vector<8x128xf32> to vector<8x32xf32>
    %1260 = math.tanh %1259 : vector<8x32xf32>
    %1261 = vector.extract_strided_slice %1242 {offsets = [0, 96], sizes = [8, 32], strides = [1, 1]} : vector<8x128xf32> to vector<8x32xf32>
    %cst_479 = arith.constant 5.000000e-01 : f32
    %1262 = vector.broadcast %cst_479 : f32 to vector<8x32xf32>
    %1263 = arith.mulf %1262, %1261 : vector<8x32xf32>
    %1264 = math.tanh %1263 : vector<8x32xf32>
    %cst_480 = arith.constant 5.000000e-01 : f32
    %1265 = vector.broadcast %cst_480 : f32 to vector<8x32xf32>
    %1266 = arith.mulf %1265, %1264 : vector<8x32xf32>
    %cst_481 = arith.constant 5.000000e-01 : f32
    %1267 = vector.broadcast %cst_481 : f32 to vector<8x32xf32>
    %1268 = arith.addf %1266, %1267 : vector<8x32xf32>
    %1269 = arith.mulf %1258, %1229 : vector<8x32xf32>
    %1270 = arith.mulf %1250, %1260 : vector<8x32xf32>
    %1271 = arith.addf %1269, %1270 : vector<8x32xf32>
    %1272 = math.tanh %1271 : vector<8x32xf32>
    %1273 = arith.mulf %1268, %1272 : vector<8x32xf32>
    %1274 = arith.truncf %1273 : vector<8x32xf32> to vector<8x32xbf16>
    %1275 = arith.index_cast %1236 : i32 to index
    %c0_482 = arith.constant 0 : index
    %1276 = vector.load %arg14[%1275, %c0_482] : memref<128x32xbf16, #tpu.memory_space<vmem>>, vector<8x32xbf16>
    tpu.vector_store %arg14[%1275, %c0_482], %1274 {strides = array<i32>} : memref<128x32xbf16, #tpu.memory_space<vmem>>, vector<8x32xbf16>,
    %c14_i32_483 = arith.constant 14 : i32
    %c8_i32_484 = arith.constant 8 : i32
    %1277 = arith.muli %c14_i32_483, %c8_i32_484 : i32
    %1278 = tpu.assume_multiple %1277, 8 : i32
    %1279 = arith.index_cast %1278 : i32 to index
    %c0_485 = arith.constant 0 : index
    %1280 = vector.load %arg12[%1279, %c0_485] : memref<128x128xf32, #tpu.memory_space<vmem>>, vector<8x128xf32>
    %1281 = arith.truncf %1273 : vector<8x32xf32> to vector<8x32xbf16>
    %c0_486 = arith.constant 0 : index
    %c0_487 = arith.constant 0 : index
    %1282 = vector.load %arg6[%c0_486, %c0_487] : memref<32x128xbf16, #tpu.memory_space<vmem>>, vector<32x128xbf16>
    %cst_488 = arith.constant dense<0.000000e+00> : vector<8x128xf32>
    %1283 = tpu.matmul %1281, %1282, %cst_488 {dimension_numbers = #tpu.dot_dimension_numbers<[1], [0], [0], [1], [0, 0, 1, 1], [], []>} : vector<8x32xbf16>, vector<32x128xbf16>, vector<8x128xf32> -> vector<8x128xf32>
    %1284 = arith.addf %1280, %1283 : vector<8x128xf32>
    %1285 = vector.extract_strided_slice %1284 {offsets = [0, 0], sizes = [8, 32], strides = [1, 1]} : vector<8x128xf32> to vector<8x32xf32>
    %cst_489 = arith.constant 5.000000e-01 : f32
    %1286 = vector.broadcast %cst_489 : f32 to vector<8x32xf32>
    %1287 = arith.mulf %1286, %1285 : vector<8x32xf32>
    %1288 = math.tanh %1287 : vector<8x32xf32>
    %cst_490 = arith.constant 5.000000e-01 : f32
    %1289 = vector.broadcast %cst_490 : f32 to vector<8x32xf32>
    %1290 = arith.mulf %1289, %1288 : vector<8x32xf32>
    %cst_491 = arith.constant 5.000000e-01 : f32
    %1291 = vector.broadcast %cst_491 : f32 to vector<8x32xf32>
    %1292 = arith.addf %1290, %1291 : vector<8x32xf32>
    %1293 = vector.extract_strided_slice %1284 {offsets = [0, 32], sizes = [8, 32], strides = [1, 1]} : vector<8x128xf32> to vector<8x32xf32>
    %cst_492 = arith.constant 5.000000e-01 : f32
    %1294 = vector.broadcast %cst_492 : f32 to vector<8x32xf32>
    %1295 = arith.mulf %1294, %1293 : vector<8x32xf32>
    %1296 = math.tanh %1295 : vector<8x32xf32>
    %cst_493 = arith.constant 5.000000e-01 : f32
    %1297 = vector.broadcast %cst_493 : f32 to vector<8x32xf32>
    %1298 = arith.mulf %1297, %1296 : vector<8x32xf32>
    %cst_494 = arith.constant 5.000000e-01 : f32
    %1299 = vector.broadcast %cst_494 : f32 to vector<8x32xf32>
    %1300 = arith.addf %1298, %1299 : vector<8x32xf32>
    %1301 = vector.extract_strided_slice %1284 {offsets = [0, 64], sizes = [8, 32], strides = [1, 1]} : vector<8x128xf32> to vector<8x32xf32>
    %1302 = math.tanh %1301 : vector<8x32xf32>
    %1303 = vector.extract_strided_slice %1284 {offsets = [0, 96], sizes = [8, 32], strides = [1, 1]} : vector<8x128xf32> to vector<8x32xf32>
    %cst_495 = arith.constant 5.000000e-01 : f32
    %1304 = vector.broadcast %cst_495 : f32 to vector<8x32xf32>
    %1305 = arith.mulf %1304, %1303 : vector<8x32xf32>
    %1306 = math.tanh %1305 : vector<8x32xf32>
    %cst_496 = arith.constant 5.000000e-01 : f32
    %1307 = vector.broadcast %cst_496 : f32 to vector<8x32xf32>
    %1308 = arith.mulf %1307, %1306 : vector<8x32xf32>
    %cst_497 = arith.constant 5.000000e-01 : f32
    %1309 = vector.broadcast %cst_497 : f32 to vector<8x32xf32>
    %1310 = arith.addf %1308, %1309 : vector<8x32xf32>
    %1311 = arith.mulf %1300, %1271 : vector<8x32xf32>
    %1312 = arith.mulf %1292, %1302 : vector<8x32xf32>
    %1313 = arith.addf %1311, %1312 : vector<8x32xf32>
    %1314 = math.tanh %1313 : vector<8x32xf32>
    %1315 = arith.mulf %1310, %1314 : vector<8x32xf32>
    %1316 = arith.truncf %1315 : vector<8x32xf32> to vector<8x32xbf16>
    %1317 = arith.index_cast %1278 : i32 to index
    %c0_498 = arith.constant 0 : index
    %1318 = vector.load %arg14[%1317, %c0_498] : memref<128x32xbf16, #tpu.memory_space<vmem>>, vector<8x32xbf16>
    tpu.vector_store %arg14[%1317, %c0_498], %1316 {strides = array<i32>} : memref<128x32xbf16, #tpu.memory_space<vmem>>, vector<8x32xbf16>,
    %c15_i32_499 = arith.constant 15 : i32
    %c8_i32_500 = arith.constant 8 : i32
    %1319 = arith.muli %c15_i32_499, %c8_i32_500 : i32
    %1320 = tpu.assume_multiple %1319, 8 : i32
    %1321 = arith.index_cast %1320 : i32 to index
    %c0_501 = arith.constant 0 : index
    %1322 = vector.load %arg12[%1321, %c0_501] : memref<128x128xf32, #tpu.memory_space<vmem>>, vector<8x128xf32>
    %1323 = arith.truncf %1315 : vector<8x32xf32> to vector<8x32xbf16>
    %c0_502 = arith.constant 0 : index
    %c0_503 = arith.constant 0 : index
    %1324 = vector.load %arg6[%c0_502, %c0_503] : memref<32x128xbf16, #tpu.memory_space<vmem>>, vector<32x128xbf16>
    %cst_504 = arith.constant dense<0.000000e+00> : vector<8x128xf32>
    %1325 = tpu.matmul %1323, %1324, %cst_504 {dimension_numbers = #tpu.dot_dimension_numbers<[1], [0], [0], [1], [0, 0, 1, 1], [], []>} : vector<8x32xbf16>, vector<32x128xbf16>, vector<8x128xf32> -> vector<8x128xf32>
    %1326 = arith.addf %1322, %1325 : vector<8x128xf32>
    %1327 = vector.extract_strided_slice %1326 {offsets = [0, 0], sizes = [8, 32], strides = [1, 1]} : vector<8x128xf32> to vector<8x32xf32>
    %cst_505 = arith.constant 5.000000e-01 : f32
    %1328 = vector.broadcast %cst_505 : f32 to vector<8x32xf32>
    %1329 = arith.mulf %1328, %1327 : vector<8x32xf32>
    %1330 = math.tanh %1329 : vector<8x32xf32>
    %cst_506 = arith.constant 5.000000e-01 : f32
    %1331 = vector.broadcast %cst_506 : f32 to vector<8x32xf32>
    %1332 = arith.mulf %1331, %1330 : vector<8x32xf32>
    %cst_507 = arith.constant 5.000000e-01 : f32
    %1333 = vector.broadcast %cst_507 : f32 to vector<8x32xf32>
    %1334 = arith.addf %1332, %1333 : vector<8x32xf32>
    %1335 = vector.extract_strided_slice %1326 {offsets = [0, 32], sizes = [8, 32], strides = [1, 1]} : vector<8x128xf32> to vector<8x32xf32>
    %cst_508 = arith.constant 5.000000e-01 : f32
    %1336 = vector.broadcast %cst_508 : f32 to vector<8x32xf32>
    %1337 = arith.mulf %1336, %1335 : vector<8x32xf32>
    %1338 = math.tanh %1337 : vector<8x32xf32>
    %cst_509 = arith.constant 5.000000e-01 : f32
    %1339 = vector.broadcast %cst_509 : f32 to vector<8x32xf32>
    %1340 = arith.mulf %1339, %1338 : vector<8x32xf32>
    %cst_510 = arith.constant 5.000000e-01 : f32
    %1341 = vector.broadcast %cst_510 : f32 to vector<8x32xf32>
    %1342 = arith.addf %1340, %1341 : vector<8x32xf32>
    %1343 = vector.extract_strided_slice %1326 {offsets = [0, 64], sizes = [8, 32], strides = [1, 1]} : vector<8x128xf32> to vector<8x32xf32>
    %1344 = math.tanh %1343 : vector<8x32xf32>
    %1345 = vector.extract_strided_slice %1326 {offsets = [0, 96], sizes = [8, 32], strides = [1, 1]} : vector<8x128xf32> to vector<8x32xf32>
    %cst_511 = arith.constant 5.000000e-01 : f32
    %1346 = vector.broadcast %cst_511 : f32 to vector<8x32xf32>
    %1347 = arith.mulf %1346, %1345 : vector<8x32xf32>
    %1348 = math.tanh %1347 : vector<8x32xf32>
    %cst_512 = arith.constant 5.000000e-01 : f32
    %1349 = vector.broadcast %cst_512 : f32 to vector<8x32xf32>
    %1350 = arith.mulf %1349, %1348 : vector<8x32xf32>
    %cst_513 = arith.constant 5.000000e-01 : f32
    %1351 = vector.broadcast %cst_513 : f32 to vector<8x32xf32>
    %1352 = arith.addf %1350, %1351 : vector<8x32xf32>
    %1353 = arith.mulf %1342, %1313 : vector<8x32xf32>
    %1354 = arith.mulf %1334, %1344 : vector<8x32xf32>
    %1355 = arith.addf %1353, %1354 : vector<8x32xf32>
    %1356 = math.tanh %1355 : vector<8x32xf32>
    %1357 = arith.mulf %1352, %1356 : vector<8x32xf32>
    %1358 = arith.truncf %1357 : vector<8x32xf32> to vector<8x32xbf16>
    %1359 = arith.index_cast %1320 : i32 to index
    %c0_514 = arith.constant 0 : index
    %1360 = vector.load %arg14[%1359, %c0_514] : memref<128x32xbf16, #tpu.memory_space<vmem>>, vector<8x32xbf16>
    tpu.vector_store %arg14[%1359, %c0_514], %1358 {strides = array<i32>} : memref<128x32xbf16, #tpu.memory_space<vmem>>, vector<8x32xbf16>,
    %c16_i32_515 = arith.constant 16 : i32
    %c0_516 = arith.constant 0 : index
    %c0_517 = arith.constant 0 : index
    %1361 = vector.load %arg14[%c0_516, %c0_517] : memref<128x32xbf16, #tpu.memory_space<vmem>>, vector<128x32xbf16>
    %c0_518 = arith.constant 0 : index
    %c0_519 = arith.constant 0 : index
    %1362 = vector.load %arg8[%c0_518, %c0_519] : memref<32x128xbf16, #tpu.memory_space<vmem>>, vector<32x128xbf16>
    %cst_520 = arith.constant dense<0.000000e+00> : vector<128x128xf32>
    %1363 = tpu.matmul %1361, %1362, %cst_520 {dimension_numbers = #tpu.dot_dimension_numbers<[1], [0], [0], [1], [0, 0, 1, 1], [], []>} : vector<128x32xbf16>, vector<32x128xbf16>, vector<128x128xf32> -> vector<128x128xf32>
    %c0_521 = arith.constant 0 : index
    %c0_522 = arith.constant 0 : index
    %1364 = vector.load %arg10[%c0_521, %c0_522] : memref<1x128xf32, #tpu.memory_space<vmem>>, vector<1x128xf32>
    %1365 = vector.broadcast %1364 : vector<1x128xf32> to vector<128x128xf32>
    %1366 = arith.addf %1363, %1365 : vector<128x128xf32>
    %c0_523 = arith.constant 0 : index
    %c0_524 = arith.constant 0 : index
    %1367 = vector.load %arg12[%c0_523, %c0_524] : memref<128x128xf32, #tpu.memory_space<vmem>>, vector<128x128xf32>
    tpu.vector_store %arg12[%c0_523, %c0_524], %1366 {strides = array<i32>} : memref<128x128xf32, #tpu.memory_space<vmem>>, vector<128x128xf32>,
    %cst_525 = arith.constant 0.000000e+00 : f32
    %1368 = vector.broadcast %cst_525 : f32 to vector<8x32xf32>
    %c0_i32_526 = arith.constant 0 : i32
    %c8_i32_527 = arith.constant 8 : i32
    %1369 = arith.muli %c0_i32_526, %c8_i32_527 : i32
    %1370 = tpu.assume_multiple %1369, 8 : i32
    %1371 = arith.index_cast %1370 : i32 to index
    %c0_528 = arith.constant 0 : index
    %1372 = vector.load %arg12[%1371, %c0_528] : memref<128x128xf32, #tpu.memory_space<vmem>>, vector<8x128xf32>
    %1373 = arith.truncf %1368 : vector<8x32xf32> to vector<8x32xbf16>
    %c0_529 = arith.constant 0 : index
    %c0_530 = arith.constant 0 : index
    %1374 = vector.load %arg9[%c0_529, %c0_530] : memref<32x128xbf16, #tpu.memory_space<vmem>>, vector<32x128xbf16>
    %cst_531 = arith.constant dense<0.000000e+00> : vector<8x128xf32>
    %1375 = tpu.matmul %1373, %1374, %cst_531 {dimension_numbers = #tpu.dot_dimension_numbers<[1], [0], [0], [1], [0, 0, 1, 1], [], []>} : vector<8x32xbf16>, vector<32x128xbf16>, vector<8x128xf32> -> vector<8x128xf32>
    %1376 = arith.addf %1372, %1375 : vector<8x128xf32>
    %1377 = vector.extract_strided_slice %1376 {offsets = [0, 0], sizes = [8, 32], strides = [1, 1]} : vector<8x128xf32> to vector<8x32xf32>
    %cst_532 = arith.constant 5.000000e-01 : f32
    %1378 = vector.broadcast %cst_532 : f32 to vector<8x32xf32>
    %1379 = arith.mulf %1378, %1377 : vector<8x32xf32>
    %1380 = math.tanh %1379 : vector<8x32xf32>
    %cst_533 = arith.constant 5.000000e-01 : f32
    %1381 = vector.broadcast %cst_533 : f32 to vector<8x32xf32>
    %1382 = arith.mulf %1381, %1380 : vector<8x32xf32>
    %cst_534 = arith.constant 5.000000e-01 : f32
    %1383 = vector.broadcast %cst_534 : f32 to vector<8x32xf32>
    %1384 = arith.addf %1382, %1383 : vector<8x32xf32>
    %1385 = vector.extract_strided_slice %1376 {offsets = [0, 32], sizes = [8, 32], strides = [1, 1]} : vector<8x128xf32> to vector<8x32xf32>
    %cst_535 = arith.constant 5.000000e-01 : f32
    %1386 = vector.broadcast %cst_535 : f32 to vector<8x32xf32>
    %1387 = arith.mulf %1386, %1385 : vector<8x32xf32>
    %1388 = math.tanh %1387 : vector<8x32xf32>
    %cst_536 = arith.constant 5.000000e-01 : f32
    %1389 = vector.broadcast %cst_536 : f32 to vector<8x32xf32>
    %1390 = arith.mulf %1389, %1388 : vector<8x32xf32>
    %cst_537 = arith.constant 5.000000e-01 : f32
    %1391 = vector.broadcast %cst_537 : f32 to vector<8x32xf32>
    %1392 = arith.addf %1390, %1391 : vector<8x32xf32>
    %1393 = vector.extract_strided_slice %1376 {offsets = [0, 64], sizes = [8, 32], strides = [1, 1]} : vector<8x128xf32> to vector<8x32xf32>
    %1394 = math.tanh %1393 : vector<8x32xf32>
    %1395 = vector.extract_strided_slice %1376 {offsets = [0, 96], sizes = [8, 32], strides = [1, 1]} : vector<8x128xf32> to vector<8x32xf32>
    %cst_538 = arith.constant 5.000000e-01 : f32
    %1396 = vector.broadcast %cst_538 : f32 to vector<8x32xf32>
    %1397 = arith.mulf %1396, %1395 : vector<8x32xf32>
    %1398 = math.tanh %1397 : vector<8x32xf32>
    %cst_539 = arith.constant 5.000000e-01 : f32
    %1399 = vector.broadcast %cst_539 : f32 to vector<8x32xf32>
    %1400 = arith.mulf %1399, %1398 : vector<8x32xf32>
    %cst_540 = arith.constant 5.000000e-01 : f32
    %1401 = vector.broadcast %cst_540 : f32 to vector<8x32xf32>
    %1402 = arith.addf %1400, %1401 : vector<8x32xf32>
    %1403 = arith.mulf %1392, %1368 : vector<8x32xf32>
    %1404 = arith.mulf %1384, %1394 : vector<8x32xf32>
    %1405 = arith.addf %1403, %1404 : vector<8x32xf32>
    %1406 = math.tanh %1405 : vector<8x32xf32>
    %1407 = arith.mulf %1402, %1406 : vector<8x32xf32>
    %1408 = arith.truncf %1407 : vector<8x32xf32> to vector<8x32xbf16>
    %c0_541 = arith.constant 0 : index
    %1409 = arith.index_cast %1370 : i32 to index
    %c0_542 = arith.constant 0 : index
    %1410 = vector.load %arg11[%c0_541, %1409, %c0_542] : memref<1x128x32xbf16, #tpu.memory_space<vmem>>, vector<1x8x32xbf16>
    %1411 = vector.shape_cast %1410 : vector<1x8x32xbf16> to vector<8x32xbf16>
    %1412 = vector.shape_cast %1408 : vector<8x32xbf16> to vector<1x8x32xbf16>
    tpu.vector_store %arg11[%c0_541, %1409, %c0_542], %1412 {strides = array<i32>} : memref<1x128x32xbf16, #tpu.memory_space<vmem>>, vector<1x8x32xbf16>,
    %c1_i32_543 = arith.constant 1 : i32
    %c8_i32_544 = arith.constant 8 : i32
    %1413 = arith.muli %c1_i32_543, %c8_i32_544 : i32
    %1414 = tpu.assume_multiple %1413, 8 : i32
    %1415 = arith.index_cast %1414 : i32 to index
    %c0_545 = arith.constant 0 : index
    %1416 = vector.load %arg12[%1415, %c0_545] : memref<128x128xf32, #tpu.memory_space<vmem>>, vector<8x128xf32>
    %1417 = arith.truncf %1407 : vector<8x32xf32> to vector<8x32xbf16>
    %c0_546 = arith.constant 0 : index
    %c0_547 = arith.constant 0 : index
    %1418 = vector.load %arg9[%c0_546, %c0_547] : memref<32x128xbf16, #tpu.memory_space<vmem>>, vector<32x128xbf16>
    %cst_548 = arith.constant dense<0.000000e+00> : vector<8x128xf32>
    %1419 = tpu.matmul %1417, %1418, %cst_548 {dimension_numbers = #tpu.dot_dimension_numbers<[1], [0], [0], [1], [0, 0, 1, 1], [], []>} : vector<8x32xbf16>, vector<32x128xbf16>, vector<8x128xf32> -> vector<8x128xf32>
    %1420 = arith.addf %1416, %1419 : vector<8x128xf32>
    %1421 = vector.extract_strided_slice %1420 {offsets = [0, 0], sizes = [8, 32], strides = [1, 1]} : vector<8x128xf32> to vector<8x32xf32>
    %cst_549 = arith.constant 5.000000e-01 : f32
    %1422 = vector.broadcast %cst_549 : f32 to vector<8x32xf32>
    %1423 = arith.mulf %1422, %1421 : vector<8x32xf32>
    %1424 = math.tanh %1423 : vector<8x32xf32>
    %cst_550 = arith.constant 5.000000e-01 : f32
    %1425 = vector.broadcast %cst_550 : f32 to vector<8x32xf32>
    %1426 = arith.mulf %1425, %1424 : vector<8x32xf32>
    %cst_551 = arith.constant 5.000000e-01 : f32
    %1427 = vector.broadcast %cst_551 : f32 to vector<8x32xf32>
    %1428 = arith.addf %1426, %1427 : vector<8x32xf32>
    %1429 = vector.extract_strided_slice %1420 {offsets = [0, 32], sizes = [8, 32], strides = [1, 1]} : vector<8x128xf32> to vector<8x32xf32>
    %cst_552 = arith.constant 5.000000e-01 : f32
    %1430 = vector.broadcast %cst_552 : f32 to vector<8x32xf32>
    %1431 = arith.mulf %1430, %1429 : vector<8x32xf32>
    %1432 = math.tanh %1431 : vector<8x32xf32>
    %cst_553 = arith.constant 5.000000e-01 : f32
    %1433 = vector.broadcast %cst_553 : f32 to vector<8x32xf32>
    %1434 = arith.mulf %1433, %1432 : vector<8x32xf32>
    %cst_554 = arith.constant 5.000000e-01 : f32
    %1435 = vector.broadcast %cst_554 : f32 to vector<8x32xf32>
    %1436 = arith.addf %1434, %1435 : vector<8x32xf32>
    %1437 = vector.extract_strided_slice %1420 {offsets = [0, 64], sizes = [8, 32], strides = [1, 1]} : vector<8x128xf32> to vector<8x32xf32>
    %1438 = math.tanh %1437 : vector<8x32xf32>
    %1439 = vector.extract_strided_slice %1420 {offsets = [0, 96], sizes = [8, 32], strides = [1, 1]} : vector<8x128xf32> to vector<8x32xf32>
    %cst_555 = arith.constant 5.000000e-01 : f32
    %1440 = vector.broadcast %cst_555 : f32 to vector<8x32xf32>
    %1441 = arith.mulf %1440, %1439 : vector<8x32xf32>
    %1442 = math.tanh %1441 : vector<8x32xf32>
    %cst_556 = arith.constant 5.000000e-01 : f32
    %1443 = vector.broadcast %cst_556 : f32 to vector<8x32xf32>
    %1444 = arith.mulf %1443, %1442 : vector<8x32xf32>
    %cst_557 = arith.constant 5.000000e-01 : f32
    %1445 = vector.broadcast %cst_557 : f32 to vector<8x32xf32>
    %1446 = arith.addf %1444, %1445 : vector<8x32xf32>
    %1447 = arith.mulf %1436, %1405 : vector<8x32xf32>
    %1448 = arith.mulf %1428, %1438 : vector<8x32xf32>
    %1449 = arith.addf %1447, %1448 : vector<8x32xf32>
    %1450 = math.tanh %1449 : vector<8x32xf32>
    %1451 = arith.mulf %1446, %1450 : vector<8x32xf32>
    %1452 = arith.truncf %1451 : vector<8x32xf32> to vector<8x32xbf16>
    %c0_558 = arith.constant 0 : index
    %1453 = arith.index_cast %1414 : i32 to index
    %c0_559 = arith.constant 0 : index
    %1454 = vector.load %arg11[%c0_558, %1453, %c0_559] : memref<1x128x32xbf16, #tpu.memory_space<vmem>>, vector<1x8x32xbf16>
    %1455 = vector.shape_cast %1454 : vector<1x8x32xbf16> to vector<8x32xbf16>
    %1456 = vector.shape_cast %1452 : vector<8x32xbf16> to vector<1x8x32xbf16>
    tpu.vector_store %arg11[%c0_558, %1453, %c0_559], %1456 {strides = array<i32>} : memref<1x128x32xbf16, #tpu.memory_space<vmem>>, vector<1x8x32xbf16>,
    %c2_i32_560 = arith.constant 2 : i32
    %c8_i32_561 = arith.constant 8 : i32
    %1457 = arith.muli %c2_i32_560, %c8_i32_561 : i32
    %1458 = tpu.assume_multiple %1457, 8 : i32
    %1459 = arith.index_cast %1458 : i32 to index
    %c0_562 = arith.constant 0 : index
    %1460 = vector.load %arg12[%1459, %c0_562] : memref<128x128xf32, #tpu.memory_space<vmem>>, vector<8x128xf32>
    %1461 = arith.truncf %1451 : vector<8x32xf32> to vector<8x32xbf16>
    %c0_563 = arith.constant 0 : index
    %c0_564 = arith.constant 0 : index
    %1462 = vector.load %arg9[%c0_563, %c0_564] : memref<32x128xbf16, #tpu.memory_space<vmem>>, vector<32x128xbf16>
    %cst_565 = arith.constant dense<0.000000e+00> : vector<8x128xf32>
    %1463 = tpu.matmul %1461, %1462, %cst_565 {dimension_numbers = #tpu.dot_dimension_numbers<[1], [0], [0], [1], [0, 0, 1, 1], [], []>} : vector<8x32xbf16>, vector<32x128xbf16>, vector<8x128xf32> -> vector<8x128xf32>
    %1464 = arith.addf %1460, %1463 : vector<8x128xf32>
    %1465 = vector.extract_strided_slice %1464 {offsets = [0, 0], sizes = [8, 32], strides = [1, 1]} : vector<8x128xf32> to vector<8x32xf32>
    %cst_566 = arith.constant 5.000000e-01 : f32
    %1466 = vector.broadcast %cst_566 : f32 to vector<8x32xf32>
    %1467 = arith.mulf %1466, %1465 : vector<8x32xf32>
    %1468 = math.tanh %1467 : vector<8x32xf32>
    %cst_567 = arith.constant 5.000000e-01 : f32
    %1469 = vector.broadcast %cst_567 : f32 to vector<8x32xf32>
    %1470 = arith.mulf %1469, %1468 : vector<8x32xf32>
    %cst_568 = arith.constant 5.000000e-01 : f32
    %1471 = vector.broadcast %cst_568 : f32 to vector<8x32xf32>
    %1472 = arith.addf %1470, %1471 : vector<8x32xf32>
    %1473 = vector.extract_strided_slice %1464 {offsets = [0, 32], sizes = [8, 32], strides = [1, 1]} : vector<8x128xf32> to vector<8x32xf32>
    %cst_569 = arith.constant 5.000000e-01 : f32
    %1474 = vector.broadcast %cst_569 : f32 to vector<8x32xf32>
    %1475 = arith.mulf %1474, %1473 : vector<8x32xf32>
    %1476 = math.tanh %1475 : vector<8x32xf32>
    %cst_570 = arith.constant 5.000000e-01 : f32
    %1477 = vector.broadcast %cst_570 : f32 to vector<8x32xf32>
    %1478 = arith.mulf %1477, %1476 : vector<8x32xf32>
    %cst_571 = arith.constant 5.000000e-01 : f32
    %1479 = vector.broadcast %cst_571 : f32 to vector<8x32xf32>
    %1480 = arith.addf %1478, %1479 : vector<8x32xf32>
    %1481 = vector.extract_strided_slice %1464 {offsets = [0, 64], sizes = [8, 32], strides = [1, 1]} : vector<8x128xf32> to vector<8x32xf32>
    %1482 = math.tanh %1481 : vector<8x32xf32>
    %1483 = vector.extract_strided_slice %1464 {offsets = [0, 96], sizes = [8, 32], strides = [1, 1]} : vector<8x128xf32> to vector<8x32xf32>
    %cst_572 = arith.constant 5.000000e-01 : f32
    %1484 = vector.broadcast %cst_572 : f32 to vector<8x32xf32>
    %1485 = arith.mulf %1484, %1483 : vector<8x32xf32>
    %1486 = math.tanh %1485 : vector<8x32xf32>
    %cst_573 = arith.constant 5.000000e-01 : f32
    %1487 = vector.broadcast %cst_573 : f32 to vector<8x32xf32>
    %1488 = arith.mulf %1487, %1486 : vector<8x32xf32>
    %cst_574 = arith.constant 5.000000e-01 : f32
    %1489 = vector.broadcast %cst_574 : f32 to vector<8x32xf32>
    %1490 = arith.addf %1488, %1489 : vector<8x32xf32>
    %1491 = arith.mulf %1480, %1449 : vector<8x32xf32>
    %1492 = arith.mulf %1472, %1482 : vector<8x32xf32>
    %1493 = arith.addf %1491, %1492 : vector<8x32xf32>
    %1494 = math.tanh %1493 : vector<8x32xf32>
    %1495 = arith.mulf %1490, %1494 : vector<8x32xf32>
    %1496 = arith.truncf %1495 : vector<8x32xf32> to vector<8x32xbf16>
    %c0_575 = arith.constant 0 : index
    %1497 = arith.index_cast %1458 : i32 to index
    %c0_576 = arith.constant 0 : index
    %1498 = vector.load %arg11[%c0_575, %1497, %c0_576] : memref<1x128x32xbf16, #tpu.memory_space<vmem>>, vector<1x8x32xbf16>
    %1499 = vector.shape_cast %1498 : vector<1x8x32xbf16> to vector<8x32xbf16>
    %1500 = vector.shape_cast %1496 : vector<8x32xbf16> to vector<1x8x32xbf16>
    tpu.vector_store %arg11[%c0_575, %1497, %c0_576], %1500 {strides = array<i32>} : memref<1x128x32xbf16, #tpu.memory_space<vmem>>, vector<1x8x32xbf16>,
    %c3_i32_577 = arith.constant 3 : i32
    %c8_i32_578 = arith.constant 8 : i32
    %1501 = arith.muli %c3_i32_577, %c8_i32_578 : i32
    %1502 = tpu.assume_multiple %1501, 8 : i32
    %1503 = arith.index_cast %1502 : i32 to index
    %c0_579 = arith.constant 0 : index
    %1504 = vector.load %arg12[%1503, %c0_579] : memref<128x128xf32, #tpu.memory_space<vmem>>, vector<8x128xf32>
    %1505 = arith.truncf %1495 : vector<8x32xf32> to vector<8x32xbf16>
    %c0_580 = arith.constant 0 : index
    %c0_581 = arith.constant 0 : index
    %1506 = vector.load %arg9[%c0_580, %c0_581] : memref<32x128xbf16, #tpu.memory_space<vmem>>, vector<32x128xbf16>
    %cst_582 = arith.constant dense<0.000000e+00> : vector<8x128xf32>
    %1507 = tpu.matmul %1505, %1506, %cst_582 {dimension_numbers = #tpu.dot_dimension_numbers<[1], [0], [0], [1], [0, 0, 1, 1], [], []>} : vector<8x32xbf16>, vector<32x128xbf16>, vector<8x128xf32> -> vector<8x128xf32>
    %1508 = arith.addf %1504, %1507 : vector<8x128xf32>
    %1509 = vector.extract_strided_slice %1508 {offsets = [0, 0], sizes = [8, 32], strides = [1, 1]} : vector<8x128xf32> to vector<8x32xf32>
    %cst_583 = arith.constant 5.000000e-01 : f32
    %1510 = vector.broadcast %cst_583 : f32 to vector<8x32xf32>
    %1511 = arith.mulf %1510, %1509 : vector<8x32xf32>
    %1512 = math.tanh %1511 : vector<8x32xf32>
    %cst_584 = arith.constant 5.000000e-01 : f32
    %1513 = vector.broadcast %cst_584 : f32 to vector<8x32xf32>
    %1514 = arith.mulf %1513, %1512 : vector<8x32xf32>
    %cst_585 = arith.constant 5.000000e-01 : f32
    %1515 = vector.broadcast %cst_585 : f32 to vector<8x32xf32>
    %1516 = arith.addf %1514, %1515 : vector<8x32xf32>
    %1517 = vector.extract_strided_slice %1508 {offsets = [0, 32], sizes = [8, 32], strides = [1, 1]} : vector<8x128xf32> to vector<8x32xf32>
    %cst_586 = arith.constant 5.000000e-01 : f32
    %1518 = vector.broadcast %cst_586 : f32 to vector<8x32xf32>
    %1519 = arith.mulf %1518, %1517 : vector<8x32xf32>
    %1520 = math.tanh %1519 : vector<8x32xf32>
    %cst_587 = arith.constant 5.000000e-01 : f32
    %1521 = vector.broadcast %cst_587 : f32 to vector<8x32xf32>
    %1522 = arith.mulf %1521, %1520 : vector<8x32xf32>
    %cst_588 = arith.constant 5.000000e-01 : f32
    %1523 = vector.broadcast %cst_588 : f32 to vector<8x32xf32>
    %1524 = arith.addf %1522, %1523 : vector<8x32xf32>
    %1525 = vector.extract_strided_slice %1508 {offsets = [0, 64], sizes = [8, 32], strides = [1, 1]} : vector<8x128xf32> to vector<8x32xf32>
    %1526 = math.tanh %1525 : vector<8x32xf32>
    %1527 = vector.extract_strided_slice %1508 {offsets = [0, 96], sizes = [8, 32], strides = [1, 1]} : vector<8x128xf32> to vector<8x32xf32>
    %cst_589 = arith.constant 5.000000e-01 : f32
    %1528 = vector.broadcast %cst_589 : f32 to vector<8x32xf32>
    %1529 = arith.mulf %1528, %1527 : vector<8x32xf32>
    %1530 = math.tanh %1529 : vector<8x32xf32>
    %cst_590 = arith.constant 5.000000e-01 : f32
    %1531 = vector.broadcast %cst_590 : f32 to vector<8x32xf32>
    %1532 = arith.mulf %1531, %1530 : vector<8x32xf32>
    %cst_591 = arith.constant 5.000000e-01 : f32
    %1533 = vector.broadcast %cst_591 : f32 to vector<8x32xf32>
    %1534 = arith.addf %1532, %1533 : vector<8x32xf32>
    %1535 = arith.mulf %1524, %1493 : vector<8x32xf32>
    %1536 = arith.mulf %1516, %1526 : vector<8x32xf32>
    %1537 = arith.addf %1535, %1536 : vector<8x32xf32>
    %1538 = math.tanh %1537 : vector<8x32xf32>
    %1539 = arith.mulf %1534, %1538 : vector<8x32xf32>
    %1540 = arith.truncf %1539 : vector<8x32xf32> to vector<8x32xbf16>
    %c0_592 = arith.constant 0 : index
    %1541 = arith.index_cast %1502 : i32 to index
    %c0_593 = arith.constant 0 : index
    %1542 = vector.load %arg11[%c0_592, %1541, %c0_593] : memref<1x128x32xbf16, #tpu.memory_space<vmem>>, vector<1x8x32xbf16>
    %1543 = vector.shape_cast %1542 : vector<1x8x32xbf16> to vector<8x32xbf16>
    %1544 = vector.shape_cast %1540 : vector<8x32xbf16> to vector<1x8x32xbf16>
    tpu.vector_store %arg11[%c0_592, %1541, %c0_593], %1544 {strides = array<i32>} : memref<1x128x32xbf16, #tpu.memory_space<vmem>>, vector<1x8x32xbf16>,
    %c4_i32_594 = arith.constant 4 : i32
    %c8_i32_595 = arith.constant 8 : i32
    %1545 = arith.muli %c4_i32_594, %c8_i32_595 : i32
    %1546 = tpu.assume_multiple %1545, 8 : i32
    %1547 = arith.index_cast %1546 : i32 to index
    %c0_596 = arith.constant 0 : index
    %1548 = vector.load %arg12[%1547, %c0_596] : memref<128x128xf32, #tpu.memory_space<vmem>>, vector<8x128xf32>
    %1549 = arith.truncf %1539 : vector<8x32xf32> to vector<8x32xbf16>
    %c0_597 = arith.constant 0 : index
    %c0_598 = arith.constant 0 : index
    %1550 = vector.load %arg9[%c0_597, %c0_598] : memref<32x128xbf16, #tpu.memory_space<vmem>>, vector<32x128xbf16>
    %cst_599 = arith.constant dense<0.000000e+00> : vector<8x128xf32>
    %1551 = tpu.matmul %1549, %1550, %cst_599 {dimension_numbers = #tpu.dot_dimension_numbers<[1], [0], [0], [1], [0, 0, 1, 1], [], []>} : vector<8x32xbf16>, vector<32x128xbf16>, vector<8x128xf32> -> vector<8x128xf32>
    %1552 = arith.addf %1548, %1551 : vector<8x128xf32>
    %1553 = vector.extract_strided_slice %1552 {offsets = [0, 0], sizes = [8, 32], strides = [1, 1]} : vector<8x128xf32> to vector<8x32xf32>
    %cst_600 = arith.constant 5.000000e-01 : f32
    %1554 = vector.broadcast %cst_600 : f32 to vector<8x32xf32>
    %1555 = arith.mulf %1554, %1553 : vector<8x32xf32>
    %1556 = math.tanh %1555 : vector<8x32xf32>
    %cst_601 = arith.constant 5.000000e-01 : f32
    %1557 = vector.broadcast %cst_601 : f32 to vector<8x32xf32>
    %1558 = arith.mulf %1557, %1556 : vector<8x32xf32>
    %cst_602 = arith.constant 5.000000e-01 : f32
    %1559 = vector.broadcast %cst_602 : f32 to vector<8x32xf32>
    %1560 = arith.addf %1558, %1559 : vector<8x32xf32>
    %1561 = vector.extract_strided_slice %1552 {offsets = [0, 32], sizes = [8, 32], strides = [1, 1]} : vector<8x128xf32> to vector<8x32xf32>
    %cst_603 = arith.constant 5.000000e-01 : f32
    %1562 = vector.broadcast %cst_603 : f32 to vector<8x32xf32>
    %1563 = arith.mulf %1562, %1561 : vector<8x32xf32>
    %1564 = math.tanh %1563 : vector<8x32xf32>
    %cst_604 = arith.constant 5.000000e-01 : f32
    %1565 = vector.broadcast %cst_604 : f32 to vector<8x32xf32>
    %1566 = arith.mulf %1565, %1564 : vector<8x32xf32>
    %cst_605 = arith.constant 5.000000e-01 : f32
    %1567 = vector.broadcast %cst_605 : f32 to vector<8x32xf32>
    %1568 = arith.addf %1566, %1567 : vector<8x32xf32>
    %1569 = vector.extract_strided_slice %1552 {offsets = [0, 64], sizes = [8, 32], strides = [1, 1]} : vector<8x128xf32> to vector<8x32xf32>
    %1570 = math.tanh %1569 : vector<8x32xf32>
    %1571 = vector.extract_strided_slice %1552 {offsets = [0, 96], sizes = [8, 32], strides = [1, 1]} : vector<8x128xf32> to vector<8x32xf32>
    %cst_606 = arith.constant 5.000000e-01 : f32
    %1572 = vector.broadcast %cst_606 : f32 to vector<8x32xf32>
    %1573 = arith.mulf %1572, %1571 : vector<8x32xf32>
    %1574 = math.tanh %1573 : vector<8x32xf32>
    %cst_607 = arith.constant 5.000000e-01 : f32
    %1575 = vector.broadcast %cst_607 : f32 to vector<8x32xf32>
    %1576 = arith.mulf %1575, %1574 : vector<8x32xf32>
    %cst_608 = arith.constant 5.000000e-01 : f32
    %1577 = vector.broadcast %cst_608 : f32 to vector<8x32xf32>
    %1578 = arith.addf %1576, %1577 : vector<8x32xf32>
    %1579 = arith.mulf %1568, %1537 : vector<8x32xf32>
    %1580 = arith.mulf %1560, %1570 : vector<8x32xf32>
    %1581 = arith.addf %1579, %1580 : vector<8x32xf32>
    %1582 = math.tanh %1581 : vector<8x32xf32>
    %1583 = arith.mulf %1578, %1582 : vector<8x32xf32>
    %1584 = arith.truncf %1583 : vector<8x32xf32> to vector<8x32xbf16>
    %c0_609 = arith.constant 0 : index
    %1585 = arith.index_cast %1546 : i32 to index
    %c0_610 = arith.constant 0 : index
    %1586 = vector.load %arg11[%c0_609, %1585, %c0_610] : memref<1x128x32xbf16, #tpu.memory_space<vmem>>, vector<1x8x32xbf16>
    %1587 = vector.shape_cast %1586 : vector<1x8x32xbf16> to vector<8x32xbf16>
    %1588 = vector.shape_cast %1584 : vector<8x32xbf16> to vector<1x8x32xbf16>
    tpu.vector_store %arg11[%c0_609, %1585, %c0_610], %1588 {strides = array<i32>} : memref<1x128x32xbf16, #tpu.memory_space<vmem>>, vector<1x8x32xbf16>,
    %c5_i32_611 = arith.constant 5 : i32
    %c8_i32_612 = arith.constant 8 : i32
    %1589 = arith.muli %c5_i32_611, %c8_i32_612 : i32
    %1590 = tpu.assume_multiple %1589, 8 : i32
    %1591 = arith.index_cast %1590 : i32 to index
    %c0_613 = arith.constant 0 : index
    %1592 = vector.load %arg12[%1591, %c0_613] : memref<128x128xf32, #tpu.memory_space<vmem>>, vector<8x128xf32>
    %1593 = arith.truncf %1583 : vector<8x32xf32> to vector<8x32xbf16>
    %c0_614 = arith.constant 0 : index
    %c0_615 = arith.constant 0 : index
    %1594 = vector.load %arg9[%c0_614, %c0_615] : memref<32x128xbf16, #tpu.memory_space<vmem>>, vector<32x128xbf16>
    %cst_616 = arith.constant dense<0.000000e+00> : vector<8x128xf32>
    %1595 = tpu.matmul %1593, %1594, %cst_616 {dimension_numbers = #tpu.dot_dimension_numbers<[1], [0], [0], [1], [0, 0, 1, 1], [], []>} : vector<8x32xbf16>, vector<32x128xbf16>, vector<8x128xf32> -> vector<8x128xf32>
    %1596 = arith.addf %1592, %1595 : vector<8x128xf32>
    %1597 = vector.extract_strided_slice %1596 {offsets = [0, 0], sizes = [8, 32], strides = [1, 1]} : vector<8x128xf32> to vector<8x32xf32>
    %cst_617 = arith.constant 5.000000e-01 : f32
    %1598 = vector.broadcast %cst_617 : f32 to vector<8x32xf32>
    %1599 = arith.mulf %1598, %1597 : vector<8x32xf32>
    %1600 = math.tanh %1599 : vector<8x32xf32>
    %cst_618 = arith.constant 5.000000e-01 : f32
    %1601 = vector.broadcast %cst_618 : f32 to vector<8x32xf32>
    %1602 = arith.mulf %1601, %1600 : vector<8x32xf32>
    %cst_619 = arith.constant 5.000000e-01 : f32
    %1603 = vector.broadcast %cst_619 : f32 to vector<8x32xf32>
    %1604 = arith.addf %1602, %1603 : vector<8x32xf32>
    %1605 = vector.extract_strided_slice %1596 {offsets = [0, 32], sizes = [8, 32], strides = [1, 1]} : vector<8x128xf32> to vector<8x32xf32>
    %cst_620 = arith.constant 5.000000e-01 : f32
    %1606 = vector.broadcast %cst_620 : f32 to vector<8x32xf32>
    %1607 = arith.mulf %1606, %1605 : vector<8x32xf32>
    %1608 = math.tanh %1607 : vector<8x32xf32>
    %cst_621 = arith.constant 5.000000e-01 : f32
    %1609 = vector.broadcast %cst_621 : f32 to vector<8x32xf32>
    %1610 = arith.mulf %1609, %1608 : vector<8x32xf32>
    %cst_622 = arith.constant 5.000000e-01 : f32
    %1611 = vector.broadcast %cst_622 : f32 to vector<8x32xf32>
    %1612 = arith.addf %1610, %1611 : vector<8x32xf32>
    %1613 = vector.extract_strided_slice %1596 {offsets = [0, 64], sizes = [8, 32], strides = [1, 1]} : vector<8x128xf32> to vector<8x32xf32>
    %1614 = math.tanh %1613 : vector<8x32xf32>
    %1615 = vector.extract_strided_slice %1596 {offsets = [0, 96], sizes = [8, 32], strides = [1, 1]} : vector<8x128xf32> to vector<8x32xf32>
    %cst_623 = arith.constant 5.000000e-01 : f32
    %1616 = vector.broadcast %cst_623 : f32 to vector<8x32xf32>
    %1617 = arith.mulf %1616, %1615 : vector<8x32xf32>
    %1618 = math.tanh %1617 : vector<8x32xf32>
    %cst_624 = arith.constant 5.000000e-01 : f32
    %1619 = vector.broadcast %cst_624 : f32 to vector<8x32xf32>
    %1620 = arith.mulf %1619, %1618 : vector<8x32xf32>
    %cst_625 = arith.constant 5.000000e-01 : f32
    %1621 = vector.broadcast %cst_625 : f32 to vector<8x32xf32>
    %1622 = arith.addf %1620, %1621 : vector<8x32xf32>
    %1623 = arith.mulf %1612, %1581 : vector<8x32xf32>
    %1624 = arith.mulf %1604, %1614 : vector<8x32xf32>
    %1625 = arith.addf %1623, %1624 : vector<8x32xf32>
    %1626 = math.tanh %1625 : vector<8x32xf32>
    %1627 = arith.mulf %1622, %1626 : vector<8x32xf32>
    %1628 = arith.truncf %1627 : vector<8x32xf32> to vector<8x32xbf16>
    %c0_626 = arith.constant 0 : index
    %1629 = arith.index_cast %1590 : i32 to index
    %c0_627 = arith.constant 0 : index
    %1630 = vector.load %arg11[%c0_626, %1629, %c0_627] : memref<1x128x32xbf16, #tpu.memory_space<vmem>>, vector<1x8x32xbf16>
    %1631 = vector.shape_cast %1630 : vector<1x8x32xbf16> to vector<8x32xbf16>
    %1632 = vector.shape_cast %1628 : vector<8x32xbf16> to vector<1x8x32xbf16>
    tpu.vector_store %arg11[%c0_626, %1629, %c0_627], %1632 {strides = array<i32>} : memref<1x128x32xbf16, #tpu.memory_space<vmem>>, vector<1x8x32xbf16>,
    %c6_i32_628 = arith.constant 6 : i32
    %c8_i32_629 = arith.constant 8 : i32
    %1633 = arith.muli %c6_i32_628, %c8_i32_629 : i32
    %1634 = tpu.assume_multiple %1633, 8 : i32
    %1635 = arith.index_cast %1634 : i32 to index
    %c0_630 = arith.constant 0 : index
    %1636 = vector.load %arg12[%1635, %c0_630] : memref<128x128xf32, #tpu.memory_space<vmem>>, vector<8x128xf32>
    %1637 = arith.truncf %1627 : vector<8x32xf32> to vector<8x32xbf16>
    %c0_631 = arith.constant 0 : index
    %c0_632 = arith.constant 0 : index
    %1638 = vector.load %arg9[%c0_631, %c0_632] : memref<32x128xbf16, #tpu.memory_space<vmem>>, vector<32x128xbf16>
    %cst_633 = arith.constant dense<0.000000e+00> : vector<8x128xf32>
    %1639 = tpu.matmul %1637, %1638, %cst_633 {dimension_numbers = #tpu.dot_dimension_numbers<[1], [0], [0], [1], [0, 0, 1, 1], [], []>} : vector<8x32xbf16>, vector<32x128xbf16>, vector<8x128xf32> -> vector<8x128xf32>
    %1640 = arith.addf %1636, %1639 : vector<8x128xf32>
    %1641 = vector.extract_strided_slice %1640 {offsets = [0, 0], sizes = [8, 32], strides = [1, 1]} : vector<8x128xf32> to vector<8x32xf32>
    %cst_634 = arith.constant 5.000000e-01 : f32
    %1642 = vector.broadcast %cst_634 : f32 to vector<8x32xf32>
    %1643 = arith.mulf %1642, %1641 : vector<8x32xf32>
    %1644 = math.tanh %1643 : vector<8x32xf32>
    %cst_635 = arith.constant 5.000000e-01 : f32
    %1645 = vector.broadcast %cst_635 : f32 to vector<8x32xf32>
    %1646 = arith.mulf %1645, %1644 : vector<8x32xf32>
    %cst_636 = arith.constant 5.000000e-01 : f32
    %1647 = vector.broadcast %cst_636 : f32 to vector<8x32xf32>
    %1648 = arith.addf %1646, %1647 : vector<8x32xf32>
    %1649 = vector.extract_strided_slice %1640 {offsets = [0, 32], sizes = [8, 32], strides = [1, 1]} : vector<8x128xf32> to vector<8x32xf32>
    %cst_637 = arith.constant 5.000000e-01 : f32
    %1650 = vector.broadcast %cst_637 : f32 to vector<8x32xf32>
    %1651 = arith.mulf %1650, %1649 : vector<8x32xf32>
    %1652 = math.tanh %1651 : vector<8x32xf32>
    %cst_638 = arith.constant 5.000000e-01 : f32
    %1653 = vector.broadcast %cst_638 : f32 to vector<8x32xf32>
    %1654 = arith.mulf %1653, %1652 : vector<8x32xf32>
    %cst_639 = arith.constant 5.000000e-01 : f32
    %1655 = vector.broadcast %cst_639 : f32 to vector<8x32xf32>
    %1656 = arith.addf %1654, %1655 : vector<8x32xf32>
    %1657 = vector.extract_strided_slice %1640 {offsets = [0, 64], sizes = [8, 32], strides = [1, 1]} : vector<8x128xf32> to vector<8x32xf32>
    %1658 = math.tanh %1657 : vector<8x32xf32>
    %1659 = vector.extract_strided_slice %1640 {offsets = [0, 96], sizes = [8, 32], strides = [1, 1]} : vector<8x128xf32> to vector<8x32xf32>
    %cst_640 = arith.constant 5.000000e-01 : f32
    %1660 = vector.broadcast %cst_640 : f32 to vector<8x32xf32>
    %1661 = arith.mulf %1660, %1659 : vector<8x32xf32>
    %1662 = math.tanh %1661 : vector<8x32xf32>
    %cst_641 = arith.constant 5.000000e-01 : f32
    %1663 = vector.broadcast %cst_641 : f32 to vector<8x32xf32>
    %1664 = arith.mulf %1663, %1662 : vector<8x32xf32>
    %cst_642 = arith.constant 5.000000e-01 : f32
    %1665 = vector.broadcast %cst_642 : f32 to vector<8x32xf32>
    %1666 = arith.addf %1664, %1665 : vector<8x32xf32>
    %1667 = arith.mulf %1656, %1625 : vector<8x32xf32>
    %1668 = arith.mulf %1648, %1658 : vector<8x32xf32>
    %1669 = arith.addf %1667, %1668 : vector<8x32xf32>
    %1670 = math.tanh %1669 : vector<8x32xf32>
    %1671 = arith.mulf %1666, %1670 : vector<8x32xf32>
    %1672 = arith.truncf %1671 : vector<8x32xf32> to vector<8x32xbf16>
    %c0_643 = arith.constant 0 : index
    %1673 = arith.index_cast %1634 : i32 to index
    %c0_644 = arith.constant 0 : index
    %1674 = vector.load %arg11[%c0_643, %1673, %c0_644] : memref<1x128x32xbf16, #tpu.memory_space<vmem>>, vector<1x8x32xbf16>
    %1675 = vector.shape_cast %1674 : vector<1x8x32xbf16> to vector<8x32xbf16>
    %1676 = vector.shape_cast %1672 : vector<8x32xbf16> to vector<1x8x32xbf16>
    tpu.vector_store %arg11[%c0_643, %1673, %c0_644], %1676 {strides = array<i32>} : memref<1x128x32xbf16, #tpu.memory_space<vmem>>, vector<1x8x32xbf16>,
    %c7_i32_645 = arith.constant 7 : i32
    %c8_i32_646 = arith.constant 8 : i32
    %1677 = arith.muli %c7_i32_645, %c8_i32_646 : i32
    %1678 = tpu.assume_multiple %1677, 8 : i32
    %1679 = arith.index_cast %1678 : i32 to index
    %c0_647 = arith.constant 0 : index
    %1680 = vector.load %arg12[%1679, %c0_647] : memref<128x128xf32, #tpu.memory_space<vmem>>, vector<8x128xf32>
    %1681 = arith.truncf %1671 : vector<8x32xf32> to vector<8x32xbf16>
    %c0_648 = arith.constant 0 : index
    %c0_649 = arith.constant 0 : index
    %1682 = vector.load %arg9[%c0_648, %c0_649] : memref<32x128xbf16, #tpu.memory_space<vmem>>, vector<32x128xbf16>
    %cst_650 = arith.constant dense<0.000000e+00> : vector<8x128xf32>
    %1683 = tpu.matmul %1681, %1682, %cst_650 {dimension_numbers = #tpu.dot_dimension_numbers<[1], [0], [0], [1], [0, 0, 1, 1], [], []>} : vector<8x32xbf16>, vector<32x128xbf16>, vector<8x128xf32> -> vector<8x128xf32>
    %1684 = arith.addf %1680, %1683 : vector<8x128xf32>
    %1685 = vector.extract_strided_slice %1684 {offsets = [0, 0], sizes = [8, 32], strides = [1, 1]} : vector<8x128xf32> to vector<8x32xf32>
    %cst_651 = arith.constant 5.000000e-01 : f32
    %1686 = vector.broadcast %cst_651 : f32 to vector<8x32xf32>
    %1687 = arith.mulf %1686, %1685 : vector<8x32xf32>
    %1688 = math.tanh %1687 : vector<8x32xf32>
    %cst_652 = arith.constant 5.000000e-01 : f32
    %1689 = vector.broadcast %cst_652 : f32 to vector<8x32xf32>
    %1690 = arith.mulf %1689, %1688 : vector<8x32xf32>
    %cst_653 = arith.constant 5.000000e-01 : f32
    %1691 = vector.broadcast %cst_653 : f32 to vector<8x32xf32>
    %1692 = arith.addf %1690, %1691 : vector<8x32xf32>
    %1693 = vector.extract_strided_slice %1684 {offsets = [0, 32], sizes = [8, 32], strides = [1, 1]} : vector<8x128xf32> to vector<8x32xf32>
    %cst_654 = arith.constant 5.000000e-01 : f32
    %1694 = vector.broadcast %cst_654 : f32 to vector<8x32xf32>
    %1695 = arith.mulf %1694, %1693 : vector<8x32xf32>
    %1696 = math.tanh %1695 : vector<8x32xf32>
    %cst_655 = arith.constant 5.000000e-01 : f32
    %1697 = vector.broadcast %cst_655 : f32 to vector<8x32xf32>
    %1698 = arith.mulf %1697, %1696 : vector<8x32xf32>
    %cst_656 = arith.constant 5.000000e-01 : f32
    %1699 = vector.broadcast %cst_656 : f32 to vector<8x32xf32>
    %1700 = arith.addf %1698, %1699 : vector<8x32xf32>
    %1701 = vector.extract_strided_slice %1684 {offsets = [0, 64], sizes = [8, 32], strides = [1, 1]} : vector<8x128xf32> to vector<8x32xf32>
    %1702 = math.tanh %1701 : vector<8x32xf32>
    %1703 = vector.extract_strided_slice %1684 {offsets = [0, 96], sizes = [8, 32], strides = [1, 1]} : vector<8x128xf32> to vector<8x32xf32>
    %cst_657 = arith.constant 5.000000e-01 : f32
    %1704 = vector.broadcast %cst_657 : f32 to vector<8x32xf32>
    %1705 = arith.mulf %1704, %1703 : vector<8x32xf32>
    %1706 = math.tanh %1705 : vector<8x32xf32>
    %cst_658 = arith.constant 5.000000e-01 : f32
    %1707 = vector.broadcast %cst_658 : f32 to vector<8x32xf32>
    %1708 = arith.mulf %1707, %1706 : vector<8x32xf32>
    %cst_659 = arith.constant 5.000000e-01 : f32
    %1709 = vector.broadcast %cst_659 : f32 to vector<8x32xf32>
    %1710 = arith.addf %1708, %1709 : vector<8x32xf32>
    %1711 = arith.mulf %1700, %1669 : vector<8x32xf32>
    %1712 = arith.mulf %1692, %1702 : vector<8x32xf32>
    %1713 = arith.addf %1711, %1712 : vector<8x32xf32>
    %1714 = math.tanh %1713 : vector<8x32xf32>
    %1715 = arith.mulf %1710, %1714 : vector<8x32xf32>
    %1716 = arith.truncf %1715 : vector<8x32xf32> to vector<8x32xbf16>
    %c0_660 = arith.constant 0 : index
    %1717 = arith.index_cast %1678 : i32 to index
    %c0_661 = arith.constant 0 : index
    %1718 = vector.load %arg11[%c0_660, %1717, %c0_661] : memref<1x128x32xbf16, #tpu.memory_space<vmem>>, vector<1x8x32xbf16>
    %1719 = vector.shape_cast %1718 : vector<1x8x32xbf16> to vector<8x32xbf16>
    %1720 = vector.shape_cast %1716 : vector<8x32xbf16> to vector<1x8x32xbf16>
    tpu.vector_store %arg11[%c0_660, %1717, %c0_661], %1720 {strides = array<i32>} : memref<1x128x32xbf16, #tpu.memory_space<vmem>>, vector<1x8x32xbf16>,
    %c8_i32_662 = arith.constant 8 : i32
    %c8_i32_663 = arith.constant 8 : i32
    %1721 = arith.muli %c8_i32_662, %c8_i32_663 : i32
    %1722 = tpu.assume_multiple %1721, 8 : i32
    %1723 = arith.index_cast %1722 : i32 to index
    %c0_664 = arith.constant 0 : index
    %1724 = vector.load %arg12[%1723, %c0_664] : memref<128x128xf32, #tpu.memory_space<vmem>>, vector<8x128xf32>
    %1725 = arith.truncf %1715 : vector<8x32xf32> to vector<8x32xbf16>
    %c0_665 = arith.constant 0 : index
    %c0_666 = arith.constant 0 : index
    %1726 = vector.load %arg9[%c0_665, %c0_666] : memref<32x128xbf16, #tpu.memory_space<vmem>>, vector<32x128xbf16>
    %cst_667 = arith.constant dense<0.000000e+00> : vector<8x128xf32>
    %1727 = tpu.matmul %1725, %1726, %cst_667 {dimension_numbers = #tpu.dot_dimension_numbers<[1], [0], [0], [1], [0, 0, 1, 1], [], []>} : vector<8x32xbf16>, vector<32x128xbf16>, vector<8x128xf32> -> vector<8x128xf32>
    %1728 = arith.addf %1724, %1727 : vector<8x128xf32>
    %1729 = vector.extract_strided_slice %1728 {offsets = [0, 0], sizes = [8, 32], strides = [1, 1]} : vector<8x128xf32> to vector<8x32xf32>
    %cst_668 = arith.constant 5.000000e-01 : f32
    %1730 = vector.broadcast %cst_668 : f32 to vector<8x32xf32>
    %1731 = arith.mulf %1730, %1729 : vector<8x32xf32>
    %1732 = math.tanh %1731 : vector<8x32xf32>
    %cst_669 = arith.constant 5.000000e-01 : f32
    %1733 = vector.broadcast %cst_669 : f32 to vector<8x32xf32>
    %1734 = arith.mulf %1733, %1732 : vector<8x32xf32>
    %cst_670 = arith.constant 5.000000e-01 : f32
    %1735 = vector.broadcast %cst_670 : f32 to vector<8x32xf32>
    %1736 = arith.addf %1734, %1735 : vector<8x32xf32>
    %1737 = vector.extract_strided_slice %1728 {offsets = [0, 32], sizes = [8, 32], strides = [1, 1]} : vector<8x128xf32> to vector<8x32xf32>
    %cst_671 = arith.constant 5.000000e-01 : f32
    %1738 = vector.broadcast %cst_671 : f32 to vector<8x32xf32>
    %1739 = arith.mulf %1738, %1737 : vector<8x32xf32>
    %1740 = math.tanh %1739 : vector<8x32xf32>
    %cst_672 = arith.constant 5.000000e-01 : f32
    %1741 = vector.broadcast %cst_672 : f32 to vector<8x32xf32>
    %1742 = arith.mulf %1741, %1740 : vector<8x32xf32>
    %cst_673 = arith.constant 5.000000e-01 : f32
    %1743 = vector.broadcast %cst_673 : f32 to vector<8x32xf32>
    %1744 = arith.addf %1742, %1743 : vector<8x32xf32>
    %1745 = vector.extract_strided_slice %1728 {offsets = [0, 64], sizes = [8, 32], strides = [1, 1]} : vector<8x128xf32> to vector<8x32xf32>
    %1746 = math.tanh %1745 : vector<8x32xf32>
    %1747 = vector.extract_strided_slice %1728 {offsets = [0, 96], sizes = [8, 32], strides = [1, 1]} : vector<8x128xf32> to vector<8x32xf32>
    %cst_674 = arith.constant 5.000000e-01 : f32
    %1748 = vector.broadcast %cst_674 : f32 to vector<8x32xf32>
    %1749 = arith.mulf %1748, %1747 : vector<8x32xf32>
    %1750 = math.tanh %1749 : vector<8x32xf32>
    %cst_675 = arith.constant 5.000000e-01 : f32
    %1751 = vector.broadcast %cst_675 : f32 to vector<8x32xf32>
    %1752 = arith.mulf %1751, %1750 : vector<8x32xf32>
    %cst_676 = arith.constant 5.000000e-01 : f32
    %1753 = vector.broadcast %cst_676 : f32 to vector<8x32xf32>
    %1754 = arith.addf %1752, %1753 : vector<8x32xf32>
    %1755 = arith.mulf %1744, %1713 : vector<8x32xf32>
    %1756 = arith.mulf %1736, %1746 : vector<8x32xf32>
    %1757 = arith.addf %1755, %1756 : vector<8x32xf32>
    %1758 = math.tanh %1757 : vector<8x32xf32>
    %1759 = arith.mulf %1754, %1758 : vector<8x32xf32>
    %1760 = arith.truncf %1759 : vector<8x32xf32> to vector<8x32xbf16>
    %c0_677 = arith.constant 0 : index
    %1761 = arith.index_cast %1722 : i32 to index
    %c0_678 = arith.constant 0 : index
    %1762 = vector.load %arg11[%c0_677, %1761, %c0_678] : memref<1x128x32xbf16, #tpu.memory_space<vmem>>, vector<1x8x32xbf16>
    %1763 = vector.shape_cast %1762 : vector<1x8x32xbf16> to vector<8x32xbf16>
    %1764 = vector.shape_cast %1760 : vector<8x32xbf16> to vector<1x8x32xbf16>
    tpu.vector_store %arg11[%c0_677, %1761, %c0_678], %1764 {strides = array<i32>} : memref<1x128x32xbf16, #tpu.memory_space<vmem>>, vector<1x8x32xbf16>,
    %c9_i32_679 = arith.constant 9 : i32
    %c8_i32_680 = arith.constant 8 : i32
    %1765 = arith.muli %c9_i32_679, %c8_i32_680 : i32
    %1766 = tpu.assume_multiple %1765, 8 : i32
    %1767 = arith.index_cast %1766 : i32 to index
    %c0_681 = arith.constant 0 : index
    %1768 = vector.load %arg12[%1767, %c0_681] : memref<128x128xf32, #tpu.memory_space<vmem>>, vector<8x128xf32>
    %1769 = arith.truncf %1759 : vector<8x32xf32> to vector<8x32xbf16>
    %c0_682 = arith.constant 0 : index
    %c0_683 = arith.constant 0 : index
    %1770 = vector.load %arg9[%c0_682, %c0_683] : memref<32x128xbf16, #tpu.memory_space<vmem>>, vector<32x128xbf16>
    %cst_684 = arith.constant dense<0.000000e+00> : vector<8x128xf32>
    %1771 = tpu.matmul %1769, %1770, %cst_684 {dimension_numbers = #tpu.dot_dimension_numbers<[1], [0], [0], [1], [0, 0, 1, 1], [], []>} : vector<8x32xbf16>, vector<32x128xbf16>, vector<8x128xf32> -> vector<8x128xf32>
    %1772 = arith.addf %1768, %1771 : vector<8x128xf32>
    %1773 = vector.extract_strided_slice %1772 {offsets = [0, 0], sizes = [8, 32], strides = [1, 1]} : vector<8x128xf32> to vector<8x32xf32>
    %cst_685 = arith.constant 5.000000e-01 : f32
    %1774 = vector.broadcast %cst_685 : f32 to vector<8x32xf32>
    %1775 = arith.mulf %1774, %1773 : vector<8x32xf32>
    %1776 = math.tanh %1775 : vector<8x32xf32>
    %cst_686 = arith.constant 5.000000e-01 : f32
    %1777 = vector.broadcast %cst_686 : f32 to vector<8x32xf32>
    %1778 = arith.mulf %1777, %1776 : vector<8x32xf32>
    %cst_687 = arith.constant 5.000000e-01 : f32
    %1779 = vector.broadcast %cst_687 : f32 to vector<8x32xf32>
    %1780 = arith.addf %1778, %1779 : vector<8x32xf32>
    %1781 = vector.extract_strided_slice %1772 {offsets = [0, 32], sizes = [8, 32], strides = [1, 1]} : vector<8x128xf32> to vector<8x32xf32>
    %cst_688 = arith.constant 5.000000e-01 : f32
    %1782 = vector.broadcast %cst_688 : f32 to vector<8x32xf32>
    %1783 = arith.mulf %1782, %1781 : vector<8x32xf32>
    %1784 = math.tanh %1783 : vector<8x32xf32>
    %cst_689 = arith.constant 5.000000e-01 : f32
    %1785 = vector.broadcast %cst_689 : f32 to vector<8x32xf32>
    %1786 = arith.mulf %1785, %1784 : vector<8x32xf32>
    %cst_690 = arith.constant 5.000000e-01 : f32
    %1787 = vector.broadcast %cst_690 : f32 to vector<8x32xf32>
    %1788 = arith.addf %1786, %1787 : vector<8x32xf32>
    %1789 = vector.extract_strided_slice %1772 {offsets = [0, 64], sizes = [8, 32], strides = [1, 1]} : vector<8x128xf32> to vector<8x32xf32>
    %1790 = math.tanh %1789 : vector<8x32xf32>
    %1791 = vector.extract_strided_slice %1772 {offsets = [0, 96], sizes = [8, 32], strides = [1, 1]} : vector<8x128xf32> to vector<8x32xf32>
    %cst_691 = arith.constant 5.000000e-01 : f32
    %1792 = vector.broadcast %cst_691 : f32 to vector<8x32xf32>
    %1793 = arith.mulf %1792, %1791 : vector<8x32xf32>
    %1794 = math.tanh %1793 : vector<8x32xf32>
    %cst_692 = arith.constant 5.000000e-01 : f32
    %1795 = vector.broadcast %cst_692 : f32 to vector<8x32xf32>
    %1796 = arith.mulf %1795, %1794 : vector<8x32xf32>
    %cst_693 = arith.constant 5.000000e-01 : f32
    %1797 = vector.broadcast %cst_693 : f32 to vector<8x32xf32>
    %1798 = arith.addf %1796, %1797 : vector<8x32xf32>
    %1799 = arith.mulf %1788, %1757 : vector<8x32xf32>
    %1800 = arith.mulf %1780, %1790 : vector<8x32xf32>
    %1801 = arith.addf %1799, %1800 : vector<8x32xf32>
    %1802 = math.tanh %1801 : vector<8x32xf32>
    %1803 = arith.mulf %1798, %1802 : vector<8x32xf32>
    %1804 = arith.truncf %1803 : vector<8x32xf32> to vector<8x32xbf16>
    %c0_694 = arith.constant 0 : index
    %1805 = arith.index_cast %1766 : i32 to index
    %c0_695 = arith.constant 0 : index
    %1806 = vector.load %arg11[%c0_694, %1805, %c0_695] : memref<1x128x32xbf16, #tpu.memory_space<vmem>>, vector<1x8x32xbf16>
    %1807 = vector.shape_cast %1806 : vector<1x8x32xbf16> to vector<8x32xbf16>
    %1808 = vector.shape_cast %1804 : vector<8x32xbf16> to vector<1x8x32xbf16>
    tpu.vector_store %arg11[%c0_694, %1805, %c0_695], %1808 {strides = array<i32>} : memref<1x128x32xbf16, #tpu.memory_space<vmem>>, vector<1x8x32xbf16>,
    %c10_i32_696 = arith.constant 10 : i32
    %c8_i32_697 = arith.constant 8 : i32
    %1809 = arith.muli %c10_i32_696, %c8_i32_697 : i32
    %1810 = tpu.assume_multiple %1809, 8 : i32
    %1811 = arith.index_cast %1810 : i32 to index
    %c0_698 = arith.constant 0 : index
    %1812 = vector.load %arg12[%1811, %c0_698] : memref<128x128xf32, #tpu.memory_space<vmem>>, vector<8x128xf32>
    %1813 = arith.truncf %1803 : vector<8x32xf32> to vector<8x32xbf16>
    %c0_699 = arith.constant 0 : index
    %c0_700 = arith.constant 0 : index
    %1814 = vector.load %arg9[%c0_699, %c0_700] : memref<32x128xbf16, #tpu.memory_space<vmem>>, vector<32x128xbf16>
    %cst_701 = arith.constant dense<0.000000e+00> : vector<8x128xf32>
    %1815 = tpu.matmul %1813, %1814, %cst_701 {dimension_numbers = #tpu.dot_dimension_numbers<[1], [0], [0], [1], [0, 0, 1, 1], [], []>} : vector<8x32xbf16>, vector<32x128xbf16>, vector<8x128xf32> -> vector<8x128xf32>
    %1816 = arith.addf %1812, %1815 : vector<8x128xf32>
    %1817 = vector.extract_strided_slice %1816 {offsets = [0, 0], sizes = [8, 32], strides = [1, 1]} : vector<8x128xf32> to vector<8x32xf32>
    %cst_702 = arith.constant 5.000000e-01 : f32
    %1818 = vector.broadcast %cst_702 : f32 to vector<8x32xf32>
    %1819 = arith.mulf %1818, %1817 : vector<8x32xf32>
    %1820 = math.tanh %1819 : vector<8x32xf32>
    %cst_703 = arith.constant 5.000000e-01 : f32
    %1821 = vector.broadcast %cst_703 : f32 to vector<8x32xf32>
    %1822 = arith.mulf %1821, %1820 : vector<8x32xf32>
    %cst_704 = arith.constant 5.000000e-01 : f32
    %1823 = vector.broadcast %cst_704 : f32 to vector<8x32xf32>
    %1824 = arith.addf %1822, %1823 : vector<8x32xf32>
    %1825 = vector.extract_strided_slice %1816 {offsets = [0, 32], sizes = [8, 32], strides = [1, 1]} : vector<8x128xf32> to vector<8x32xf32>
    %cst_705 = arith.constant 5.000000e-01 : f32
    %1826 = vector.broadcast %cst_705 : f32 to vector<8x32xf32>
    %1827 = arith.mulf %1826, %1825 : vector<8x32xf32>
    %1828 = math.tanh %1827 : vector<8x32xf32>
    %cst_706 = arith.constant 5.000000e-01 : f32
    %1829 = vector.broadcast %cst_706 : f32 to vector<8x32xf32>
    %1830 = arith.mulf %1829, %1828 : vector<8x32xf32>
    %cst_707 = arith.constant 5.000000e-01 : f32
    %1831 = vector.broadcast %cst_707 : f32 to vector<8x32xf32>
    %1832 = arith.addf %1830, %1831 : vector<8x32xf32>
    %1833 = vector.extract_strided_slice %1816 {offsets = [0, 64], sizes = [8, 32], strides = [1, 1]} : vector<8x128xf32> to vector<8x32xf32>
    %1834 = math.tanh %1833 : vector<8x32xf32>
    %1835 = vector.extract_strided_slice %1816 {offsets = [0, 96], sizes = [8, 32], strides = [1, 1]} : vector<8x128xf32> to vector<8x32xf32>
    %cst_708 = arith.constant 5.000000e-01 : f32
    %1836 = vector.broadcast %cst_708 : f32 to vector<8x32xf32>
    %1837 = arith.mulf %1836, %1835 : vector<8x32xf32>
    %1838 = math.tanh %1837 : vector<8x32xf32>
    %cst_709 = arith.constant 5.000000e-01 : f32
    %1839 = vector.broadcast %cst_709 : f32 to vector<8x32xf32>
    %1840 = arith.mulf %1839, %1838 : vector<8x32xf32>
    %cst_710 = arith.constant 5.000000e-01 : f32
    %1841 = vector.broadcast %cst_710 : f32 to vector<8x32xf32>
    %1842 = arith.addf %1840, %1841 : vector<8x32xf32>
    %1843 = arith.mulf %1832, %1801 : vector<8x32xf32>
    %1844 = arith.mulf %1824, %1834 : vector<8x32xf32>
    %1845 = arith.addf %1843, %1844 : vector<8x32xf32>
    %1846 = math.tanh %1845 : vector<8x32xf32>
    %1847 = arith.mulf %1842, %1846 : vector<8x32xf32>
    %1848 = arith.truncf %1847 : vector<8x32xf32> to vector<8x32xbf16>
    %c0_711 = arith.constant 0 : index
    %1849 = arith.index_cast %1810 : i32 to index
    %c0_712 = arith.constant 0 : index
    %1850 = vector.load %arg11[%c0_711, %1849, %c0_712] : memref<1x128x32xbf16, #tpu.memory_space<vmem>>, vector<1x8x32xbf16>
    %1851 = vector.shape_cast %1850 : vector<1x8x32xbf16> to vector<8x32xbf16>
    %1852 = vector.shape_cast %1848 : vector<8x32xbf16> to vector<1x8x32xbf16>
    tpu.vector_store %arg11[%c0_711, %1849, %c0_712], %1852 {strides = array<i32>} : memref<1x128x32xbf16, #tpu.memory_space<vmem>>, vector<1x8x32xbf16>,
    %c11_i32_713 = arith.constant 11 : i32
    %c8_i32_714 = arith.constant 8 : i32
    %1853 = arith.muli %c11_i32_713, %c8_i32_714 : i32
    %1854 = tpu.assume_multiple %1853, 8 : i32
    %1855 = arith.index_cast %1854 : i32 to index
    %c0_715 = arith.constant 0 : index
    %1856 = vector.load %arg12[%1855, %c0_715] : memref<128x128xf32, #tpu.memory_space<vmem>>, vector<8x128xf32>
    %1857 = arith.truncf %1847 : vector<8x32xf32> to vector<8x32xbf16>
    %c0_716 = arith.constant 0 : index
    %c0_717 = arith.constant 0 : index
    %1858 = vector.load %arg9[%c0_716, %c0_717] : memref<32x128xbf16, #tpu.memory_space<vmem>>, vector<32x128xbf16>
    %cst_718 = arith.constant dense<0.000000e+00> : vector<8x128xf32>
    %1859 = tpu.matmul %1857, %1858, %cst_718 {dimension_numbers = #tpu.dot_dimension_numbers<[1], [0], [0], [1], [0, 0, 1, 1], [], []>} : vector<8x32xbf16>, vector<32x128xbf16>, vector<8x128xf32> -> vector<8x128xf32>
    %1860 = arith.addf %1856, %1859 : vector<8x128xf32>
    %1861 = vector.extract_strided_slice %1860 {offsets = [0, 0], sizes = [8, 32], strides = [1, 1]} : vector<8x128xf32> to vector<8x32xf32>
    %cst_719 = arith.constant 5.000000e-01 : f32
    %1862 = vector.broadcast %cst_719 : f32 to vector<8x32xf32>
    %1863 = arith.mulf %1862, %1861 : vector<8x32xf32>
    %1864 = math.tanh %1863 : vector<8x32xf32>
    %cst_720 = arith.constant 5.000000e-01 : f32
    %1865 = vector.broadcast %cst_720 : f32 to vector<8x32xf32>
    %1866 = arith.mulf %1865, %1864 : vector<8x32xf32>
    %cst_721 = arith.constant 5.000000e-01 : f32
    %1867 = vector.broadcast %cst_721 : f32 to vector<8x32xf32>
    %1868 = arith.addf %1866, %1867 : vector<8x32xf32>
    %1869 = vector.extract_strided_slice %1860 {offsets = [0, 32], sizes = [8, 32], strides = [1, 1]} : vector<8x128xf32> to vector<8x32xf32>
    %cst_722 = arith.constant 5.000000e-01 : f32
    %1870 = vector.broadcast %cst_722 : f32 to vector<8x32xf32>
    %1871 = arith.mulf %1870, %1869 : vector<8x32xf32>
    %1872 = math.tanh %1871 : vector<8x32xf32>
    %cst_723 = arith.constant 5.000000e-01 : f32
    %1873 = vector.broadcast %cst_723 : f32 to vector<8x32xf32>
    %1874 = arith.mulf %1873, %1872 : vector<8x32xf32>
    %cst_724 = arith.constant 5.000000e-01 : f32
    %1875 = vector.broadcast %cst_724 : f32 to vector<8x32xf32>
    %1876 = arith.addf %1874, %1875 : vector<8x32xf32>
    %1877 = vector.extract_strided_slice %1860 {offsets = [0, 64], sizes = [8, 32], strides = [1, 1]} : vector<8x128xf32> to vector<8x32xf32>
    %1878 = math.tanh %1877 : vector<8x32xf32>
    %1879 = vector.extract_strided_slice %1860 {offsets = [0, 96], sizes = [8, 32], strides = [1, 1]} : vector<8x128xf32> to vector<8x32xf32>
    %cst_725 = arith.constant 5.000000e-01 : f32
    %1880 = vector.broadcast %cst_725 : f32 to vector<8x32xf32>
    %1881 = arith.mulf %1880, %1879 : vector<8x32xf32>
    %1882 = math.tanh %1881 : vector<8x32xf32>
    %cst_726 = arith.constant 5.000000e-01 : f32
    %1883 = vector.broadcast %cst_726 : f32 to vector<8x32xf32>
    %1884 = arith.mulf %1883, %1882 : vector<8x32xf32>
    %cst_727 = arith.constant 5.000000e-01 : f32
    %1885 = vector.broadcast %cst_727 : f32 to vector<8x32xf32>
    %1886 = arith.addf %1884, %1885 : vector<8x32xf32>
    %1887 = arith.mulf %1876, %1845 : vector<8x32xf32>
    %1888 = arith.mulf %1868, %1878 : vector<8x32xf32>
    %1889 = arith.addf %1887, %1888 : vector<8x32xf32>
    %1890 = math.tanh %1889 : vector<8x32xf32>
    %1891 = arith.mulf %1886, %1890 : vector<8x32xf32>
    %1892 = arith.truncf %1891 : vector<8x32xf32> to vector<8x32xbf16>
    %c0_728 = arith.constant 0 : index
    %1893 = arith.index_cast %1854 : i32 to index
    %c0_729 = arith.constant 0 : index
    %1894 = vector.load %arg11[%c0_728, %1893, %c0_729] : memref<1x128x32xbf16, #tpu.memory_space<vmem>>, vector<1x8x32xbf16>
    %1895 = vector.shape_cast %1894 : vector<1x8x32xbf16> to vector<8x32xbf16>
    %1896 = vector.shape_cast %1892 : vector<8x32xbf16> to vector<1x8x32xbf16>
    tpu.vector_store %arg11[%c0_728, %1893, %c0_729], %1896 {strides = array<i32>} : memref<1x128x32xbf16, #tpu.memory_space<vmem>>, vector<1x8x32xbf16>,
    %c12_i32_730 = arith.constant 12 : i32
    %c8_i32_731 = arith.constant 8 : i32
    %1897 = arith.muli %c12_i32_730, %c8_i32_731 : i32
    %1898 = tpu.assume_multiple %1897, 8 : i32
    %1899 = arith.index_cast %1898 : i32 to index
    %c0_732 = arith.constant 0 : index
    %1900 = vector.load %arg12[%1899, %c0_732] : memref<128x128xf32, #tpu.memory_space<vmem>>, vector<8x128xf32>
    %1901 = arith.truncf %1891 : vector<8x32xf32> to vector<8x32xbf16>
    %c0_733 = arith.constant 0 : index
    %c0_734 = arith.constant 0 : index
    %1902 = vector.load %arg9[%c0_733, %c0_734] : memref<32x128xbf16, #tpu.memory_space<vmem>>, vector<32x128xbf16>
    %cst_735 = arith.constant dense<0.000000e+00> : vector<8x128xf32>
    %1903 = tpu.matmul %1901, %1902, %cst_735 {dimension_numbers = #tpu.dot_dimension_numbers<[1], [0], [0], [1], [0, 0, 1, 1], [], []>} : vector<8x32xbf16>, vector<32x128xbf16>, vector<8x128xf32> -> vector<8x128xf32>
    %1904 = arith.addf %1900, %1903 : vector<8x128xf32>
    %1905 = vector.extract_strided_slice %1904 {offsets = [0, 0], sizes = [8, 32], strides = [1, 1]} : vector<8x128xf32> to vector<8x32xf32>
    %cst_736 = arith.constant 5.000000e-01 : f32
    %1906 = vector.broadcast %cst_736 : f32 to vector<8x32xf32>
    %1907 = arith.mulf %1906, %1905 : vector<8x32xf32>
    %1908 = math.tanh %1907 : vector<8x32xf32>
    %cst_737 = arith.constant 5.000000e-01 : f32
    %1909 = vector.broadcast %cst_737 : f32 to vector<8x32xf32>
    %1910 = arith.mulf %1909, %1908 : vector<8x32xf32>
    %cst_738 = arith.constant 5.000000e-01 : f32
    %1911 = vector.broadcast %cst_738 : f32 to vector<8x32xf32>
    %1912 = arith.addf %1910, %1911 : vector<8x32xf32>
    %1913 = vector.extract_strided_slice %1904 {offsets = [0, 32], sizes = [8, 32], strides = [1, 1]} : vector<8x128xf32> to vector<8x32xf32>
    %cst_739 = arith.constant 5.000000e-01 : f32
    %1914 = vector.broadcast %cst_739 : f32 to vector<8x32xf32>
    %1915 = arith.mulf %1914, %1913 : vector<8x32xf32>
    %1916 = math.tanh %1915 : vector<8x32xf32>
    %cst_740 = arith.constant 5.000000e-01 : f32
    %1917 = vector.broadcast %cst_740 : f32 to vector<8x32xf32>
    %1918 = arith.mulf %1917, %1916 : vector<8x32xf32>
    %cst_741 = arith.constant 5.000000e-01 : f32
    %1919 = vector.broadcast %cst_741 : f32 to vector<8x32xf32>
    %1920 = arith.addf %1918, %1919 : vector<8x32xf32>
    %1921 = vector.extract_strided_slice %1904 {offsets = [0, 64], sizes = [8, 32], strides = [1, 1]} : vector<8x128xf32> to vector<8x32xf32>
    %1922 = math.tanh %1921 : vector<8x32xf32>
    %1923 = vector.extract_strided_slice %1904 {offsets = [0, 96], sizes = [8, 32], strides = [1, 1]} : vector<8x128xf32> to vector<8x32xf32>
    %cst_742 = arith.constant 5.000000e-01 : f32
    %1924 = vector.broadcast %cst_742 : f32 to vector<8x32xf32>
    %1925 = arith.mulf %1924, %1923 : vector<8x32xf32>
    %1926 = math.tanh %1925 : vector<8x32xf32>
    %cst_743 = arith.constant 5.000000e-01 : f32
    %1927 = vector.broadcast %cst_743 : f32 to vector<8x32xf32>
    %1928 = arith.mulf %1927, %1926 : vector<8x32xf32>
    %cst_744 = arith.constant 5.000000e-01 : f32
    %1929 = vector.broadcast %cst_744 : f32 to vector<8x32xf32>
    %1930 = arith.addf %1928, %1929 : vector<8x32xf32>
    %1931 = arith.mulf %1920, %1889 : vector<8x32xf32>
    %1932 = arith.mulf %1912, %1922 : vector<8x32xf32>
    %1933 = arith.addf %1931, %1932 : vector<8x32xf32>
    %1934 = math.tanh %1933 : vector<8x32xf32>
    %1935 = arith.mulf %1930, %1934 : vector<8x32xf32>
    %1936 = arith.truncf %1935 : vector<8x32xf32> to vector<8x32xbf16>
    %c0_745 = arith.constant 0 : index
    %1937 = arith.index_cast %1898 : i32 to index
    %c0_746 = arith.constant 0 : index
    %1938 = vector.load %arg11[%c0_745, %1937, %c0_746] : memref<1x128x32xbf16, #tpu.memory_space<vmem>>, vector<1x8x32xbf16>
    %1939 = vector.shape_cast %1938 : vector<1x8x32xbf16> to vector<8x32xbf16>
    %1940 = vector.shape_cast %1936 : vector<8x32xbf16> to vector<1x8x32xbf16>
    tpu.vector_store %arg11[%c0_745, %1937, %c0_746], %1940 {strides = array<i32>} : memref<1x128x32xbf16, #tpu.memory_space<vmem>>, vector<1x8x32xbf16>,
    %c13_i32_747 = arith.constant 13 : i32
    %c8_i32_748 = arith.constant 8 : i32
    %1941 = arith.muli %c13_i32_747, %c8_i32_748 : i32
    %1942 = tpu.assume_multiple %1941, 8 : i32
    %1943 = arith.index_cast %1942 : i32 to index
    %c0_749 = arith.constant 0 : index
    %1944 = vector.load %arg12[%1943, %c0_749] : memref<128x128xf32, #tpu.memory_space<vmem>>, vector<8x128xf32>
    %1945 = arith.truncf %1935 : vector<8x32xf32> to vector<8x32xbf16>
    %c0_750 = arith.constant 0 : index
    %c0_751 = arith.constant 0 : index
    %1946 = vector.load %arg9[%c0_750, %c0_751] : memref<32x128xbf16, #tpu.memory_space<vmem>>, vector<32x128xbf16>
    %cst_752 = arith.constant dense<0.000000e+00> : vector<8x128xf32>
    %1947 = tpu.matmul %1945, %1946, %cst_752 {dimension_numbers = #tpu.dot_dimension_numbers<[1], [0], [0], [1], [0, 0, 1, 1], [], []>} : vector<8x32xbf16>, vector<32x128xbf16>, vector<8x128xf32> -> vector<8x128xf32>
    %1948 = arith.addf %1944, %1947 : vector<8x128xf32>
    %1949 = vector.extract_strided_slice %1948 {offsets = [0, 0], sizes = [8, 32], strides = [1, 1]} : vector<8x128xf32> to vector<8x32xf32>
    %cst_753 = arith.constant 5.000000e-01 : f32
    %1950 = vector.broadcast %cst_753 : f32 to vector<8x32xf32>
    %1951 = arith.mulf %1950, %1949 : vector<8x32xf32>
    %1952 = math.tanh %1951 : vector<8x32xf32>
    %cst_754 = arith.constant 5.000000e-01 : f32
    %1953 = vector.broadcast %cst_754 : f32 to vector<8x32xf32>
    %1954 = arith.mulf %1953, %1952 : vector<8x32xf32>
    %cst_755 = arith.constant 5.000000e-01 : f32
    %1955 = vector.broadcast %cst_755 : f32 to vector<8x32xf32>
    %1956 = arith.addf %1954, %1955 : vector<8x32xf32>
    %1957 = vector.extract_strided_slice %1948 {offsets = [0, 32], sizes = [8, 32], strides = [1, 1]} : vector<8x128xf32> to vector<8x32xf32>
    %cst_756 = arith.constant 5.000000e-01 : f32
    %1958 = vector.broadcast %cst_756 : f32 to vector<8x32xf32>
    %1959 = arith.mulf %1958, %1957 : vector<8x32xf32>
    %1960 = math.tanh %1959 : vector<8x32xf32>
    %cst_757 = arith.constant 5.000000e-01 : f32
    %1961 = vector.broadcast %cst_757 : f32 to vector<8x32xf32>
    %1962 = arith.mulf %1961, %1960 : vector<8x32xf32>
    %cst_758 = arith.constant 5.000000e-01 : f32
    %1963 = vector.broadcast %cst_758 : f32 to vector<8x32xf32>
    %1964 = arith.addf %1962, %1963 : vector<8x32xf32>
    %1965 = vector.extract_strided_slice %1948 {offsets = [0, 64], sizes = [8, 32], strides = [1, 1]} : vector<8x128xf32> to vector<8x32xf32>
    %1966 = math.tanh %1965 : vector<8x32xf32>
    %1967 = vector.extract_strided_slice %1948 {offsets = [0, 96], sizes = [8, 32], strides = [1, 1]} : vector<8x128xf32> to vector<8x32xf32>
    %cst_759 = arith.constant 5.000000e-01 : f32
    %1968 = vector.broadcast %cst_759 : f32 to vector<8x32xf32>
    %1969 = arith.mulf %1968, %1967 : vector<8x32xf32>
    %1970 = math.tanh %1969 : vector<8x32xf32>
    %cst_760 = arith.constant 5.000000e-01 : f32
    %1971 = vector.broadcast %cst_760 : f32 to vector<8x32xf32>
    %1972 = arith.mulf %1971, %1970 : vector<8x32xf32>
    %cst_761 = arith.constant 5.000000e-01 : f32
    %1973 = vector.broadcast %cst_761 : f32 to vector<8x32xf32>
    %1974 = arith.addf %1972, %1973 : vector<8x32xf32>
    %1975 = arith.mulf %1964, %1933 : vector<8x32xf32>
    %1976 = arith.mulf %1956, %1966 : vector<8x32xf32>
    %1977 = arith.addf %1975, %1976 : vector<8x32xf32>
    %1978 = math.tanh %1977 : vector<8x32xf32>
    %1979 = arith.mulf %1974, %1978 : vector<8x32xf32>
    %1980 = arith.truncf %1979 : vector<8x32xf32> to vector<8x32xbf16>
    %c0_762 = arith.constant 0 : index
    %1981 = arith.index_cast %1942 : i32 to index
    %c0_763 = arith.constant 0 : index
    %1982 = vector.load %arg11[%c0_762, %1981, %c0_763] : memref<1x128x32xbf16, #tpu.memory_space<vmem>>, vector<1x8x32xbf16>
    %1983 = vector.shape_cast %1982 : vector<1x8x32xbf16> to vector<8x32xbf16>
    %1984 = vector.shape_cast %1980 : vector<8x32xbf16> to vector<1x8x32xbf16>
    tpu.vector_store %arg11[%c0_762, %1981, %c0_763], %1984 {strides = array<i32>} : memref<1x128x32xbf16, #tpu.memory_space<vmem>>, vector<1x8x32xbf16>,
    %c14_i32_764 = arith.constant 14 : i32
    %c8_i32_765 = arith.constant 8 : i32
    %1985 = arith.muli %c14_i32_764, %c8_i32_765 : i32
    %1986 = tpu.assume_multiple %1985, 8 : i32
    %1987 = arith.index_cast %1986 : i32 to index
    %c0_766 = arith.constant 0 : index
    %1988 = vector.load %arg12[%1987, %c0_766] : memref<128x128xf32, #tpu.memory_space<vmem>>, vector<8x128xf32>
    %1989 = arith.truncf %1979 : vector<8x32xf32> to vector<8x32xbf16>
    %c0_767 = arith.constant 0 : index
    %c0_768 = arith.constant 0 : index
    %1990 = vector.load %arg9[%c0_767, %c0_768] : memref<32x128xbf16, #tpu.memory_space<vmem>>, vector<32x128xbf16>
    %cst_769 = arith.constant dense<0.000000e+00> : vector<8x128xf32>
    %1991 = tpu.matmul %1989, %1990, %cst_769 {dimension_numbers = #tpu.dot_dimension_numbers<[1], [0], [0], [1], [0, 0, 1, 1], [], []>} : vector<8x32xbf16>, vector<32x128xbf16>, vector<8x128xf32> -> vector<8x128xf32>
    %1992 = arith.addf %1988, %1991 : vector<8x128xf32>
    %1993 = vector.extract_strided_slice %1992 {offsets = [0, 0], sizes = [8, 32], strides = [1, 1]} : vector<8x128xf32> to vector<8x32xf32>
    %cst_770 = arith.constant 5.000000e-01 : f32
    %1994 = vector.broadcast %cst_770 : f32 to vector<8x32xf32>
    %1995 = arith.mulf %1994, %1993 : vector<8x32xf32>
    %1996 = math.tanh %1995 : vector<8x32xf32>
    %cst_771 = arith.constant 5.000000e-01 : f32
    %1997 = vector.broadcast %cst_771 : f32 to vector<8x32xf32>
    %1998 = arith.mulf %1997, %1996 : vector<8x32xf32>
    %cst_772 = arith.constant 5.000000e-01 : f32
    %1999 = vector.broadcast %cst_772 : f32 to vector<8x32xf32>
    %2000 = arith.addf %1998, %1999 : vector<8x32xf32>
    %2001 = vector.extract_strided_slice %1992 {offsets = [0, 32], sizes = [8, 32], strides = [1, 1]} : vector<8x128xf32> to vector<8x32xf32>
    %cst_773 = arith.constant 5.000000e-01 : f32
    %2002 = vector.broadcast %cst_773 : f32 to vector<8x32xf32>
    %2003 = arith.mulf %2002, %2001 : vector<8x32xf32>
    %2004 = math.tanh %2003 : vector<8x32xf32>
    %cst_774 = arith.constant 5.000000e-01 : f32
    %2005 = vector.broadcast %cst_774 : f32 to vector<8x32xf32>
    %2006 = arith.mulf %2005, %2004 : vector<8x32xf32>
    %cst_775 = arith.constant 5.000000e-01 : f32
    %2007 = vector.broadcast %cst_775 : f32 to vector<8x32xf32>
    %2008 = arith.addf %2006, %2007 : vector<8x32xf32>
    %2009 = vector.extract_strided_slice %1992 {offsets = [0, 64], sizes = [8, 32], strides = [1, 1]} : vector<8x128xf32> to vector<8x32xf32>
    %2010 = math.tanh %2009 : vector<8x32xf32>
    %2011 = vector.extract_strided_slice %1992 {offsets = [0, 96], sizes = [8, 32], strides = [1, 1]} : vector<8x128xf32> to vector<8x32xf32>
    %cst_776 = arith.constant 5.000000e-01 : f32
    %2012 = vector.broadcast %cst_776 : f32 to vector<8x32xf32>
    %2013 = arith.mulf %2012, %2011 : vector<8x32xf32>
    %2014 = math.tanh %2013 : vector<8x32xf32>
    %cst_777 = arith.constant 5.000000e-01 : f32
    %2015 = vector.broadcast %cst_777 : f32 to vector<8x32xf32>
    %2016 = arith.mulf %2015, %2014 : vector<8x32xf32>
    %cst_778 = arith.constant 5.000000e-01 : f32
    %2017 = vector.broadcast %cst_778 : f32 to vector<8x32xf32>
    %2018 = arith.addf %2016, %2017 : vector<8x32xf32>
    %2019 = arith.mulf %2008, %1977 : vector<8x32xf32>
    %2020 = arith.mulf %2000, %2010 : vector<8x32xf32>
    %2021 = arith.addf %2019, %2020 : vector<8x32xf32>
    %2022 = math.tanh %2021 : vector<8x32xf32>
    %2023 = arith.mulf %2018, %2022 : vector<8x32xf32>
    %2024 = arith.truncf %2023 : vector<8x32xf32> to vector<8x32xbf16>
    %c0_779 = arith.constant 0 : index
    %2025 = arith.index_cast %1986 : i32 to index
    %c0_780 = arith.constant 0 : index
    %2026 = vector.load %arg11[%c0_779, %2025, %c0_780] : memref<1x128x32xbf16, #tpu.memory_space<vmem>>, vector<1x8x32xbf16>
    %2027 = vector.shape_cast %2026 : vector<1x8x32xbf16> to vector<8x32xbf16>
    %2028 = vector.shape_cast %2024 : vector<8x32xbf16> to vector<1x8x32xbf16>
    tpu.vector_store %arg11[%c0_779, %2025, %c0_780], %2028 {strides = array<i32>} : memref<1x128x32xbf16, #tpu.memory_space<vmem>>, vector<1x8x32xbf16>,
    %c15_i32_781 = arith.constant 15 : i32
    %c8_i32_782 = arith.constant 8 : i32
    %2029 = arith.muli %c15_i32_781, %c8_i32_782 : i32
    %2030 = tpu.assume_multiple %2029, 8 : i32
    %2031 = arith.index_cast %2030 : i32 to index
    %c0_783 = arith.constant 0 : index
    %2032 = vector.load %arg12[%2031, %c0_783] : memref<128x128xf32, #tpu.memory_space<vmem>>, vector<8x128xf32>
    %2033 = arith.truncf %2023 : vector<8x32xf32> to vector<8x32xbf16>
    %c0_784 = arith.constant 0 : index
    %c0_785 = arith.constant 0 : index
    %2034 = vector.load %arg9[%c0_784, %c0_785] : memref<32x128xbf16, #tpu.memory_space<vmem>>, vector<32x128xbf16>
    %cst_786 = arith.constant dense<0.000000e+00> : vector<8x128xf32>
    %2035 = tpu.matmul %2033, %2034, %cst_786 {dimension_numbers = #tpu.dot_dimension_numbers<[1], [0], [0], [1], [0, 0, 1, 1], [], []>} : vector<8x32xbf16>, vector<32x128xbf16>, vector<8x128xf32> -> vector<8x128xf32>
    %2036 = arith.addf %2032, %2035 : vector<8x128xf32>
    %2037 = vector.extract_strided_slice %2036 {offsets = [0, 0], sizes = [8, 32], strides = [1, 1]} : vector<8x128xf32> to vector<8x32xf32>
    %cst_787 = arith.constant 5.000000e-01 : f32
    %2038 = vector.broadcast %cst_787 : f32 to vector<8x32xf32>
    %2039 = arith.mulf %2038, %2037 : vector<8x32xf32>
    %2040 = math.tanh %2039 : vector<8x32xf32>
    %cst_788 = arith.constant 5.000000e-01 : f32
    %2041 = vector.broadcast %cst_788 : f32 to vector<8x32xf32>
    %2042 = arith.mulf %2041, %2040 : vector<8x32xf32>
    %cst_789 = arith.constant 5.000000e-01 : f32
    %2043 = vector.broadcast %cst_789 : f32 to vector<8x32xf32>
    %2044 = arith.addf %2042, %2043 : vector<8x32xf32>
    %2045 = vector.extract_strided_slice %2036 {offsets = [0, 32], sizes = [8, 32], strides = [1, 1]} : vector<8x128xf32> to vector<8x32xf32>
    %cst_790 = arith.constant 5.000000e-01 : f32
    %2046 = vector.broadcast %cst_790 : f32 to vector<8x32xf32>
    %2047 = arith.mulf %2046, %2045 : vector<8x32xf32>
    %2048 = math.tanh %2047 : vector<8x32xf32>
    %cst_791 = arith.constant 5.000000e-01 : f32
    %2049 = vector.broadcast %cst_791 : f32 to vector<8x32xf32>
    %2050 = arith.mulf %2049, %2048 : vector<8x32xf32>
    %cst_792 = arith.constant 5.000000e-01 : f32
    %2051 = vector.broadcast %cst_792 : f32 to vector<8x32xf32>
    %2052 = arith.addf %2050, %2051 : vector<8x32xf32>
    %2053 = vector.extract_strided_slice %2036 {offsets = [0, 64], sizes = [8, 32], strides = [1, 1]} : vector<8x128xf32> to vector<8x32xf32>
    %2054 = math.tanh %2053 : vector<8x32xf32>
    %2055 = vector.extract_strided_slice %2036 {offsets = [0, 96], sizes = [8, 32], strides = [1, 1]} : vector<8x128xf32> to vector<8x32xf32>
    %cst_793 = arith.constant 5.000000e-01 : f32
    %2056 = vector.broadcast %cst_793 : f32 to vector<8x32xf32>
    %2057 = arith.mulf %2056, %2055 : vector<8x32xf32>
    %2058 = math.tanh %2057 : vector<8x32xf32>
    %cst_794 = arith.constant 5.000000e-01 : f32
    %2059 = vector.broadcast %cst_794 : f32 to vector<8x32xf32>
    %2060 = arith.mulf %2059, %2058 : vector<8x32xf32>
    %cst_795 = arith.constant 5.000000e-01 : f32
    %2061 = vector.broadcast %cst_795 : f32 to vector<8x32xf32>
    %2062 = arith.addf %2060, %2061 : vector<8x32xf32>
    %2063 = arith.mulf %2052, %2021 : vector<8x32xf32>
    %2064 = arith.mulf %2044, %2054 : vector<8x32xf32>
    %2065 = arith.addf %2063, %2064 : vector<8x32xf32>
    %2066 = math.tanh %2065 : vector<8x32xf32>
    %2067 = arith.mulf %2062, %2066 : vector<8x32xf32>
    %2068 = arith.truncf %2067 : vector<8x32xf32> to vector<8x32xbf16>
    %c0_796 = arith.constant 0 : index
    %2069 = arith.index_cast %2030 : i32 to index
    %c0_797 = arith.constant 0 : index
    %2070 = vector.load %arg11[%c0_796, %2069, %c0_797] : memref<1x128x32xbf16, #tpu.memory_space<vmem>>, vector<1x8x32xbf16>
    %2071 = vector.shape_cast %2070 : vector<1x8x32xbf16> to vector<8x32xbf16>
    %2072 = vector.shape_cast %2068 : vector<8x32xbf16> to vector<1x8x32xbf16>
    tpu.vector_store %arg11[%c0_796, %2069, %c0_797], %2072 {strides = array<i32>} : memref<1x128x32xbf16, #tpu.memory_space<vmem>>, vector<1x8x32xbf16>,
    %c16_i32_798 = arith.constant 16 : i32
    return
  }
  func.func @transform_0(%arg0: i32) -> (i32, i32, i32) {
    %c0_i32 = arith.constant 0 : i32
    %c0_i32_0 = arith.constant 0 : i32
    %c0_i32_1 = arith.constant 0 : i32
    return %arg0, %c0_i32, %c0_i32_0 : i32, i32, i32
  }
  func.func @transform_1(%arg0: i32) -> (i32, i32) {
    %c0_i32 = arith.constant 0 : i32
    %c0_i32_0 = arith.constant 0 : i32
    %c0_i32_1 = arith.constant 0 : i32
    return %c0_i32, %c0_i32_0 : i32, i32
  }
  func.func @transform_2(%arg0: i32) -> (i32, i32) {
    %c0_i32 = arith.constant 0 : i32
    %c0_i32_0 = arith.constant 0 : i32
    %c0_i32_1 = arith.constant 0 : i32
    return %c0_i32, %c0_i32_0 : i32, i32
  }
  func.func @transform_3(%arg0: i32) -> (i32, i32) {
    %c0_i32 = arith.constant 0 : i32
    %c0_i32_0 = arith.constant 0 : i32
    %c0_i32_1 = arith.constant 0 : i32
    return %c0_i32, %c0_i32_0 : i32, i32
  }
  func.func @transform_4(%arg0: i32) -> (i32, i32) {
    %c0_i32 = arith.constant 0 : i32
    %c0_i32_0 = arith.constant 0 : i32
    %c0_i32_1 = arith.constant 0 : i32
    return %c0_i32, %c0_i32_0 : i32, i32
  }
  func.func @transform_5(%arg0: i32) -> (i32, i32) {
    %c0_i32 = arith.constant 0 : i32
    %c0_i32_0 = arith.constant 0 : i32
    %c0_i32_1 = arith.constant 0 : i32
    return %c0_i32, %c0_i32_0 : i32, i32
  }
  func.func @transform_6(%arg0: i32) -> (i32, i32) {
    %c0_i32 = arith.constant 0 : i32
    %c0_i32_0 = arith.constant 0 : i32
    %c0_i32_1 = arith.constant 0 : i32
    return %c0_i32, %c0_i32_0 : i32, i32
  }
  func.func @transform_7(%arg0: i32) -> (i32, i32) {
    %c0_i32 = arith.constant 0 : i32
    %c0_i32_0 = arith.constant 0 : i32
    %c0_i32_1 = arith.constant 0 : i32
    return %c0_i32, %c0_i32_0 : i32, i32
  }
  func.func @transform_8(%arg0: i32) -> (i32, i32) {
    %c0_i32 = arith.constant 0 : i32
    %c0_i32_0 = arith.constant 0 : i32
    %c0_i32_1 = arith.constant 0 : i32
    return %c0_i32, %c0_i32_0 : i32, i32
  }
  func.func @transform_9(%arg0: i32) -> (i32, i32) {
    %c0_i32 = arith.constant 0 : i32
    %c0_i32_0 = arith.constant 0 : i32
    %c0_i32_1 = arith.constant 0 : i32
    return %c0_i32, %c0_i32_0 : i32, i32
  }
  func.func @transform_10(%arg0: i32) -> (i32, i32, i32) {
    %c0_i32 = arith.constant 0 : i32
    %c0_i32_0 = arith.constant 0 : i32
    %c0_i32_1 = arith.constant 0 : i32
    return %arg0, %c0_i32, %c0_i32_0 : i32, i32, i32
  }
}

</mosaic_0001>

<bundles_post_ra>
// kernel: rlstm_forward.3
= control target key start
LH: loop header
LB: loop body
LE: loop exit
PB: predicated region body
PF: predicated region fallthrough
CT: control target
= control target key end

     0   :  { %vm135_vm0 = vcmask 261120   ;;  %s568_s0 = inlined_call_operand.vmem [shape: bf16[128,32], index: 0, kind: input, shape index: {}]   ;;  %s569_s1 = inlined_call_operand.vmem [shape: bf16[128,32], index: 1, kind: input, shape index: {}]   ;;  %s570_s2 = inlined_call_operand.vmem [shape: f32[1,128], index: 2, kind: input, shape index: {}]   ;;  %s571_s3 = inlined_call_operand.hbm [shape: f32[128,128], index: 3, kind: output, shape index: {}]  }
   0x1   :  { %v421_v0 = vld [vmem:[%s569_s1 + $0x38] sm:$0xff]   ;;  %v422_v1 = vld [vmem:[%s569_s1 + $0x30] sm:$0xff]   ;;  %v423_v3 = vld [vmem:[%s569_s1 + $0x28] sm:$0xff]  }
   0x2   :  { %402 = vmatprep.subr.msk.bf16.mxu0 %vm135_vm0, %v421_v0  ;;  %403 = vmatprep.subr.msk.bf16.mxu1 %vm135_vm0, %v421_v0  ;;  %v182_v2 = vsel %vm135_vm0, %v421_v0, 0  ;;  %v179_v4 = vsel %vm135_vm0, %v422_v1, 0  ;;  %v429_v5 = vld [vmem:[%s568_s0] sm:$0xff]   ;;  %v176_v7 = vsel %vm135_vm0, %v423_v3, 0 }
   0x3   :  { %355 = vmatpush3.bf16.xpose.msra.mxu0 %v182_v2  ;;  %394 = vmatpush3.bf16.xpose.msra.mxu1 %v182_v2  ;;  %v430_v6 = vld [vmem:[%s568_s0 + $0x20] sm:$0xff]  }
   0x4   :  { %404 = vmatprep.subr.msk.bf16.mxu0 %vm135_vm0, %v422_v1  ;;  %405 = vmatprep.subr.msk.bf16.mxu1 %vm135_vm0, %v422_v1  ;;  %v424_v8 = vld [vmem:[%s569_s1 + $0x20] sm:$0xff]  }
   0x5   :  { %370 = vmatprep.mubr.msk.bf16.mxu0 %vm135_vm0, %v429_v5  ;;  %378 = vmatprep.mubr.msk.bf16.mxu1 %vm135_vm0, %v430_v6 }
   0xb   :  { %357 = vmatpush3.bf16.xpose.msra.mxu0 %v179_v4  ;;  %395 = vmatpush3.bf16.xpose.msra.mxu1 %v179_v4 }
   0xc   :  { %406 = vmatprep.subr.msk.bf16.mxu0 %vm135_vm0, %v423_v3  ;;  %407 = vmatprep.subr.msk.bf16.mxu1 %vm135_vm0, %v423_v3 }
   0xd   :  { %8 = vsyncpa [#allocation3], 0  ;;  %v173_v9 = vsel %vm135_vm0, %v424_v8, 0  ;;  %v425_v10 = vld [vmem:[%s569_s1 + $0x18] sm:$0xff]   ;;  %v426_v12 = vld [vmem:[%s569_s1 + $0x10] sm:$0xff]  }
   0xe   :  { %v170_v11 = vsel %vm135_vm0, %v425_v10, 0  ;;  %v167_v13 = vsel %vm135_vm0, %v426_v12, 0  ;;  %v427_v14 = vld [vmem:[%s569_s1 + $0x8] sm:$0xff]   ;;  %v428_v16 = vld [vmem:[%s569_s1] sm:$0xff]   ;;  %v433_v20 = vld [vmem:[%s568_s0 + $0x10] sm:$0xff]  }
   0xf   :  { %v164_v15 = vsel %vm135_vm0, %v427_v14, 0  ;;  %v161_v17 = vsel %vm135_vm0, %v428_v16, 0  ;;  %v431_v18 = vld [vmem:[%s568_s0 + $0x8] sm:$0xff]   ;;  %v434_v21 = vld [vmem:[%s568_s0 + $0x30] sm:$0xff]   ;;  %v435_v22 = vld [vmem:[%s568_s0 + $0x18] sm:$0xff]  }
  0x10   :  { %v432_v19 = vld [vmem:[%s568_s0 + $0x28] sm:$0xff]   ;;  %v436_v23 = vld [vmem:[%s568_s0 + $0x38] sm:$0xff]   ;;  %v313_v24 = vld [vmem:[%s570_s2] ss:$0 sm:$0xff]  ;;  %s459_s0 = smov [#allocation2]  }
  0x11   :  { %s302_s2 = sshll.u32 %s459_s0, 4  ;;  %s303_s2 = int_to_ptr.vmem [resolvable:$true] %s302_s2 }
  0x12   :  { %s437_s18 = scalar_lea.vmem %s303_s2, 2048  ;;  %p442_p1 = scmp.lt.s32.totalorder %s303_s2, %s303_s2 }
  0x13   :  { %359 = vmatpush3.bf16.xpose.msra.mxu0 %v176_v7  ;;  %396 = vmatpush3.bf16.xpose.msra.mxu1 %v176_v7  ;;  %p438_p0 = scmp.ne.s32.totalorder %s303_s2, %s437_s18  ;;  %p443_p2 = scmp.lt.s32.totalorder %s437_s18, %s437_s18 }
  0x14   :  { %408 = vmatprep.subr.msk.bf16.mxu0 %vm135_vm0, %v424_v8  ;;  %409 = vmatprep.subr.msk.bf16.mxu1 %vm135_vm0, %v424_v8 }
  0x15   :  { %p444_p3 = por %p443_p2, %p442_p1 }
  0x17   :  { %p445_p4 = pnand %p444_p3, %p438_p0 }
  0x1b   :  { %361 = vmatpush3.bf16.xpose.msra.mxu0 %v173_v9  ;;  %397 = vmatpush3.bf16.xpose.msra.mxu1 %v173_v9 }
  0x1c   :  { %410 = vmatprep.subr.msk.bf16.mxu0 %vm135_vm0, %v425_v10  ;;  %411 = vmatprep.subr.msk.bf16.mxu1 %vm135_vm0, %v425_v10 }
  0x23   :  { %363 = vmatpush3.bf16.xpose.msra.mxu0 %v170_v11  ;;  %398 = vmatpush3.bf16.xpose.msra.mxu1 %v170_v11 }
  0x24   :  { %412 = vmatprep.subr.msk.bf16.mxu0 %vm135_vm0, %v426_v12  ;;  %413 = vmatprep.subr.msk.bf16.mxu1 %vm135_vm0, %v426_v12 }
  0x2b   :  { %365 = vmatpush3.bf16.xpose.msra.mxu0 %v167_v13  ;;  %399 = vmatpush3.bf16.xpose.msra.mxu1 %v167_v13 }
  0x2c   :  { %414 = vmatprep.subr.msk.bf16.mxu0 %vm135_vm0, %v427_v14  ;;  %415 = vmatprep.subr.msk.bf16.mxu1 %vm135_vm0, %v427_v14 }
  0x33   :  { %367 = vmatpush3.bf16.xpose.msra.mxu0 %v164_v15  ;;  %400 = vmatpush3.bf16.xpose.msra.mxu1 %v164_v15 }
  0x34   :  { %416 = vmatprep.subr.msk.bf16.mxu0 %vm135_vm0, %v428_v16  ;;  %417 = vmatprep.subr.msk.bf16.mxu1 %vm135_vm0, %v428_v16 }
  0x3b   :  { %369 = vmatpush3.bf16.xpose.msra.mxu0 %v161_v17  ;;  %401 = vmatpush3.bf16.xpose.msra.mxu1 %v161_v17 }
  0x42   :  { %371 = vmatmul.mubr.msk.bf16.vlgmr.msra.gmra.mxu0 %vm135_vm0, %v431_v18  ;;  %379 = vmatmul.mubr.msk.bf16.vlgmr.msra.gmra.mxu1 %vm135_vm0, %v432_v19 }
  0x43   :  { %374 = vmatprep.mubr.msk.bf16.mxu0 %vm135_vm0, %v433_v20  ;;  %382 = vmatprep.mubr.msk.bf16.mxu1 %vm135_vm0, %v434_v21 }
  0x4a   :  { %375 = vmatmul.mubr.msk.bf16.gmra.mxu0 %vm135_vm0, %v435_v22  ;;  %383 = vmatmul.mubr.msk.bf16.gmra.mxu1 %vm135_vm0, %v436_v23 }
 0x102   :  { %v372_v25 = vpop.f32.mrf.mxu0  ;;  %v380_v26 = vpop.f32.mrf.mxu1 }
 0x103   :  { %v227_v27 = vadd.f32 %v372_v25, %v313_v24  ;;  %v259_v28 = vadd.f32 %v380_v26, %v313_v24 }
 0x104   :  { %v218_v29 = vpop.f32.mrf.mxu0  ;;  %v250_v30 = vpop.f32.mrf.mxu1 }
 0x105   :  { %283 = vst [vmem:[#allocation2 + $0x10] sm:$0xff] %v227_v27  ;;  %291 = vst [vmem:[#allocation2 + $0x50] sm:$0xff] %v259_v28  ;;  %v219_v31 = vadd.f32 %v313_v24, %v218_v29  ;;  %v251_v32 = vadd.f32 %v313_v24, %v250_v30 }
 0x106   :  { %v373_v33 = vpop.f32.mrf.mxu0  ;;  %v381_v34 = vpop.f32.mrf.mxu1 }
 0x107   :  { %281 = vst [vmem:[#allocation2] sm:$0xff] %v219_v31  ;;  %289 = vst [vmem:[#allocation2 + $0x40] sm:$0xff] %v251_v32  ;;  %v230_v35 = vadd.f32 %v373_v33, %v313_v24  ;;  %v262_v36 = vadd.f32 %v381_v34, %v313_v24 }
 0x108   :  { %v221_v37 = vpop.f32.mrf.mxu0  ;;  %v253_v38 = vpop.f32.mrf.mxu1 }
 0x109   :  { %284 = vst [vmem:[#allocation2 + $0x18] sm:$0xff] %v230_v35  ;;  %292 = vst [vmem:[#allocation2 + $0x58] sm:$0xff] %v262_v36  ;;  %v222_v39 = vadd.f32 %v313_v24, %v221_v37  ;;  %v254_v40 = vadd.f32 %v313_v24, %v253_v38 }
 0x10a   :  { %v376_v41 = vpop.f32.mrf.mxu0  ;;  %v384_v42 = vpop.f32.mrf.mxu1 }
 0x10b   :  { %282 = vst [vmem:[#allocation2 + $0x8] sm:$0xff] %v222_v39  ;;  %290 = vst [vmem:[#allocation2 + $0x48] sm:$0xff] %v254_v40  ;;  %v243_v43 = vadd.f32 %v376_v41, %v313_v24  ;;  %v275_v44 = vadd.f32 %v384_v42, %v313_v24 }
 0x10c   :  { %v234_v45 = vpop.f32.mrf.mxu0  ;;  %v266_v46 = vpop.f32.mrf.mxu1 }
 0x10d   :  { %287 = vst [vmem:[#allocation2 + $0x30] sm:$0xff] %v243_v43  ;;  %295 = vst [vmem:[#allocation2 + $0x70] sm:$0xff] %v275_v44  ;;  %v235_v47 = vadd.f32 %v313_v24, %v234_v45  ;;  %v267_v48 = vadd.f32 %v313_v24, %v266_v46 }
 0x10e   :  { %v377_v49 = vpop.f32.mrf.mxu0  ;;  %v385_v50 = vpop.f32.mrf.mxu1 }
 0x10f   :  { %285 = vst [vmem:[#allocation2 + $0x20] sm:$0xff] %v235_v47  ;;  %293 = vst [vmem:[#allocation2 + $0x60] sm:$0xff] %v267_v48  ;;  %v246_v51 = vadd.f32 %v377_v49, %v313_v24  ;;  %v278_v52 = vadd.f32 %v385_v50, %v313_v24 }
 0x110   :  { %v237_v53 = vpop.f32.mrf.mxu0  ;;  %v269_v54 = vpop.f32.mrf.mxu1 }
 0x111   :  { %288 = vst [vmem:[#allocation2 + $0x38] sm:$0xff] %v246_v51  ;;  %296 = vst [vmem:[#allocation2 + $0x78] sm:$0xff] %v278_v52  ;;  %v238_v55 = vadd.f32 %v313_v24, %v237_v53  ;;  %v270_v56 = vadd.f32 %v313_v24, %v269_v54 }
 0x113   :  { %286 = vst [vmem:[#allocation2 + $0x28] sm:$0xff] %v238_v55  ;;  %294 = vst [vmem:[#allocation2 + $0x68] sm:$0xff] %v270_v56 }
 0x114   :  { %448 = shalt.err (!%p445_p4)
}
 0x115   :  { %s460_s19 = smov 128   ;;  %s461_s20 = smov 8  }
 0x116   :  { %308 = dma.vmem_to_hbm [thread:$0]  %s303_s2, 2048, %s571_s3, [#allocation3], %s460_s19, %s460_s19, %s461_s20  }
 0x117   :  { %457 = dma.done.wait [#allocation3], 2048  }
 0x118   :  { %458 = vsyncadd [#allocation3], 4294965248 }
 0x119   :  { %312 = vsyncpa [#allocation3], 1 }

// kernel: rlstm_forward.2
= control target key start
LH: loop header
LB: loop body
LE: loop exit
PB: predicated region body
PF: predicated region fallthrough
CT: control target
= control target key end

     0   :  { %v6551_v0 = vmov 0.0   ;;  %vm6552_vm0 = vmmov 0   ;;  %vm115_vm1 = vcmask 261120   ;;  %v6553_v7 = vmov 0   ;;  %s6554_s26 = smov 64   ;;  %s6555_s27 = smov 32   ;;  %s7932_s1 = inlined_call_operand.vmem [shape: bf16[32,128], index: 1, kind: input, shape index: {}]   ;;  %s7933_s2 = inlined_call_operand.vmem [shape: bf16[32,128], index: 2, kind: input, shape index: {}]   ;;  %s7934_s0 = inlined_call_operand.vmem [shape: bf16[1,128,32], index: 0, kind: input, shape index: {}]   ;;  %s7935_s3 = inlined_call_operand.vmem [shape: f32[1,128], index: 3, kind: input, shape index: {}]   ;;  %s7936_s4 = inlined_call_operand.vmem [shape: bf16[32,128], index: 4, kind: input, shape index: {}]   ;;  %s7937_s5 = inlined_call_operand.vmem [shape: bf16[32,128], index: 5, kind: input, shape index: {}]   ;;  %s7938_s6 = inlined_call_operand.vmem [shape: f32[1,128], index: 6, kind: input, shape index: {}]   ;;  %s7939_s7 = inlined_call_operand.vmem [shape: bf16[32,128], index: 7, kind: input, shape index: {}]   ;;  %s7940_s8 = inlined_call_operand.vmem [shape: bf16[32,128], index: 8, kind: input, shape index: {}]   ;;  %s7941_s9 = inlined_call_operand.vmem [shape: f32[1,128], index: 9, kind: input, shape index: {}]   ;;  %s7942_s10 = inlined_call_operand.vmem [shape: bf16[1,128,32], index: 10, kind: output, shape index: {}]  }
   0x1   :  { %5705 = vmatprep.subr.bf16.mxu1 %v6551_v0  ;;  %v6134_v1 = vld [vmem:[%s7932_s1 + $0x8] sm:$0xff]   ;;  %5709 = vmatprep.mubr.msk.bf16.mxu1 %vm6552_vm0, %v6551_v0  ;;  %v6136_v3 = vld [vmem:[%s7932_s1] sm:$0xff]   ;;  %vm343_vm2 = vcmask 257024  }
   0x2   :  { %v6135_v2 = vld [vmem:[%s7933_s2 + $0x8] sm:$0xff]   ;;  %5685 = vmatprep.subr.bf16.mxu0 %v6134_v1  ;;  %v6137_v4 = vld [vmem:[%s7933_s2] sm:$0xff]  }
   0x3   :  { %5706 = vmatpush3.bf16.msra.mxu1 %v6135_v2  ;;  %5686 = vmatpush3.bf16.msra.mxu0 %v6134_v1  ;;  %v6138_v5 = vld [vmem:[%s7934_s0] sm:$0xff]   ;;  %v6139_v6 = vld [vmem:[%s7934_s0 + $0x8] sm:$0xff]  }
   0x4   :  { %5707 = vmatprep.subr.bf16.mxu1 %v6551_v0  ;;  %5687 = vmatprep.subr.bf16.mxu0 %v6136_v3  ;;  %v6645_v10 = vld [vmem:[%s7935_s3] ss:$0 sm:$0xff]  ;;  %v6140_v27 = vld [vmem:[%s7933_s2 + $0x8] sm:$0xff]  }
   0x5   :  { %5689 = vmatprep.mubr.msk.bf16.mxu0 %vm115_vm1, %v6138_v5  ;;  %v6141_v28 = vld [vmem:[%s7933_s2] sm:$0xff]   ;;  %v6142_v52 = vld [vmem:[%s7933_s2 + $0x8] sm:$0xff]  }
   0x6   :  { %v6143_v53 = vld [vmem:[%s7933_s2] sm:$0xff]  }
   0x7   :  { %5708 = vmatpush3.bf16.msra.mxu1 %v6137_v4  ;;  %5688 = vmatpush3.bf16.msra.mxu0 %v6136_v3 }
   0x8   :  { %5713 = vmatprep.subr.bf16.mxu1 %v6551_v0  ;;  %5737 = vmatprep.subr.bf16.mxu0 %v6551_v0 }
   0xa   :  { %5710 = vmatmul.mubr.bf16.vlgmr.msra.gmra.mxu1 %v6553_v7  ;;  %5690 = vmatmul.mubr.msk.bf16.vlgmr.msra.gmra.mxu0 %vm115_vm1, %v6139_v6 }
   0xb   :  { %5717 = vmatprep.mubr.msk.bf16.mxu1 %vm6552_vm0, %v6551_v0  ;;  %5714 = vmatpush3.bf16.msra.mxu1 %v6140_v27 }
   0xc   :  { %5715 = vmatprep.subr.bf16.mxu1 %v6551_v0 }
   0xf   :  { %5716 = vmatpush3.bf16.msra.mxu1 %v6141_v28 }
  0x10   :  { %5721 = vmatprep.subr.bf16.mxu1 %v6551_v0 }
  0xca   :  { %v307_v8 = vpop.f32.mrf.mxu1  ;;  %v6640_v9 = vpop.f32.mrf.mxu0 }
  0xcb   :  { %v183_v59 = vadd.f32 %v6640_v9, %v6645_v10 }
  0xcc   :  { %v5711_v11 = vpop.f32.mrf.mxu1  ;;  %v174_v12 = vpop.f32.mrf.mxu0 }
  0xcd   :  { %v175_v13 = vadd.f32 %v6645_v10, %v174_v12 }
  0xce   :  { %v310_v14 = vpop.f32.mrf.mxu1  ;;  %v6666_v34 = vpop.f32.mrf.mxu0 }
  0xcf   :  { %v313_v15 = vadd.f32 %v307_v8, %v175_v13  ;;  %v6144_v14 = vld [vmem:[%s7933_s2 + $0x8] sm:$0xff]  }
  0xd0   :  { %v5712_v16 = vpop.f32.mrf.mxu1  ;;  %v177_v35 = vpop.f32.mrf.mxu0 }
  0xd1   :  { %6260 = vtanh.f32 %v313_v15  ;;  %v314_v18 = vmul.f32 0.5, %v313_v15  ;;  %v178_v36 = vadd.f32 %v6645_v10, %v177_v35  ;;  %v6145_v15 = vld [vmem:[%s7933_s2] sm:$0xff]  }
  0xd3   :  { %6262 = vtanh.f32 %v314_v18 }
  0xde   :  { %v6261_v17 = vpop.eup %6260 }
  0xdf   :  { %321 = vrot.lane.b32.xlu0 %v6261_v17, %s6554_s26 }
  0xe0   :  { %v6263_v19 = vpop.eup %6262 }
  0xe1   :  { %v316_v20 = vmul.f32 0.5, %v6263_v19 }
  0xe3   :  { %v317_v21 = vadd.f32 0.5, %v316_v20 }
  0xe5   :  { %v319_v24 = vmul.f32 0.0, %v317_v21 }
 0x151   :  { %v322_v22 = vpop.permute.xlu0 %321 }
 0x152   :  { %v324_v23 = vmul.f32 %v322_v22, %v317_v21 }
 0x154   :  { %326 = vrot.lane.b32.xlu0 %v324_v23, %s6555_s27 }
 0x1c6   :  { %v327_v25 = vpop.permute.xlu0 %326 }
 0x1c7   :  { %v329_v26 = vadd.f32 %v327_v25, %v319_v24 }
 0x1c9   :  { %6264 = vtanh.f32 %v329_v26 }
 0x1d6   :  { %v6265_v29 = vpop.eup %6264 }
 0x1d7   :  { %332 = vrot.lane.b32.xlu1 %v6265_v29, %s6554_s26 }
 0x249   :  { %v333_v30 = vpop.permute.xlu1 %332 }
 0x24a   :  { %v335_v31 = vmul.f32 %v333_v30, %v317_v21  ;;  %v186_v21 = vadd.f32 %v6666_v34, %v6645_v10 }
 0x24c   :  { %v6659_v32 = vpack.c.bf16 %v335_v31, %v335_v31 }
 0x24e   :  { %351 = vrot.lane.b32.xlu1 %v6659_v32, %s6555_s27 }
 0x2c0   :  { %v352_v33 = vpop.permute.xlu1 %351 }
 0x2c1   :  { %5718 = vmatmul.mubr.msk.bf16.vlgmr.msra.gmra.mxu1 %vm115_vm1, %v352_v33 }
 0x2c2   :  { %5725 = vmatprep.mubr.msk.bf16.mxu1 %vm6552_vm0, %v6551_v0  ;;  %5722 = vmatpush3.bf16.msra.mxu1 %v6142_v52 }
 0x2c3   :  { %5723 = vmatprep.subr.bf16.mxu1 %v6551_v0 }
 0x2c6   :  { %5724 = vmatpush3.bf16.msra.mxu1 %v6143_v53 }
 0x2c7   :  { %5729 = vmatprep.subr.bf16.mxu1 %v6551_v0 }
 0x381   :  { %v402_v37 = vpop.f32.mrf.mxu1 }
 0x382   :  { %v408_v38 = vadd.f32 %v402_v37, %v178_v36 }
 0x383   :  { %v5719_v39 = vpop.f32.mrf.mxu1 }
 0x384   :  { %6266 = vtanh.f32 %v408_v38  ;;  %v409_v43 = vmul.f32 0.5, %v408_v38  ;;  %v6146_v38 = vld [vmem:[%s7933_s2 + $0x8] sm:$0xff]   ;;  %v6147_v39 = vld [vmem:[%s7934_s0 + $0x10] sm:$0xff]  }
 0x385   :  { %v405_v40 = vpop.f32.mrf.mxu1  ;;  %5738 = vmatpush3.bf16.msra.mxu0 %v6146_v38  ;;  %5693 = vmatprep.mubr.msk.bf16.mxu0 %vm115_vm1, %v6147_v39 }
 0x386   :  { %6268 = vtanh.f32 %v409_v43  ;;  %v6148_v40 = vld [vmem:[%s7934_s0 + $0x18] sm:$0xff]   ;;  %5739 = vmatprep.subr.bf16.mxu0 %v6551_v0  ;;  %v6150_v43 = vld [vmem:[%s7934_s0 + $0x28] sm:$0xff]  }
 0x387   :  { %v5720_v41 = vpop.f32.mrf.mxu1  ;;  %5694 = vmatmul.mubr.msk.bf16.gmra.mxu0 %vm115_vm1, %v6148_v40 }
 0x388   :  { %v6149_v41 = vld [vmem:[%s7934_s0 + $0x20] sm:$0xff]  }
 0x389   :  { %5697 = vmatprep.mubr.msk.bf16.mxu0 %vm115_vm1, %v6149_v41 }
 0x38f   :  { %5698 = vmatmul.mubr.msk.bf16.gmra.mxu0 %vm115_vm1, %v6150_v43 }
 0x391   :  { %v6267_v42 = vpop.eup %6266 }
 0x392   :  { %416 = vrot.lane.b32.xlu0 %v6267_v42, %s6554_s26  ;;  %v6151_v42 = vld [vmem:[%s7933_s2] sm:$0xff]  }
 0x393   :  { %v6269_v44 = vpop.eup %6268  ;;  %5740 = vmatpush3.bf16.msra.mxu0 %v6151_v42 }
 0x394   :  { %v411_v45 = vmul.f32 0.5, %v6269_v44  ;;  %5753 = vmatprep.subr.bf16.mxu0 %v6551_v0 }
 0x396   :  { %v412_v46 = vadd.f32 0.5, %v411_v45  ;;  %v6152_v45 = vld [vmem:[%s7934_s0 + $0x30] sm:$0xff]  }
 0x397   :  { %5701 = vmatprep.mubr.msk.bf16.mxu0 %vm115_vm1, %v6152_v45  ;;  %v6157_v45 = vld [vmem:[%s7933_s2] sm:$0xff]  }
 0x398   :  { %v414_v49 = vmul.f32 %v412_v46, %v329_v26 }
 0x404   :  { %v417_v47 = vpop.permute.xlu0 %416 }
 0x405   :  { %v419_v48 = vmul.f32 %v417_v47, %v412_v46 }
 0x407   :  { %421 = vrot.lane.b32.xlu1 %v419_v48, %s6555_s27 }
 0x479   :  { %v422_v50 = vpop.permute.xlu1 %421 }
 0x47a   :  { %v424_v51 = vadd.f32 %v422_v50, %v414_v49 }
 0x47c   :  { %6270 = vtanh.f32 %v424_v51 }
 0x489   :  { %v6271_v54 = vpop.eup %6270 }
 0x48a   :  { %427 = vrot.lane.b32.xlu0 %v6271_v54, %s6554_s26 }
 0x4fc   :  { %v428_v55 = vpop.permute.xlu0 %427 }
 0x4fd   :  { %v430_v56 = vmul.f32 %v428_v55, %v412_v46  ;;  %v6153_v46 = vld [vmem:[%s7934_s0 + $0x38] sm:$0xff]  }
 0x4fe   :  { %5702 = vmatmul.mubr.msk.bf16.gmra.mxu0 %vm115_vm1, %v6153_v46 }
 0x4ff   :  { %v6680_v57 = vpack.c.bf16 %v430_v56, %v430_v56  ;;  %5741 = vmatprep.mubr.msk.bf16.mxu0 %vm6552_vm0, %v6551_v0 }
 0x501   :  { %446 = vrot.lane.b32.xlu1 %v6680_v57, %s6555_s27 }
 0x573   :  { %v447_v58 = vpop.permute.xlu1 %446 }
 0x574   :  { %5726 = vmatmul.mubr.msk.bf16.vlgmr.msra.gmra.mxu1 %vm115_vm1, %v447_v58 }
 0x575   :  { %5733 = vmatprep.mubr.msk.bf16.mxu1 %vm6552_vm0, %v6551_v0  ;;  %5730 = vmatpush3.bf16.msra.mxu1 %v6144_v14 }
 0x576   :  { %5731 = vmatprep.subr.bf16.mxu1 %v6551_v0 }
 0x579   :  { %5732 = vmatpush3.bf16.msra.mxu1 %v6145_v15 }
 0x57a   :  { %5745 = vmatprep.subr.bf16.mxu1 %v6551_v0 }
 0x634   :  { %v497_v60 = vpop.f32.mrf.mxu1 }
 0x635   :  { %v503_v61 = vadd.f32 %v497_v60, %v183_v59 }
 0x636   :  { %v5727_v62 = vpop.f32.mrf.mxu1 }
 0x637   :  { %6272 = vtanh.f32 %v503_v61  ;;  %v504_v3 = vmul.f32 0.5, %v503_v61 }
 0x638   :  { %v500_v63 = vpop.f32.mrf.mxu1 }
 0x639   :  { %6274 = vtanh.f32 %v504_v3 }
 0x63a   :  { %v5728_v1 = vpop.f32.mrf.mxu1 }
 0x644   :  { %v6273_v2 = vpop.eup %6272 }
 0x645   :  { %511 = vrot.lane.b32.xlu0 %v6273_v2, %s6554_s26 }
 0x646   :  { %v6275_v4 = vpop.eup %6274 }
 0x647   :  { %v506_v5 = vmul.f32 0.5, %v6275_v4 }
 0x649   :  { %v507_v6 = vadd.f32 0.5, %v506_v5 }
 0x64b   :  { %v509_v12 = vmul.f32 %v507_v6, %v424_v51  ;;  %v6753_v51 = vpop.f32.mrf.mxu0 }
 0x64d   :  { %v190_v52 = vpop.f32.mrf.mxu0 }
 0x64e   :  { %v191_v1 = vadd.f32 %v6645_v10, %v190_v52 }
 0x64f   :  { %v6755_v53 = vpop.f32.mrf.mxu0 }
 0x651   :  { %v193_v54 = vpop.f32.mrf.mxu0 }
 0x653   :  { %v6757_v55 = vpop.f32.mrf.mxu0 }
 0x655   :  { %v6759_v56 = vpop.f32.mrf.mxu0 }
 0x657   :  { %v6761_v58 = vpop.f32.mrf.mxu0 }
 0x659   :  { %v6763_v59 = vpop.f32.mrf.mxu0 }
 0x65b   :  { %v6765_v60 = vpop.f32.mrf.mxu0 }
 0x65d   :  { %v6767_v61 = vpop.f32.mrf.mxu0 }
 0x65f   :  { %v6769_v62 = vpop.f32.mrf.mxu0 }
 0x661   :  { %v6771_v63 = vpop.f32.mrf.mxu0 }
 0x6b7   :  { %v512_v8 = vpop.permute.xlu0 %511 }
 0x6b8   :  { %v514_v11 = vmul.f32 %v512_v8, %v507_v6 }
 0x6ba   :  { %516 = vrot.lane.b32.xlu1 %v514_v11, %s6555_s27 }
 0x72c   :  { %v517_v9 = vpop.permute.xlu1 %516 }
 0x72d   :  { %v519_v13 = vadd.f32 %v517_v9, %v509_v12 }
 0x72f   :  { %6276 = vtanh.f32 %v519_v13 }
 0x73c   :  { %v6277_v16 = vpop.eup %6276 }
 0x73d   :  { %522 = vrot.lane.b32.xlu0 %v6277_v16, %s6554_s26 }
 0x7af   :  { %v523_v17 = vpop.permute.xlu0 %522 }
 0x7b0   :  { %v525_v18 = vmul.f32 %v523_v17, %v507_v6 }
 0x7b2   :  { %v6700_v19 = vpack.c.bf16 %v525_v18, %v525_v18 }
 0x7b4   :  { %541 = vrot.lane.b32.xlu1 %v6700_v19, %s6555_s27 }
 0x826   :  { %v542_v20 = vpop.permute.xlu1 %541 }
 0x827   :  { %5734 = vmatmul.mubr.msk.bf16.vlgmr.msra.gmra.mxu1 %vm115_vm1, %v542_v20  ;;  %v6154_v20 = vld [vmem:[%s7933_s2 + $0x8] sm:$0xff]  }
 0x828   :  { %5749 = vmatprep.mubr.msk.bf16.mxu1 %vm6552_vm0, %v6551_v0  ;;  %5746 = vmatpush3.bf16.msra.mxu1 %v6154_v20 }
 0x829   :  { %5747 = vmatprep.subr.bf16.mxu1 %v6551_v0 }
 0x8e7   :  { %v592_v22 = vpop.f32.mrf.mxu1 }
 0x8e8   :  { %v598_v23 = vadd.f32 %v592_v22, %v186_v21  ;;  %v6155_v21 = vld [vmem:[%s7933_s2] sm:$0xff]  }
 0x8e9   :  { %v5735_v24 = vpop.f32.mrf.mxu1  ;;  %5748 = vmatpush3.bf16.msra.mxu1 %v6155_v21 }
 0x8ea   :  { %6278 = vtanh.f32 %v598_v23  ;;  %v599_v28 = vmul.f32 0.5, %v598_v23  ;;  %5761 = vmatprep.subr.bf16.mxu1 %v6551_v0 }
 0x8eb   :  { %v595_v25 = vpop.f32.mrf.mxu1 }
 0x8ec   :  { %6280 = vtanh.f32 %v599_v28 }
 0x8ed   :  { %v5736_v26 = vpop.f32.mrf.mxu1 }
 0x8f7   :  { %v6279_v27 = vpop.eup %6278 }
 0x8f8   :  { %606 = vrot.lane.b32.xlu0 %v6279_v27, %s6554_s26  ;;  %v194_v27 = vadd.f32 %v6645_v10, %v193_v54  ;;  %v199_v54 = vadd.f32 %v6753_v51, %v6645_v10 }
 0x8f9   :  { %v6281_v29 = vpop.eup %6280 }
 0x8fa   :  { %v601_v30 = vmul.f32 0.5, %v6281_v29 }
 0x8fc   :  { %v602_v31 = vadd.f32 0.5, %v601_v30 }
 0x8fe   :  { %v604_v36 = vmul.f32 %v602_v31, %v519_v13 }
 0x96a   :  { %v607_v33 = vpop.permute.xlu0 %606 }
 0x96b   :  { %v609_v35 = vmul.f32 %v607_v33, %v602_v31 }
 0x96d   :  { %611 = vrot.lane.b32.xlu1 %v609_v35, %s6555_s27 }
 0x9df   :  { %v612_v34 = vpop.permute.xlu1 %611 }
 0x9e0   :  { %v614_v37 = vadd.f32 %v612_v34, %v604_v36 }
 0x9e2   :  { %6282 = vtanh.f32 %v614_v37 }
 0x9ef   :  { %v6283_v44 = vpop.eup %6282 }
 0x9f0   :  { %617 = vrot.lane.b32.xlu0 %v6283_v44, %s6554_s26  ;;  %v6156_v44 = vld [vmem:[%s7933_s2 + $0x8] sm:$0xff]  }
 0xa62   :  { %v618_v47 = vpop.permute.xlu0 %617 }
 0xa63   :  { %v620_v48 = vmul.f32 %v618_v47, %v602_v31 }
 0xa65   :  { %v6746_v49 = vpack.c.bf16 %v620_v48, %v620_v48 }
 0xa67   :  { %636 = vrot.lane.b32.xlu1 %v6746_v49, %s6555_s27 }
 0xad9   :  { %v637_v50 = vpop.permute.xlu1 %636 }
 0xada   :  { %5742 = vmatmul.mubr.msk.bf16.vlgmr.msra.gmra.mxu0 %vm115_vm1, %v637_v50 }
 0xadb   :  { %5757 = vmatprep.mubr.msk.bf16.mxu0 %vm6552_vm0, %v6551_v0  ;;  %5754 = vmatpush3.bf16.msra.mxu0 %v6156_v44 }
 0xadc   :  { %5755 = vmatprep.subr.bf16.mxu0 %v6551_v0 }
 0xadf   :  { %5756 = vmatpush3.bf16.msra.mxu0 %v6157_v45 }
 0xae0   :  { %5769 = vmatprep.subr.bf16.mxu0 %v6551_v0 }
 0xb9a   :  { %v687_v2 = vpop.f32.mrf.mxu0 }
 0xb9b   :  { %v693_v3 = vadd.f32 %v687_v2, %v191_v1 }
 0xb9c   :  { %v5743_v4 = vpop.f32.mrf.mxu0 }
 0xb9d   :  { %6284 = vtanh.f32 %v693_v3  ;;  %v694_v11 = vmul.f32 0.5, %v693_v3 }
 0xb9e   :  { %v690_v5 = vpop.f32.mrf.mxu0 }
 0xb9f   :  { %6286 = vtanh.f32 %v694_v11 }
 0xba0   :  { %v5744_v6 = vpop.f32.mrf.mxu0 }
 0xbaa   :  { %v6285_v8 = vpop.eup %6284 }
 0xbab   :  { %701 = vrot.lane.b32.xlu0 %v6285_v8, %s6554_s26 }
 0xbac   :  { %v6287_v12 = vpop.eup %6286 }
 0xbad   :  { %v696_v9 = vmul.f32 0.5, %v6287_v12 }
 0xbaf   :  { %v697_v13 = vadd.f32 0.5, %v696_v9 }
 0xbb1   :  { %v699_v16 = vmul.f32 %v697_v13, %v614_v37 }
 0xc1d   :  { %v702_v14 = vpop.permute.xlu0 %701 }
 0xc1e   :  { %v704_v15 = vmul.f32 %v702_v14, %v697_v13 }
 0xc20   :  { %706 = vrot.lane.b32.xlu1 %v704_v15, %s6555_s27 }
 0xc92   :  { %v707_v17 = vpop.permute.xlu1 %706 }
 0xc93   :  { %v709_v18 = vadd.f32 %v707_v17, %v699_v16  ;;  %v6158_v17 = vld [vmem:[%s7933_s2 + $0x8] sm:$0xff]  }
 0xc95   :  { %6288 = vtanh.f32 %v709_v18 }
 0xca2   :  { %v6289_v22 = vpop.eup %6288 }
 0xca3   :  { %712 = vrot.lane.b32.xlu0 %v6289_v22, %s6554_s26 }
 0xd15   :  { %v713_v23 = vpop.permute.xlu0 %712 }
 0xd16   :  { %v715_v24 = vmul.f32 %v713_v23, %v697_v13 }
 0xd18   :  { %v6785_v25 = vpack.c.bf16 %v715_v24, %v715_v24 }
 0xd1a   :  { %731 = vrot.lane.b32.xlu1 %v6785_v25, %s6555_s27 }
 0xd8c   :  { %v732_v26 = vpop.permute.xlu1 %731 }
 0xd8d   :  { %5750 = vmatmul.mubr.msk.bf16.vlgmr.msra.gmra.mxu1 %vm115_vm1, %v732_v26  ;;  %v202_v26 = vadd.f32 %v6755_v53, %v6645_v10 }
 0xd8e   :  { %5765 = vmatprep.mubr.msk.bf16.mxu1 %vm6552_vm0, %v6551_v0  ;;  %5762 = vmatpush3.bf16.msra.mxu1 %v6158_v17 }
 0xd8f   :  { %5763 = vmatprep.subr.bf16.mxu1 %v6551_v0 }
 0xe4d   :  { %v782_v28 = vpop.f32.mrf.mxu1 }
 0xe4e   :  { %v788_v29 = vadd.f32 %v782_v28, %v194_v27 }
 0xe4f   :  { %v5751_v30 = vpop.f32.mrf.mxu1 }
 0xe50   :  { %6290 = vtanh.f32 %v788_v29  ;;  %v789_v36 = vmul.f32 0.5, %v788_v29 }
 0xe51   :  { %v785_v31 = vpop.f32.mrf.mxu1 }
 0xe52   :  { %6292 = vtanh.f32 %v789_v36 }
 0xe53   :  { %v5752_v33 = vpop.f32.mrf.mxu1 }
 0xe5d   :  { %v6291_v35 = vpop.eup %6290 }
 0xe5e   :  { %796 = vrot.lane.b32.xlu0 %v6291_v35, %s6554_s26 }
 0xe5f   :  { %v6293_v34 = vpop.eup %6292 }
 0xe60   :  { %v791_v37 = vmul.f32 0.5, %v6293_v34 }
 0xe62   :  { %v792_v38 = vadd.f32 0.5, %v791_v37 }
 0xe64   :  { %v794_v41 = vmul.f32 %v792_v38, %v709_v18  ;;  %v6159_v18 = vld [vmem:[%s7933_s2] sm:$0xff]  }
 0xe65   :  { %5764 = vmatpush3.bf16.msra.mxu1 %v6159_v18 }
 0xe66   :  { %5777 = vmatprep.subr.bf16.mxu1 %v6551_v0 }
 0xed0   :  { %v797_v39 = vpop.permute.xlu0 %796 }
 0xed1   :  { %v799_v40 = vmul.f32 %v797_v39, %v792_v38 }
 0xed3   :  { %801 = vrot.lane.b32.xlu1 %v799_v40, %s6555_s27 }
 0xf45   :  { %v802_v42 = vpop.permute.xlu1 %801 }
 0xf46   :  { %v804_v43 = vadd.f32 %v802_v42, %v794_v41  ;;  %v6160_v42 = vld [vmem:[%s7933_s2 + $0x8] sm:$0xff]  }
 0xf48   :  { %6294 = vtanh.f32 %v804_v43 }
 0xf55   :  { %v6295_v46 = vpop.eup %6294 }
 0xf56   :  { %807 = vrot.lane.b32.xlu0 %v6295_v46, %s6554_s26 }
 0xfc8   :  { %v808_v47 = vpop.permute.xlu0 %807 }
 0xfc9   :  { %v810_v48 = vmul.f32 %v808_v47, %v792_v38 }
 0xfcb   :  { %v6804_v50 = vpack.c.bf16 %v810_v48, %v810_v48 }
 0xfcd   :  { %826 = vrot.lane.b32.xlu1 %v6804_v50, %s6555_s27 }
0x103f   :  { %v827_v52 = vpop.permute.xlu1 %826 }
0x1040   :  { %5758 = vmatmul.mubr.msk.bf16.vlgmr.msra.gmra.mxu0 %vm115_vm1, %v827_v52  ;;  %v207_v52 = vadd.f32 %v6645_v10, %v6759_v56 }
0x1041   :  { %5773 = vmatprep.mubr.msk.bf16.mxu0 %vm6552_vm0, %v6551_v0  ;;  %5770 = vmatpush3.bf16.msra.mxu0 %v6160_v42 }
0x1042   :  { %5771 = vmatprep.subr.bf16.mxu0 %v6551_v0 }
0x1100   :  { %v877_v1 = vpop.f32.mrf.mxu0 }
0x1101   :  { %v883_v2 = vadd.f32 %v877_v1, %v199_v54 }
0x1102   :  { %v5759_v3 = vpop.f32.mrf.mxu0 }
0x1103   :  { %6296 = vtanh.f32 %v883_v2  ;;  %v884_v8 = vmul.f32 0.5, %v883_v2 }
0x1104   :  { %v880_v4 = vpop.f32.mrf.mxu0 }
0x1105   :  { %6298 = vtanh.f32 %v884_v8 }
0x1106   :  { %v5760_v5 = vpop.f32.mrf.mxu0 }
0x1110   :  { %v6297_v6 = vpop.eup %6296 }
0x1111   :  { %891 = vrot.lane.b32.xlu0 %v6297_v6, %s6554_s26 }
0x1112   :  { %v6299_v11 = vpop.eup %6298 }
0x1113   :  { %v886_v12 = vmul.f32 0.5, %v6299_v11 }
0x1115   :  { %v887_v9 = vadd.f32 0.5, %v886_v12 }
0x1117   :  { %v889_v15 = vmul.f32 %v887_v9, %v804_v43  ;;  %v6161_v43 = vld [vmem:[%s7933_s2] sm:$0xff]  }
0x1118   :  { %5772 = vmatpush3.bf16.msra.mxu0 %v6161_v43 }
0x1119   :  { %5785 = vmatprep.subr.bf16.mxu0 %v6551_v0 }
0x1183   :  { %v892_v13 = vpop.permute.xlu0 %891 }
0x1184   :  { %v894_v14 = vmul.f32 %v892_v13, %v887_v9 }
0x1186   :  { %896 = vrot.lane.b32.xlu1 %v894_v14, %s6555_s27 }
0x11f8   :  { %v897_v51 = vpop.permute.xlu1 %896 }
0x11f9   :  { %v899_v16 = vadd.f32 %v897_v51, %v889_v15  ;;  %v6162_v51 = vld [vmem:[%s7933_s2 + $0x8] sm:$0xff]  }
0x11fb   :  { %6300 = vtanh.f32 %v899_v16 }
0x1208   :  { %v6301_v20 = vpop.eup %6300 }
0x1209   :  { %902 = vrot.lane.b32.xlu0 %v6301_v20, %s6554_s26 }
0x127b   :  { %v903_v21 = vpop.permute.xlu0 %902 }
0x127c   :  { %v905_v22 = vmul.f32 %v903_v21, %v887_v9 }
0x127e   :  { %v6824_v23 = vpack.c.bf16 %v905_v22, %v905_v22 }
0x1280   :  { %921 = vrot.lane.b32.xlu1 %v6824_v23, %s6555_s27 }
0x12f2   :  { %v922_v24 = vpop.permute.xlu1 %921 }
0x12f3   :  { %5766 = vmatmul.mubr.msk.bf16.vlgmr.msra.gmra.mxu1 %vm115_vm1, %v922_v24  ;;  %v210_v24 = vadd.f32 %v6645_v10, %v6763_v59 }
0x12f4   :  { %5781 = vmatprep.mubr.msk.bf16.mxu1 %vm6552_vm0, %v6551_v0  ;;  %5778 = vmatpush3.bf16.msra.mxu1 %v6162_v51 }
0x12f5   :  { %5779 = vmatprep.subr.bf16.mxu1 %v6551_v0 }
0x13b3   :  { %v972_v27 = vpop.f32.mrf.mxu1 }
0x13b4   :  { %v978_v28 = vadd.f32 %v972_v27, %v202_v26 }
0x13b5   :  { %v5767_v29 = vpop.f32.mrf.mxu1 }
0x13b6   :  { %6302 = vtanh.f32 %v978_v28  ;;  %v979_v35 = vmul.f32 0.5, %v978_v28 }
0x13b7   :  { %v975_v30 = vpop.f32.mrf.mxu1 }
0x13b8   :  { %6304 = vtanh.f32 %v979_v35 }
0x13b9   :  { %v5768_v31 = vpop.f32.mrf.mxu1 }
0x13c3   :  { %v6303_v33 = vpop.eup %6302 }
0x13c4   :  { %986 = vrot.lane.b32.xlu0 %v6303_v33, %s6554_s26 }
0x13c5   :  { %v6305_v36 = vpop.eup %6304 }
0x13c6   :  { %v981_v34 = vmul.f32 0.5, %v6305_v36 }
0x13c8   :  { %v982_v37 = vadd.f32 0.5, %v981_v34 }
0x13ca   :  { %v984_v40 = vmul.f32 %v982_v37, %v899_v16  ;;  %v6163_v16 = vld [vmem:[%s7933_s2] sm:$0xff]  }
0x13cb   :  { %5780 = vmatpush3.bf16.msra.mxu1 %v6163_v16 }
0x13cc   :  { %5793 = vmatprep.subr.bf16.mxu1 %v6551_v0 }
0x1436   :  { %v987_v38 = vpop.permute.xlu0 %986 }
0x1437   :  { %v989_v39 = vmul.f32 %v987_v38, %v982_v37 }
0x1439   :  { %991 = vrot.lane.b32.xlu1 %v989_v39, %s6555_s27 }
0x14ab   :  { %v992_v53 = vpop.permute.xlu1 %991 }
0x14ac   :  { %v994_v41 = vadd.f32 %v992_v53, %v984_v40  ;;  %v6164_v53 = vld [vmem:[%s7933_s2 + $0x8] sm:$0xff]  }
0x14ae   :  { %6306 = vtanh.f32 %v994_v41 }
0x14bb   :  { %v6307_v44 = vpop.eup %6306 }
0x14bc   :  { %997 = vrot.lane.b32.xlu0 %v6307_v44, %s6554_s26 }
0x152e   :  { %v998_v45 = vpop.permute.xlu0 %997 }
0x152f   :  { %v1000_v46 = vmul.f32 %v998_v45, %v982_v37 }
0x1531   :  { %v6844_v47 = vpack.c.bf16 %v1000_v46, %v1000_v46 }
0x1533   :  { %1016 = vrot.lane.b32.xlu1 %v6844_v47, %s6555_s27 }
0x15a5   :  { %v1017_v48 = vpop.permute.xlu1 %1016 }
0x15a6   :  { %5774 = vmatmul.mubr.msk.bf16.vlgmr.msra.gmra.mxu0 %vm115_vm1, %v1017_v48  ;;  %v215_v48 = vadd.f32 %v6757_v55, %v6645_v10 }
0x15a7   :  { %5789 = vmatprep.mubr.msk.bf16.mxu0 %vm6552_vm0, %v6551_v0  ;;  %5786 = vmatpush3.bf16.msra.mxu0 %v6164_v53 }
0x15a8   :  { %5787 = vmatprep.subr.bf16.mxu0 %v6551_v0 }
0x1666   :  { %v1067_v54 = vpop.f32.mrf.mxu0 }
0x1667   :  { %v1073_v1 = vadd.f32 %v1067_v54, %v207_v52 }
0x1668   :  { %v5775_v2 = vpop.f32.mrf.mxu0 }
0x1669   :  { %6308 = vtanh.f32 %v1073_v1  ;;  %v1074_v6 = vmul.f32 0.5, %v1073_v1 }
0x166a   :  { %v1070_v3 = vpop.f32.mrf.mxu0 }
0x166b   :  { %6310 = vtanh.f32 %v1074_v6 }
0x166c   :  { %v5776_v4 = vpop.f32.mrf.mxu0 }
0x1676   :  { %v6309_v5 = vpop.eup %6308 }
0x1677   :  { %1081 = vrot.lane.b32.xlu0 %v6309_v5, %s6554_s26 }
0x1678   :  { %v6311_v8 = vpop.eup %6310 }
0x1679   :  { %v1076_v11 = vmul.f32 0.5, %v6311_v8 }
0x167b   :  { %v1077_v12 = vadd.f32 0.5, %v1076_v11 }
0x167d   :  { %v1079_v14 = vmul.f32 %v1077_v12, %v994_v41  ;;  %v6165_v41 = vld [vmem:[%s7933_s2] sm:$0xff]  }
0x167e   :  { %5788 = vmatpush3.bf16.msra.mxu0 %v6165_v41 }
0x167f   :  { %5801 = vmatprep.subr.bf16.mxu0 %v6551_v0 }
0x16e9   :  { %v1082_v9 = vpop.permute.xlu0 %1081 }
0x16ea   :  { %v1084_v13 = vmul.f32 %v1082_v9, %v1077_v12 }
0x16ec   :  { %1086 = vrot.lane.b32.xlu1 %v1084_v13, %s6555_s27 }
0x175e   :  { %v1087_v56 = vpop.permute.xlu1 %1086 }
0x175f   :  { %v1089_v15 = vadd.f32 %v1087_v56, %v1079_v14  ;;  %v6166_v56 = vld [vmem:[%s7933_s2 + $0x8] sm:$0xff]  }
0x1761   :  { %6312 = vtanh.f32 %v1089_v15 }
0x176e   :  { %v6313_v17 = vpop.eup %6312 }
0x176f   :  { %1092 = vrot.lane.b32.xlu0 %v6313_v17, %s6554_s26 }
0x17e1   :  { %v1093_v18 = vpop.permute.xlu0 %1092 }
0x17e2   :  { %v1095_v20 = vmul.f32 %v1093_v18, %v1077_v12 }
0x17e4   :  { %v6864_v21 = vpack.c.bf16 %v1095_v20, %v1095_v20 }
0x17e6   :  { %1111 = vrot.lane.b32.xlu1 %v6864_v21, %s6555_s27 }
0x1858   :  { %v1112_v22 = vpop.permute.xlu1 %1111 }
0x1859   :  { %5782 = vmatmul.mubr.msk.bf16.vlgmr.msra.gmra.mxu1 %vm115_vm1, %v1112_v22  ;;  %v218_v22 = vadd.f32 %v6761_v58, %v6645_v10 }
0x185a   :  { %5797 = vmatprep.mubr.msk.bf16.mxu1 %vm6552_vm0, %v6551_v0  ;;  %5794 = vmatpush3.bf16.msra.mxu1 %v6166_v56 }
0x185b   :  { %5795 = vmatprep.subr.bf16.mxu1 %v6551_v0 }
0x1919   :  { %v1162_v26 = vpop.f32.mrf.mxu1 }
0x191a   :  { %v1168_v27 = vadd.f32 %v1162_v26, %v210_v24 }
0x191b   :  { %v5783_v28 = vpop.f32.mrf.mxu1 }
0x191c   :  { %6314 = vtanh.f32 %v1168_v27  ;;  %v1169_v33 = vmul.f32 0.5, %v1168_v27 }
0x191d   :  { %v1165_v29 = vpop.f32.mrf.mxu1 }
0x191e   :  { %6316 = vtanh.f32 %v1169_v33 }
0x191f   :  { %v5784_v30 = vpop.f32.mrf.mxu1 }
0x1929   :  { %v6315_v31 = vpop.eup %6314 }
0x192a   :  { %1176 = vrot.lane.b32.xlu0 %v6315_v31, %s6554_s26 }
0x192b   :  { %v6317_v35 = vpop.eup %6316 }
0x192c   :  { %v1171_v36 = vmul.f32 0.5, %v6317_v35 }
0x192e   :  { %v1172_v34 = vadd.f32 0.5, %v1171_v36 }
0x1930   :  { %v1174_v39 = vmul.f32 %v1172_v34, %v1089_v15  ;;  %v6167_v15 = vld [vmem:[%s7933_s2] sm:$0xff]  }
0x1931   :  { %5796 = vmatpush3.bf16.msra.mxu1 %v6167_v15 }
0x1932   :  { %5809 = vmatprep.subr.bf16.mxu1 %v6551_v0 }
0x199c   :  { %v1177_v37 = vpop.permute.xlu0 %1176 }
0x199d   :  { %v1179_v38 = vmul.f32 %v1177_v37, %v1172_v34 }
0x199f   :  { %1181 = vrot.lane.b32.xlu1 %v1179_v38, %s6555_s27 }
0x1a11   :  { %v1182_v59 = vpop.permute.xlu1 %1181 }
0x1a12   :  { %v1184_v40 = vadd.f32 %v1182_v59, %v1174_v39  ;;  %v6168_v59 = vld [vmem:[%s7933_s2 + $0x8] sm:$0xff]  }
0x1a14   :  { %6318 = vtanh.f32 %v1184_v40 }
0x1a21   :  { %v6319_v42 = vpop.eup %6318 }
0x1a22   :  { %1187 = vrot.lane.b32.xlu0 %v6319_v42, %s6554_s26 }
0x1a94   :  { %v1188_v43 = vpop.permute.xlu0 %1187 }
0x1a95   :  { %v1190_v44 = vmul.f32 %v1188_v43, %v1172_v34 }
0x1a97   :  { %v6884_v45 = vpack.c.bf16 %v1190_v44, %v1190_v44 }
0x1a99   :  { %1206 = vrot.lane.b32.xlu1 %v6884_v45, %s6555_s27 }
0x1b0b   :  { %v1207_v46 = vpop.permute.xlu1 %1206 }
0x1b0c   :  { %5790 = vmatmul.mubr.msk.bf16.vlgmr.msra.gmra.mxu0 %vm115_vm1, %v1207_v46  ;;  %v223_v46 = vadd.f32 %v6645_v10, %v6767_v61 }
0x1b0d   :  { %5805 = vmatprep.mubr.msk.bf16.mxu0 %vm6552_vm0, %v6551_v0  ;;  %5802 = vmatpush3.bf16.msra.mxu0 %v6168_v59 }
0x1b0e   :  { %5803 = vmatprep.subr.bf16.mxu0 %v6551_v0 }
0x1bcc   :  { %v1257_v52 = vpop.f32.mrf.mxu0 }
0x1bcd   :  { %v1263_v54 = vadd.f32 %v1257_v52, %v215_v48 }
0x1bce   :  { %v5791_v1 = vpop.f32.mrf.mxu0 }
0x1bcf   :  { %6320 = vtanh.f32 %v1263_v54  ;;  %v1264_v5 = vmul.f32 0.5, %v1263_v54 }
0x1bd0   :  { %v1260_v2 = vpop.f32.mrf.mxu0 }
0x1bd1   :  { %6322 = vtanh.f32 %v1264_v5 }
0x1bd2   :  { %v5792_v3 = vpop.f32.mrf.mxu0 }
0x1bdc   :  { %v6321_v4 = vpop.eup %6320 }
0x1bdd   :  { %1271 = vrot.lane.b32.xlu0 %v6321_v4, %s6554_s26 }
0x1bde   :  { %v6323_v6 = vpop.eup %6322 }
0x1bdf   :  { %v1266_v8 = vmul.f32 0.5, %v6323_v6 }
0x1be1   :  { %v1267_v11 = vadd.f32 0.5, %v1266_v8 }
0x1be3   :  { %v1269_v13 = vmul.f32 %v1267_v11, %v1184_v40  ;;  %v6169_v40 = vld [vmem:[%s7933_s2] sm:$0xff]  }
0x1be4   :  { %5804 = vmatpush3.bf16.msra.mxu0 %v6169_v40 }
0x1be5   :  { %5817 = vmatprep.subr.bf16.mxu0 %v6551_v0 }
0x1c4f   :  { %v1272_v12 = vpop.permute.xlu0 %1271 }
0x1c50   :  { %v1274_v9 = vmul.f32 %v1272_v12, %v1267_v11 }
0x1c52   :  { %1276 = vrot.lane.b32.xlu1 %v1274_v9, %s6555_s27 }
0x1cc4   :  { %v1277_v55 = vpop.permute.xlu1 %1276 }
0x1cc5   :  { %v1279_v14 = vadd.f32 %v1277_v55, %v1269_v13  ;;  %v6170_v55 = vld [vmem:[%s7933_s2 + $0x8] sm:$0xff]  }
0x1cc7   :  { %6324 = vtanh.f32 %v1279_v14 }
0x1cd4   :  { %v6325_v51 = vpop.eup %6324 }
0x1cd5   :  { %1282 = vrot.lane.b32.xlu0 %v6325_v51, %s6554_s26 }
0x1d47   :  { %v1283_v16 = vpop.permute.xlu0 %1282 }
0x1d48   :  { %v1285_v17 = vmul.f32 %v1283_v16, %v1267_v11 }
0x1d4a   :  { %v6904_v18 = vpack.c.bf16 %v1285_v17, %v1285_v17 }
0x1d4c   :  { %1301 = vrot.lane.b32.xlu1 %v6904_v18, %s6555_s27 }
0x1dbe   :  { %v1302_v20 = vpop.permute.xlu1 %1301 }
0x1dbf   :  { %5798 = vmatmul.mubr.msk.bf16.vlgmr.msra.gmra.mxu1 %vm115_vm1, %v1302_v20  ;;  %v226_v20 = vadd.f32 %v6645_v10, %v6771_v63 }
0x1dc0   :  { %5813 = vmatprep.mubr.msk.bf16.mxu1 %vm6552_vm0, %v6551_v0  ;;  %5810 = vmatpush3.bf16.msra.mxu1 %v6170_v55 }
0x1dc1   :  { %5811 = vmatprep.subr.bf16.mxu1 %v6551_v0 }
0x1e7f   :  { %v1352_v24 = vpop.f32.mrf.mxu1 }
0x1e80   :  { %v1358_v26 = vadd.f32 %v1352_v24, %v218_v22 }
0x1e81   :  { %v5799_v27 = vpop.f32.mrf.mxu1 }
0x1e82   :  { %6326 = vtanh.f32 %v1358_v26  ;;  %v1359_v31 = vmul.f32 0.5, %v1358_v26 }
0x1e83   :  { %v1355_v28 = vpop.f32.mrf.mxu1 }
0x1e84   :  { %6328 = vtanh.f32 %v1359_v31 }
0x1e85   :  { %v5800_v29 = vpop.f32.mrf.mxu1 }
0x1e8f   :  { %v6327_v30 = vpop.eup %6326 }
0x1e90   :  { %1366 = vrot.lane.b32.xlu0 %v6327_v30, %s6554_s26 }
0x1e91   :  { %v6329_v33 = vpop.eup %6328 }
0x1e92   :  { %v1361_v35 = vmul.f32 0.5, %v6329_v33 }
0x1e94   :  { %v1362_v36 = vadd.f32 0.5, %v1361_v35 }
0x1e96   :  { %v1364_v38 = vmul.f32 %v1362_v36, %v1279_v14  ;;  %v6171_v14 = vld [vmem:[%s7933_s2] sm:$0xff]  }
0x1e97   :  { %5812 = vmatpush3.bf16.msra.mxu1 %v6171_v14  ;;  %v6178_v14 = vld [vmem:[%s7933_s2 + $0x8] sm:$0xff]  }
0x1e98   :  { %5825 = vmatprep.subr.bf16.mxu1 %v6551_v0 }
0x1f02   :  { %v1367_v34 = vpop.permute.xlu0 %1366 }
0x1f03   :  { %v1369_v37 = vmul.f32 %v1367_v34, %v1362_v36 }
0x1f05   :  { %1371 = vrot.lane.b32.xlu1 %v1369_v37, %s6555_s27 }
0x1f77   :  { %v1372_v58 = vpop.permute.xlu1 %1371 }
0x1f78   :  { %v1374_v39 = vadd.f32 %v1372_v58, %v1364_v38  ;;  %v6172_v38 = vld [vmem:[%s7933_s2 + $0x8] sm:$0xff]   ;;  %v6173_v58 = vld [vmem:[%s7933_s2] sm:$0xff]  }
0x1f7a   :  { %6330 = vtanh.f32 %v1374_v39 }
0x1f87   :  { %v6331_v53 = vpop.eup %6330 }
0x1f88   :  { %1377 = vrot.lane.b32.xlu0 %v6331_v53, %s6554_s26 }
0x1ffa   :  { %v1378_v41 = vpop.permute.xlu0 %1377 }
0x1ffb   :  { %v1380_v42 = vmul.f32 %v1378_v41, %v1362_v36 }
0x1ffd   :  { %v6924_v43 = vpack.c.bf16 %v1380_v42, %v1380_v42  ;;  %v6971_v42 = vld [vmem:[%s7935_s3] ss:$0 sm:$0xff] }
0x1fff   :  { %1396 = vrot.lane.b32.xlu1 %v6924_v43, %s6555_s27 }
0x2071   :  { %v1397_v44 = vpop.permute.xlu1 %1396 }
0x2072   :  { %5806 = vmatmul.mubr.msk.bf16.vlgmr.msra.gmra.mxu0 %vm115_vm1, %v1397_v44  ;;  %v231_v44 = vadd.f32 %v6971_v42, %v6765_v60 }
0x2073   :  { %5821 = vmatprep.mubr.msk.bf16.mxu0 %vm6552_vm0, %v6551_v0  ;;  %5818 = vmatpush3.bf16.msra.mxu0 %v6172_v38 }
0x2074   :  { %5819 = vmatprep.subr.bf16.mxu0 %v6551_v0 }
0x2077   :  { %5820 = vmatpush3.bf16.msra.mxu0 %v6173_v58 }
0x2132   :  { %v1447_v48 = vpop.f32.mrf.mxu0 }
0x2133   :  { %v1453_v52 = vadd.f32 %v1447_v48, %v223_v46 }
0x2134   :  { %v5807_v54 = vpop.f32.mrf.mxu0 }
0x2135   :  { %6332 = vtanh.f32 %v1453_v52  ;;  %v1454_v4 = vmul.f32 0.5, %v1453_v52 }
0x2136   :  { %v1450_v1 = vpop.f32.mrf.mxu0 }
0x2137   :  { %6334 = vtanh.f32 %v1454_v4 }
0x2138   :  { %v5808_v2 = vpop.f32.mrf.mxu0 }
0x2142   :  { %v6333_v3 = vpop.eup %6332 }
0x2143   :  { %1461 = vrot.lane.b32.xlu0 %v6333_v3, %s6554_s26 }
0x2144   :  { %v6335_v5 = vpop.eup %6334 }
0x2145   :  { %v1456_v6 = vmul.f32 0.5, %v6335_v5 }
0x2147   :  { %v1457_v8 = vadd.f32 0.5, %v1456_v6 }
0x2149   :  { %v1459_v9 = vmul.f32 %v1457_v8, %v1374_v39 }
0x21b5   :  { %v1462_v11 = vpop.permute.xlu0 %1461 }
0x21b6   :  { %v1464_v12 = vmul.f32 %v1462_v11, %v1457_v8 }
0x21b8   :  { %1466 = vrot.lane.b32.xlu1 %v1464_v12, %s6555_s27 }
0x222a   :  { %v1467_v61 = vpop.permute.xlu1 %1466 }
0x222b   :  { %v1469_v13 = vadd.f32 %v1467_v61, %v1459_v9 }
0x222d   :  { %6336 = vtanh.f32 %v1469_v13 }
0x223a   :  { %v6337_v56 = vpop.eup %6336 }
0x223b   :  { %1472 = vrot.lane.b32.xlu0 %v6337_v56, %s6554_s26  ;;  %v6179_v56 = vld [vmem:[%s7933_s2] sm:$0xff]  }
0x22ad   :  { %v1473_v15 = vpop.permute.xlu0 %1472 }
0x22ae   :  { %v1475_v51 = vmul.f32 %v1473_v15, %v1457_v8 }
0x22b0   :  { %v6944_v16 = vpack.c.bf16 %v1475_v51, %v1475_v51 }
0x22b2   :  { %1491 = vrot.lane.b32.xlu1 %v6944_v16, %s6555_s27 }
0x2324   :  { %v1492_v17 = vpop.permute.xlu1 %1491 }
0x2325   :  { %5814 = vmatmul.mubr.msk.bf16.vlgmr.msra.gmra.mxu1 %vm115_vm1, %v1492_v17 }
0x2326   :  { %5829 = vmatprep.mubr.msk.bf16.mxu1 %vm6552_vm0, %v6551_v0  ;;  %5826 = vmatpush3.bf16.msra.mxu1 %v6178_v14 }
0x2327   :  { %5827 = vmatprep.subr.bf16.mxu1 %v6551_v0 }
0x232a   :  { %5828 = vmatpush3.bf16.msra.mxu1 %v6179_v56 }
0x232b   :  { %5853 = vmatprep.subr.bf16.mxu1 %v6551_v0 }
0x23e5   :  { %v1542_v22 = vpop.f32.mrf.mxu1 }
0x23e6   :  { %v1548_v24 = vadd.f32 %v1542_v22, %v226_v20 }
0x23e7   :  { %v5815_v26 = vpop.f32.mrf.mxu1 }
0x23e8   :  { %6338 = vtanh.f32 %v1548_v24  ;;  %v1549_v30 = vmul.f32 0.5, %v1548_v24  ;;  %v6180_v24 = vld [vmem:[%s7937_s5 + $0x8] sm:$0xff]  }
0x23e9   :  { %v1545_v27 = vpop.f32.mrf.mxu1 }
0x23ea   :  { %6340 = vtanh.f32 %v1549_v30  ;;  %v6181_v27 = vld [vmem:[%s7937_s5] sm:$0xff]  }
0x23eb   :  { %v5816_v28 = vpop.f32.mrf.mxu1 }
0x23ec   :  { %v234_v28 = vadd.f32 %v6971_v42, %v6769_v62 }
0x23f5   :  { %v6339_v29 = vpop.eup %6338 }
0x23f6   :  { %1556 = vrot.lane.b32.xlu0 %v6339_v29, %s6554_s26 }
0x23f7   :  { %v6341_v31 = vpop.eup %6340 }
0x23f8   :  { %v1551_v33 = vmul.f32 0.5, %v6341_v31 }
0x23fa   :  { %v1552_v35 = vadd.f32 0.5, %v1551_v33 }
0x23fc   :  { %v1554_v37 = vmul.f32 %v1552_v35, %v1469_v13 }
0x2468   :  { %v1557_v36 = vpop.permute.xlu0 %1556 }
0x2469   :  { %v1559_v34 = vmul.f32 %v1557_v36, %v1552_v35 }
0x246b   :  { %1561 = vrot.lane.b32.xlu1 %v1559_v34, %s6555_s27  ;;  %v7037_v34 = vld [vmem:[%s7938_s6] ss:$0 sm:$0xff] }
0x24dd   :  { %v1562_v10 = vpop.permute.xlu1 %1561 }
0x24de   :  { %v1564_v63 = vadd.f32 %v1562_v10, %v1554_v37 }
0x24e0   :  { %6342 = vtanh.f32 %v1564_v63 }
0x24ed   :  { %v6343_v39 = vpop.eup %6342 }
0x24ee   :  { %1567 = vrot.lane.b32.xlu0 %v6343_v39, %s6554_s26 }
0x2560   :  { %v1568_v59 = vpop.permute.xlu0 %1567 }
0x2561   :  { %v1570_v40 = vmul.f32 %v1568_v59, %v1552_v35 }
0x2563   :  { %v6963_v53 = vpack.c.bf16 %v1570_v40, %v1570_v40 }
0x2565   :  { %1586 = vrot.lane.b32.xlu1 %v6963_v53, %s6555_s27 }
0x25d7   :  { %v1587_v41 = vpop.permute.xlu1 %1586 }
0x25d8   :  { %5822 = vmatmul.mubr.msk.bf16.vlgmr.msra.gmra.mxu0 %vm115_vm1, %v1587_v41 }
0x2698   :  { %v1637_v46 = vpop.f32.mrf.mxu0 }
0x2699   :  { %v1643_v48 = vadd.f32 %v1637_v46, %v231_v44 }
0x269a   :  { %v5823_v52 = vpop.f32.mrf.mxu0 }
0x269b   :  { %6344 = vtanh.f32 %v1643_v48  ;;  %v1644_v3 = vmul.f32 0.5, %v1643_v48 }
0x269c   :  { %v1640_v54 = vpop.f32.mrf.mxu0 }
0x269d   :  { %6346 = vtanh.f32 %v1644_v3  ;;  %v6183_v3 = vld [vmem:[%s7937_s5] sm:$0xff]  }
0x269e   :  { %v5824_v1 = vpop.f32.mrf.mxu0 }
0x26a8   :  { %v6345_v2 = vpop.eup %6344 }
0x26a9   :  { %1651 = vrot.lane.b32.xlu0 %v6345_v2, %s6554_s26  ;;  %v6182_v2 = vld [vmem:[%s7937_s5 + $0x8] sm:$0xff]  }
0x26aa   :  { %v6347_v4 = vpop.eup %6346 }
0x26ab   :  { %v1646_v5 = vmul.f32 0.5, %v6347_v4 }
0x26ad   :  { %v1647_v6 = vadd.f32 0.5, %v1646_v5 }
0x26af   :  { %v1649_v60 = vmul.f32 %v1647_v6, %v1564_v63 }
0x271b   :  { %v1652_v8 = vpop.permute.xlu0 %1651 }
0x271c   :  { %v1654_v11 = vmul.f32 %v1652_v8, %v1647_v6 }
0x271e   :  { %1656 = vrot.lane.b32.xlu1 %v1654_v11, %s6555_s27 }
0x2722   :  { %340 = vrot.lane.b32.xlu1 %v6659_v32, %s6555_s27  ;;  %v6174_v32 = vld [vmem:[%s7936_s4 + $0x8] sm:$0xff]  }
0x2723   :  { %5833 = vmatprep.subr.bf16.mxu0 %v6174_v32 }
0x2724   :  { %5834 = vmatpush3.bf16.msra.mxu0 %v6174_v32 }
0x2726   :  { %530 = vrot.lane.b32.xlu1 %v6700_v19, %s6555_s27  ;;  %v6175_v19 = vld [vmem:[%s7936_s4] sm:$0xff]  }
0x2727   :  { %5835 = vmatprep.subr.bf16.mxu0 %v6175_v19 }
0x2728   :  { %5836 = vmatpush3.bf16.msra.mxu0 %v6175_v19 }
0x2729   :  { %5885 = vmatprep.subr.bf16.mxu0 %v6551_v0 }
0x2790   :  { %v1657_v12 = vpop.permute.xlu1 %1656 }
0x2791   :  { %v6981_v9 = vadd.f32 %v1657_v12, %v1649_v60 }
0x2793   :  { %6348 = vtanh.f32 %v6981_v9 }
0x2794   :  { %v341_v61 = vpop.permute.xlu1 %340 }
0x2795   :  { %344 = vst.msk [vmem:[#allocation3] sm:$0xf] %vm343_vm2, %v341_v61 }
0x2798   :  { %v531_v13 = vpop.permute.xlu1 %530 }
0x2799   :  { %534 = vst.msk [vmem:[#allocation3 + $0x8] sm:$0xf] %vm343_vm2, %v531_v13 }
0x27a0   :  { %v6349_v55 = vpop.eup %6348 }
0x27a1   :  { %1662 = vrot.lane.b32.xlu0 %v6349_v55, %s6554_s26 }
0x27a5   :  { %435 = vrot.lane.b32.xlu0 %v6680_v57, %s6555_s27 }
0x27a9   :  { %625 = vrot.lane.b32.xlu0 %v6746_v49, %s6555_s27 }
0x2813   :  { %v1663_v15 = vpop.permute.xlu0 %1662 }
0x2814   :  { %v1665_v51 = vmul.f32 %v1663_v15, %v1647_v6 }
0x2816   :  { %v7006_v57 = vpack.c.bf16 %v1665_v51, %v1665_v51 }
0x2817   :  { %v436_v17 = vpop.permute.xlu0 %435 }
0x2818   :  { %439 = vst.msk [vmem:[#allocation3 + $0x4] sm:$0xf] %vm343_vm2, %v436_v17  ;;  %1681 = vrot.lane.b32.xlu1 %v7006_v57, %s6555_s27 }
0x281b   :  { %v626_v20 = vpop.permute.xlu0 %625 }
0x281c   :  { %629 = vst.msk [vmem:[#allocation3 + $0xc] sm:$0xf] %vm343_vm2, %v626_v20 }
0x281f   :  { %v6176_v22 = vld [vmem:[#allocation3] sm:$0xff]  }
0x2820   :  { %5837 = vmatprep.mubr.msk.bf16.mxu0 %vm115_vm1, %v6176_v22 }
0x2823   :  { %v6177_v49 = vld [vmem:[#allocation3 + $0x8] sm:$0xff]  }
0x2824   :  { %5838 = vmatmul.mubr.msk.bf16.vlgmr.msra.gmra.mxu0 %vm115_vm1, %v6177_v49 }
0x288a   :  { %v1682_v26 = vpop.permute.xlu1 %1681 }
0x288b   :  { %5830 = vmatmul.mubr.msk.bf16.vlgmr.msra.gmra.mxu1 %vm115_vm1, %v1682_v26 }
0x288c   :  { %5854 = vmatpush3.bf16.msra.mxu1 %v6180_v24  ;;  %5857 = vmatprep.mubr.msk.bf16.mxu1 %vm6552_vm0, %v6551_v0 }
0x288d   :  { %5855 = vmatprep.subr.bf16.mxu1 %v6551_v0 }
0x2890   :  { %5856 = vmatpush3.bf16.msra.mxu1 %v6181_v27 }
0x2891   :  { %5861 = vmatprep.subr.bf16.mxu1 %v6551_v0 }
0x2893   :  { %5858 = vmatmul.mubr.bf16.vlgmr.msra.gmra.mxu1 %v6553_v7 }
0x2894   :  { %5865 = vmatprep.mubr.msk.bf16.mxu1 %vm6552_vm0, %v6551_v0  ;;  %5862 = vmatpush3.bf16.msra.mxu1 %v6182_v2  ;;  %v6186_v2 = vld [vmem:[%s7937_s5 + $0x8] sm:$0xff]  }
0x2895   :  { %5863 = vmatprep.subr.bf16.mxu1 %v6551_v0 }
0x2898   :  { %5864 = vmatpush3.bf16.msra.mxu1 %v6183_v3  ;;  %v6187_v3 = vld [vmem:[%s7937_s5] sm:$0xff]  }
0x2899   :  { %5869 = vmatprep.subr.bf16.mxu1 %v6551_v0 }
0x28e4   :  { %v7030_v29 = vpop.f32.mrf.mxu0 }
0x28e6   :  { %v1907_v35 = vpop.f32.mrf.mxu0 }
0x28e7   :  { %v1908_v10 = vadd.f32 %v7037_v34, %v1907_v35 }
0x28e8   :  { %v7058_v60 = vpop.f32.mrf.mxu0 }
0x28ea   :  { %v1910_v12 = vpop.f32.mrf.mxu0 }
0x28eb   :  { %v1911_v61 = vadd.f32 %v7037_v34, %v1910_v12 }
0x294b   :  { %v1732_v30 = vpop.f32.mrf.mxu1 }
0x294c   :  { %v7032_v31 = vadd.f32 %v1732_v30, %v234_v28  ;;  %v6184_v28 = vld [vmem:[%s7937_s5 + $0x8] sm:$0xff]   ;;  %v6185_v30 = vld [vmem:[%s7937_s5] sm:$0xff]  }
0x294d   :  { %v5831_v33 = vpop.f32.mrf.mxu1 }
0x294f   :  { %v1735_v36 = vpop.f32.mrf.mxu1 }
0x2951   :  { %v5832_v37 = vpop.f32.mrf.mxu1 }
0x2953   :  { %v2037_v63 = vpop.f32.mrf.mxu1 }
0x2954   :  { %v2043_v38 = vadd.f32 %v2037_v63, %v1908_v10  ;;  %v1916_v63 = vadd.f32 %v7030_v29, %v7037_v34 }
0x2955   :  { %v5859_v58 = vpop.f32.mrf.mxu1 }
0x2956   :  { %6350 = vtanh.f32 %v2043_v38  ;;  %v2044_v40 = vmul.f32 0.5, %v2043_v38 }
0x2957   :  { %v2040_v62 = vpop.f32.mrf.mxu1 }
0x2958   :  { %6352 = vtanh.f32 %v2044_v40 }
0x2959   :  { %v5860_v39 = vpop.f32.mrf.mxu1 }
0x2963   :  { %v6351_v59 = vpop.eup %6350 }
0x2964   :  { %2051 = vrot.lane.b32.xlu0 %v6351_v59, %s6554_s26 }
0x2965   :  { %v6353_v41 = vpop.eup %6352 }
0x2966   :  { %v2046_v42 = vmul.f32 0.5, %v6353_v41 }
0x2968   :  { %v2047_v44 = vadd.f32 0.5, %v2046_v42 }
0x296a   :  { %v2049_v52 = vmul.f32 0.0, %v2047_v44 }
0x29d6   :  { %v2052_v46 = vpop.permute.xlu0 %2051 }
0x29d7   :  { %v2054_v48 = vmul.f32 %v2052_v46, %v2047_v44 }
0x29d9   :  { %2056 = vrot.lane.b32.xlu1 %v2054_v48, %s6555_s27 }
0x2a4b   :  { %v2057_v54 = vpop.permute.xlu1 %2056 }
0x2a4c   :  { %v2059_v1 = vadd.f32 %v2057_v54, %v2049_v52 }
0x2a4e   :  { %6354 = vtanh.f32 %v2059_v1 }
0x2a5b   :  { %v6355_v4 = vpop.eup %6354 }
0x2a5c   :  { %2062 = vrot.lane.b32.xlu0 %v6355_v4, %s6554_s26 }
0x2ace   :  { %v2063_v5 = vpop.permute.xlu0 %2062 }
0x2acf   :  { %v2065_v6 = vmul.f32 %v2063_v5, %v2047_v44 }
0x2ad1   :  { %v7051_v8 = vpack.c.bf16 %v2065_v6, %v2065_v6  ;;  %v1739_v6 = vmul.f32 0.5, %v7032_v31 }
0x2ad3   :  { %2079 = vrot.lane.b32.xlu1 %v7051_v8, %s6555_s27 }
0x2b45   :  { %v2080_v11 = vpop.permute.xlu1 %2079 }
0x2b46   :  { %5866 = vmatmul.mubr.msk.bf16.vlgmr.msra.gmra.mxu1 %vm115_vm1, %v2080_v11 }
0x2b47   :  { %5873 = vmatprep.mubr.msk.bf16.mxu1 %vm6552_vm0, %v6551_v0  ;;  %5870 = vmatpush3.bf16.msra.mxu1 %v6184_v28 }
0x2b48   :  { %5871 = vmatprep.subr.bf16.mxu1 %v6551_v0 }
0x2b4b   :  { %5872 = vmatpush3.bf16.msra.mxu1 %v6185_v30 }
0x2b4c   :  { %5877 = vmatprep.subr.bf16.mxu1 %v6551_v0 }
0x2c06   :  { %v2130_v13 = vpop.f32.mrf.mxu1 }
0x2c07   :  { %v2136_v32 = vadd.f32 %v2130_v13, %v1911_v61 }
0x2c08   :  { %v5867_v19 = vpop.f32.mrf.mxu1 }
0x2c09   :  { %6356 = vtanh.f32 %v2136_v32  ;;  %v2137_v15 = vmul.f32 0.5, %v2136_v32 }
0x2c0a   :  { %v2133_v55 = vpop.f32.mrf.mxu1 }
0x2c0b   :  { %6358 = vtanh.f32 %v2137_v15 }
0x2c0c   :  { %v5868_v14 = vpop.f32.mrf.mxu1 }
0x2c16   :  { %v6357_v56 = vpop.eup %6356 }
0x2c17   :  { %2144 = vrot.lane.b32.xlu0 %v6357_v56, %s6554_s26 }
0x2c18   :  { %v6359_v51 = vpop.eup %6358 }
0x2c19   :  { %v2139_v17 = vmul.f32 0.5, %v6359_v51 }
0x2c1b   :  { %v2140_v20 = vadd.f32 0.5, %v2139_v17 }
0x2c1d   :  { %v2142_v24 = vmul.f32 %v2140_v20, %v2059_v1 }
0x2c89   :  { %v2145_v22 = vpop.permute.xlu0 %2144 }
0x2c8a   :  { %v2147_v49 = vmul.f32 %v2145_v22, %v2140_v20 }
0x2c8c   :  { %2149 = vrot.lane.b32.xlu1 %v2147_v49, %s6555_s27 }
0x2cfe   :  { %v2150_v26 = vpop.permute.xlu1 %2149 }
0x2cff   :  { %v2152_v27 = vadd.f32 %v2150_v26, %v2142_v24 }
0x2d01   :  { %6360 = vtanh.f32 %v2152_v27 }
0x2d0e   :  { %v6361_v33 = vpop.eup %6360 }
0x2d0f   :  { %2155 = vrot.lane.b32.xlu0 %v6361_v33, %s6554_s26 }
0x2d81   :  { %v2156_v35 = vpop.permute.xlu0 %2155 }
0x2d82   :  { %v2158_v36 = vmul.f32 %v2156_v35, %v2140_v20 }
0x2d84   :  { %v7072_v37 = vpack.c.bf16 %v2158_v36, %v2158_v36 }
0x2d86   :  { %2173 = vrot.lane.b32.xlu1 %v7072_v37, %s6555_s27 }
0x2df8   :  { %v2174_v10 = vpop.permute.xlu1 %2173 }
0x2df9   :  { %5874 = vmatmul.mubr.msk.bf16.vlgmr.msra.gmra.mxu1 %vm115_vm1, %v2174_v10 }
0x2dfa   :  { %5881 = vmatprep.mubr.msk.bf16.mxu1 %vm6552_vm0, %v6551_v0  ;;  %5878 = vmatpush3.bf16.msra.mxu1 %v6186_v2 }
0x2dfb   :  { %5879 = vmatprep.subr.bf16.mxu1 %v6551_v0 }
0x2dfe   :  { %5880 = vmatpush3.bf16.msra.mxu1 %v6187_v3 }
0x2dff   :  { %5893 = vmatprep.subr.bf16.mxu1 %v6551_v0 }
0x2eb9   :  { %v2224_v38 = vpop.f32.mrf.mxu1 }
0x2eba   :  { %v2230_v58 = vadd.f32 %v2224_v38, %v1916_v63 }
0x2ebb   :  { %v5875_v62 = vpop.f32.mrf.mxu1 }
0x2ebc   :  { %6362 = vtanh.f32 %v2230_v58  ;;  %v2231_v41 = vmul.f32 0.5, %v2230_v58 }
0x2ebd   :  { %v2227_v39 = vpop.f32.mrf.mxu1 }
0x2ebe   :  { %6364 = vtanh.f32 %v2231_v41 }
0x2ebf   :  { %v5876_v59 = vpop.f32.mrf.mxu1 }
0x2ec0   :  { %v6194_v59 = vld [vmem:[%s7937_s5 + $0x8] sm:$0xff]  }
0x2ec1   :  { %5886 = vmatpush3.bf16.msra.mxu0 %v6194_v59 }
0x2ec2   :  { %5887 = vmatprep.subr.bf16.mxu0 %v6551_v0 }
0x2ec9   :  { %v6363_v40 = vpop.eup %6362 }
0x2eca   :  { %2238 = vrot.lane.b32.xlu0 %v6363_v40, %s6554_s26 }
0x2ecb   :  { %v6365_v42 = vpop.eup %6364 }
0x2ecc   :  { %v2233_v44 = vmul.f32 0.5, %v6365_v42 }
0x2ece   :  { %v2234_v46 = vadd.f32 0.5, %v2233_v44 }
0x2ed0   :  { %v2236_v54 = vmul.f32 %v2234_v46, %v2152_v27 }
0x2f3c   :  { %v2239_v48 = vpop.permute.xlu0 %2238 }
0x2f3d   :  { %v2241_v52 = vmul.f32 %v2239_v48, %v2234_v46 }
0x2f3f   :  { %2243 = vrot.lane.b32.xlu1 %v2241_v52, %s6555_s27 }
0x2fb1   :  { %v2244_v29 = vpop.permute.xlu1 %2243 }
0x2fb2   :  { %v7083_v1 = vadd.f32 %v2244_v29, %v2236_v54 }
0x2fb4   :  { %6366 = vtanh.f32 %v7083_v1 }
0x2fb5   :  { %6368 = vtanh.f32 %v7032_v31 }
0x2fb6   :  { %6370 = vtanh.f32 %v1739_v6 }
0x2fc1   :  { %v6367_v4 = vpop.eup %6366 }
0x2fc2   :  { %2249 = vrot.lane.b32.xlu0 %v6367_v4, %s6554_s26  ;;  %v6369_v5 = vpop.eup %6368 }
0x2fc3   :  { %v6371_v11 = vpop.eup %6370 }
0x2fc4   :  { %v1741_v12 = vmul.f32 0.5, %v6371_v11 }
0x2fc6   :  { %1746 = vrot.lane.b32.xlu0 %v6369_v5, %s6554_s26  ;;  %v1742_v19 = vadd.f32 0.5, %v1741_v12 }
0x2fc8   :  { %v1744_v31 = vmul.f32 %v1742_v19, %v6981_v9 }
0x3034   :  { %v2250_v61 = vpop.permute.xlu0 %2249 }
0x3035   :  { %v2252_v13 = vmul.f32 %v2250_v61, %v2234_v46 }
0x3037   :  { %v7098_v32 = vpack.c.bf16 %v2252_v13, %v2252_v13 }
0x3038   :  { %v1747_v55 = vpop.permute.xlu0 %1746 }
0x3039   :  { %v1749_v14 = vmul.f32 %v1747_v55, %v1742_v19  ;;  %2267 = vrot.lane.b32.xlu1 %v7098_v32, %s6555_s27 }
0x303b   :  { %1751 = vrot.lane.b32.xlu0 %v1749_v14, %s6555_s27 }
0x30ab   :  { %v2268_v56 = vpop.permute.xlu1 %2267 }
0x30ac   :  { %5882 = vmatmul.mubr.msk.bf16.vlgmr.msra.gmra.mxu1 %vm115_vm1, %v2268_v56 }
0x30ad   :  { %v1752_v15 = vpop.permute.xlu0 %1751  ;;  %5897 = vmatprep.mubr.msk.bf16.mxu1 %vm6552_vm0, %v6551_v0 }
0x30ae   :  { %v1754_v51 = vadd.f32 %v1752_v15, %v1744_v31 }
0x30b0   :  { %6372 = vtanh.f32 %v1754_v51 }
0x30bd   :  { %v6373_v17 = vpop.eup %6372 }
0x30be   :  { %1757 = vrot.lane.b32.xlu0 %v6373_v17, %s6554_s26 }
0x30c2   :  { %720 = vrot.lane.b32.xlu0 %v6785_v25, %s6555_s27 }
0x30c6   :  { %910 = vrot.lane.b32.xlu0 %v6824_v23, %s6555_s27 }
0x30ca   :  { %1100 = vrot.lane.b32.xlu0 %v6864_v21, %s6555_s27 }
0x30ce   :  { %1290 = vrot.lane.b32.xlu0 %v6904_v18, %s6555_s27 }
0x30d2   :  { %1480 = vrot.lane.b32.xlu0 %v6944_v16, %s6555_s27 }
0x30d6   :  { %1670 = vrot.lane.b32.xlu0 %v7006_v57, %s6555_s27  ;;  %v1919_v57 = vadd.f32 %v7058_v60, %v7037_v34 }
0x3130   :  { %v1758_v9 = vpop.permute.xlu0 %1757 }
0x3131   :  { %v1760_v39 = vmul.f32 %v1758_v9, %v1742_v19 }
0x3133   :  { %v5478_v40 = vpack.c.bf16 %v1760_v39, %v1760_v39 }
0x3134   :  { %v721_v20 = vpop.permute.xlu0 %720 }
0x3135   :  { %724 = vst.msk [vmem:[#allocation3 + $0x10] sm:$0xf] %vm343_vm2, %v721_v20 }
0x3138   :  { %v911_v25 = vpop.permute.xlu0 %910 }
0x3139   :  { %914 = vst.msk [vmem:[#allocation3 + $0x18] sm:$0xf] %vm343_vm2, %v911_v25 }
0x313c   :  { %v1101_v23 = vpop.permute.xlu0 %1100 }
0x313d   :  { %1104 = vst.msk [vmem:[#allocation3 + $0x20] sm:$0xf] %vm343_vm2, %v1101_v23 }
0x3140   :  { %v1291_v21 = vpop.permute.xlu0 %1290 }
0x3141   :  { %1294 = vst.msk [vmem:[#allocation3 + $0x28] sm:$0xf] %vm343_vm2, %v1291_v21 }
0x3144   :  { %v1481_v18 = vpop.permute.xlu0 %1480 }
0x3145   :  { %1484 = vst.msk [vmem:[#allocation3 + $0x30] sm:$0xf] %vm343_vm2, %v1481_v18 }
0x3148   :  { %v1671_v16 = vpop.permute.xlu0 %1670 }
0x3149   :  { %1674 = vst.msk [vmem:[#allocation3 + $0x38] sm:$0xf] %vm343_vm2, %v1671_v16 }
0x316c   :  { %v2318_v22 = vpop.f32.mrf.mxu1 }
0x316d   :  { %v2324_v49 = vadd.f32 %v2318_v22, %v1919_v57 }
0x316e   :  { %v5883_v24 = vpop.f32.mrf.mxu1 }
0x316f   :  { %6374 = vtanh.f32 %v2324_v49  ;;  %v2325_v30 = vmul.f32 0.5, %v2324_v49 }
0x3170   :  { %v2321_v26 = vpop.f32.mrf.mxu1 }
0x3171   :  { %6376 = vtanh.f32 %v2325_v30  ;;  %v6196_v30 = vld [vmem:[%s7937_s5 + $0x8] sm:$0xff]  }
0x3172   :  { %v5884_v27 = vpop.f32.mrf.mxu1  ;;  %5894 = vmatpush3.bf16.msra.mxu1 %v6196_v30 }
0x3173   :  { %5895 = vmatprep.subr.bf16.mxu1 %v6551_v0 }
0x317c   :  { %v6375_v28 = vpop.eup %6374 }
0x317d   :  { %2332 = vrot.lane.b32.xlu1 %v6375_v28, %s6554_s26 }
0x317e   :  { %v6377_v33 = vpop.eup %6376 }
0x317f   :  { %v2327_v35 = vmul.f32 0.5, %v6377_v33  ;;  %v6197_v33 = vld [vmem:[%s7937_s5] sm:$0xff]  }
0x3180   :  { %5896 = vmatpush3.bf16.msra.mxu1 %v6197_v33 }
0x3181   :  { %v2328_v36 = vadd.f32 0.5, %v2327_v35  ;;  %5909 = vmatprep.subr.bf16.mxu1 %v6551_v0 }
0x3183   :  { %v2330_v60 = vmul.f32 %v2328_v36, %v7083_v1 }
0x31ef   :  { %v2333_v10 = vpop.permute.xlu1 %2332 }
0x31f0   :  { %v2335_v63 = vmul.f32 %v2333_v10, %v2328_v36 }
0x31f2   :  { %2337 = vrot.lane.b32.xlu1 %v2335_v63, %s6555_s27 }
0x3264   :  { %v2338_v38 = vpop.permute.xlu1 %2337 }
0x3265   :  { %v7131_v58 = vadd.f32 %v2338_v38, %v2330_v60 }
0x3267   :  { %6378 = vtanh.f32 %v7131_v58 }
0x3274   :  { %v6379_v62 = vpop.eup %6378 }
0x3275   :  { %2343 = vrot.lane.b32.xlu1 %v6379_v62, %s6554_s26 }
0x3279   :  { %815 = vrot.lane.b32.xlu1 %v6804_v50, %s6555_s27  ;;  %v6195_v50 = vld [vmem:[%s7937_s5] sm:$0xff]  }
0x327a   :  { %5888 = vmatpush3.bf16.msra.mxu0 %v6195_v50 }
0x327b   :  { %5901 = vmatprep.subr.bf16.mxu0 %v6551_v0 }
0x327d   :  { %1005 = vrot.lane.b32.xlu1 %v6844_v47, %s6555_s27 }
0x3281   :  { %1195 = vrot.lane.b32.xlu1 %v6884_v45, %s6555_s27 }
0x3285   :  { %1385 = vrot.lane.b32.xlu1 %v6924_v43, %s6555_s27 }
0x3289   :  { %1575 = vrot.lane.b32.xlu1 %v6963_v53, %s6555_s27 }
0x328d   :  { %1765 = vrot.lane.b32.xlu1 %v5478_v40, %s6555_s27 }
0x32e7   :  { %v2344_v47 = vpop.permute.xlu1 %2343 }
0x32e8   :  { %v2346_v45 = vmul.f32 %v2344_v47, %v2328_v36 }
0x32ea   :  { %v7154_v43 = vpack.c.bf16 %v2346_v45, %v2346_v45 }
0x32eb   :  { %v816_v53 = vpop.permute.xlu1 %815 }
0x32ec   :  { %819 = vst.msk [vmem:[#allocation3 + $0x14] sm:$0xf] %vm343_vm2, %v816_v53  ;;  %2361 = vrot.lane.b32.xlu0 %v7154_v43, %s6555_s27 }
0x32ef   :  { %v1006_v41 = vpop.permute.xlu1 %1005 }
0x32f0   :  { %1009 = vst.msk [vmem:[#allocation3 + $0x1c] sm:$0xf] %vm343_vm2, %v1006_v41 }
0x32f3   :  { %v1196_v42 = vpop.permute.xlu1 %1195  ;;  %v6188_v44 = vld [vmem:[#allocation3 + $0x10] sm:$0xff]  }
0x32f4   :  { %1199 = vst.msk [vmem:[#allocation3 + $0x24] sm:$0xf] %vm343_vm2, %v1196_v42  ;;  %5841 = vmatprep.mubr.msk.bf16.mxu0 %vm115_vm1, %v6188_v44 }
0x32f7   :  { %v1386_v46 = vpop.permute.xlu1 %1385  ;;  %v6189_v48 = vld [vmem:[#allocation3 + $0x18] sm:$0xff]  }
0x32f8   :  { %1389 = vst.msk [vmem:[#allocation3 + $0x2c] sm:$0xf] %vm343_vm2, %v1386_v46  ;;  %5842 = vmatmul.mubr.msk.bf16.gmra.mxu0 %vm115_vm1, %v6189_v48 }
0x32fb   :  { %v1576_v52 = vpop.permute.xlu1 %1575  ;;  %v6190_v54 = vld [vmem:[#allocation3 + $0x20] sm:$0xff]  }
0x32fc   :  { %1579 = vst.msk [vmem:[#allocation3 + $0x34] sm:$0xf] %vm343_vm2, %v1576_v52  ;;  %5845 = vmatprep.mubr.msk.bf16.mxu0 %vm115_vm1, %v6190_v54  ;;  %v6198_v54 = vld [vmem:[%s7937_s5 + $0x8] sm:$0xff]  }
0x32ff   :  { %v1766_v29 = vpop.permute.xlu1 %1765  ;;  %v6191_v1 = vld [vmem:[#allocation3 + $0x28] sm:$0xff]  }
0x3300   :  { %1769 = vst.msk [vmem:[#allocation3 + $0x3c] sm:$0xf] %vm343_vm2, %v1766_v29  ;;  %5846 = vmatmul.mubr.msk.bf16.gmra.mxu0 %vm115_vm1, %v6191_v1  ;;  %v6199_v29 = vld [vmem:[%s7937_s5] sm:$0xff]  }
0x3303   :  { %v6192_v2 = vld [vmem:[#allocation3 + $0x30] sm:$0xff]  }
0x3304   :  { %5849 = vmatprep.mubr.msk.bf16.mxu0 %vm115_vm1, %v6192_v2 }
0x3307   :  { %v6193_v3 = vld [vmem:[#allocation3 + $0x38] sm:$0xff]  }
0x3308   :  { %5850 = vmatmul.mubr.msk.bf16.gmra.mxu0 %vm115_vm1, %v6193_v3 }
0x3309   :  { %5889 = vmatprep.mubr.msk.bf16.mxu0 %vm6552_vm0, %v6551_v0 }
0x335e   :  { %v2362_v4 = vpop.permute.xlu0 %2361 }
0x335f   :  { %5890 = vmatmul.mubr.msk.bf16.vlgmr.msra.gmra.mxu0 %vm115_vm1, %v2362_v4 }
0x3360   :  { %5905 = vmatprep.mubr.msk.bf16.mxu0 %vm6552_vm0, %v6551_v0  ;;  %5902 = vmatpush3.bf16.msra.mxu0 %v6198_v54 }
0x3361   :  { %5903 = vmatprep.subr.bf16.mxu0 %v6551_v0 }
0x3364   :  { %5904 = vmatpush3.bf16.msra.mxu0 %v6199_v29 }
0x3365   :  { %5917 = vmatprep.subr.bf16.mxu0 %v6551_v0 }
0x33b8   :  { %v7175_v5 = vpop.f32.mrf.mxu0 }
0x33ba   :  { %v1923_v6 = vpop.f32.mrf.mxu0 }
0x33bb   :  { %v1924_v51 = vadd.f32 %v7037_v34, %v1923_v6 }
0x33bc   :  { %v7177_v11 = vpop.f32.mrf.mxu0 }
0x33be   :  { %v1926_v12 = vpop.f32.mrf.mxu0 }
0x33bf   :  { %v1927_v38 = vadd.f32 %v7037_v34, %v1926_v12  ;;  %v1932_v12 = vadd.f32 %v7175_v5, %v7037_v34 }
0x33c0   :  { %v7179_v61 = vpop.f32.mrf.mxu0 }
0x33c2   :  { %v7181_v13 = vpop.f32.mrf.mxu0 }
0x33c4   :  { %v7183_v19 = vpop.f32.mrf.mxu0 }
0x33c6   :  { %v7185_v55 = vpop.f32.mrf.mxu0 }
0x33c8   :  { %v7187_v14 = vpop.f32.mrf.mxu0 }
0x33ca   :  { %v7189_v56 = vpop.f32.mrf.mxu0 }
0x33cc   :  { %v7191_v31 = vpop.f32.mrf.mxu0 }
0x33ce   :  { %v7193_v15 = vpop.f32.mrf.mxu0 }
0x341f   :  { %v2412_v17 = vpop.f32.mrf.mxu0 }
0x3420   :  { %v2418_v9 = vadd.f32 %v2412_v17, %v1924_v51 }
0x3421   :  { %v5891_v20 = vpop.f32.mrf.mxu0 }
0x3422   :  { %6380 = vtanh.f32 %v2418_v9  ;;  %v2419_v18 = vmul.f32 0.5, %v2418_v9 }
0x3423   :  { %v2415_v25 = vpop.f32.mrf.mxu0 }
0x3424   :  { %6382 = vtanh.f32 %v2419_v18 }
0x3425   :  { %v5892_v23 = vpop.f32.mrf.mxu0 }
0x342f   :  { %v6381_v21 = vpop.eup %6380 }
0x3430   :  { %2426 = vrot.lane.b32.xlu1 %v6381_v21, %s6554_s26 }
0x3431   :  { %v6383_v16 = vpop.eup %6382 }
0x3432   :  { %v2421_v57 = vmul.f32 0.5, %v6383_v16 }
0x3434   :  { %v2422_v22 = vadd.f32 0.5, %v2421_v57 }
0x3436   :  { %v2424_v26 = vmul.f32 %v2422_v22, %v7131_v58 }
0x34a2   :  { %v2427_v49 = vpop.permute.xlu1 %2426 }
0x34a3   :  { %v2429_v24 = vmul.f32 %v2427_v49, %v2422_v22 }
0x34a5   :  { %2431 = vrot.lane.b32.xlu0 %v2429_v24, %s6555_s27 }
0x3517   :  { %v2432_v27 = vpop.permute.xlu0 %2431 }
0x3518   :  { %v2434_v28 = vadd.f32 %v2432_v27, %v2424_v26  ;;  %v6200_v27 = vld [vmem:[%s7937_s5 + $0x8] sm:$0xff]  }
0x351a   :  { %6384 = vtanh.f32 %v2434_v28 }
0x3527   :  { %v6385_v35 = vpop.eup %6384 }
0x3528   :  { %2437 = vrot.lane.b32.xlu1 %v6385_v35, %s6554_s26 }
0x359a   :  { %v2438_v36 = vpop.permute.xlu1 %2437 }
0x359b   :  { %v2440_v10 = vmul.f32 %v2438_v36, %v2422_v22 }
0x359d   :  { %v7208_v63 = vpack.c.bf16 %v2440_v10, %v2440_v10 }
0x359f   :  { %2455 = vrot.lane.b32.xlu0 %v7208_v63, %s6555_s27 }
0x3611   :  { %v2456_v60 = vpop.permute.xlu0 %2455 }
0x3612   :  { %5898 = vmatmul.mubr.msk.bf16.vlgmr.msra.gmra.mxu1 %vm115_vm1, %v2456_v60  ;;  %v1935_v60 = vadd.f32 %v7177_v11, %v7037_v34 }
0x3613   :  { %5913 = vmatprep.mubr.msk.bf16.mxu1 %vm6552_vm0, %v6551_v0  ;;  %5910 = vmatpush3.bf16.msra.mxu1 %v6200_v27 }
0x3614   :  { %5911 = vmatprep.subr.bf16.mxu1 %v6551_v0 }
0x36d2   :  { %v2506_v58 = vpop.f32.mrf.mxu1 }
0x36d3   :  { %v2512_v62 = vadd.f32 %v2506_v58, %v1927_v38 }
0x36d4   :  { %v5899_v39 = vpop.f32.mrf.mxu1 }
0x36d5   :  { %6386 = vtanh.f32 %v2512_v62  ;;  %v2513_v47 = vmul.f32 0.5, %v2512_v62 }
0x36d6   :  { %v2509_v59 = vpop.f32.mrf.mxu1 }
0x36d7   :  { %6388 = vtanh.f32 %v2513_v47 }
0x36d8   :  { %v5900_v40 = vpop.f32.mrf.mxu1 }
0x36e2   :  { %v6387_v50 = vpop.eup %6386 }
0x36e3   :  { %2520 = vrot.lane.b32.xlu1 %v6387_v50, %s6554_s26 }
0x36e4   :  { %v6389_v45 = vpop.eup %6388 }
0x36e5   :  { %v2515_v53 = vmul.f32 0.5, %v6389_v45 }
0x36e7   :  { %v2516_v41 = vadd.f32 0.5, %v2515_v53 }
0x36e9   :  { %v2518_v46 = vmul.f32 %v2516_v41, %v2434_v28  ;;  %v6201_v28 = vld [vmem:[%s7937_s5] sm:$0xff]  }
0x36ea   :  { %5912 = vmatpush3.bf16.msra.mxu1 %v6201_v28 }
0x36eb   :  { %5925 = vmatprep.subr.bf16.mxu1 %v6551_v0 }
0x3755   :  { %v2521_v42 = vpop.permute.xlu1 %2520 }
0x3756   :  { %v2523_v44 = vmul.f32 %v2521_v42, %v2516_v41 }
0x3758   :  { %2525 = vrot.lane.b32.xlu0 %v2523_v44, %s6555_s27 }
0x37ca   :  { %v2526_v48 = vpop.permute.xlu0 %2525 }
0x37cb   :  { %v2528_v52 = vadd.f32 %v2526_v48, %v2518_v46  ;;  %v6202_v48 = vld [vmem:[%s7937_s5 + $0x8] sm:$0xff]  }
0x37cd   :  { %6390 = vtanh.f32 %v2528_v52 }
0x37da   :  { %v6391_v1 = vpop.eup %6390 }
0x37db   :  { %2531 = vrot.lane.b32.xlu1 %v6391_v1, %s6554_s26 }
0x384d   :  { %v2532_v2 = vpop.permute.xlu1 %2531 }
0x384e   :  { %v2534_v3 = vmul.f32 %v2532_v2, %v2516_v41 }
0x3850   :  { %v7227_v4 = vpack.c.bf16 %v2534_v3, %v2534_v3 }
0x3852   :  { %2549 = vrot.lane.b32.xlu0 %v7227_v4, %s6555_s27 }
0x38c4   :  { %v2550_v6 = vpop.permute.xlu0 %2549 }
0x38c5   :  { %5906 = vmatmul.mubr.msk.bf16.vlgmr.msra.gmra.mxu0 %vm115_vm1, %v2550_v6  ;;  %v1940_v6 = vadd.f32 %v7037_v34, %v7181_v13 }
0x38c6   :  { %5921 = vmatprep.mubr.msk.bf16.mxu0 %vm6552_vm0, %v6551_v0  ;;  %5918 = vmatpush3.bf16.msra.mxu0 %v6202_v48 }
0x38c7   :  { %5919 = vmatprep.subr.bf16.mxu0 %v6551_v0 }
0x3985   :  { %v2600_v51 = vpop.f32.mrf.mxu0 }
0x3986   :  { %v2606_v17 = vadd.f32 %v2600_v51, %v1932_v12 }
0x3987   :  { %v5907_v9 = vpop.f32.mrf.mxu0 }
0x3988   :  { %6392 = vtanh.f32 %v2606_v17  ;;  %v2607_v21 = vmul.f32 0.5, %v2606_v17 }
0x3989   :  { %v2603_v20 = vpop.f32.mrf.mxu0 }
0x398a   :  { %6394 = vtanh.f32 %v2607_v21 }
0x398b   :  { %v5908_v25 = vpop.f32.mrf.mxu0 }
0x3995   :  { %v6393_v23 = vpop.eup %6392 }
0x3996   :  { %2614 = vrot.lane.b32.xlu1 %v6393_v23, %s6554_s26 }
0x3997   :  { %v6395_v18 = vpop.eup %6394 }
0x3998   :  { %v2609_v16 = vmul.f32 0.5, %v6395_v18 }
0x399a   :  { %v2610_v57 = vadd.f32 0.5, %v2609_v16 }
0x399c   :  { %v2612_v24 = vmul.f32 %v2610_v57, %v2528_v52  ;;  %v6203_v52 = vld [vmem:[%s7937_s5] sm:$0xff]  }
0x399d   :  { %5920 = vmatpush3.bf16.msra.mxu0 %v6203_v52 }
0x399e   :  { %5933 = vmatprep.subr.bf16.mxu0 %v6551_v0 }
0x3a08   :  { %v2615_v22 = vpop.permute.xlu1 %2614 }
0x3a09   :  { %v2617_v49 = vmul.f32 %v2615_v22, %v2610_v57 }
0x3a0b   :  { %2619 = vrot.lane.b32.xlu0 %v2617_v49, %s6555_s27 }
0x3a7d   :  { %v2620_v5 = vpop.permute.xlu0 %2619 }
0x3a7e   :  { %v2622_v26 = vadd.f32 %v2620_v5, %v2612_v24  ;;  %v6204_v5 = vld [vmem:[%s7937_s5 + $0x8] sm:$0xff]  }
0x3a80   :  { %6396 = vtanh.f32 %v2622_v26 }
0x3a8d   :  { %v6397_v30 = vpop.eup %6396 }
0x3a8e   :  { %2625 = vrot.lane.b32.xlu1 %v6397_v30, %s6554_s26 }
0x3b00   :  { %v2626_v33 = vpop.permute.xlu1 %2625 }
0x3b01   :  { %v2628_v35 = vmul.f32 %v2626_v33, %v2610_v57 }
0x3b03   :  { %v7247_v36 = vpack.c.bf16 %v2628_v35, %v2628_v35 }
0x3b05   :  { %2643 = vrot.lane.b32.xlu0 %v7247_v36, %s6555_s27 }
0x3b77   :  { %v2644_v10 = vpop.permute.xlu0 %2643 }
0x3b78   :  { %5914 = vmatmul.mubr.msk.bf16.vlgmr.msra.gmra.mxu1 %vm115_vm1, %v2644_v10  ;;  %v1943_v10 = vadd.f32 %v7037_v34, %v7185_v55 }
0x3b79   :  { %5929 = vmatprep.mubr.msk.bf16.mxu1 %vm6552_vm0, %v6551_v0  ;;  %5926 = vmatpush3.bf16.msra.mxu1 %v6204_v5 }
0x3b7a   :  { %5927 = vmatprep.subr.bf16.mxu1 %v6551_v0 }
0x3c38   :  { %v2694_v38 = vpop.f32.mrf.mxu1 }
0x3c39   :  { %v2700_v58 = vadd.f32 %v2694_v38, %v1935_v60 }
0x3c3a   :  { %v5915_v62 = vpop.f32.mrf.mxu1 }
0x3c3b   :  { %6398 = vtanh.f32 %v2700_v58  ;;  %v2701_v50 = vmul.f32 0.5, %v2700_v58 }
0x3c3c   :  { %v2697_v39 = vpop.f32.mrf.mxu1 }
0x3c3d   :  { %6400 = vtanh.f32 %v2701_v50 }
0x3c3e   :  { %v5916_v59 = vpop.f32.mrf.mxu1 }
0x3c48   :  { %v6399_v40 = vpop.eup %6398 }
0x3c49   :  { %2708 = vrot.lane.b32.xlu1 %v6399_v40, %s6554_s26 }
0x3c4a   :  { %v6401_v47 = vpop.eup %6400 }
0x3c4b   :  { %v2703_v45 = vmul.f32 0.5, %v6401_v47 }
0x3c4d   :  { %v2704_v53 = vadd.f32 0.5, %v2703_v45 }
0x3c4f   :  { %v2706_v44 = vmul.f32 %v2704_v53, %v2622_v26  ;;  %v6205_v26 = vld [vmem:[%s7937_s5] sm:$0xff]  }
0x3c50   :  { %5928 = vmatpush3.bf16.msra.mxu1 %v6205_v26 }
0x3c51   :  { %5941 = vmatprep.subr.bf16.mxu1 %v6551_v0 }
0x3cbb   :  { %v2709_v41 = vpop.permute.xlu1 %2708 }
0x3cbc   :  { %v2711_v42 = vmul.f32 %v2709_v41, %v2704_v53 }
0x3cbe   :  { %2713 = vrot.lane.b32.xlu0 %v2711_v42, %s6555_s27 }
0x3d30   :  { %v2714_v11 = vpop.permute.xlu0 %2713 }
0x3d31   :  { %v2716_v46 = vadd.f32 %v2714_v11, %v2706_v44  ;;  %v6206_v11 = vld [vmem:[%s7937_s5 + $0x8] sm:$0xff]  }
0x3d33   :  { %6402 = vtanh.f32 %v2716_v46 }
0x3d40   :  { %v6403_v54 = vpop.eup %6402 }
0x3d41   :  { %2719 = vrot.lane.b32.xlu1 %v6403_v54, %s6554_s26 }
0x3db3   :  { %v2720_v29 = vpop.permute.xlu1 %2719 }
0x3db4   :  { %v2722_v1 = vmul.f32 %v2720_v29, %v2704_v53 }
0x3db6   :  { %v7267_v2 = vpack.c.bf16 %v2722_v1, %v2722_v1 }
0x3db8   :  { %2737 = vrot.lane.b32.xlu0 %v7267_v2, %s6555_s27 }
0x3e2a   :  { %v2738_v3 = vpop.permute.xlu0 %2737 }
0x3e2b   :  { %5922 = vmatmul.mubr.msk.bf16.vlgmr.msra.gmra.mxu0 %vm115_vm1, %v2738_v3  ;;  %v1948_v3 = vadd.f32 %v7179_v61, %v7037_v34 }
0x3e2c   :  { %5937 = vmatprep.mubr.msk.bf16.mxu0 %vm6552_vm0, %v6551_v0  ;;  %5934 = vmatpush3.bf16.msra.mxu0 %v6206_v11 }
0x3e2d   :  { %5935 = vmatprep.subr.bf16.mxu0 %v6551_v0 }
0x3eeb   :  { %v2788_v12 = vpop.f32.mrf.mxu0 }
0x3eec   :  { %v2794_v51 = vadd.f32 %v2788_v12, %v1940_v6 }
0x3eed   :  { %v5923_v17 = vpop.f32.mrf.mxu0 }
0x3eee   :  { %6404 = vtanh.f32 %v2794_v51  ;;  %v2795_v23 = vmul.f32 0.5, %v2794_v51 }
0x3eef   :  { %v2791_v9 = vpop.f32.mrf.mxu0 }
0x3ef0   :  { %6406 = vtanh.f32 %v2795_v23 }
0x3ef1   :  { %v5924_v20 = vpop.f32.mrf.mxu0 }
0x3efb   :  { %v6405_v25 = vpop.eup %6404 }
0x3efc   :  { %2802 = vrot.lane.b32.xlu1 %v6405_v25, %s6554_s26 }
0x3efd   :  { %v6407_v21 = vpop.eup %6406 }
0x3efe   :  { %v2797_v18 = vmul.f32 0.5, %v6407_v21 }
0x3f00   :  { %v2798_v16 = vadd.f32 0.5, %v2797_v18 }
0x3f02   :  { %v2800_v49 = vmul.f32 %v2798_v16, %v2716_v46  ;;  %v6207_v46 = vld [vmem:[%s7937_s5] sm:$0xff]  }
0x3f03   :  { %5936 = vmatpush3.bf16.msra.mxu0 %v6207_v46 }
0x3f04   :  { %5949 = vmatprep.subr.bf16.mxu0 %v6551_v0 }
0x3f6e   :  { %v2803_v57 = vpop.permute.xlu1 %2802 }
0x3f6f   :  { %v2805_v22 = vmul.f32 %v2803_v57, %v2798_v16 }
0x3f71   :  { %2807 = vrot.lane.b32.xlu0 %v2805_v22, %s6555_s27 }
0x3fe3   :  { %v2808_v13 = vpop.permute.xlu0 %2807 }
0x3fe4   :  { %v2810_v24 = vadd.f32 %v2808_v13, %v2800_v49  ;;  %v6208_v13 = vld [vmem:[%s7937_s5 + $0x8] sm:$0xff]  }
0x3fe6   :  { %6408 = vtanh.f32 %v2810_v24 }
0x3ff3   :  { %v6409_v27 = vpop.eup %6408 }
0x3ff4   :  { %2813 = vrot.lane.b32.xlu1 %v6409_v27, %s6554_s26 }
0x4066   :  { %v2814_v28 = vpop.permute.xlu1 %2813 }
0x4067   :  { %v2816_v30 = vmul.f32 %v2814_v28, %v2798_v16 }
0x4069   :  { %v7287_v33 = vpack.c.bf16 %v2816_v30, %v2816_v30 }
0x406b   :  { %2831 = vrot.lane.b32.xlu0 %v7287_v33, %s6555_s27 }
0x40dd   :  { %v2832_v35 = vpop.permute.xlu0 %2831 }
0x40de   :  { %5930 = vmatmul.mubr.msk.bf16.vlgmr.msra.gmra.mxu1 %vm115_vm1, %v2832_v35  ;;  %v1951_v35 = vadd.f32 %v7183_v19, %v7037_v34 }
0x40df   :  { %5945 = vmatprep.mubr.msk.bf16.mxu1 %vm6552_vm0, %v6551_v0  ;;  %5942 = vmatpush3.bf16.msra.mxu1 %v6208_v13 }
0x40e0   :  { %5943 = vmatprep.subr.bf16.mxu1 %v6551_v0 }
0x419e   :  { %v2882_v60 = vpop.f32.mrf.mxu1 }
0x419f   :  { %v2888_v38 = vadd.f32 %v2882_v60, %v1943_v10 }
0x41a0   :  { %v5931_v58 = vpop.f32.mrf.mxu1 }
0x41a1   :  { %6410 = vtanh.f32 %v2888_v38  ;;  %v2889_v40 = vmul.f32 0.5, %v2888_v38 }
0x41a2   :  { %v2885_v62 = vpop.f32.mrf.mxu1 }
0x41a3   :  { %6412 = vtanh.f32 %v2889_v40 }
0x41a4   :  { %v5932_v39 = vpop.f32.mrf.mxu1 }
0x41ae   :  { %v6411_v59 = vpop.eup %6410 }
0x41af   :  { %2896 = vrot.lane.b32.xlu1 %v6411_v59, %s6554_s26 }
0x41b0   :  { %v6413_v50 = vpop.eup %6412 }
0x41b1   :  { %v2891_v47 = vmul.f32 0.5, %v6413_v50 }
0x41b3   :  { %v2892_v45 = vadd.f32 0.5, %v2891_v47 }
0x41b5   :  { %v2894_v42 = vmul.f32 %v2892_v45, %v2810_v24  ;;  %v6209_v24 = vld [vmem:[%s7937_s5] sm:$0xff]  }
0x41b6   :  { %5944 = vmatpush3.bf16.msra.mxu1 %v6209_v24 }
0x41b7   :  { %5957 = vmatprep.subr.bf16.mxu1 %v6551_v0 }
0x4221   :  { %v2897_v53 = vpop.permute.xlu1 %2896 }
0x4222   :  { %v2899_v41 = vmul.f32 %v2897_v53, %v2892_v45 }
0x4224   :  { %2901 = vrot.lane.b32.xlu0 %v2899_v41, %s6555_s27 }
0x4296   :  { %v2902_v55 = vpop.permute.xlu0 %2901 }
0x4297   :  { %v2904_v44 = vadd.f32 %v2902_v55, %v2894_v42  ;;  %v6210_v42 = vld [vmem:[%s7937_s5 + $0x8] sm:$0xff]   ;;  %v6211_v55 = vld [vmem:[%s7937_s5] sm:$0xff]  }
0x4299   :  { %6414 = vtanh.f32 %v2904_v44 }
0x42a6   :  { %v6415_v48 = vpop.eup %6414 }
0x42a7   :  { %2907 = vrot.lane.b32.xlu1 %v6415_v48, %s6554_s26 }
0x4319   :  { %v2908_v52 = vpop.permute.xlu1 %2907 }
0x431a   :  { %v2910_v54 = vmul.f32 %v2908_v52, %v2892_v45 }
0x431c   :  { %v7307_v29 = vpack.c.bf16 %v2910_v54, %v2910_v54  ;;  %v7357_v54 = vld [vmem:[%s7938_s6] ss:$0 sm:$0xff] }
0x431e   :  { %2925 = vrot.lane.b32.xlu0 %v7307_v29, %s6555_s27 }
0x4390   :  { %v2926_v1 = vpop.permute.xlu0 %2925 }
0x4391   :  { %5938 = vmatmul.mubr.msk.bf16.vlgmr.msra.gmra.mxu0 %vm115_vm1, %v2926_v1  ;;  %v1956_v1 = vadd.f32 %v7357_v54, %v7189_v56 }
0x4392   :  { %5953 = vmatprep.mubr.msk.bf16.mxu0 %vm6552_vm0, %v6551_v0  ;;  %5950 = vmatpush3.bf16.msra.mxu0 %v6210_v42 }
0x4393   :  { %5951 = vmatprep.subr.bf16.mxu0 %v6551_v0 }
0x4396   :  { %5952 = vmatpush3.bf16.msra.mxu0 %v6211_v55 }
0x4397   :  { %5965 = vmatprep.subr.bf16.mxu0 %v6551_v0 }
0x4451   :  { %v2976_v6 = vpop.f32.mrf.mxu0 }
0x4452   :  { %v2982_v12 = vadd.f32 %v2976_v6, %v1948_v3 }
0x4453   :  { %v5939_v51 = vpop.f32.mrf.mxu0 }
0x4454   :  { %6416 = vtanh.f32 %v2982_v12  ;;  %v2983_v25 = vmul.f32 0.5, %v2982_v12 }
0x4455   :  { %v2979_v17 = vpop.f32.mrf.mxu0 }
0x4456   :  { %6418 = vtanh.f32 %v2983_v25 }
0x4457   :  { %v5940_v9 = vpop.f32.mrf.mxu0 }
0x4461   :  { %v6417_v20 = vpop.eup %6416 }
0x4462   :  { %2990 = vrot.lane.b32.xlu1 %v6417_v20, %s6554_s26 }
0x4463   :  { %v6419_v23 = vpop.eup %6418 }
0x4464   :  { %v2985_v21 = vmul.f32 0.5, %v6419_v23 }
0x4466   :  { %v2986_v18 = vadd.f32 0.5, %v2985_v21 }
0x4468   :  { %v2988_v22 = vmul.f32 %v2986_v18, %v2904_v44 }
0x44d4   :  { %v2991_v16 = vpop.permute.xlu1 %2990 }
0x44d5   :  { %v2993_v57 = vmul.f32 %v2991_v16, %v2986_v18 }
0x44d7   :  { %2995 = vrot.lane.b32.xlu0 %v2993_v57, %s6555_s27 }
0x4549   :  { %v2996_v61 = vpop.permute.xlu0 %2995 }
0x454a   :  { %v2998_v49 = vadd.f32 %v2996_v61, %v2988_v22  ;;  %v6212_v61 = vld [vmem:[%s7937_s5 + $0x8] sm:$0xff]  }
0x454c   :  { %6420 = vtanh.f32 %v2998_v49 }
0x4559   :  { %v6421_v5 = vpop.eup %6420 }
0x455a   :  { %3001 = vrot.lane.b32.xlu1 %v6421_v5, %s6554_s26 }
0x45cc   :  { %v3002_v26 = vpop.permute.xlu1 %3001 }
0x45cd   :  { %v3004_v27 = vmul.f32 %v3002_v26, %v2986_v18 }
0x45cf   :  { %v7327_v28 = vpack.c.bf16 %v3004_v27, %v3004_v27 }
0x45d1   :  { %3019 = vrot.lane.b32.xlu0 %v7327_v28, %s6555_s27 }
0x4643   :  { %v3020_v30 = vpop.permute.xlu0 %3019 }
0x4644   :  { %5946 = vmatmul.mubr.msk.bf16.vlgmr.msra.gmra.mxu1 %vm115_vm1, %v3020_v30  ;;  %v1959_v30 = vadd.f32 %v7357_v54, %v7193_v15 }
0x4645   :  { %5961 = vmatprep.mubr.msk.bf16.mxu1 %vm6552_vm0, %v6551_v0  ;;  %5958 = vmatpush3.bf16.msra.mxu1 %v6212_v61  ;;  %v6216_v61 = vld [vmem:[%s7939_s7 + $0x8] sm:$0xff]  }
0x4646   :  { %5959 = vmatprep.subr.bf16.mxu1 %v6551_v0 }
0x4704   :  { %v3070_v10 = vpop.f32.mrf.mxu1 }
0x4705   :  { %v3076_v60 = vadd.f32 %v3070_v10, %v1951_v35 }
0x4706   :  { %v5947_v38 = vpop.f32.mrf.mxu1 }
0x4707   :  { %6422 = vtanh.f32 %v3076_v60  ;;  %v3077_v59 = vmul.f32 0.5, %v3076_v60 }
0x4708   :  { %v3073_v58 = vpop.f32.mrf.mxu1 }
0x4709   :  { %6424 = vtanh.f32 %v3077_v59 }
0x470a   :  { %v5948_v62 = vpop.f32.mrf.mxu1 }
0x4714   :  { %v6423_v39 = vpop.eup %6422 }
0x4715   :  { %3084 = vrot.lane.b32.xlu1 %v6423_v39, %s6554_s26 }
0x4716   :  { %v6425_v40 = vpop.eup %6424 }
0x4717   :  { %v3079_v50 = vmul.f32 0.5, %v6425_v40 }
0x4719   :  { %v3080_v47 = vadd.f32 0.5, %v3079_v50 }
0x471b   :  { %v3082_v41 = vmul.f32 %v3080_v47, %v2998_v49  ;;  %v6213_v49 = vld [vmem:[%s7937_s5] sm:$0xff]  }
0x471c   :  { %5960 = vmatpush3.bf16.msra.mxu1 %v6213_v49  ;;  %v6220_v49 = vld [vmem:[%s7937_s5 + $0x8] sm:$0xff]  }
0x471d   :  { %5973 = vmatprep.subr.bf16.mxu1 %v6551_v0 }
0x4787   :  { %v3085_v45 = vpop.permute.xlu1 %3084 }
0x4788   :  { %v3087_v53 = vmul.f32 %v3085_v45, %v3080_v47 }
0x478a   :  { %3089 = vrot.lane.b32.xlu0 %v3087_v53, %s6555_s27 }
0x47fc   :  { %v3090_v34 = vpop.permute.xlu0 %3089 }
0x47fd   :  { %v3092_v19 = vadd.f32 %v3090_v34, %v3082_v41  ;;  %v6214_v34 = vld [vmem:[%s7937_s5 + $0x8] sm:$0xff]  }
0x47ff   :  { %6426 = vtanh.f32 %v3092_v19 }
0x480c   :  { %v6427_v44 = vpop.eup %6426 }
0x480d   :  { %3095 = vrot.lane.b32.xlu1 %v6427_v44, %s6554_s26 }
0x487f   :  { %v3096_v11 = vpop.permute.xlu1 %3095 }
0x4880   :  { %v3098_v46 = vmul.f32 %v3096_v11, %v3080_v47 }
0x4882   :  { %v7347_v48 = vpack.c.bf16 %v3098_v46, %v3098_v46 }
0x4884   :  { %3113 = vrot.lane.b32.xlu0 %v7347_v48, %s6555_s27 }
0x48f6   :  { %v3114_v52 = vpop.permute.xlu0 %3113 }
0x48f7   :  { %5954 = vmatmul.mubr.msk.bf16.vlgmr.msra.gmra.mxu0 %vm115_vm1, %v3114_v52  ;;  %v1964_v52 = vadd.f32 %v7357_v54, %v7187_v14 }
0x48f8   :  { %5969 = vmatprep.mubr.msk.bf16.mxu0 %vm6552_vm0, %v6551_v0  ;;  %5966 = vmatpush3.bf16.msra.mxu0 %v6214_v34 }
0x48f9   :  { %5967 = vmatprep.subr.bf16.mxu0 %v6551_v0 }
0x49b7   :  { %v3164_v3 = vpop.f32.mrf.mxu0 }
0x49b8   :  { %v3170_v6 = vadd.f32 %v3164_v3, %v1956_v1 }
0x49b9   :  { %v5955_v12 = vpop.f32.mrf.mxu0 }
0x49ba   :  { %6428 = vtanh.f32 %v3170_v6  ;;  %v3171_v20 = vmul.f32 0.5, %v3170_v6 }
0x49bb   :  { %v3167_v51 = vpop.f32.mrf.mxu0 }
0x49bc   :  { %6430 = vtanh.f32 %v3171_v20 }
0x49bd   :  { %v5956_v17 = vpop.f32.mrf.mxu0 }
0x49c7   :  { %v6429_v9 = vpop.eup %6428 }
0x49c8   :  { %3178 = vrot.lane.b32.xlu1 %v6429_v9, %s6554_s26 }
0x49c9   :  { %v6431_v25 = vpop.eup %6430 }
0x49ca   :  { %v3173_v23 = vmul.f32 0.5, %v6431_v25 }
0x49cc   :  { %v3174_v21 = vadd.f32 0.5, %v3173_v23 }
0x49ce   :  { %v3176_v57 = vmul.f32 %v3174_v21, %v3092_v19  ;;  %v6215_v19 = vld [vmem:[%s7937_s5] sm:$0xff]  }
0x49cf   :  { %5968 = vmatpush3.bf16.msra.mxu0 %v6215_v19 }
0x49d0   :  { %5981 = vmatprep.subr.bf16.mxu0 %v6216_v61 }
0x4a3a   :  { %v3179_v18 = vpop.permute.xlu1 %3178 }
0x4a3b   :  { %v3181_v16 = vmul.f32 %v3179_v18, %v3174_v21 }
0x4a3d   :  { %3183 = vrot.lane.b32.xlu0 %v3181_v16, %s6555_s27 }
0x4aaf   :  { %v3184_v56 = vpop.permute.xlu0 %3183 }
0x4ab0   :  { %v3186_v22 = vadd.f32 %v3184_v56, %v3176_v57 }
0x4ab2   :  { %6432 = vtanh.f32 %v3186_v22 }
0x4abf   :  { %v6433_v13 = vpop.eup %6432 }
0x4ac0   :  { %3189 = vrot.lane.b32.xlu1 %v6433_v13, %s6554_s26  ;;  %v6221_v13 = vld [vmem:[%s7937_s5] sm:$0xff]  }
0x4b32   :  { %v3190_v24 = vpop.permute.xlu1 %3189 }
0x4b33   :  { %v3192_v5 = vmul.f32 %v3190_v24, %v3174_v21 }
0x4b35   :  { %v7372_v26 = vpack.c.bf16 %v3192_v5, %v3192_v5 }
0x4b37   :  { %3207 = vrot.lane.b32.xlu0 %v7372_v26, %s6555_s27 }
0x4ba9   :  { %v3208_v27 = vpop.permute.xlu0 %3207 }
0x4baa   :  { %5962 = vmatmul.mubr.msk.bf16.vlgmr.msra.gmra.mxu1 %vm115_vm1, %v3208_v27 }
0x4bab   :  { %5977 = vmatprep.mubr.msk.bf16.mxu1 %vm6552_vm0, %v6551_v0  ;;  %5974 = vmatpush3.bf16.msra.mxu1 %v6220_v49 }
0x4bac   :  { %5975 = vmatprep.subr.bf16.mxu1 %v6551_v0 }
0x4baf   :  { %5976 = vmatpush3.bf16.msra.mxu1 %v6221_v13 }
0x4bb0   :  { %6001 = vmatprep.subr.bf16.mxu1 %v6551_v0 }
0x4c6a   :  { %v3258_v35 = vpop.f32.mrf.mxu1 }
0x4c6b   :  { %v3264_v10 = vadd.f32 %v3258_v35, %v1959_v30 }
0x4c6c   :  { %v5963_v60 = vpop.f32.mrf.mxu1 }
0x4c6d   :  { %6434 = vtanh.f32 %v3264_v10  ;;  %v3265_v39 = vmul.f32 0.5, %v3264_v10  ;;  %v6222_v10 = vld [vmem:[%s7940_s8 + $0x8] sm:$0xff]  }
0x4c6e   :  { %v3261_v38 = vpop.f32.mrf.mxu1 }
0x4c6f   :  { %6436 = vtanh.f32 %v3265_v39  ;;  %v6223_v38 = vld [vmem:[%s7940_s8] sm:$0xff]  }
0x4c70   :  { %v5964_v58 = vpop.f32.mrf.mxu1 }
0x4c71   :  { %v1967_v58 = vadd.f32 %v7357_v54, %v7191_v31 }
0x4c7a   :  { %v6435_v62 = vpop.eup %6434 }
0x4c7b   :  { %3272 = vrot.lane.b32.xlu1 %v6435_v62, %s6554_s26 }
0x4c7c   :  { %v6437_v59 = vpop.eup %6436 }
0x4c7d   :  { %v3267_v40 = vmul.f32 0.5, %v6437_v59 }
0x4c7f   :  { %v3268_v50 = vadd.f32 0.5, %v3267_v40 }
0x4c81   :  { %v3270_v53 = vmul.f32 %v3268_v50, %v3186_v22 }
0x4ced   :  { %v3273_v47 = vpop.permute.xlu1 %3272 }
0x4cee   :  { %v3275_v45 = vmul.f32 %v3273_v47, %v3268_v50 }
0x4cf0   :  { %3277 = vrot.lane.b32.xlu0 %v3275_v45, %s6555_s27  ;;  %v7460_v45 = vld [vmem:[%s7941_s9] ss:$0 sm:$0xff] }
0x4d62   :  { %v3278_v15 = vpop.permute.xlu0 %3277 }
0x4d63   :  { %v3280_v41 = vadd.f32 %v3278_v15, %v3270_v53 }
0x4d65   :  { %6438 = vtanh.f32 %v3280_v41 }
0x4d72   :  { %v6439_v42 = vpop.eup %6438 }
0x4d73   :  { %3283 = vrot.lane.b32.xlu1 %v6439_v42, %s6554_s26 }
0x4de5   :  { %v3284_v55 = vpop.permute.xlu1 %3283 }
0x4de6   :  { %v3286_v44 = vmul.f32 %v3284_v55, %v3268_v50 }
0x4de8   :  { %v7391_v11 = vpack.c.bf16 %v3286_v44, %v3286_v44 }
0x4dea   :  { %3301 = vrot.lane.b32.xlu0 %v7391_v11, %s6555_s27 }
0x4e5c   :  { %v3302_v46 = vpop.permute.xlu0 %3301 }
0x4e5d   :  { %5970 = vmatmul.mubr.msk.bf16.vlgmr.msra.gmra.mxu0 %vm115_vm1, %v3302_v46 }
0x4e5e   :  { %5982 = vmatpush3.bf16.msra.mxu0 %v6216_v61 }
0x4f1d   :  { %v3352_v1 = vpop.f32.mrf.mxu0 }
0x4f1e   :  { %v3358_v3 = vadd.f32 %v3352_v1, %v1964_v52 }
0x4f1f   :  { %v5971_v6 = vpop.f32.mrf.mxu0 }
0x4f20   :  { %6440 = vtanh.f32 %v3358_v3  ;;  %v3359_v9 = vmul.f32 0.5, %v3358_v3 }
0x4f21   :  { %v3355_v12 = vpop.f32.mrf.mxu0 }
0x4f22   :  { %6442 = vtanh.f32 %v3359_v9 }
0x4f23   :  { %v5972_v51 = vpop.f32.mrf.mxu0 }
0x4f24   :  { %v6224_v51 = vld [vmem:[%s7940_s8 + $0x8] sm:$0xff]  }
0x4f2d   :  { %v6441_v17 = vpop.eup %6440 }
0x4f2e   :  { %3366 = vrot.lane.b32.xlu1 %v6441_v17, %s6554_s26  ;;  %v6225_v17 = vld [vmem:[%s7940_s8] sm:$0xff]  }
0x4f2f   :  { %v6443_v20 = vpop.eup %6442 }
0x4f30   :  { %v3361_v25 = vmul.f32 0.5, %v6443_v20 }
0x4f32   :  { %v3362_v23 = vadd.f32 0.5, %v3361_v25 }
0x4f34   :  { %v3364_v14 = vmul.f32 %v3362_v23, %v3280_v41 }
0x4fa0   :  { %v3367_v21 = vpop.permute.xlu1 %3366 }
0x4fa1   :  { %v3369_v18 = vmul.f32 %v3367_v21, %v3362_v23 }
0x4fa3   :  { %3371 = vrot.lane.b32.xlu0 %v3369_v18, %s6555_s27 }
0x4fa7   :  { %2070 = vrot.lane.b32.xlu0 %v7051_v8, %s6555_s27  ;;  %v6217_v8 = vld [vmem:[%s7939_s7] sm:$0xff]  }
0x4fa8   :  { %5983 = vmatprep.subr.bf16.mxu0 %v6217_v8 }
0x4fa9   :  { %5984 = vmatpush3.bf16.msra.mxu0 %v6217_v8 }
0x4faa   :  { %6033 = vmatprep.subr.bf16.mxu0 %v6551_v0 }
0x4fab   :  { %2257 = vrot.lane.b32.xlu0 %v7098_v32, %s6555_s27 }
0x5015   :  { %v3372_v16 = vpop.permute.xlu0 %3371 }
0x5016   :  { %v7404_v57 = vadd.f32 %v3372_v16, %v3364_v14 }
0x5018   :  { %6444 = vtanh.f32 %v7404_v57 }
0x5019   :  { %v2071_v56 = vpop.permute.xlu0 %2070 }
0x501a   :  { %2073 = vst.msk [vmem:[#allocation4] sm:$0xf] %vm343_vm2, %v2071_v56 }
0x501d   :  { %v2258_v22 = vpop.permute.xlu0 %2257 }
0x501e   :  { %2261 = vst.msk [vmem:[#allocation4 + $0x8] sm:$0xf] %vm343_vm2, %v2258_v22 }
0x5025   :  { %v6445_v32 = vpop.eup %6444 }
0x5026   :  { %3377 = vrot.lane.b32.xlu1 %v6445_v32, %s6554_s26 }
0x502a   :  { %2163 = vrot.lane.b32.xlu1 %v7072_v37, %s6555_s27 }
0x502e   :  { %2351 = vrot.lane.b32.xlu1 %v7154_v43, %s6555_s27 }
0x5098   :  { %v3378_v37 = vpop.permute.xlu1 %3377 }
0x5099   :  { %v3380_v24 = vmul.f32 %v3378_v37, %v3362_v23 }
0x509b   :  { %v7429_v5 = vpack.c.bf16 %v3380_v24, %v3380_v24 }
0x509c   :  { %v2164_v27 = vpop.permute.xlu1 %2163 }
0x509d   :  { %2167 = vst.msk [vmem:[#allocation4 + $0x4] sm:$0xf] %vm343_vm2, %v2164_v27  ;;  %3395 = vrot.lane.b32.xlu0 %v7429_v5, %s6555_s27 }
0x50a0   :  { %v2352_v30 = vpop.permute.xlu1 %2351 }
0x50a1   :  { %2355 = vst.msk [vmem:[#allocation4 + $0xc] sm:$0xf] %vm343_vm2, %v2352_v30 }
0x50a4   :  { %v6218_v35 = vld [vmem:[#allocation4] sm:$0xff]  }
0x50a5   :  { %5985 = vmatprep.mubr.msk.bf16.mxu0 %vm115_vm1, %v6218_v35 }
0x50a8   :  { %v6219_v43 = vld [vmem:[#allocation4 + $0x8] sm:$0xff]  }
0x50a9   :  { %5986 = vmatmul.mubr.msk.bf16.vlgmr.msra.gmra.mxu0 %vm115_vm1, %v6219_v43 }
0x510f   :  { %v3396_v60 = vpop.permute.xlu0 %3395 }
0x5110   :  { %5978 = vmatmul.mubr.msk.bf16.vlgmr.msra.gmra.mxu1 %vm115_vm1, %v3396_v60 }
0x5111   :  { %6002 = vmatpush3.bf16.msra.mxu1 %v6222_v10  ;;  %6005 = vmatprep.mubr.msk.bf16.mxu1 %vm6552_vm0, %v6551_v0 }
0x5112   :  { %6003 = vmatprep.subr.bf16.mxu1 %v6551_v0 }
0x5115   :  { %6004 = vmatpush3.bf16.msra.mxu1 %v6223_v38  ;;  %v6226_v38 = vld [vmem:[%s7940_s8 + $0x8] sm:$0xff]  }
0x5116   :  { %6009 = vmatprep.subr.bf16.mxu1 %v6551_v0 }
0x5118   :  { %6006 = vmatmul.mubr.bf16.vlgmr.msra.gmra.mxu1 %v6553_v7 }
0x5119   :  { %6013 = vmatprep.mubr.msk.bf16.mxu1 %vm6552_vm0, %v6551_v0  ;;  %6010 = vmatpush3.bf16.msra.mxu1 %v6224_v51  ;;  %v6229_v51 = vld [vmem:[%s7940_s8] sm:$0xff]  }
0x511a   :  { %6011 = vmatprep.subr.bf16.mxu1 %v6551_v0 }
0x511d   :  { %6012 = vmatpush3.bf16.msra.mxu1 %v6225_v17 }
0x511e   :  { %6017 = vmatprep.subr.bf16.mxu1 %v6551_v0 }
0x5169   :  { %v7453_v62 = vpop.f32.mrf.mxu0 }
0x516b   :  { %v3621_v50 = vpop.f32.mrf.mxu0 }
0x516c   :  { %v3622_v53 = vadd.f32 %v7460_v45, %v3621_v50 }
0x516d   :  { %v7481_v18 = vpop.f32.mrf.mxu0 }
0x516f   :  { %v3624_v14 = vpop.f32.mrf.mxu0 }
0x5170   :  { %v3625_v16 = vadd.f32 %v7460_v45, %v3624_v14 }
0x51d0   :  { %v3446_v39 = vpop.f32.mrf.mxu1 }
0x51d1   :  { %v7455_v59 = vadd.f32 %v3446_v39, %v1967_v58  ;;  %v6227_v58 = vld [vmem:[%s7940_s8] sm:$0xff]  }
0x51d2   :  { %v5979_v40 = vpop.f32.mrf.mxu1 }
0x51d4   :  { %v3449_v47 = vpop.f32.mrf.mxu1 }
0x51d6   :  { %v5980_v7 = vpop.f32.mrf.mxu1 }
0x51d8   :  { %v3751_v15 = vpop.f32.mrf.mxu1 }
0x51d9   :  { %v3757_v41 = vadd.f32 %v3751_v15, %v3622_v53  ;;  %v3630_v53 = vadd.f32 %v7453_v62, %v7460_v45 }
0x51da   :  { %v6007_v34 = vpop.f32.mrf.mxu1 }
0x51db   :  { %6446 = vtanh.f32 %v3757_v41  ;;  %v3758_v42 = vmul.f32 0.5, %v3757_v41 }
0x51dc   :  { %v3754_v31 = vpop.f32.mrf.mxu1 }
0x51dd   :  { %6448 = vtanh.f32 %v3758_v42 }
0x51de   :  { %v6008_v54 = vpop.f32.mrf.mxu1 }
0x51e8   :  { %v6447_v19 = vpop.eup %6446 }
0x51e9   :  { %3765 = vrot.lane.b32.xlu1 %v6447_v19, %s6554_s26 }
0x51ea   :  { %v6449_v55 = vpop.eup %6448 }
0x51eb   :  { %v3760_v44 = vmul.f32 0.5, %v6449_v55 }
0x51ed   :  { %v3761_v46 = vadd.f32 0.5, %v3760_v44 }
0x51ef   :  { %v3763_v3 = vmul.f32 0.0, %v3761_v46 }
0x525b   :  { %v3766_v52 = vpop.permute.xlu1 %3765 }
0x525c   :  { %v3768_v1 = vmul.f32 %v3766_v52, %v3761_v46 }
0x525e   :  { %3770 = vrot.lane.b32.xlu0 %v3768_v1, %s6555_s27 }
0x52d0   :  { %v3771_v6 = vpop.permute.xlu0 %3770 }
0x52d1   :  { %v3773_v12 = vadd.f32 %v3771_v6, %v3763_v3 }
0x52d3   :  { %6450 = vtanh.f32 %v3773_v12 }
0x52e0   :  { %v6451_v9 = vpop.eup %6450 }
0x52e1   :  { %3776 = vrot.lane.b32.xlu1 %v6451_v9, %s6554_s26 }
0x5353   :  { %v3777_v20 = vpop.permute.xlu1 %3776 }
0x5354   :  { %v3779_v25 = vmul.f32 %v3777_v20, %v3761_v46  ;;  %v3453_v20 = vmul.f32 0.5, %v7455_v59 }
0x5356   :  { %v7474_v23 = vpack.c.bf16 %v3779_v25, %v3779_v25 }
0x5358   :  { %3793 = vrot.lane.b32.xlu0 %v7474_v23, %s6555_s27 }
0x53ca   :  { %v3794_v21 = vpop.permute.xlu0 %3793 }
0x53cb   :  { %6014 = vmatmul.mubr.msk.bf16.vlgmr.msra.gmra.mxu1 %vm115_vm1, %v3794_v21 }
0x53cc   :  { %6021 = vmatprep.mubr.msk.bf16.mxu1 %vm6552_vm0, %v6551_v0  ;;  %6018 = vmatpush3.bf16.msra.mxu1 %v6226_v38 }
0x53cd   :  { %6019 = vmatprep.subr.bf16.mxu1 %v6551_v0 }
0x53d0   :  { %6020 = vmatpush3.bf16.msra.mxu1 %v6227_v58 }
0x53d1   :  { %6025 = vmatprep.subr.bf16.mxu1 %v6551_v0 }
0x548b   :  { %v3844_v56 = vpop.f32.mrf.mxu1 }
0x548c   :  { %v3850_v22 = vadd.f32 %v3844_v56, %v3625_v16 }
0x548d   :  { %v6015_v61 = vpop.f32.mrf.mxu1 }
0x548e   :  { %6452 = vtanh.f32 %v3850_v22  ;;  %v3851_v13 = vmul.f32 0.5, %v3850_v22 }
0x548f   :  { %v3847_v8 = vpop.f32.mrf.mxu1 }
0x5490   :  { %6454 = vtanh.f32 %v3851_v13 }
0x5491   :  { %v6016_v32 = vpop.f32.mrf.mxu1 }
0x549b   :  { %v6453_v49 = vpop.eup %6452 }
0x549c   :  { %3858 = vrot.lane.b32.xlu1 %v6453_v49, %s6554_s26 }
0x549d   :  { %v6455_v37 = vpop.eup %6454 }
0x549e   :  { %v3853_v24 = vmul.f32 0.5, %v6455_v37 }
0x54a0   :  { %v3854_v27 = vadd.f32 0.5, %v3853_v24 }
0x54a2   :  { %v3856_v43 = vmul.f32 %v3854_v27, %v3773_v12  ;;  %v6228_v12 = vld [vmem:[%s7940_s8 + $0x8] sm:$0xff]  }
0x550e   :  { %v3859_v30 = vpop.permute.xlu1 %3858 }
0x550f   :  { %v3861_v35 = vmul.f32 %v3859_v30, %v3854_v27 }
0x5511   :  { %3863 = vrot.lane.b32.xlu0 %v3861_v35, %s6555_s27 }
0x5583   :  { %v3864_v10 = vpop.permute.xlu0 %3863 }
0x5584   :  { %v3866_v60 = vadd.f32 %v3864_v10, %v3856_v43 }
0x5586   :  { %6456 = vtanh.f32 %v3866_v60 }
0x5593   :  { %v6457_v39 = vpop.eup %6456 }
0x5594   :  { %3869 = vrot.lane.b32.xlu1 %v6457_v39, %s6554_s26 }
0x5606   :  { %v3870_v40 = vpop.permute.xlu1 %3869 }
0x5607   :  { %v3872_v50 = vmul.f32 %v3870_v40, %v3854_v27 }
0x5609   :  { %v7495_v47 = vpack.c.bf16 %v3872_v50, %v3872_v50 }
0x560b   :  { %3887 = vrot.lane.b32.xlu0 %v7495_v47, %s6555_s27 }
0x567d   :  { %v3888_v7 = vpop.permute.xlu0 %3887 }
0x567e   :  { %6022 = vmatmul.mubr.msk.bf16.vlgmr.msra.gmra.mxu1 %vm115_vm1, %v3888_v7 }
0x567f   :  { %6029 = vmatprep.mubr.msk.bf16.mxu1 %vm6552_vm0, %v6551_v0  ;;  %6026 = vmatpush3.bf16.msra.mxu1 %v6228_v12 }
0x5680   :  { %6027 = vmatprep.subr.bf16.mxu1 %v6551_v0 }
0x5683   :  { %6028 = vmatpush3.bf16.msra.mxu1 %v6229_v51 }
0x5684   :  { %6041 = vmatprep.subr.bf16.mxu1 %v6551_v0 }
0x573e   :  { %v3938_v15 = vpop.f32.mrf.mxu1 }
0x573f   :  { %v3944_v41 = vadd.f32 %v3938_v15, %v3630_v53 }
0x5740   :  { %v6023_v34 = vpop.f32.mrf.mxu1 }
0x5741   :  { %6458 = vtanh.f32 %v3944_v41  ;;  %v3945_v42 = vmul.f32 0.5, %v3944_v41 }
0x5742   :  { %v3941_v31 = vpop.f32.mrf.mxu1 }
0x5743   :  { %6460 = vtanh.f32 %v3945_v42  ;;  %v6236_v31 = vld [vmem:[%s7940_s8 + $0x8] sm:$0xff]  }
0x5744   :  { %v6024_v54 = vpop.f32.mrf.mxu1  ;;  %6034 = vmatpush3.bf16.msra.mxu0 %v6236_v31 }
0x5745   :  { %6035 = vmatprep.subr.bf16.mxu0 %v6551_v0 }
0x574e   :  { %v6459_v19 = vpop.eup %6458 }
0x574f   :  { %3952 = vrot.lane.b32.xlu1 %v6459_v19, %s6554_s26 }
0x5750   :  { %v6461_v55 = vpop.eup %6460 }
0x5751   :  { %v3947_v44 = vmul.f32 0.5, %v6461_v55 }
0x5753   :  { %v3948_v46 = vadd.f32 0.5, %v3947_v44 }
0x5755   :  { %v3950_v3 = vmul.f32 %v3948_v46, %v3866_v60 }
0x57c1   :  { %v3953_v52 = vpop.permute.xlu1 %3952 }
0x57c2   :  { %v3955_v1 = vmul.f32 %v3953_v52, %v3948_v46 }
0x57c4   :  { %3957 = vrot.lane.b32.xlu0 %v3955_v1, %s6555_s27 }
0x5836   :  { %v3958_v62 = vpop.permute.xlu0 %3957 }
0x5837   :  { %v7506_v6 = vadd.f32 %v3958_v62, %v3950_v3 }
0x5839   :  { %6462 = vtanh.f32 %v7506_v6 }
0x583a   :  { %6464 = vtanh.f32 %v7455_v59 }
0x583b   :  { %6466 = vtanh.f32 %v3453_v20 }
0x5846   :  { %v6463_v17 = vpop.eup %6462 }
0x5847   :  { %3963 = vrot.lane.b32.xlu1 %v6463_v17, %s6554_s26  ;;  %v6465_v9 = vpop.eup %6464 }
0x5848   :  { %v6467_v25 = vpop.eup %6466 }
0x5849   :  { %v3455_v21 = vmul.f32 0.5, %v6467_v25 }
0x584b   :  { %3460 = vrot.lane.b32.xlu1 %v6465_v9, %s6554_s26  ;;  %v3456_v22 = vadd.f32 0.5, %v3455_v21 }
0x584d   :  { %v3458_v59 = vmul.f32 %v3456_v22, %v7404_v57 }
0x58b9   :  { %v3964_v14 = vpop.permute.xlu1 %3963 }
0x58ba   :  { %v3966_v16 = vmul.f32 %v3964_v14, %v3948_v46 }
0x58bc   :  { %v7521_v56 = vpack.c.bf16 %v3966_v16, %v3966_v16 }
0x58bd   :  { %v3461_v61 = vpop.permute.xlu1 %3460 }
0x58be   :  { %v3463_v8 = vmul.f32 %v3461_v61, %v3456_v22  ;;  %3981 = vrot.lane.b32.xlu0 %v7521_v56, %s6555_s27 }
0x58c0   :  { %3465 = vrot.lane.b32.xlu1 %v3463_v8, %s6555_s27 }
0x5930   :  { %v3982_v32 = vpop.permute.xlu0 %3981 }
0x5931   :  { %6030 = vmatmul.mubr.msk.bf16.vlgmr.msra.gmra.mxu1 %vm115_vm1, %v3982_v32 }
0x5932   :  { %v3466_v49 = vpop.permute.xlu1 %3465  ;;  %6045 = vmatprep.mubr.msk.bf16.mxu1 %vm6552_vm0, %v6551_v0 }
0x5933   :  { %v3468_v13 = vadd.f32 %v3466_v49, %v3458_v59 }
0x5935   :  { %6468 = vtanh.f32 %v3468_v13 }
0x5942   :  { %v6469_v37 = vpop.eup %6468 }
0x5943   :  { %3471 = vrot.lane.b32.xlu1 %v6469_v37, %s6554_s26 }
0x5947   :  { %2445 = vrot.lane.b32.xlu1 %v7208_v63, %s6555_s27 }
0x594b   :  { %2633 = vrot.lane.b32.xlu1 %v7247_v36, %s6555_s27 }
0x594f   :  { %2821 = vrot.lane.b32.xlu1 %v7287_v33, %s6555_s27 }
0x5953   :  { %3009 = vrot.lane.b32.xlu1 %v7327_v28, %s6555_s27 }
0x5957   :  { %3197 = vrot.lane.b32.xlu1 %v7372_v26, %s6555_s27 }
0x595b   :  { %3385 = vrot.lane.b32.xlu1 %v7429_v5, %s6555_s27  ;;  %v3633_v5 = vadd.f32 %v7481_v18, %v7460_v45 }
0x59b5   :  { %v3472_v57 = vpop.permute.xlu1 %3471 }
0x59b6   :  { %v3474_v34 = vmul.f32 %v3472_v57, %v3456_v22 }
0x59b8   :  { %v5494_v54 = vpack.c.bf16 %v3474_v34, %v3474_v34 }
0x59b9   :  { %v2446_v24 = vpop.permute.xlu1 %2445 }
0x59ba   :  { %2449 = vst.msk [vmem:[#allocation4 + $0x10] sm:$0xf] %vm343_vm2, %v2446_v24 }
0x59bd   :  { %v2634_v63 = vpop.permute.xlu1 %2633 }
0x59be   :  { %2637 = vst.msk [vmem:[#allocation4 + $0x18] sm:$0xf] %vm343_vm2, %v2634_v63 }
0x59c1   :  { %v2822_v36 = vpop.permute.xlu1 %2821 }
0x59c2   :  { %2825 = vst.msk [vmem:[#allocation4 + $0x20] sm:$0xf] %vm343_vm2, %v2822_v36 }
0x59c5   :  { %v3010_v33 = vpop.permute.xlu1 %3009 }
0x59c6   :  { %3013 = vst.msk [vmem:[#allocation4 + $0x28] sm:$0xf] %vm343_vm2, %v3010_v33 }
0x59c9   :  { %v3198_v28 = vpop.permute.xlu1 %3197 }
0x59ca   :  { %3201 = vst.msk [vmem:[#allocation4 + $0x30] sm:$0xf] %vm343_vm2, %v3198_v28 }
0x59cd   :  { %v3386_v26 = vpop.permute.xlu1 %3385 }
0x59ce   :  { %3389 = vst.msk [vmem:[#allocation4 + $0x38] sm:$0xf] %vm343_vm2, %v3386_v26 }
0x59f1   :  { %v4032_v27 = vpop.f32.mrf.mxu1 }
0x59f2   :  { %v4038_v30 = vadd.f32 %v4032_v27, %v3633_v5 }
0x59f3   :  { %v6031_v35 = vpop.f32.mrf.mxu1 }
0x59f4   :  { %6470 = vtanh.f32 %v4038_v30  ;;  %v4039_v38 = vmul.f32 0.5, %v4038_v30 }
0x59f5   :  { %v4035_v43 = vpop.f32.mrf.mxu1 }
0x59f6   :  { %6472 = vtanh.f32 %v4039_v38  ;;  %v6239_v38 = vld [vmem:[%s7940_s8] sm:$0xff]  }
0x59f7   :  { %v6032_v10 = vpop.f32.mrf.mxu1 }
0x5a01   :  { %v6471_v60 = vpop.eup %6470 }
0x5a02   :  { %4046 = vrot.lane.b32.xlu0 %v6471_v60, %s6554_s26  ;;  %v6238_v60 = vld [vmem:[%s7940_s8 + $0x8] sm:$0xff]  }
0x5a03   :  { %v6473_v58 = vpop.eup %6472  ;;  %6042 = vmatpush3.bf16.msra.mxu1 %v6238_v60 }
0x5a04   :  { %v4041_v39 = vmul.f32 0.5, %v6473_v58  ;;  %6043 = vmatprep.subr.bf16.mxu1 %v6551_v0 }
0x5a06   :  { %v4042_v40 = vadd.f32 0.5, %v4041_v39 }
0x5a07   :  { %6044 = vmatpush3.bf16.msra.mxu1 %v6239_v38 }
0x5a08   :  { %v4044_v18 = vmul.f32 %v4042_v40, %v7506_v6  ;;  %6057 = vmatprep.subr.bf16.mxu1 %v6551_v0 }
0x5a74   :  { %v4047_v50 = vpop.permute.xlu0 %4046 }
0x5a75   :  { %v4049_v7 = vmul.f32 %v4047_v50, %v4042_v40 }
0x5a77   :  { %4051 = vrot.lane.b32.xlu0 %v4049_v7, %s6555_s27 }
0x5ae9   :  { %v4052_v53 = vpop.permute.xlu0 %4051 }
0x5aea   :  { %v7554_v15 = vadd.f32 %v4052_v53, %v4044_v18 }
0x5aec   :  { %6474 = vtanh.f32 %v7554_v15 }
0x5af9   :  { %v6475_v41 = vpop.eup %6474 }
0x5afa   :  { %4057 = vrot.lane.b32.xlu0 %v6475_v41, %s6554_s26 }
0x5afe   :  { %2539 = vrot.lane.b32.xlu0 %v7227_v4, %s6555_s27  ;;  %v6237_v4 = vld [vmem:[%s7940_s8] sm:$0xff]  }
0x5aff   :  { %6036 = vmatpush3.bf16.msra.mxu0 %v6237_v4 }
0x5b00   :  { %6049 = vmatprep.subr.bf16.mxu0 %v6551_v0 }
0x5b02   :  { %2727 = vrot.lane.b32.xlu0 %v7267_v2, %s6555_s27 }
0x5b06   :  { %2915 = vrot.lane.b32.xlu0 %v7307_v29, %s6555_s27 }
0x5b0a   :  { %3103 = vrot.lane.b32.xlu0 %v7347_v48, %s6555_s27 }
0x5b0e   :  { %3291 = vrot.lane.b32.xlu0 %v7391_v11, %s6555_s27 }
0x5b12   :  { %3479 = vrot.lane.b32.xlu0 %v5494_v54, %s6555_s27 }
0x5b6c   :  { %v4058_v2 = vpop.permute.xlu0 %4057 }
0x5b6d   :  { %v4060_v29 = vmul.f32 %v4058_v2, %v4042_v40 }
0x5b6f   :  { %v7577_v48 = vpack.c.bf16 %v4060_v29, %v4060_v29 }
0x5b70   :  { %v2540_v11 = vpop.permute.xlu0 %2539 }
0x5b71   :  { %2543 = vst.msk [vmem:[#allocation4 + $0x14] sm:$0xf] %vm343_vm2, %v2540_v11  ;;  %4075 = vrot.lane.b32.xlu1 %v7577_v48, %s6555_s27 }
0x5b74   :  { %v2728_v19 = vpop.permute.xlu0 %2727 }
0x5b75   :  { %2731 = vst.msk [vmem:[#allocation4 + $0x1c] sm:$0xf] %vm343_vm2, %v2728_v19 }
0x5b78   :  { %v2916_v42 = vpop.permute.xlu0 %2915  ;;  %v6230_v55 = vld [vmem:[#allocation4 + $0x10] sm:$0xff]  }
0x5b79   :  { %2919 = vst.msk [vmem:[#allocation4 + $0x24] sm:$0xf] %vm343_vm2, %v2916_v42  ;;  %5989 = vmatprep.mubr.msk.bf16.mxu0 %vm115_vm1, %v6230_v55 }
0x5b7c   :  { %v3104_v44 = vpop.permute.xlu0 %3103  ;;  %v6231_v46 = vld [vmem:[#allocation4 + $0x18] sm:$0xff]  }
0x5b7d   :  { %3107 = vst.msk [vmem:[#allocation4 + $0x2c] sm:$0xf] %vm343_vm2, %v3104_v44  ;;  %5990 = vmatmul.mubr.msk.bf16.gmra.mxu0 %vm115_vm1, %v6231_v46 }
0x5b80   :  { %v3292_v52 = vpop.permute.xlu0 %3291  ;;  %v6232_v1 = vld [vmem:[#allocation4 + $0x20] sm:$0xff]  }
0x5b81   :  { %3295 = vst.msk [vmem:[#allocation4 + $0x34] sm:$0xf] %vm343_vm2, %v3292_v52  ;;  %5993 = vmatprep.mubr.msk.bf16.mxu0 %vm115_vm1, %v6232_v1  ;;  %v6240_v52 = vld [vmem:[%s7940_s8 + $0x8] sm:$0xff]   ;;  %v6241_v1 = vld [vmem:[%s7940_s8] sm:$0xff]  }
0x5b84   :  { %v3480_v3 = vpop.permute.xlu0 %3479  ;;  %v6233_v62 = vld [vmem:[#allocation4 + $0x28] sm:$0xff]  }
0x5b85   :  { %3483 = vst.msk [vmem:[#allocation4 + $0x3c] sm:$0xf] %vm343_vm2, %v3480_v3  ;;  %5994 = vmatmul.mubr.msk.bf16.gmra.mxu0 %vm115_vm1, %v6233_v62 }
0x5b88   :  { %v6234_v6 = vld [vmem:[#allocation4 + $0x30] sm:$0xff]  }
0x5b89   :  { %5997 = vmatprep.mubr.msk.bf16.mxu0 %vm115_vm1, %v6234_v6 }
0x5b8c   :  { %v6235_v12 = vld [vmem:[#allocation4 + $0x38] sm:$0xff]  }
0x5b8d   :  { %5998 = vmatmul.mubr.msk.bf16.gmra.mxu0 %vm115_vm1, %v6235_v12 }
0x5b8e   :  { %6037 = vmatprep.mubr.msk.bf16.mxu0 %vm6552_vm0, %v6551_v0 }
0x5be3   :  { %v4076_v51 = vpop.permute.xlu1 %4075 }
0x5be4   :  { %6038 = vmatmul.mubr.msk.bf16.vlgmr.msra.gmra.mxu0 %vm115_vm1, %v4076_v51 }
0x5be5   :  { %6053 = vmatprep.mubr.msk.bf16.mxu0 %vm6552_vm0, %v6551_v0  ;;  %6050 = vmatpush3.bf16.msra.mxu0 %v6240_v52 }
0x5be6   :  { %6051 = vmatprep.subr.bf16.mxu0 %v6551_v0 }
0x5be9   :  { %6052 = vmatpush3.bf16.msra.mxu0 %v6241_v1 }
0x5bea   :  { %6065 = vmatprep.subr.bf16.mxu0 %v6551_v0 }
0x5c3d   :  { %v7598_v17 = vpop.f32.mrf.mxu0 }
0x5c3f   :  { %v3637_v9 = vpop.f32.mrf.mxu0 }
0x5c40   :  { %v3638_v49 = vadd.f32 %v7460_v45, %v3637_v9  ;;  %v3646_v9 = vadd.f32 %v7598_v17, %v7460_v45 }
0x5c41   :  { %v7600_v20 = vpop.f32.mrf.mxu0 }
0x5c43   :  { %v3640_v25 = vpop.f32.mrf.mxu0 }
0x5c44   :  { %v3641_v18 = vadd.f32 %v7460_v45, %v3640_v25 }
0x5c45   :  { %v7602_v21 = vpop.f32.mrf.mxu0 }
0x5c47   :  { %v7604_v14 = vpop.f32.mrf.mxu0 }
0x5c49   :  { %v7606_v16 = vpop.f32.mrf.mxu0 }
0x5c4b   :  { %v7608_v22 = vpop.f32.mrf.mxu0 }
0x5c4d   :  { %v7610_v61 = vpop.f32.mrf.mxu0 }
0x5c4f   :  { %v7612_v8 = vpop.f32.mrf.mxu0 }
0x5c51   :  { %v7614_v32 = vpop.f32.mrf.mxu0 }
0x5c53   :  { %v7616_v59 = vpop.f32.mrf.mxu0 }
0x5ca4   :  { %v4126_v13 = vpop.f32.mrf.mxu0 }
0x5ca5   :  { %v4132_v37 = vadd.f32 %v4126_v13, %v3638_v49 }
0x5ca6   :  { %v6039_v57 = vpop.f32.mrf.mxu0 }
0x5ca7   :  { %6476 = vtanh.f32 %v4132_v37  ;;  %v4133_v33 = vmul.f32 0.5, %v4132_v37 }
0x5ca8   :  { %v4129_v24 = vpop.f32.mrf.mxu0 }
0x5ca9   :  { %6478 = vtanh.f32 %v4133_v33 }
0x5caa   :  { %v6040_v63 = vpop.f32.mrf.mxu0 }
0x5cb4   :  { %v6477_v36 = vpop.eup %6476 }
0x5cb5   :  { %4140 = vrot.lane.b32.xlu0 %v6477_v36, %s6554_s26 }
0x5cb6   :  { %v6479_v28 = vpop.eup %6478 }
0x5cb7   :  { %v4135_v26 = vmul.f32 0.5, %v6479_v28 }
0x5cb9   :  { %v4136_v5 = vadd.f32 0.5, %v4135_v26 }
0x5cbb   :  { %v4138_v35 = vmul.f32 %v4136_v5, %v7554_v15 }
0x5d27   :  { %v4141_v27 = vpop.permute.xlu0 %4140 }
0x5d28   :  { %v4143_v30 = vmul.f32 %v4141_v27, %v4136_v5 }
0x5d2a   :  { %4145 = vrot.lane.b32.xlu1 %v4143_v30, %s6555_s27 }
0x5d9c   :  { %v4146_v43 = vpop.permute.xlu1 %4145 }
0x5d9d   :  { %v4148_v10 = vadd.f32 %v4146_v43, %v4138_v35  ;;  %v6242_v35 = vld [vmem:[%s7940_s8 + $0x8] sm:$0xff]   ;;  %v6243_v43 = vld [vmem:[%s7940_s8] sm:$0xff]  }
0x5d9f   :  { %6480 = vtanh.f32 %v4148_v10 }
0x5dac   :  { %v6481_v58 = vpop.eup %6480 }
0x5dad   :  { %4151 = vrot.lane.b32.xlu0 %v6481_v58, %s6554_s26 }
0x5e1f   :  { %v4152_v39 = vpop.permute.xlu0 %4151 }
0x5e20   :  { %v4154_v40 = vmul.f32 %v4152_v39, %v4136_v5 }
0x5e22   :  { %v7631_v50 = vpack.c.bf16 %v4154_v40, %v4154_v40  ;;  %v3649_v40 = vadd.f32 %v7600_v20, %v7460_v45 }
0x5e24   :  { %4169 = vrot.lane.b32.xlu1 %v7631_v50, %s6555_s27 }
0x5e96   :  { %v4170_v7 = vpop.permute.xlu1 %4169 }
0x5e97   :  { %6046 = vmatmul.mubr.msk.bf16.vlgmr.msra.gmra.mxu1 %vm115_vm1, %v4170_v7 }
0x5e98   :  { %6061 = vmatprep.mubr.msk.bf16.mxu1 %vm6552_vm0, %v6551_v0  ;;  %6058 = vmatpush3.bf16.msra.mxu1 %v6242_v35 }
0x5e99   :  { %6059 = vmatprep.subr.bf16.mxu1 %v6551_v0 }
0x5e9c   :  { %6060 = vmatpush3.bf16.msra.mxu1 %v6243_v43 }
0x5e9d   :  { %6073 = vmatprep.subr.bf16.mxu1 %v6551_v0 }
0x5f57   :  { %v4220_v53 = vpop.f32.mrf.mxu1 }
0x5f58   :  { %v4226_v15 = vadd.f32 %v4220_v53, %v3641_v18 }
0x5f59   :  { %v6047_v41 = vpop.f32.mrf.mxu1 }
0x5f5a   :  { %6482 = vtanh.f32 %v4226_v15  ;;  %v4227_v4 = vmul.f32 0.5, %v4226_v15 }
0x5f5b   :  { %v4223_v34 = vpop.f32.mrf.mxu1 }
0x5f5c   :  { %6484 = vtanh.f32 %v4227_v4 }
0x5f5d   :  { %v6048_v31 = vpop.f32.mrf.mxu1 }
0x5f67   :  { %v6483_v54 = vpop.eup %6482 }
0x5f68   :  { %4234 = vrot.lane.b32.xlu0 %v6483_v54, %s6554_s26 }
0x5f69   :  { %v6485_v2 = vpop.eup %6484 }
0x5f6a   :  { %v4229_v29 = vmul.f32 0.5, %v6485_v2 }
0x5f6c   :  { %v4230_v11 = vadd.f32 0.5, %v4229_v29 }
0x5f6e   :  { %v4232_v55 = vmul.f32 %v4230_v11, %v4148_v10 }
0x5fda   :  { %v4235_v19 = vpop.permute.xlu0 %4234 }
0x5fdb   :  { %v4237_v42 = vmul.f32 %v4235_v19, %v4230_v11 }
0x5fdd   :  { %4239 = vrot.lane.b32.xlu1 %v4237_v42, %s6555_s27 }
0x604f   :  { %v4240_v44 = vpop.permute.xlu1 %4239 }
0x6050   :  { %v4242_v46 = vadd.f32 %v4240_v44, %v4232_v55  ;;  %v6244_v55 = vld [vmem:[%s7940_s8 + $0x8] sm:$0xff]   ;;  %v6245_v44 = vld [vmem:[%s7940_s8] sm:$0xff]  }
0x6052   :  { %6486 = vtanh.f32 %v4242_v46 }
0x605f   :  { %v6487_v3 = vpop.eup %6486 }
0x6060   :  { %4245 = vrot.lane.b32.xlu0 %v6487_v3, %s6554_s26 }
0x60d2   :  { %v4246_v62 = vpop.permute.xlu0 %4245 }
0x60d3   :  { %v4248_v6 = vmul.f32 %v4246_v62, %v4230_v11 }
0x60d5   :  { %v7650_v12 = vpack.c.bf16 %v4248_v6, %v4248_v6  ;;  %v3654_v6 = vadd.f32 %v7460_v45, %v7604_v14 }
0x60d7   :  { %4263 = vrot.lane.b32.xlu1 %v7650_v12, %s6555_s27 }
0x6149   :  { %v4264_v51 = vpop.permute.xlu1 %4263 }
0x614a   :  { %6054 = vmatmul.mubr.msk.bf16.vlgmr.msra.gmra.mxu0 %vm115_vm1, %v4264_v51 }
0x614b   :  { %6069 = vmatprep.mubr.msk.bf16.mxu0 %vm6552_vm0, %v6551_v0  ;;  %6066 = vmatpush3.bf16.msra.mxu0 %v6244_v55 }
0x614c   :  { %6067 = vmatprep.subr.bf16.mxu0 %v6551_v0 }
0x614f   :  { %6068 = vmatpush3.bf16.msra.mxu0 %v6245_v44 }
0x6150   :  { %6081 = vmatprep.subr.bf16.mxu0 %v6551_v0 }
0x620a   :  { %v4314_v25 = vpop.f32.mrf.mxu0 }
0x620b   :  { %v4320_v49 = vadd.f32 %v4314_v25, %v3646_v9 }
0x620c   :  { %v6055_v13 = vpop.f32.mrf.mxu0 }
0x620d   :  { %6488 = vtanh.f32 %v4320_v49  ;;  %v4321_v63 = vmul.f32 0.5, %v4320_v49 }
0x620e   :  { %v4317_v37 = vpop.f32.mrf.mxu0 }
0x620f   :  { %6490 = vtanh.f32 %v4321_v63 }
0x6210   :  { %v6056_v57 = vpop.f32.mrf.mxu0 }
0x621a   :  { %v6489_v24 = vpop.eup %6488 }
0x621b   :  { %4328 = vrot.lane.b32.xlu0 %v6489_v24, %s6554_s26 }
0x621c   :  { %v6491_v36 = vpop.eup %6490 }
0x621d   :  { %v4323_v33 = vmul.f32 0.5, %v6491_v36 }
0x621f   :  { %v4324_v28 = vadd.f32 0.5, %v4323_v33 }
0x6221   :  { %v4326_v27 = vmul.f32 %v4324_v28, %v4242_v46 }
0x628d   :  { %v4329_v26 = vpop.permute.xlu0 %4328 }
0x628e   :  { %v4331_v5 = vmul.f32 %v4329_v26, %v4324_v28 }
0x6290   :  { %4333 = vrot.lane.b32.xlu1 %v4331_v5, %s6555_s27 }
0x6302   :  { %v4334_v17 = vpop.permute.xlu1 %4333 }
0x6303   :  { %v4336_v30 = vadd.f32 %v4334_v17, %v4326_v27  ;;  %v6246_v27 = vld [vmem:[%s7940_s8 + $0x8] sm:$0xff]   ;;  %v6247_v17 = vld [vmem:[%s7940_s8] sm:$0xff]  }
0x6305   :  { %6492 = vtanh.f32 %v4336_v30 }
0x6312   :  { %v6493_v10 = vpop.eup %6492 }
0x6313   :  { %4339 = vrot.lane.b32.xlu0 %v6493_v10, %s6554_s26 }
0x6385   :  { %v4340_v60 = vpop.permute.xlu0 %4339 }
0x6386   :  { %v4342_v38 = vmul.f32 %v4340_v60, %v4324_v28 }
0x6388   :  { %v7670_v58 = vpack.c.bf16 %v4342_v38, %v4342_v38  ;;  %v3657_v38 = vadd.f32 %v7460_v45, %v7608_v22 }
0x638a   :  { %4357 = vrot.lane.b32.xlu1 %v7670_v58, %s6555_s27 }
0x63fc   :  { %v4358_v39 = vpop.permute.xlu1 %4357 }
0x63fd   :  { %6062 = vmatmul.mubr.msk.bf16.vlgmr.msra.gmra.mxu1 %vm115_vm1, %v4358_v39 }
0x63fe   :  { %6077 = vmatprep.mubr.msk.bf16.mxu1 %vm6552_vm0, %v6551_v0  ;;  %6074 = vmatpush3.bf16.msra.mxu1 %v6246_v27 }
0x63ff   :  { %6075 = vmatprep.subr.bf16.mxu1 %v6551_v0 }
0x6402   :  { %6076 = vmatpush3.bf16.msra.mxu1 %v6247_v17 }
0x6403   :  { %6089 = vmatprep.subr.bf16.mxu1 %v6551_v0 }
0x64bd   :  { %v4408_v7 = vpop.f32.mrf.mxu1 }
0x64be   :  { %v4414_v18 = vadd.f32 %v4408_v7, %v3649_v40 }
0x64bf   :  { %v6063_v53 = vpop.f32.mrf.mxu1 }
0x64c0   :  { %6494 = vtanh.f32 %v4414_v18  ;;  %v4415_v31 = vmul.f32 0.5, %v4414_v18 }
0x64c1   :  { %v4411_v15 = vpop.f32.mrf.mxu1 }
0x64c2   :  { %6496 = vtanh.f32 %v4415_v31 }
0x64c3   :  { %v6064_v41 = vpop.f32.mrf.mxu1 }
0x64cd   :  { %v6495_v34 = vpop.eup %6494 }
0x64ce   :  { %4422 = vrot.lane.b32.xlu0 %v6495_v34, %s6554_s26 }
0x64cf   :  { %v6497_v54 = vpop.eup %6496 }
0x64d0   :  { %v4417_v4 = vmul.f32 0.5, %v6497_v54 }
0x64d2   :  { %v4418_v2 = vadd.f32 0.5, %v4417_v4 }
0x64d4   :  { %v4420_v19 = vmul.f32 %v4418_v2, %v4336_v30 }
0x6540   :  { %v4423_v29 = vpop.permute.xlu0 %4422 }
0x6541   :  { %v4425_v11 = vmul.f32 %v4423_v29, %v4418_v2 }
0x6543   :  { %4427 = vrot.lane.b32.xlu1 %v4425_v11, %s6555_s27 }
0x65b5   :  { %v4428_v20 = vpop.permute.xlu1 %4427 }
0x65b6   :  { %v4430_v42 = vadd.f32 %v4428_v20, %v4420_v19  ;;  %v6248_v19 = vld [vmem:[%s7940_s8 + $0x8] sm:$0xff]   ;;  %v6249_v20 = vld [vmem:[%s7940_s8] sm:$0xff]  }
0x65b8   :  { %6498 = vtanh.f32 %v4430_v42 }
0x65c5   :  { %v6499_v46 = vpop.eup %6498 }
0x65c6   :  { %4433 = vrot.lane.b32.xlu0 %v6499_v46, %s6554_s26 }
0x6638   :  { %v4434_v52 = vpop.permute.xlu0 %4433 }
0x6639   :  { %v4436_v1 = vmul.f32 %v4434_v52, %v4418_v2 }
0x663b   :  { %v7690_v3 = vpack.c.bf16 %v4436_v1, %v4436_v1  ;;  %v3662_v1 = vadd.f32 %v7602_v21, %v7460_v45 }
0x663d   :  { %4451 = vrot.lane.b32.xlu1 %v7690_v3, %s6555_s27 }
0x66af   :  { %v4452_v62 = vpop.permute.xlu1 %4451 }
0x66b0   :  { %6070 = vmatmul.mubr.msk.bf16.vlgmr.msra.gmra.mxu0 %vm115_vm1, %v4452_v62 }
0x66b1   :  { %6085 = vmatprep.mubr.msk.bf16.mxu0 %vm6552_vm0, %v6551_v0  ;;  %6082 = vmatpush3.bf16.msra.mxu0 %v6248_v19 }
0x66b2   :  { %6083 = vmatprep.subr.bf16.mxu0 %v6551_v0 }
0x66b5   :  { %6084 = vmatpush3.bf16.msra.mxu0 %v6249_v20 }
0x66b6   :  { %6097 = vmatprep.subr.bf16.mxu0 %v6551_v0 }
0x6770   :  { %v4502_v51 = vpop.f32.mrf.mxu0 }
0x6771   :  { %v4508_v9 = vadd.f32 %v4502_v51, %v3654_v6 }
0x6772   :  { %v6071_v25 = vpop.f32.mrf.mxu0 }
0x6773   :  { %6500 = vtanh.f32 %v4508_v9  ;;  %v4509_v57 = vmul.f32 0.5, %v4508_v9 }
0x6774   :  { %v4505_v49 = vpop.f32.mrf.mxu0 }
0x6775   :  { %6502 = vtanh.f32 %v4509_v57 }
0x6776   :  { %v6072_v13 = vpop.f32.mrf.mxu0 }
0x6780   :  { %v6501_v37 = vpop.eup %6500 }
0x6781   :  { %4516 = vrot.lane.b32.xlu0 %v6501_v37, %s6554_s26 }
0x6782   :  { %v6503_v24 = vpop.eup %6502 }
0x6783   :  { %v4511_v63 = vmul.f32 0.5, %v6503_v24 }
0x6785   :  { %v4512_v36 = vadd.f32 0.5, %v4511_v63 }
0x6787   :  { %v4514_v26 = vmul.f32 %v4512_v36, %v4430_v42 }
0x67f3   :  { %v4517_v33 = vpop.permute.xlu0 %4516 }
0x67f4   :  { %v4519_v28 = vmul.f32 %v4517_v33, %v4512_v36 }
0x67f6   :  { %4521 = vrot.lane.b32.xlu1 %v4519_v28, %s6555_s27 }
0x6868   :  { %v4522_v14 = vpop.permute.xlu1 %4521 }
0x6869   :  { %v4524_v5 = vadd.f32 %v4522_v14, %v4514_v26  ;;  %v6250_v26 = vld [vmem:[%s7940_s8 + $0x8] sm:$0xff]   ;;  %v6251_v14 = vld [vmem:[%s7940_s8] sm:$0xff]  }
0x686b   :  { %6504 = vtanh.f32 %v4524_v5 }
0x6878   :  { %v6505_v30 = vpop.eup %6504 }
0x6879   :  { %4527 = vrot.lane.b32.xlu0 %v6505_v30, %s6554_s26 }
0x68eb   :  { %v4528_v35 = vpop.permute.xlu0 %4527 }
0x68ec   :  { %v4530_v43 = vmul.f32 %v4528_v35, %v4512_v36 }
0x68ee   :  { %v7710_v10 = vpack.c.bf16 %v4530_v43, %v4530_v43  ;;  %v3665_v43 = vadd.f32 %v7606_v16, %v7460_v45 }
0x68f0   :  { %4545 = vrot.lane.b32.xlu1 %v7710_v10, %s6555_s27 }
0x6962   :  { %v4546_v60 = vpop.permute.xlu1 %4545 }
0x6963   :  { %6078 = vmatmul.mubr.msk.bf16.vlgmr.msra.gmra.mxu1 %vm115_vm1, %v4546_v60 }
0x6964   :  { %6093 = vmatprep.mubr.msk.bf16.mxu1 %vm6552_vm0, %v6551_v0  ;;  %6090 = vmatpush3.bf16.msra.mxu1 %v6250_v26 }
0x6965   :  { %6091 = vmatprep.subr.bf16.mxu1 %v6551_v0 }
0x6968   :  { %6092 = vmatpush3.bf16.msra.mxu1 %v6251_v14 }
0x6969   :  { %6105 = vmatprep.subr.bf16.mxu1 %v6551_v0 }
0x6a23   :  { %v4596_v39 = vpop.f32.mrf.mxu1 }
0x6a24   :  { %v4602_v40 = vadd.f32 %v4596_v39, %v3657_v38 }
0x6a25   :  { %v6079_v7 = vpop.f32.mrf.mxu1 }
0x6a26   :  { %6506 = vtanh.f32 %v4602_v40  ;;  %v4603_v41 = vmul.f32 0.5, %v4602_v40 }
0x6a27   :  { %v4599_v18 = vpop.f32.mrf.mxu1 }
0x6a28   :  { %6508 = vtanh.f32 %v4603_v41 }
0x6a29   :  { %v6080_v53 = vpop.f32.mrf.mxu1 }
0x6a33   :  { %v6507_v15 = vpop.eup %6506 }
0x6a34   :  { %4610 = vrot.lane.b32.xlu0 %v6507_v15, %s6554_s26 }
0x6a35   :  { %v6509_v34 = vpop.eup %6508 }
0x6a36   :  { %v4605_v31 = vmul.f32 0.5, %v6509_v34 }
0x6a38   :  { %v4606_v54 = vadd.f32 0.5, %v4605_v31 }
0x6a3a   :  { %v4608_v29 = vmul.f32 %v4606_v54, %v4524_v5 }
0x6aa6   :  { %v4611_v4 = vpop.permute.xlu0 %4610 }
0x6aa7   :  { %v4613_v2 = vmul.f32 %v4611_v4, %v4606_v54 }
0x6aa9   :  { %4615 = vrot.lane.b32.xlu1 %v4613_v2, %s6555_s27  ;;  %v6252_v2 = vld [vmem:[%s7940_s8 + $0x8] sm:$0xff]  }
0x6b1b   :  { %v4616_v22 = vpop.permute.xlu1 %4615 }
0x6b1c   :  { %v4618_v11 = vadd.f32 %v4616_v22, %v4608_v29  ;;  %v6253_v29 = vld [vmem:[%s7940_s8] sm:$0xff]  }
0x6b1e   :  { %6510 = vtanh.f32 %v4618_v11 }
0x6b2b   :  { %v6511_v42 = vpop.eup %6510 }
0x6b2c   :  { %4621 = vrot.lane.b32.xlu0 %v6511_v42, %s6554_s26 }
0x6b9e   :  { %v4622_v55 = vpop.permute.xlu0 %4621 }
0x6b9f   :  { %v4624_v44 = vmul.f32 %v4622_v55, %v4606_v54  ;;  %v7780_v55 = vld [vmem:[%s7941_s9] ss:$0 sm:$0xff] }
0x6ba1   :  { %v7730_v46 = vpack.c.bf16 %v4624_v44, %v4624_v44  ;;  %v3670_v44 = vadd.f32 %v7780_v55, %v7612_v8 }
0x6ba3   :  { %4639 = vrot.lane.b32.xlu1 %v7730_v46, %s6555_s27 }
0x6c15   :  { %v4640_v52 = vpop.permute.xlu1 %4639 }
0x6c16   :  { %6086 = vmatmul.mubr.msk.bf16.vlgmr.msra.gmra.mxu0 %vm115_vm1, %v4640_v52 }
0x6c17   :  { %6101 = vmatprep.mubr.msk.bf16.mxu0 %vm6552_vm0, %v6551_v0  ;;  %6098 = vmatpush3.bf16.msra.mxu0 %v6252_v2 }
0x6c18   :  { %6099 = vmatprep.subr.bf16.mxu0 %v6551_v0 }
0x6c1b   :  { %6100 = vmatpush3.bf16.msra.mxu0 %v6253_v29 }
0x6c1c   :  { %6113 = vmatprep.subr.bf16.mxu0 %v6551_v0 }
0x6cd6   :  { %v4690_v62 = vpop.f32.mrf.mxu0 }
0x6cd7   :  { %v4696_v6 = vadd.f32 %v4690_v62, %v3662_v1 }
0x6cd8   :  { %v6087_v51 = vpop.f32.mrf.mxu0 }
0x6cd9   :  { %6512 = vtanh.f32 %v4696_v6  ;;  %v4697_v13 = vmul.f32 0.5, %v4696_v6 }
0x6cda   :  { %v4693_v9 = vpop.f32.mrf.mxu0 }
0x6cdb   :  { %6514 = vtanh.f32 %v4697_v13 }
0x6cdc   :  { %v6088_v25 = vpop.f32.mrf.mxu0 }
0x6ce6   :  { %v6513_v49 = vpop.eup %6512 }
0x6ce7   :  { %4704 = vrot.lane.b32.xlu0 %v6513_v49, %s6554_s26 }
0x6ce8   :  { %v6515_v37 = vpop.eup %6514 }
0x6ce9   :  { %v4699_v57 = vmul.f32 0.5, %v6515_v37 }
0x6ceb   :  { %v4700_v24 = vadd.f32 0.5, %v4699_v57 }
0x6ced   :  { %v4702_v33 = vmul.f32 %v4700_v24, %v4618_v11 }
0x6d59   :  { %v4705_v63 = vpop.permute.xlu0 %4704 }
0x6d5a   :  { %v4707_v36 = vmul.f32 %v4705_v63, %v4700_v24 }
0x6d5c   :  { %4709 = vrot.lane.b32.xlu1 %v4707_v36, %s6555_s27 }
0x6dce   :  { %v4710_v21 = vpop.permute.xlu1 %4709 }
0x6dcf   :  { %v4712_v28 = vadd.f32 %v4710_v21, %v4702_v33  ;;  %v6254_v33 = vld [vmem:[%s7940_s8 + $0x8] sm:$0xff]   ;;  %v6255_v21 = vld [vmem:[%s7940_s8] sm:$0xff]  }
0x6dd1   :  { %6516 = vtanh.f32 %v4712_v28 }
0x6dde   :  { %v6517_v5 = vpop.eup %6516 }
0x6ddf   :  { %4715 = vrot.lane.b32.xlu0 %v6517_v5, %s6554_s26 }
0x6e51   :  { %v4716_v27 = vpop.permute.xlu0 %4715 }
0x6e52   :  { %v4718_v17 = vmul.f32 %v4716_v27, %v4700_v24 }
0x6e54   :  { %v7750_v30 = vpack.c.bf16 %v4718_v17, %v4718_v17  ;;  %v3673_v17 = vadd.f32 %v7780_v55, %v7616_v59 }
0x6e56   :  { %4733 = vrot.lane.b32.xlu1 %v7750_v30, %s6555_s27 }
0x6ec8   :  { %v4734_v35 = vpop.permute.xlu1 %4733 }
0x6ec9   :  { %6094 = vmatmul.mubr.msk.bf16.vlgmr.msra.gmra.mxu1 %vm115_vm1, %v4734_v35 }
0x6eca   :  { %6109 = vmatprep.mubr.msk.bf16.mxu1 %vm6552_vm0, %v6551_v0  ;;  %6106 = vmatpush3.bf16.msra.mxu1 %v6254_v33 }
0x6ecb   :  { %6107 = vmatprep.subr.bf16.mxu1 %v6551_v0 }
0x6ece   :  { %6108 = vmatpush3.bf16.msra.mxu1 %v6255_v21 }
0x6ecf   :  { %6121 = vmatprep.subr.bf16.mxu1 %v6551_v0 }
0x6f89   :  { %v4784_v60 = vpop.f32.mrf.mxu1 }
0x6f8a   :  { %v4790_v38 = vadd.f32 %v4784_v60, %v3665_v43 }
0x6f8b   :  { %v6095_v39 = vpop.f32.mrf.mxu1 }
0x6f8c   :  { %6518 = vtanh.f32 %v4790_v38  ;;  %v4791_v53 = vmul.f32 0.5, %v4790_v38 }
0x6f8d   :  { %v4787_v40 = vpop.f32.mrf.mxu1 }
0x6f8e   :  { %6520 = vtanh.f32 %v4791_v53 }
0x6f8f   :  { %v6096_v7 = vpop.f32.mrf.mxu1 }
0x6f99   :  { %v6519_v18 = vpop.eup %6518 }
0x6f9a   :  { %4798 = vrot.lane.b32.xlu0 %v6519_v18, %s6554_s26 }
0x6f9b   :  { %v6521_v15 = vpop.eup %6520 }
0x6f9c   :  { %v4793_v41 = vmul.f32 0.5, %v6521_v15 }
0x6f9e   :  { %v4794_v34 = vadd.f32 0.5, %v4793_v41 }
0x6fa0   :  { %v4796_v4 = vmul.f32 %v4794_v34, %v4712_v28 }
0x700c   :  { %v4799_v31 = vpop.permute.xlu0 %4798 }
0x700d   :  { %v4801_v54 = vmul.f32 %v4799_v31, %v4794_v34 }
0x700f   :  { %4803 = vrot.lane.b32.xlu1 %v4801_v54, %s6555_s27 }
0x7081   :  { %v4804_v45 = vpop.permute.xlu1 %4803 }
0x7082   :  { %v4806_v16 = vadd.f32 %v4804_v45, %v4796_v4  ;;  %v6256_v4 = vld [vmem:[%s7940_s8 + $0x8] sm:$0xff]   ;;  %v6257_v45 = vld [vmem:[%s7940_s8] sm:$0xff]  }
0x7084   :  { %6522 = vtanh.f32 %v4806_v16 }
0x7091   :  { %v6523_v22 = vpop.eup %6522 }
0x7092   :  { %4809 = vrot.lane.b32.xlu0 %v6523_v22, %s6554_s26 }
0x7104   :  { %v4810_v11 = vpop.permute.xlu0 %4809 }
0x7105   :  { %v4812_v19 = vmul.f32 %v4810_v11, %v4794_v34 }
0x7107   :  { %v7770_v20 = vpack.c.bf16 %v4812_v19, %v4812_v19  ;;  %v3678_v19 = vadd.f32 %v7780_v55, %v7610_v61 }
0x7109   :  { %4827 = vrot.lane.b32.xlu1 %v7770_v20, %s6555_s27 }
0x717b   :  { %v4828_v42 = vpop.permute.xlu1 %4827 }
0x717c   :  { %6102 = vmatmul.mubr.msk.bf16.vlgmr.msra.gmra.mxu0 %vm115_vm1, %v4828_v42 }
0x717d   :  { %6117 = vmatprep.mubr.msk.bf16.mxu0 %vm6552_vm0, %v6551_v0  ;;  %6114 = vmatpush3.bf16.msra.mxu0 %v6256_v4 }
0x717e   :  { %6115 = vmatprep.subr.bf16.mxu0 %v6551_v0 }
0x7181   :  { %6116 = vmatpush3.bf16.msra.mxu0 %v6257_v45 }
0x723c   :  { %v4878_v52 = vpop.f32.mrf.mxu0 }
0x723d   :  { %v4884_v1 = vadd.f32 %v4878_v52, %v3670_v44 }
0x723e   :  { %v6103_v62 = vpop.f32.mrf.mxu0 }
0x723f   :  { %6524 = vtanh.f32 %v4884_v1  ;;  %v4885_v25 = vmul.f32 0.5, %v4884_v1 }
0x7240   :  { %v4881_v6 = vpop.f32.mrf.mxu0 }
0x7241   :  { %6526 = vtanh.f32 %v4885_v25 }
0x7242   :  { %v6104_v51 = vpop.f32.mrf.mxu0 }
0x724c   :  { %v6525_v9 = vpop.eup %6524 }
0x724d   :  { %4892 = vrot.lane.b32.xlu0 %v6525_v9, %s6554_s26 }
0x724e   :  { %v6527_v49 = vpop.eup %6526 }
0x724f   :  { %v4887_v13 = vmul.f32 0.5, %v6527_v49 }
0x7251   :  { %v4888_v37 = vadd.f32 0.5, %v4887_v13 }
0x7253   :  { %v4890_v63 = vmul.f32 %v4888_v37, %v4806_v16 }
0x72bf   :  { %v4893_v57 = vpop.permute.xlu0 %4892 }
0x72c0   :  { %v4895_v24 = vmul.f32 %v4893_v57, %v4888_v37 }
0x72c2   :  { %4897 = vrot.lane.b32.xlu1 %v4895_v24, %s6555_s27 }
0x7334   :  { %v4898_v8 = vpop.permute.xlu1 %4897 }
0x7335   :  { %v4900_v36 = vadd.f32 %v4898_v8, %v4890_v63  ;;  %v6258_v63 = vld [vmem:[%s7940_s8 + $0x8] sm:$0xff]   ;;  %v6259_v8 = vld [vmem:[%s7940_s8] sm:$0xff]  }
0x7337   :  { %6528 = vtanh.f32 %v4900_v36 }
0x7344   :  { %v6529_v28 = vpop.eup %6528 }
0x7345   :  { %4903 = vrot.lane.b32.xlu0 %v6529_v28, %s6554_s26 }
0x73b7   :  { %v4904_v26 = vpop.permute.xlu0 %4903 }
0x73b8   :  { %v4906_v14 = vmul.f32 %v4904_v26, %v4888_v37 }
0x73ba   :  { %v7795_v5 = vpack.c.bf16 %v4906_v14, %v4906_v14  ;;  %v3681_v14 = vadd.f32 %v7780_v55, %v7614_v32 }
0x73bc   :  { %4921 = vrot.lane.b32.xlu1 %v7795_v5, %s6555_s27 }
0x742e   :  { %v4922_v27 = vpop.permute.xlu1 %4921 }
0x742f   :  { %6110 = vmatmul.mubr.msk.bf16.vlgmr.msra.gmra.mxu1 %vm115_vm1, %v4922_v27 }
0x7430   :  { %6125 = vmatprep.mubr.msk.bf16.mxu1 %vm6552_vm0, %v6551_v0  ;;  %6122 = vmatpush3.bf16.msra.mxu1 %v6258_v63 }
0x7431   :  { %6123 = vmatprep.subr.bf16.mxu1 %v6551_v0 }
0x7434   :  { %6124 = vmatpush3.bf16.msra.mxu1 %v6259_v8 }
0x74ef   :  { %v4972_v35 = vpop.f32.mrf.mxu1 }
0x74f0   :  { %v4978_v43 = vadd.f32 %v4972_v35, %v3673_v17 }
0x74f1   :  { %v6111_v60 = vpop.f32.mrf.mxu1 }
0x74f2   :  { %6530 = vtanh.f32 %v4978_v43  ;;  %v4979_v7 = vmul.f32 0.5, %v4978_v43 }
0x74f3   :  { %v4975_v38 = vpop.f32.mrf.mxu1 }
0x74f4   :  { %6532 = vtanh.f32 %v4979_v7 }
0x74f5   :  { %v6112_v39 = vpop.f32.mrf.mxu1 }
0x74ff   :  { %v6531_v40 = vpop.eup %6530 }
0x7500   :  { %4986 = vrot.lane.b32.xlu0 %v6531_v40, %s6554_s26 }
0x7501   :  { %v6533_v18 = vpop.eup %6532 }
0x7502   :  { %v4981_v53 = vmul.f32 0.5, %v6533_v18 }
0x7504   :  { %v4982_v15 = vadd.f32 0.5, %v4981_v53 }
0x7506   :  { %v4984_v31 = vmul.f32 %v4982_v15, %v4900_v36 }
0x7572   :  { %v4987_v41 = vpop.permute.xlu0 %4986 }
0x7573   :  { %v4989_v34 = vmul.f32 %v4987_v41, %v4982_v15 }
0x7575   :  { %4991 = vrot.lane.b32.xlu1 %v4989_v34, %s6555_s27 }
0x75e7   :  { %v4992_v59 = vpop.permute.xlu1 %4991 }
0x75e8   :  { %v4994_v54 = vadd.f32 %v4992_v59, %v4984_v31 }
0x75ea   :  { %6534 = vtanh.f32 %v4994_v54 }
0x75f7   :  { %v6535_v16 = vpop.eup %6534 }
0x75f8   :  { %4997 = vrot.lane.b32.xlu0 %v6535_v16, %s6554_s26 }
0x766a   :  { %v4998_v2 = vpop.permute.xlu0 %4997 }
0x766b   :  { %v5000_v29 = vmul.f32 %v4998_v2, %v4982_v15 }
0x766d   :  { %v7814_v22 = vpack.c.bf16 %v5000_v29, %v5000_v29 }
0x766f   :  { %5015 = vrot.lane.b32.xlu1 %v7814_v22, %s6555_s27 }
0x76e1   :  { %v5016_v11 = vpop.permute.xlu1 %5015 }
0x76e2   :  { %6118 = vmatmul.mubr.msk.bf16.vlgmr.msra.gmra.mxu0 %vm115_vm1, %v5016_v11 }
0x77a2   :  { %v5066_v42 = vpop.f32.mrf.mxu0 }
0x77a3   :  { %v5072_v44 = vadd.f32 %v5066_v42, %v3678_v19 }
0x77a4   :  { %v6119_v52 = vpop.f32.mrf.mxu0 }
0x77a5   :  { %6536 = vtanh.f32 %v5072_v44  ;;  %v5073_v51 = vmul.f32 0.5, %v5072_v44 }
0x77a6   :  { %v5069_v1 = vpop.f32.mrf.mxu0 }
0x77a7   :  { %6538 = vtanh.f32 %v5073_v51 }
0x77a8   :  { %v6120_v62 = vpop.f32.mrf.mxu0 }
0x77b2   :  { %v6537_v6 = vpop.eup %6536 }
0x77b3   :  { %5080 = vrot.lane.b32.xlu0 %v6537_v6, %s6554_s26 }
0x77b4   :  { %v6539_v9 = vpop.eup %6538 }
0x77b5   :  { %v5075_v25 = vmul.f32 0.5, %v6539_v9 }
0x77b7   :  { %v5076_v49 = vadd.f32 0.5, %v5075_v25 }
0x77b9   :  { %v5078_v57 = vmul.f32 %v5076_v49, %v4994_v54 }
0x7825   :  { %v5081_v13 = vpop.permute.xlu0 %5080 }
0x7826   :  { %v5083_v37 = vmul.f32 %v5081_v13, %v5076_v49 }
0x7828   :  { %5085 = vrot.lane.b32.xlu1 %v5083_v37, %s6555_s27 }
0x789a   :  { %v5086_v61 = vpop.permute.xlu1 %5085 }
0x789b   :  { %v5088_v24 = vadd.f32 %v5086_v61, %v5078_v57 }
0x789d   :  { %6540 = vtanh.f32 %v5088_v24 }
0x78aa   :  { %v6541_v36 = vpop.eup %6540 }
0x78ab   :  { %5091 = vrot.lane.b32.xlu0 %v6541_v36, %s6554_s26 }
0x791d   :  { %v5092_v33 = vpop.permute.xlu0 %5091 }
0x791e   :  { %v5094_v21 = vmul.f32 %v5092_v33, %v5076_v49 }
0x7920   :  { %v5095_v28 = vpack.c.bf16 %v5094_v21, %v5094_v21 }
0x7922   :  { %5109 = vrot.lane.b32.xlu1 %v5095_v28, %s6555_s27 }
0x7994   :  { %v5110_v26 = vpop.permute.xlu1 %5109 }
0x7995   :  { %6126 = vmatmul.mubr.msk.bf16.vlgmr.msra.gmra.mxu1 %vm115_vm1, %v5110_v26 }
0x7a55   :  { %v5160_v27 = vpop.f32.mrf.mxu1 }
0x7a56   :  { %v5166_v17 = vadd.f32 %v5160_v27, %v3681_v14 }
0x7a57   :  { %v6127_v35 = vpop.f32.mrf.mxu1 }
0x7a58   :  { %6542 = vtanh.f32 %v5166_v17  ;;  %v5167_v38 = vmul.f32 0.5, %v5166_v17 }
0x7a59   :  { %v5163_v0 = vpop.f32.mrf.mxu1 }
0x7a5a   :  { %6544 = vtanh.f32 %v5167_v38 }
0x7a5b   :  { %v6128_v43 = vpop.f32.mrf.mxu1 }
0x7a65   :  { %v6543_v60 = vpop.eup %6542 }
0x7a66   :  { %5174 = vrot.lane.b32.xlu0 %v6543_v60, %s6554_s26 }
0x7a67   :  { %v6545_v39 = vpop.eup %6544 }
0x7a68   :  { %v5169_v40 = vmul.f32 0.5, %v6545_v39 }
0x7a6a   :  { %v5170_v7 = vadd.f32 0.5, %v5169_v40 }
0x7ad8   :  { %v5175_v18 = vpop.permute.xlu0 %5174 }
0x7ad9   :  { %v5177_v53 = vmul.f32 %v5175_v18, %v5170_v7 }
0x7adb   :  { %5179 = vrot.lane.b32.xlu1 %v5177_v53, %s6555_s27 }
0x7adf   :  { %3784 = vrot.lane.b32.xlu1 %v7474_v23, %s6555_s27  ;;  %v5172_v23 = vmul.f32 %v5170_v7, %v5088_v24 }
0x7ae3   :  { %3971 = vrot.lane.b32.xlu1 %v7521_v56, %s6555_s27 }
0x7ae7   :  { %4159 = vrot.lane.b32.xlu1 %v7631_v50, %s6555_s27 }
0x7aeb   :  { %4347 = vrot.lane.b32.xlu1 %v7670_v58, %s6555_s27 }
0x7aef   :  { %4535 = vrot.lane.b32.xlu1 %v7710_v10, %s6555_s27 }
0x7af3   :  { %4723 = vrot.lane.b32.xlu1 %v7750_v30, %s6555_s27 }
0x7af7   :  { %4911 = vrot.lane.b32.xlu1 %v7795_v5, %s6555_s27 }
0x7afb   :  { %5099 = vrot.lane.b32.xlu1 %v5095_v28, %s6555_s27 }
0x7b4d   :  { %v5180_v32 = vpop.permute.xlu1 %5179 }
0x7b4e   :  { %v5182_v56 = vadd.f32 %v5180_v32, %v5172_v23 }
0x7b50   :  { %6546 = vtanh.f32 %v5182_v56 }
0x7b51   :  { %v3785_v55 = vpop.permute.xlu1 %3784 }
0x7b52   :  { %3787 = vst.msk [vmem:[%s7942_s10] sm:$0xf] %vm343_vm2, %v3785_v55 }
0x7b55   :  { %v3972_v50 = vpop.permute.xlu1 %3971 }
0x7b56   :  { %5397 = vst.msk [vmem:[%s7942_s10 + $0x8] sm:$0xf] %vm343_vm2, %v3972_v50 }
0x7b59   :  { %v4160_v58 = vpop.permute.xlu1 %4159 }
0x7b5a   :  { %5407 = vst.msk [vmem:[%s7942_s10 + $0x10] sm:$0xf] %vm343_vm2, %v4160_v58 }
0x7b5d   :  { %v6547_v10 = vpop.eup %6546  ;;  %v4348_v30 = vpop.permute.xlu1 %4347 }
0x7b5e   :  { %5417 = vst.msk [vmem:[%s7942_s10 + $0x18] sm:$0xf] %vm343_vm2, %v4348_v30  ;;  %5185 = vrot.lane.b32.xlu0 %v6547_v10, %s6554_s26 }
0x7b61   :  { %v4536_v5 = vpop.permute.xlu1 %4535 }
0x7b62   :  { %5427 = vst.msk [vmem:[%s7942_s10 + $0x20] sm:$0xf] %vm343_vm2, %v4536_v5  ;;  %3877 = vrot.lane.b32.xlu0 %v7495_v47, %s6555_s27 }
0x7b65   :  { %v4724_v15 = vpop.permute.xlu1 %4723 }
0x7b66   :  { %5437 = vst.msk [vmem:[%s7942_s10 + $0x28] sm:$0xf] %vm343_vm2, %v4724_v15  ;;  %4065 = vrot.lane.b32.xlu0 %v7577_v48, %s6555_s27 }
0x7b69   :  { %v4912_v41 = vpop.permute.xlu1 %4911 }
0x7b6a   :  { %5447 = vst.msk [vmem:[%s7942_s10 + $0x30] sm:$0xf] %vm343_vm2, %v4912_v41  ;;  %4253 = vrot.lane.b32.xlu0 %v7650_v12, %s6555_s27 }
0x7b6d   :  { %v5100_v34 = vpop.permute.xlu1 %5099 }
0x7b6e   :  { %5457 = vst.msk [vmem:[%s7942_s10 + $0x38] sm:$0xf] %vm343_vm2, %v5100_v34  ;;  %4441 = vrot.lane.b32.xlu0 %v7690_v3, %s6555_s27 }
0x7b72   :  { %4629 = vrot.lane.b32.xlu0 %v7730_v46, %s6555_s27 }
0x7b76   :  { %4817 = vrot.lane.b32.xlu0 %v7770_v20, %s6555_s27 }
0x7b7a   :  { %5005 = vrot.lane.b32.xlu0 %v7814_v22, %s6555_s27 }
0x7bd0   :  { %v5186_v47 = vpop.permute.xlu0 %5185 }
0x7bd1   :  { %v5188_v48 = vmul.f32 %v5186_v47, %v5170_v7 }
0x7bd3   :  { %v5510_v12 = vpack.c.bf16 %v5188_v48, %v5188_v48 }
0x7bd4   :  { %v3878_v31 = vpop.permute.xlu0 %3877 }
0x7bd5   :  { %5392 = vst.msk [vmem:[%s7942_s10 + $0x4] sm:$0xf] %vm343_vm2, %v3878_v31  ;;  %5193 = vrot.lane.b32.xlu0 %v5510_v12, %s6555_s27 }
0x7bd8   :  { %v4066_v3 = vpop.permute.xlu0 %4065 }
0x7bd9   :  { %5402 = vst.msk [vmem:[%s7942_s10 + $0xc] sm:$0xf] %vm343_vm2, %v4066_v3 }
0x7bdc   :  { %v4254_v46 = vpop.permute.xlu0 %4253 }
0x7bdd   :  { %5412 = vst.msk [vmem:[%s7942_s10 + $0x14] sm:$0xf] %vm343_vm2, %v4254_v46 }
0x7be0   :  { %v4442_v20 = vpop.permute.xlu0 %4441 }
0x7be1   :  { %5422 = vst.msk [vmem:[%s7942_s10 + $0x1c] sm:$0xf] %vm343_vm2, %v4442_v20 }
0x7be4   :  { %v4630_v59 = vpop.permute.xlu0 %4629 }
0x7be5   :  { %5432 = vst.msk [vmem:[%s7942_s10 + $0x24] sm:$0xf] %vm343_vm2, %v4630_v59 }
0x7be8   :  { %v4818_v54 = vpop.permute.xlu0 %4817 }
0x7be9   :  { %5442 = vst.msk [vmem:[%s7942_s10 + $0x2c] sm:$0xf] %vm343_vm2, %v4818_v54 }
0x7bec   :  { %v5006_v4 = vpop.permute.xlu0 %5005 }
0x7bed   :  { %5452 = vst.msk [vmem:[%s7942_s10 + $0x34] sm:$0xf] %vm343_vm2, %v5006_v4 }
0x7c47   :  { %v5194_v45 = vpop.permute.xlu0 %5193 }
0x7c48   :  { %5462 = vst.msk [vmem:[%s7942_s10 + $0x3c] sm:$0xf] %vm343_vm2, %v5194_v45 }

</bundles_post_ra>
